<compile_context>
chip_gen: v7x
topology: tpu7x:2x2x1
jax: 0.10.0
libtpu: 0.0.40
codegen_flags: <defaults>
</compile_context>

<pallas_src>
import functools
import math

import jax
import jax.numpy as jnp
from jax.experimental import pallas as pl
from jax.experimental.pallas import tpu as pltpu


# ----------------------------------------------------------------------------
# Fused Pallas kernel: edge CNN + residual + clamp + 4-direction propagate
# ----------------------------------------------------------------------------
def _edge_refine_kernel(H, W,
                        x_ref, w1_ref, b1_ref, w2_ref, b2_ref, w3_ref, b3_ref,
                        d_ref, o_ref, s1, s2, acc, dscr):
    """Processes one batch element.

    "Flat padded" layout: a zero-padded (C, H+2, W+2) map flattened over the last two
    axes (+2 trailing zeros so every 3x3 tap slice stays in bounds). A tap (kh, kw) is
    then a contiguous lane slice of length Lo = H*(W+2) starting at kh*(W+2)+kw.
    Output positions p = h*(W+2)+w; columns w in {W, W+1} are junk and pinned to 0.
    """
    Wp = W + 2
    Lo = H * Wp

    col = jax.lax.broadcasted_iota(jnp.int32, (1, Lo), 1) % Wp
    valid = col < W                                    # masks the junk columns

    def conv3x3(load, w_ref, b_ref):
        cout = w_ref.shape[1]
        acc[0:cout, :] = jnp.zeros((cout, Lo), jnp.float32)
        for t in range(9):                             # statically unrolled taps
            off = (t // 3) * Wp + (t % 3)
            acc[0:cout, :] += jnp.dot(w_ref[t], load(off),
                                      preferred_element_type=jnp.float32)
        return acc[0:cout, :] + b_ref[...]

    def relu_repad(h, scratch):
        # ReLU + write back into the padded-flat layout with zeroed borders/junk.
        scratch[...] = jnp.zeros_like(scratch)
        h = jnp.where(valid, jnp.maximum(h, 0.0), 0.0)
        scratch[:, pl.ds(Wp + 1, Lo)] = h.astype(scratch.dtype)

    # conv1: input = [edges, img, zero channels] in padded-flat layout (f32 in HBM).
    h = conv3x3(lambda off: x_ref[0, :, pl.ds(off, Lo)].astype(jnp.bfloat16),
                w1_ref, b1_ref)
    relu_repad(h, s1)

    # conv2
    h = conv3x3(lambda off: s1[:, pl.ds(off, Lo)], w2_ref, b2_ref)
    relu_repad(h, s2)

    # edge predictor + residual(edges) + clamp
    ew = conv3x3(lambda off: s2[:, pl.ds(off, Lo)], w3_ref, b3_ref)
    edges = x_ref[0, 0:1, pl.ds(Wp + 1, Lo)]           # edges[h,w] aligned with output p
    ew = jnp.clip(ew + edges, 0.0, 1.0)
    ew = jnp.where(valid, ew, 0.0)                     # weights = 0 on junk columns

    # propagate: 4 sequential directional blends.  Shifted neighbours are read from a
    # zero-margined VMEM scratch, so boundary pixels blend with 0 exactly as in the
    # reference (cat-with-zeros + crop).  Junk columns of d stay 0 because their
    # blend weights are 0.
    d = jnp.where(valid, d_ref[0], 0.0)
    dscr[...] = jnp.zeros_like(dscr)
    # (read offset rel. to scratch base Wp, direction-weight row, normalizer row)
    steps = ((Wp - 1, 0, 4),   # cur[h,w] = d[h, w-1]   (dlr, nlr)
             (Wp + 1, 1, 5),   # cur[h,w] = d[h, w+1]   (drl, nrl)
             (0,      2, 6),   # cur[h,w] = d[h-1, w]   (dud, nud)
             (2 * Wp, 3, 7))   # cur[h,w] = d[h+1, w]   (ddu, ndu)
    for off, iw, inw in steps:
        wgt = ew[iw:iw + 1, :] * ew[inw:inw + 1, :]
        dscr[:, pl.ds(Wp, Lo)] = d
        cur = dscr[:, pl.ds(off, Lo)]
        d = cur * wgt + d * (1.0 - wgt)
    o_ref[0] = d


# ----------------------------------------------------------------------------
# TED substitute (glue): Sobel gradient magnitude, normalized to [0, 1]
# ----------------------------------------------------------------------------
def _sobel_edge_map(img):
    g = jnp.mean(img, axis=1, keepdims=True)
    _, _, H, W = g.shape
    gp = jnp.pad(g, ((0, 0), (0, 0), (1, 1), (1, 1)))
    kx = jnp.array([[-1., 0., 1.], [-2., 0., 2.], [-1., 0., 1.]], jnp.float32)
    ky = jnp.array([[-1., -2., -1.], [0., 0., 0.], [1., 2., 1.]], jnp.float32)
    gx = jnp.zeros_like(g)
    gy = jnp.zeros_like(g)
    for kh in range(3):
        for kw in range(3):
            win = gp[:, :, kh:kh + H, kw:kw + W]
            gx = gx + kx[kh, kw] * win
            gy = gy + ky[kh, kw] * win
    mag = jnp.sqrt(gx * gx + gy * gy)
    return (mag - jnp.min(mag)) / (jnp.max(mag) - jnp.min(mag) + 1e-12)


# ----------------------------------------------------------------------------
# Forward (JAX glue around the single fused Pallas kernel)
# ----------------------------------------------------------------------------
def refinenet_forward(params, img, depth_init, depth_min, depth_max):
    del depth_min, depth_max          # accepted (PyTorch signature) but unused by forward
    B, _, H, W = img.shape
    Wp = W + 2
    Lo = H * Wp                       # flat length of the output/valid region
    Lp = (H + 2) * Wp + 2             # flat length of padded inputs (+2 tap slack)
    CIN1 = 8                          # 4 real input channels zero-padded to 8 sublanes

    edges = _sobel_edge_map(img)                                        # (B,1,H,W)
    x4 = jnp.concatenate([edges, img], axis=1)                          # (B,4,H,W)
    x4 = jnp.pad(x4, ((0, 0), (0, CIN1 - 4), (0, 0), (0, 0)))           # -> 8 channels
    x4p = jnp.pad(x4, ((0, 0), (0, 0), (1, 1), (1, 1)))
    x4p = x4p.reshape(B, CIN1, (H + 2) * Wp)
    x4p = jnp.pad(x4p, ((0, 0), (0, 0), (0, 2))).astype(jnp.float32)    # (B,8,Lp)

    dflat = jnp.pad(depth_init, ((0, 0), (0, 0), (0, 0), (0, 2)))
    dflat = dflat.reshape(B, 1, Lo).astype(jnp.float32)                 # (B,1,Lo)

    def taps(w, cin_pad=None):        # (Cout,Cin,3,3) -> (9,Cout,Cin[_pad]) bf16
        co, ci = w.shape[0], w.shape[1]
        wt = jnp.transpose(w, (2, 3, 0, 1)).reshape(9, co, ci)
        if cin_pad is not None and cin_pad > ci:
            wt = jnp.pad(wt, ((0, 0), (0, 0), (0, cin_pad - ci)))
        return wt.astype(jnp.bfloat16)

    def bias(b):
        return b.reshape(-1, 1).astype(jnp.float32)

    w1, b1 = taps(params["conv1"]["w"], CIN1), bias(params["conv1"]["b"])
    w2, b2 = taps(params["conv2"]["w"]), bias(params["conv2"]["b"])
    w3, b3 = taps(params["conv3"]["w"]), bias(params["conv3"]["b"])
    C1 = w1.shape[1]                  # 32
    C3 = w3.shape[1]                  # 8

    kernel = functools.partial(_edge_refine_kernel, H, W)
    out_flat = pl.pallas_call(
        kernel,
        out_shape=jax.ShapeDtypeStruct((B, 1, Lo), jnp.float32),
        grid=(B,),
        in_specs=[
            pl.BlockSpec((1, CIN1, Lp), lambda b: (b, 0, 0)),   # [edges, img] padded-flat
            pl.BlockSpec((9, C1, CIN1), lambda b: (0, 0, 0)),   # conv1 taps (bf16)
            pl.BlockSpec((C1, 1), lambda b: (0, 0)),            # conv1 bias
            pl.BlockSpec((9, C1, C1), lambda b: (0, 0, 0)),     # conv2 taps
            pl.BlockSpec((C1, 1), lambda b: (0, 0)),            # conv2 bias
            pl.BlockSpec((9, C3, C1), lambda b: (0, 0, 0)),     # edge-predictor taps
            pl.BlockSpec((C3, 1), lambda b: (0, 0)),            # edge-predictor bias
            pl.BlockSpec((1, 1, Lo), lambda b: (b, 0, 0)),      # initial depth, flat
        ],
        out_specs=pl.BlockSpec((1, 1, Lo), lambda b: (b, 0, 0)),
        scratch_shapes=[
            pltpu.VMEM((C1, Lp), jnp.bfloat16),                 # padded conv1 output
            pltpu.VMEM((C1, Lp), jnp.bfloat16),                 # padded conv2 output
            pltpu.VMEM((C1, Lo), jnp.float32),                  # f32 matmul accumulator
            pltpu.VMEM((1, Lo + 2 * Wp), jnp.float32),          # zero-margined depth
        ],
        compiler_params=pltpu.CompilerParams(
            dimension_semantics=("parallel",)),                 # v7x: batch on 2 TCs
    )(x4p, w1, b1, w2, b2, w3, b3, dflat)

    return out_flat.reshape(B, 1, H, Wp)[:, :, :, :W]


# ----------------------------------------------------------------------------
# Pure-JAX reference (mirrors the PyTorch module) for a numeric self-check
# ----------------------------------------------------------------------------
def _conv2d_ref(x, w, b):
    y = jax.lax.conv_general_dilated(
        x, w, window_strides=(1, 1), padding=((1, 1), (1, 1)),
        dimension_numbers=("NCHW", "OIHW", "NCHW"))
    return y + b[None, :, None, None]


def _propagate_ref(d, dlr, drl, dud, ddu, nlr, nrl, nud, ndu):
    B, _, H, W = d.shape
    zc = jnp.zeros((B, 1, H, 1), d.dtype)
    zr = jnp.zeros((B, 1, 1, W), d.dtype)
    cur = jnp.concatenate([zc, d], axis=3)[:, :, :, :W]
    out = cur * dlr * nlr + d * (1 - dlr * nlr)
    cur = jnp.concatenate([out, zc], axis=3)[:, :, :, 1:]
    out = cur * drl * nrl + out * (1 - drl * nrl)
    cur = jnp.concatenate([zr, out], axis=2)[:, :, :H, :]
    out = cur * dud * nud + out * (1 - dud * nud)
    cur = jnp.concatenate([out, zr], axis=2)[:, :, 1:, :]
    out = cur * ddu * ndu + out * (1 - ddu * ndu)
    return out


def refinenet_reference(params, img, depth_init):
    edges = _sobel_edge_map(img)
    x = jnp.concatenate([edges, img], axis=1)
    h = jax.nn.relu(_conv2d_ref(x, params["conv1"]["w"], params["conv1"]["b"]))
    h = jax.nn.relu(_conv2d_ref(h, params["conv2"]["w"], params["conv2"]["b"]))
    ew = _conv2d_ref(h, params["conv3"]["w"], params["conv3"]["b"])
    ew = jnp.clip(ew + jnp.tile(edges, (1, 8, 1, 1)), 0.0, 1.0)
    return _propagate_ref(depth_init, *[ew[:, i:i + 1] for i in range(8)])


# ----------------------------------------------------------------------------
# Deterministic PyTorch-default-like parameter init
# ----------------------------------------------------------------------------
def _init_conv(key, cin, cout, k=3):
    k1, k2 = jax.random.split(key)
    bound = 1.0 / math.sqrt(cin * k * k)
    return {"w": jax.random.uniform(k1, (cout, cin, k, k), jnp.float32, -bound, bound),
            "b": jax.random.uniform(k2, (cout,), jnp.float32, -bound, bound)}


def init_refinenet_params(key):
    k1, k2, k3 = jax.random.split(key, 3)
    return {"conv1": _init_conv(k1, 4, 32),
            "conv2": _init_conv(k2, 32, 32),
            "conv3": _init_conv(k3, 32, 8)}


# ----------------------------------------------------------------------------
if __name__ == "__main__":
    key = jax.random.PRNGKey(0)
    k_par, k_img, k_dep = jax.random.split(key, 3)

    B, H, W = 2, 32, 32
    depth_min, depth_max = 425.0, 935.0

    params = init_refinenet_params(k_par)
    img = jax.random.normal(k_img, (B, 3, H, W), jnp.float32)
    # smooth-ish depth (ramp + small noise) inside [depth_min, depth_max]
    ramp = (jnp.linspace(0.0, 0.5, H)[None, None, :, None]
            + jnp.linspace(0.0, 0.5, W)[None, None, None, :])
    depth_init = depth_min + ramp * (depth_max - depth_min)
    depth_init = depth_init + 2.0 * jax.random.normal(k_dep, (B, 1, H, W), jnp.float32)

    fwd = jax.jit(refinenet_forward)
    out = fwd(params, img, depth_init, depth_min, depth_max)
    out = jax.block_until_ready(out)

    assert out.shape == (B, 1, H, W)
    assert bool(jnp.all(jnp.isfinite(out)))

    # numeric self-check vs the pure-JAX reference (loose tol: bf16 MXU operands)
    ref = jax.jit(refinenet_reference)(params, img, depth_init)
    err = float(jnp.max(jnp.abs(out - ref)))
    assert err < 0.05 * (depth_max - depth_min) + 1e-3, f"mismatch vs reference: {err}"

    print("KERNEL_OK")
</pallas_src>

<mosaic_0001>
module attributes {stable_mosaic.version = 11 : i64} {
  func.func @_edge_refine_kernel(%arg0: i32, %arg1: memref<1x8x1158xf32, #tpu.memory_space<vmem>>, %arg2: memref<9x32x8xbf16, #tpu.memory_space<vmem>>, %arg3: memref<32x1xf32, #tpu.memory_space<vmem>>, %arg4: memref<9x32x32xbf16, #tpu.memory_space<vmem>>, %arg5: memref<32x1xf32, #tpu.memory_space<vmem>>, %arg6: memref<9x8x32xbf16, #tpu.memory_space<vmem>>, %arg7: memref<8x1xf32, #tpu.memory_space<vmem>>, %arg8: memref<1x1x1088xf32, #tpu.memory_space<vmem>>, %arg9: memref<1x1x1088xf32, #tpu.memory_space<vmem>>, %arg10: memref<32x1158xbf16, #tpu.memory_space<vmem>>, %arg11: memref<32x1158xbf16, #tpu.memory_space<vmem>>, %arg12: memref<32x1088xf32, #tpu.memory_space<vmem>>, %arg13: memref<1x1156xf32, #tpu.memory_space<vmem>>) attributes {dimension_semantics = [#tpu.dimension_semantics<parallel>], iteration_bounds = array<i64: 2>, scalar_prefetch = 0 : i64, scratch_operands = 4 : i64, tpu.core_type = #tpu.core_type<tc>, window_params = [{transform_indices = @transform_0, window_bounds = array<i64: 1, 8, 1158>}, {pipeline_mode = #tpu.pipeline_mode<synchronous>, transform_indices = @transform_1, window_bounds = array<i64: 9, 32, 8>}, {pipeline_mode = #tpu.pipeline_mode<synchronous>, transform_indices = @transform_2, window_bounds = array<i64: 32, 1>}, {pipeline_mode = #tpu.pipeline_mode<synchronous>, transform_indices = @transform_3, window_bounds = array<i64: 9, 32, 32>}, {pipeline_mode = #tpu.pipeline_mode<synchronous>, transform_indices = @transform_4, window_bounds = array<i64: 32, 1>}, {pipeline_mode = #tpu.pipeline_mode<synchronous>, transform_indices = @transform_5, window_bounds = array<i64: 9, 8, 32>}, {pipeline_mode = #tpu.pipeline_mode<synchronous>, transform_indices = @transform_6, window_bounds = array<i64: 8, 1>}, {transform_indices = @transform_7, window_bounds = array<i64: 1, 1, 1088>}, {transform_indices = @transform_8, window_bounds = array<i64: 1, 1, 1088>}]} {
    %0 = tpu.iota {dimensions = array<i32: 1>} : vector<1x1088xi32>
    %c34_i32 = arith.constant 34 : i32
    %c0_i32 = arith.constant 0 : i32
    %1 = arith.cmpi eq, %c34_i32, %c0_i32 : i32
    %c1_i32 = arith.constant 1 : i32
    %2 = arith.select %1, %c1_i32, %c34_i32 : i32
    %3 = vector.broadcast %2 : i32 to vector<1x1088xi32>
    %4 = arith.remsi %0, %3 : vector<1x1088xi32>
    %c0_i32_0 = arith.constant 0 : i32
    %5 = vector.broadcast %c0_i32_0 : i32 to vector<1x1088xi32>
    %6 = arith.cmpi ne, %4, %5 : vector<1x1088xi32>
    %c0_i32_1 = arith.constant 0 : i32
    %7 = vector.broadcast %c0_i32_1 : i32 to vector<1x1088xi32>
    %8 = arith.cmpi slt, %4, %7 : vector<1x1088xi32>
    %c0_i32_2 = arith.constant 0 : i32
    %9 = arith.cmpi slt, %2, %c0_i32_2 : i32
    %10 = vector.broadcast %9 : i1 to vector<1x1088xi1>
    %11 = vector.broadcast %10 : vector<1x1088xi1> to vector<1x1088xi1>
    %12 = arith.xori %8, %11 : vector<1x1088xi1>
    %13 = arith.andi %12, %6 : vector<1x1088xi1>
    %14 = vector.broadcast %2 : i32 to vector<1x1088xi32>
    %15 = arith.addi %4, %14 : vector<1x1088xi32>
    %16 = arith.select %13, %15, %4 : vector<1x1088xi1>, vector<1x1088xi32>
    %c32_i32 = arith.constant 32 : i32
    %17 = vector.broadcast %c32_i32 : i32 to vector<1x1088xi32>
    %18 = arith.cmpi slt, %16, %17 : vector<1x1088xi32>
    %cst = arith.constant 0.000000e+00 : f32
    %19 = vector.broadcast %cst : f32 to vector<32x1088xf32>
    %c0 = arith.constant 0 : index
    %c0_3 = arith.constant 0 : index
    %20 = vector.load %arg12[%c0, %c0_3] : memref<32x1088xf32, #tpu.memory_space<vmem>>, vector<32x1088xf32>
    tpu.vector_store %arg12[%c0, %c0_3], %19 {strides = array<i32>} : memref<32x1088xf32, #tpu.memory_space<vmem>>, vector<32x1088xf32>,
    %c0_4 = arith.constant 0 : index
    %c0_5 = arith.constant 0 : index
    %21 = vector.load %arg12[%c0_4, %c0_5] : memref<32x1088xf32, #tpu.memory_space<vmem>>, vector<32x1088xf32>
    %c0_6 = arith.constant 0 : index
    %c0_7 = arith.constant 0 : index
    %c0_8 = arith.constant 0 : index
    %22 = vector.load %arg2[%c0_6, %c0_7, %c0_8] : memref<9x32x8xbf16, #tpu.memory_space<vmem>>, vector<1x32x8xbf16>
    %23 = vector.shape_cast %22 : vector<1x32x8xbf16> to vector<32x8xbf16>
    %c0_9 = arith.constant 0 : index
    %c0_10 = arith.constant 0 : index
    %c0_11 = arith.constant 0 : index
    %24 = vector.load %arg1[%c0_9, %c0_10, %c0_11] : memref<1x8x1158xf32, #tpu.memory_space<vmem>>, vector<1x8x1088xf32>
    %25 = vector.shape_cast %24 : vector<1x8x1088xf32> to vector<8x1088xf32>
    %26 = arith.truncf %25 : vector<8x1088xf32> to vector<8x1088xbf16>
    %cst_12 = arith.constant dense<0.000000e+00> : vector<32x1088xf32>
    %27 = tpu.matmul %23, %26, %cst_12 {dimension_numbers = #tpu.dot_dimension_numbers<[1], [0], [0], [1], [0, 0, 1, 1], [], []>} : vector<32x8xbf16>, vector<8x1088xbf16>, vector<32x1088xf32> -> vector<32x1088xf32>
    %28 = arith.addf %21, %27 : vector<32x1088xf32>
    %c0_13 = arith.constant 0 : index
    %c0_14 = arith.constant 0 : index
    %29 = vector.load %arg12[%c0_13, %c0_14] : memref<32x1088xf32, #tpu.memory_space<vmem>>, vector<32x1088xf32>
    tpu.vector_store %arg12[%c0_13, %c0_14], %28 {strides = array<i32>} : memref<32x1088xf32, #tpu.memory_space<vmem>>, vector<32x1088xf32>,
    %c0_15 = arith.constant 0 : index
    %c0_16 = arith.constant 0 : index
    %30 = vector.load %arg12[%c0_15, %c0_16] : memref<32x1088xf32, #tpu.memory_space<vmem>>, vector<32x1088xf32>
    %c1 = arith.constant 1 : index
    %c0_17 = arith.constant 0 : index
    %c0_18 = arith.constant 0 : index
    %31 = vector.load %arg2[%c1, %c0_17, %c0_18] : memref<9x32x8xbf16, #tpu.memory_space<vmem>>, vector<1x32x8xbf16>
    %32 = vector.shape_cast %31 : vector<1x32x8xbf16> to vector<32x8xbf16>
    %c0_19 = arith.constant 0 : index
    %c0_20 = arith.constant 0 : index
    %c1_21 = arith.constant 1 : index
    %33 = vector.load %arg1[%c0_19, %c0_20, %c1_21] : memref<1x8x1158xf32, #tpu.memory_space<vmem>>, vector<1x8x1088xf32>
    %34 = vector.shape_cast %33 : vector<1x8x1088xf32> to vector<8x1088xf32>
    %35 = arith.truncf %34 : vector<8x1088xf32> to vector<8x1088xbf16>
    %cst_22 = arith.constant dense<0.000000e+00> : vector<32x1088xf32>
    %36 = tpu.matmul %32, %35, %cst_22 {dimension_numbers = #tpu.dot_dimension_numbers<[1], [0], [0], [1], [0, 0, 1, 1], [], []>} : vector<32x8xbf16>, vector<8x1088xbf16>, vector<32x1088xf32> -> vector<32x1088xf32>
    %37 = arith.addf %30, %36 : vector<32x1088xf32>
    %c0_23 = arith.constant 0 : index
    %c0_24 = arith.constant 0 : index
    %38 = vector.load %arg12[%c0_23, %c0_24] : memref<32x1088xf32, #tpu.memory_space<vmem>>, vector<32x1088xf32>
    tpu.vector_store %arg12[%c0_23, %c0_24], %37 {strides = array<i32>} : memref<32x1088xf32, #tpu.memory_space<vmem>>, vector<32x1088xf32>,
    %c0_25 = arith.constant 0 : index
    %c0_26 = arith.constant 0 : index
    %39 = vector.load %arg12[%c0_25, %c0_26] : memref<32x1088xf32, #tpu.memory_space<vmem>>, vector<32x1088xf32>
    %c2 = arith.constant 2 : index
    %c0_27 = arith.constant 0 : index
    %c0_28 = arith.constant 0 : index
    %40 = vector.load %arg2[%c2, %c0_27, %c0_28] : memref<9x32x8xbf16, #tpu.memory_space<vmem>>, vector<1x32x8xbf16>
    %41 = vector.shape_cast %40 : vector<1x32x8xbf16> to vector<32x8xbf16>
    %c0_29 = arith.constant 0 : index
    %c0_30 = arith.constant 0 : index
    %c2_31 = arith.constant 2 : index
    %42 = vector.load %arg1[%c0_29, %c0_30, %c2_31] : memref<1x8x1158xf32, #tpu.memory_space<vmem>>, vector<1x8x1088xf32>
    %43 = vector.shape_cast %42 : vector<1x8x1088xf32> to vector<8x1088xf32>
    %44 = arith.truncf %43 : vector<8x1088xf32> to vector<8x1088xbf16>
    %cst_32 = arith.constant dense<0.000000e+00> : vector<32x1088xf32>
    %45 = tpu.matmul %41, %44, %cst_32 {dimension_numbers = #tpu.dot_dimension_numbers<[1], [0], [0], [1], [0, 0, 1, 1], [], []>} : vector<32x8xbf16>, vector<8x1088xbf16>, vector<32x1088xf32> -> vector<32x1088xf32>
    %46 = arith.addf %39, %45 : vector<32x1088xf32>
    %c0_33 = arith.constant 0 : index
    %c0_34 = arith.constant 0 : index
    %47 = vector.load %arg12[%c0_33, %c0_34] : memref<32x1088xf32, #tpu.memory_space<vmem>>, vector<32x1088xf32>
    tpu.vector_store %arg12[%c0_33, %c0_34], %46 {strides = array<i32>} : memref<32x1088xf32, #tpu.memory_space<vmem>>, vector<32x1088xf32>,
    %c0_35 = arith.constant 0 : index
    %c0_36 = arith.constant 0 : index
    %48 = vector.load %arg12[%c0_35, %c0_36] : memref<32x1088xf32, #tpu.memory_space<vmem>>, vector<32x1088xf32>
    %c3 = arith.constant 3 : index
    %c0_37 = arith.constant 0 : index
    %c0_38 = arith.constant 0 : index
    %49 = vector.load %arg2[%c3, %c0_37, %c0_38] : memref<9x32x8xbf16, #tpu.memory_space<vmem>>, vector<1x32x8xbf16>
    %50 = vector.shape_cast %49 : vector<1x32x8xbf16> to vector<32x8xbf16>
    %c0_39 = arith.constant 0 : index
    %c0_40 = arith.constant 0 : index
    %c34 = arith.constant 34 : index
    %51 = vector.load %arg1[%c0_39, %c0_40, %c34] : memref<1x8x1158xf32, #tpu.memory_space<vmem>>, vector<1x8x1088xf32>
    %52 = vector.shape_cast %51 : vector<1x8x1088xf32> to vector<8x1088xf32>
    %53 = arith.truncf %52 : vector<8x1088xf32> to vector<8x1088xbf16>
    %cst_41 = arith.constant dense<0.000000e+00> : vector<32x1088xf32>
    %54 = tpu.matmul %50, %53, %cst_41 {dimension_numbers = #tpu.dot_dimension_numbers<[1], [0], [0], [1], [0, 0, 1, 1], [], []>} : vector<32x8xbf16>, vector<8x1088xbf16>, vector<32x1088xf32> -> vector<32x1088xf32>
    %55 = arith.addf %48, %54 : vector<32x1088xf32>
    %c0_42 = arith.constant 0 : index
    %c0_43 = arith.constant 0 : index
    %56 = vector.load %arg12[%c0_42, %c0_43] : memref<32x1088xf32, #tpu.memory_space<vmem>>, vector<32x1088xf32>
    tpu.vector_store %arg12[%c0_42, %c0_43], %55 {strides = array<i32>} : memref<32x1088xf32, #tpu.memory_space<vmem>>, vector<32x1088xf32>,
    %c0_44 = arith.constant 0 : index
    %c0_45 = arith.constant 0 : index
    %57 = vector.load %arg12[%c0_44, %c0_45] : memref<32x1088xf32, #tpu.memory_space<vmem>>, vector<32x1088xf32>
    %c4 = arith.constant 4 : index
    %c0_46 = arith.constant 0 : index
    %c0_47 = arith.constant 0 : index
    %58 = vector.load %arg2[%c4, %c0_46, %c0_47] : memref<9x32x8xbf16, #tpu.memory_space<vmem>>, vector<1x32x8xbf16>
    %59 = vector.shape_cast %58 : vector<1x32x8xbf16> to vector<32x8xbf16>
    %c0_48 = arith.constant 0 : index
    %c0_49 = arith.constant 0 : index
    %c35 = arith.constant 35 : index
    %60 = vector.load %arg1[%c0_48, %c0_49, %c35] : memref<1x8x1158xf32, #tpu.memory_space<vmem>>, vector<1x8x1088xf32>
    %61 = vector.shape_cast %60 : vector<1x8x1088xf32> to vector<8x1088xf32>
    %62 = arith.truncf %61 : vector<8x1088xf32> to vector<8x1088xbf16>
    %cst_50 = arith.constant dense<0.000000e+00> : vector<32x1088xf32>
    %63 = tpu.matmul %59, %62, %cst_50 {dimension_numbers = #tpu.dot_dimension_numbers<[1], [0], [0], [1], [0, 0, 1, 1], [], []>} : vector<32x8xbf16>, vector<8x1088xbf16>, vector<32x1088xf32> -> vector<32x1088xf32>
    %64 = arith.addf %57, %63 : vector<32x1088xf32>
    %c0_51 = arith.constant 0 : index
    %c0_52 = arith.constant 0 : index
    %65 = vector.load %arg12[%c0_51, %c0_52] : memref<32x1088xf32, #tpu.memory_space<vmem>>, vector<32x1088xf32>
    tpu.vector_store %arg12[%c0_51, %c0_52], %64 {strides = array<i32>} : memref<32x1088xf32, #tpu.memory_space<vmem>>, vector<32x1088xf32>,
    %c0_53 = arith.constant 0 : index
    %c0_54 = arith.constant 0 : index
    %66 = vector.load %arg12[%c0_53, %c0_54] : memref<32x1088xf32, #tpu.memory_space<vmem>>, vector<32x1088xf32>
    %c5 = arith.constant 5 : index
    %c0_55 = arith.constant 0 : index
    %c0_56 = arith.constant 0 : index
    %67 = vector.load %arg2[%c5, %c0_55, %c0_56] : memref<9x32x8xbf16, #tpu.memory_space<vmem>>, vector<1x32x8xbf16>
    %68 = vector.shape_cast %67 : vector<1x32x8xbf16> to vector<32x8xbf16>
    %c0_57 = arith.constant 0 : index
    %c0_58 = arith.constant 0 : index
    %c36 = arith.constant 36 : index
    %69 = vector.load %arg1[%c0_57, %c0_58, %c36] : memref<1x8x1158xf32, #tpu.memory_space<vmem>>, vector<1x8x1088xf32>
    %70 = vector.shape_cast %69 : vector<1x8x1088xf32> to vector<8x1088xf32>
    %71 = arith.truncf %70 : vector<8x1088xf32> to vector<8x1088xbf16>
    %cst_59 = arith.constant dense<0.000000e+00> : vector<32x1088xf32>
    %72 = tpu.matmul %68, %71, %cst_59 {dimension_numbers = #tpu.dot_dimension_numbers<[1], [0], [0], [1], [0, 0, 1, 1], [], []>} : vector<32x8xbf16>, vector<8x1088xbf16>, vector<32x1088xf32> -> vector<32x1088xf32>
    %73 = arith.addf %66, %72 : vector<32x1088xf32>
    %c0_60 = arith.constant 0 : index
    %c0_61 = arith.constant 0 : index
    %74 = vector.load %arg12[%c0_60, %c0_61] : memref<32x1088xf32, #tpu.memory_space<vmem>>, vector<32x1088xf32>
    tpu.vector_store %arg12[%c0_60, %c0_61], %73 {strides = array<i32>} : memref<32x1088xf32, #tpu.memory_space<vmem>>, vector<32x1088xf32>,
    %c0_62 = arith.constant 0 : index
    %c0_63 = arith.constant 0 : index
    %75 = vector.load %arg12[%c0_62, %c0_63] : memref<32x1088xf32, #tpu.memory_space<vmem>>, vector<32x1088xf32>
    %c6 = arith.constant 6 : index
    %c0_64 = arith.constant 0 : index
    %c0_65 = arith.constant 0 : index
    %76 = vector.load %arg2[%c6, %c0_64, %c0_65] : memref<9x32x8xbf16, #tpu.memory_space<vmem>>, vector<1x32x8xbf16>
    %77 = vector.shape_cast %76 : vector<1x32x8xbf16> to vector<32x8xbf16>
    %c0_66 = arith.constant 0 : index
    %c0_67 = arith.constant 0 : index
    %c68 = arith.constant 68 : index
    %78 = vector.load %arg1[%c0_66, %c0_67, %c68] : memref<1x8x1158xf32, #tpu.memory_space<vmem>>, vector<1x8x1088xf32>
    %79 = vector.shape_cast %78 : vector<1x8x1088xf32> to vector<8x1088xf32>
    %80 = arith.truncf %79 : vector<8x1088xf32> to vector<8x1088xbf16>
    %cst_68 = arith.constant dense<0.000000e+00> : vector<32x1088xf32>
    %81 = tpu.matmul %77, %80, %cst_68 {dimension_numbers = #tpu.dot_dimension_numbers<[1], [0], [0], [1], [0, 0, 1, 1], [], []>} : vector<32x8xbf16>, vector<8x1088xbf16>, vector<32x1088xf32> -> vector<32x1088xf32>
    %82 = arith.addf %75, %81 : vector<32x1088xf32>
    %c0_69 = arith.constant 0 : index
    %c0_70 = arith.constant 0 : index
    %83 = vector.load %arg12[%c0_69, %c0_70] : memref<32x1088xf32, #tpu.memory_space<vmem>>, vector<32x1088xf32>
    tpu.vector_store %arg12[%c0_69, %c0_70], %82 {strides = array<i32>} : memref<32x1088xf32, #tpu.memory_space<vmem>>, vector<32x1088xf32>,
    %c0_71 = arith.constant 0 : index
    %c0_72 = arith.constant 0 : index
    %84 = vector.load %arg12[%c0_71, %c0_72] : memref<32x1088xf32, #tpu.memory_space<vmem>>, vector<32x1088xf32>
    %c7 = arith.constant 7 : index
    %c0_73 = arith.constant 0 : index
    %c0_74 = arith.constant 0 : index
    %85 = vector.load %arg2[%c7, %c0_73, %c0_74] : memref<9x32x8xbf16, #tpu.memory_space<vmem>>, vector<1x32x8xbf16>
    %86 = vector.shape_cast %85 : vector<1x32x8xbf16> to vector<32x8xbf16>
    %c0_75 = arith.constant 0 : index
    %c0_76 = arith.constant 0 : index
    %c69 = arith.constant 69 : index
    %87 = vector.load %arg1[%c0_75, %c0_76, %c69] : memref<1x8x1158xf32, #tpu.memory_space<vmem>>, vector<1x8x1088xf32>
    %88 = vector.shape_cast %87 : vector<1x8x1088xf32> to vector<8x1088xf32>
    %89 = arith.truncf %88 : vector<8x1088xf32> to vector<8x1088xbf16>
    %cst_77 = arith.constant dense<0.000000e+00> : vector<32x1088xf32>
    %90 = tpu.matmul %86, %89, %cst_77 {dimension_numbers = #tpu.dot_dimension_numbers<[1], [0], [0], [1], [0, 0, 1, 1], [], []>} : vector<32x8xbf16>, vector<8x1088xbf16>, vector<32x1088xf32> -> vector<32x1088xf32>
    %91 = arith.addf %84, %90 : vector<32x1088xf32>
    %c0_78 = arith.constant 0 : index
    %c0_79 = arith.constant 0 : index
    %92 = vector.load %arg12[%c0_78, %c0_79] : memref<32x1088xf32, #tpu.memory_space<vmem>>, vector<32x1088xf32>
    tpu.vector_store %arg12[%c0_78, %c0_79], %91 {strides = array<i32>} : memref<32x1088xf32, #tpu.memory_space<vmem>>, vector<32x1088xf32>,
    %c0_80 = arith.constant 0 : index
    %c0_81 = arith.constant 0 : index
    %93 = vector.load %arg12[%c0_80, %c0_81] : memref<32x1088xf32, #tpu.memory_space<vmem>>, vector<32x1088xf32>
    %c8 = arith.constant 8 : index
    %c0_82 = arith.constant 0 : index
    %c0_83 = arith.constant 0 : index
    %94 = vector.load %arg2[%c8, %c0_82, %c0_83] : memref<9x32x8xbf16, #tpu.memory_space<vmem>>, vector<1x32x8xbf16>
    %95 = vector.shape_cast %94 : vector<1x32x8xbf16> to vector<32x8xbf16>
    %c0_84 = arith.constant 0 : index
    %c0_85 = arith.constant 0 : index
    %c70 = arith.constant 70 : index
    %96 = vector.load %arg1[%c0_84, %c0_85, %c70] : memref<1x8x1158xf32, #tpu.memory_space<vmem>>, vector<1x8x1088xf32>
    %97 = vector.shape_cast %96 : vector<1x8x1088xf32> to vector<8x1088xf32>
    %98 = arith.truncf %97 : vector<8x1088xf32> to vector<8x1088xbf16>
    %cst_86 = arith.constant dense<0.000000e+00> : vector<32x1088xf32>
    %99 = tpu.matmul %95, %98, %cst_86 {dimension_numbers = #tpu.dot_dimension_numbers<[1], [0], [0], [1], [0, 0, 1, 1], [], []>} : vector<32x8xbf16>, vector<8x1088xbf16>, vector<32x1088xf32> -> vector<32x1088xf32>
    %100 = arith.addf %93, %99 : vector<32x1088xf32>
    %c0_87 = arith.constant 0 : index
    %c0_88 = arith.constant 0 : index
    %101 = vector.load %arg12[%c0_87, %c0_88] : memref<32x1088xf32, #tpu.memory_space<vmem>>, vector<32x1088xf32>
    tpu.vector_store %arg12[%c0_87, %c0_88], %100 {strides = array<i32>} : memref<32x1088xf32, #tpu.memory_space<vmem>>, vector<32x1088xf32>,
    %c0_89 = arith.constant 0 : index
    %c0_90 = arith.constant 0 : index
    %102 = vector.load %arg12[%c0_89, %c0_90] : memref<32x1088xf32, #tpu.memory_space<vmem>>, vector<32x1088xf32>
    %c0_91 = arith.constant 0 : index
    %c0_92 = arith.constant 0 : index
    %103 = vector.load %arg3[%c0_91, %c0_92] : memref<32x1xf32, #tpu.memory_space<vmem>>, vector<32x1xf32>
    %104 = vector.broadcast %103 : vector<32x1xf32> to vector<32x1088xf32>
    %105 = arith.addf %102, %104 : vector<32x1088xf32>
    %cst_93 = arith.constant 0.000000e+00 : bf16
    %106 = vector.broadcast %cst_93 : bf16 to vector<32x1158xbf16>
    %c0_94 = arith.constant 0 : index
    %c0_95 = arith.constant 0 : index
    %107 = vector.load %arg10[%c0_94, %c0_95] : memref<32x1158xbf16, #tpu.memory_space<vmem>>, vector<32x1158xbf16>
    tpu.vector_store %arg10[%c0_94, %c0_95], %106 {strides = array<i32>} : memref<32x1158xbf16, #tpu.memory_space<vmem>>, vector<32x1158xbf16>,
    %cst_96 = arith.constant 0.000000e+00 : f32
    %108 = vector.broadcast %cst_96 : f32 to vector<32x1088xf32>
    %109 = arith.maximumf %105, %108 : vector<32x1088xf32>
    %cst_97 = arith.constant 0.000000e+00 : f32
    %110 = vector.shape_cast %18 : vector<1x1088xi1> to vector<1x1088xi1>
    %111 = vector.broadcast %110 : vector<1x1088xi1> to vector<32x1088xi1>
    %112 = vector.broadcast %cst_97 : f32 to vector<32x1088xf32>
    %113 = arith.select %111, %109, %112 : vector<32x1088xi1>, vector<32x1088xf32>
    %114 = arith.truncf %113 : vector<32x1088xf32> to vector<32x1088xbf16>
    %c0_98 = arith.constant 0 : index
    %c35_99 = arith.constant 35 : index
    %115 = vector.load %arg10[%c0_98, %c35_99] : memref<32x1158xbf16, #tpu.memory_space<vmem>>, vector<32x1088xbf16>
    tpu.vector_store %arg10[%c0_98, %c35_99], %114 {strides = array<i32>} : memref<32x1158xbf16, #tpu.memory_space<vmem>>, vector<32x1088xbf16>,
    %cst_100 = arith.constant 0.000000e+00 : f32
    %116 = vector.broadcast %cst_100 : f32 to vector<32x1088xf32>
    %c0_101 = arith.constant 0 : index
    %c0_102 = arith.constant 0 : index
    %117 = vector.load %arg12[%c0_101, %c0_102] : memref<32x1088xf32, #tpu.memory_space<vmem>>, vector<32x1088xf32>
    tpu.vector_store %arg12[%c0_101, %c0_102], %116 {strides = array<i32>} : memref<32x1088xf32, #tpu.memory_space<vmem>>, vector<32x1088xf32>,
    %c0_103 = arith.constant 0 : index
    %c0_104 = arith.constant 0 : index
    %118 = vector.load %arg12[%c0_103, %c0_104] : memref<32x1088xf32, #tpu.memory_space<vmem>>, vector<32x1088xf32>
    %c0_105 = arith.constant 0 : index
    %c0_106 = arith.constant 0 : index
    %c0_107 = arith.constant 0 : index
    %119 = vector.load %arg4[%c0_105, %c0_106, %c0_107] : memref<9x32x32xbf16, #tpu.memory_space<vmem>>, vector<1x32x32xbf16>
    %120 = vector.shape_cast %119 : vector<1x32x32xbf16> to vector<32x32xbf16>
    %c0_108 = arith.constant 0 : index
    %c0_109 = arith.constant 0 : index
    %121 = vector.load %arg10[%c0_108, %c0_109] : memref<32x1158xbf16, #tpu.memory_space<vmem>>, vector<32x1088xbf16>
    %cst_110 = arith.constant dense<0.000000e+00> : vector<32x1088xf32>
    %122 = tpu.matmul %120, %121, %cst_110 {dimension_numbers = #tpu.dot_dimension_numbers<[1], [0], [0], [1], [0, 0, 1, 1], [], []>} : vector<32x32xbf16>, vector<32x1088xbf16>, vector<32x1088xf32> -> vector<32x1088xf32>
    %123 = arith.addf %118, %122 : vector<32x1088xf32>
    %c0_111 = arith.constant 0 : index
    %c0_112 = arith.constant 0 : index
    %124 = vector.load %arg12[%c0_111, %c0_112] : memref<32x1088xf32, #tpu.memory_space<vmem>>, vector<32x1088xf32>
    tpu.vector_store %arg12[%c0_111, %c0_112], %123 {strides = array<i32>} : memref<32x1088xf32, #tpu.memory_space<vmem>>, vector<32x1088xf32>,
    %c0_113 = arith.constant 0 : index
    %c0_114 = arith.constant 0 : index
    %125 = vector.load %arg12[%c0_113, %c0_114] : memref<32x1088xf32, #tpu.memory_space<vmem>>, vector<32x1088xf32>
    %c1_115 = arith.constant 1 : index
    %c0_116 = arith.constant 0 : index
    %c0_117 = arith.constant 0 : index
    %126 = vector.load %arg4[%c1_115, %c0_116, %c0_117] : memref<9x32x32xbf16, #tpu.memory_space<vmem>>, vector<1x32x32xbf16>
    %127 = vector.shape_cast %126 : vector<1x32x32xbf16> to vector<32x32xbf16>
    %c0_118 = arith.constant 0 : index
    %c1_119 = arith.constant 1 : index
    %128 = vector.load %arg10[%c0_118, %c1_119] : memref<32x1158xbf16, #tpu.memory_space<vmem>>, vector<32x1088xbf16>
    %cst_120 = arith.constant dense<0.000000e+00> : vector<32x1088xf32>
    %129 = tpu.matmul %127, %128, %cst_120 {dimension_numbers = #tpu.dot_dimension_numbers<[1], [0], [0], [1], [0, 0, 1, 1], [], []>} : vector<32x32xbf16>, vector<32x1088xbf16>, vector<32x1088xf32> -> vector<32x1088xf32>
    %130 = arith.addf %125, %129 : vector<32x1088xf32>
    %c0_121 = arith.constant 0 : index
    %c0_122 = arith.constant 0 : index
    %131 = vector.load %arg12[%c0_121, %c0_122] : memref<32x1088xf32, #tpu.memory_space<vmem>>, vector<32x1088xf32>
    tpu.vector_store %arg12[%c0_121, %c0_122], %130 {strides = array<i32>} : memref<32x1088xf32, #tpu.memory_space<vmem>>, vector<32x1088xf32>,
    %c0_123 = arith.constant 0 : index
    %c0_124 = arith.constant 0 : index
    %132 = vector.load %arg12[%c0_123, %c0_124] : memref<32x1088xf32, #tpu.memory_space<vmem>>, vector<32x1088xf32>
    %c2_125 = arith.constant 2 : index
    %c0_126 = arith.constant 0 : index
    %c0_127 = arith.constant 0 : index
    %133 = vector.load %arg4[%c2_125, %c0_126, %c0_127] : memref<9x32x32xbf16, #tpu.memory_space<vmem>>, vector<1x32x32xbf16>
    %134 = vector.shape_cast %133 : vector<1x32x32xbf16> to vector<32x32xbf16>
    %c0_128 = arith.constant 0 : index
    %c2_129 = arith.constant 2 : index
    %135 = vector.load %arg10[%c0_128, %c2_129] : memref<32x1158xbf16, #tpu.memory_space<vmem>>, vector<32x1088xbf16>
    %cst_130 = arith.constant dense<0.000000e+00> : vector<32x1088xf32>
    %136 = tpu.matmul %134, %135, %cst_130 {dimension_numbers = #tpu.dot_dimension_numbers<[1], [0], [0], [1], [0, 0, 1, 1], [], []>} : vector<32x32xbf16>, vector<32x1088xbf16>, vector<32x1088xf32> -> vector<32x1088xf32>
    %137 = arith.addf %132, %136 : vector<32x1088xf32>
    %c0_131 = arith.constant 0 : index
    %c0_132 = arith.constant 0 : index
    %138 = vector.load %arg12[%c0_131, %c0_132] : memref<32x1088xf32, #tpu.memory_space<vmem>>, vector<32x1088xf32>
    tpu.vector_store %arg12[%c0_131, %c0_132], %137 {strides = array<i32>} : memref<32x1088xf32, #tpu.memory_space<vmem>>, vector<32x1088xf32>,
    %c0_133 = arith.constant 0 : index
    %c0_134 = arith.constant 0 : index
    %139 = vector.load %arg12[%c0_133, %c0_134] : memref<32x1088xf32, #tpu.memory_space<vmem>>, vector<32x1088xf32>
    %c3_135 = arith.constant 3 : index
    %c0_136 = arith.constant 0 : index
    %c0_137 = arith.constant 0 : index
    %140 = vector.load %arg4[%c3_135, %c0_136, %c0_137] : memref<9x32x32xbf16, #tpu.memory_space<vmem>>, vector<1x32x32xbf16>
    %141 = vector.shape_cast %140 : vector<1x32x32xbf16> to vector<32x32xbf16>
    %c0_138 = arith.constant 0 : index
    %c34_139 = arith.constant 34 : index
    %142 = vector.load %arg10[%c0_138, %c34_139] : memref<32x1158xbf16, #tpu.memory_space<vmem>>, vector<32x1088xbf16>
    %cst_140 = arith.constant dense<0.000000e+00> : vector<32x1088xf32>
    %143 = tpu.matmul %141, %142, %cst_140 {dimension_numbers = #tpu.dot_dimension_numbers<[1], [0], [0], [1], [0, 0, 1, 1], [], []>} : vector<32x32xbf16>, vector<32x1088xbf16>, vector<32x1088xf32> -> vector<32x1088xf32>
    %144 = arith.addf %139, %143 : vector<32x1088xf32>
    %c0_141 = arith.constant 0 : index
    %c0_142 = arith.constant 0 : index
    %145 = vector.load %arg12[%c0_141, %c0_142] : memref<32x1088xf32, #tpu.memory_space<vmem>>, vector<32x1088xf32>
    tpu.vector_store %arg12[%c0_141, %c0_142], %144 {strides = array<i32>} : memref<32x1088xf32, #tpu.memory_space<vmem>>, vector<32x1088xf32>,
    %c0_143 = arith.constant 0 : index
    %c0_144 = arith.constant 0 : index
    %146 = vector.load %arg12[%c0_143, %c0_144] : memref<32x1088xf32, #tpu.memory_space<vmem>>, vector<32x1088xf32>
    %c4_145 = arith.constant 4 : index
    %c0_146 = arith.constant 0 : index
    %c0_147 = arith.constant 0 : index
    %147 = vector.load %arg4[%c4_145, %c0_146, %c0_147] : memref<9x32x32xbf16, #tpu.memory_space<vmem>>, vector<1x32x32xbf16>
    %148 = vector.shape_cast %147 : vector<1x32x32xbf16> to vector<32x32xbf16>
    %c0_148 = arith.constant 0 : index
    %c35_149 = arith.constant 35 : index
    %149 = vector.load %arg10[%c0_148, %c35_149] : memref<32x1158xbf16, #tpu.memory_space<vmem>>, vector<32x1088xbf16>
    %cst_150 = arith.constant dense<0.000000e+00> : vector<32x1088xf32>
    %150 = tpu.matmul %148, %149, %cst_150 {dimension_numbers = #tpu.dot_dimension_numbers<[1], [0], [0], [1], [0, 0, 1, 1], [], []>} : vector<32x32xbf16>, vector<32x1088xbf16>, vector<32x1088xf32> -> vector<32x1088xf32>
    %151 = arith.addf %146, %150 : vector<32x1088xf32>
    %c0_151 = arith.constant 0 : index
    %c0_152 = arith.constant 0 : index
    %152 = vector.load %arg12[%c0_151, %c0_152] : memref<32x1088xf32, #tpu.memory_space<vmem>>, vector<32x1088xf32>
    tpu.vector_store %arg12[%c0_151, %c0_152], %151 {strides = array<i32>} : memref<32x1088xf32, #tpu.memory_space<vmem>>, vector<32x1088xf32>,
    %c0_153 = arith.constant 0 : index
    %c0_154 = arith.constant 0 : index
    %153 = vector.load %arg12[%c0_153, %c0_154] : memref<32x1088xf32, #tpu.memory_space<vmem>>, vector<32x1088xf32>
    %c5_155 = arith.constant 5 : index
    %c0_156 = arith.constant 0 : index
    %c0_157 = arith.constant 0 : index
    %154 = vector.load %arg4[%c5_155, %c0_156, %c0_157] : memref<9x32x32xbf16, #tpu.memory_space<vmem>>, vector<1x32x32xbf16>
    %155 = vector.shape_cast %154 : vector<1x32x32xbf16> to vector<32x32xbf16>
    %c0_158 = arith.constant 0 : index
    %c36_159 = arith.constant 36 : index
    %156 = vector.load %arg10[%c0_158, %c36_159] : memref<32x1158xbf16, #tpu.memory_space<vmem>>, vector<32x1088xbf16>
    %cst_160 = arith.constant dense<0.000000e+00> : vector<32x1088xf32>
    %157 = tpu.matmul %155, %156, %cst_160 {dimension_numbers = #tpu.dot_dimension_numbers<[1], [0], [0], [1], [0, 0, 1, 1], [], []>} : vector<32x32xbf16>, vector<32x1088xbf16>, vector<32x1088xf32> -> vector<32x1088xf32>
    %158 = arith.addf %153, %157 : vector<32x1088xf32>
    %c0_161 = arith.constant 0 : index
    %c0_162 = arith.constant 0 : index
    %159 = vector.load %arg12[%c0_161, %c0_162] : memref<32x1088xf32, #tpu.memory_space<vmem>>, vector<32x1088xf32>
    tpu.vector_store %arg12[%c0_161, %c0_162], %158 {strides = array<i32>} : memref<32x1088xf32, #tpu.memory_space<vmem>>, vector<32x1088xf32>,
    %c0_163 = arith.constant 0 : index
    %c0_164 = arith.constant 0 : index
    %160 = vector.load %arg12[%c0_163, %c0_164] : memref<32x1088xf32, #tpu.memory_space<vmem>>, vector<32x1088xf32>
    %c6_165 = arith.constant 6 : index
    %c0_166 = arith.constant 0 : index
    %c0_167 = arith.constant 0 : index
    %161 = vector.load %arg4[%c6_165, %c0_166, %c0_167] : memref<9x32x32xbf16, #tpu.memory_space<vmem>>, vector<1x32x32xbf16>
    %162 = vector.shape_cast %161 : vector<1x32x32xbf16> to vector<32x32xbf16>
    %c0_168 = arith.constant 0 : index
    %c68_169 = arith.constant 68 : index
    %163 = vector.load %arg10[%c0_168, %c68_169] : memref<32x1158xbf16, #tpu.memory_space<vmem>>, vector<32x1088xbf16>
    %cst_170 = arith.constant dense<0.000000e+00> : vector<32x1088xf32>
    %164 = tpu.matmul %162, %163, %cst_170 {dimension_numbers = #tpu.dot_dimension_numbers<[1], [0], [0], [1], [0, 0, 1, 1], [], []>} : vector<32x32xbf16>, vector<32x1088xbf16>, vector<32x1088xf32> -> vector<32x1088xf32>
    %165 = arith.addf %160, %164 : vector<32x1088xf32>
    %c0_171 = arith.constant 0 : index
    %c0_172 = arith.constant 0 : index
    %166 = vector.load %arg12[%c0_171, %c0_172] : memref<32x1088xf32, #tpu.memory_space<vmem>>, vector<32x1088xf32>
    tpu.vector_store %arg12[%c0_171, %c0_172], %165 {strides = array<i32>} : memref<32x1088xf32, #tpu.memory_space<vmem>>, vector<32x1088xf32>,
    %c0_173 = arith.constant 0 : index
    %c0_174 = arith.constant 0 : index
    %167 = vector.load %arg12[%c0_173, %c0_174] : memref<32x1088xf32, #tpu.memory_space<vmem>>, vector<32x1088xf32>
    %c7_175 = arith.constant 7 : index
    %c0_176 = arith.constant 0 : index
    %c0_177 = arith.constant 0 : index
    %168 = vector.load %arg4[%c7_175, %c0_176, %c0_177] : memref<9x32x32xbf16, #tpu.memory_space<vmem>>, vector<1x32x32xbf16>
    %169 = vector.shape_cast %168 : vector<1x32x32xbf16> to vector<32x32xbf16>
    %c0_178 = arith.constant 0 : index
    %c69_179 = arith.constant 69 : index
    %170 = vector.load %arg10[%c0_178, %c69_179] : memref<32x1158xbf16, #tpu.memory_space<vmem>>, vector<32x1088xbf16>
    %cst_180 = arith.constant dense<0.000000e+00> : vector<32x1088xf32>
    %171 = tpu.matmul %169, %170, %cst_180 {dimension_numbers = #tpu.dot_dimension_numbers<[1], [0], [0], [1], [0, 0, 1, 1], [], []>} : vector<32x32xbf16>, vector<32x1088xbf16>, vector<32x1088xf32> -> vector<32x1088xf32>
    %172 = arith.addf %167, %171 : vector<32x1088xf32>
    %c0_181 = arith.constant 0 : index
    %c0_182 = arith.constant 0 : index
    %173 = vector.load %arg12[%c0_181, %c0_182] : memref<32x1088xf32, #tpu.memory_space<vmem>>, vector<32x1088xf32>
    tpu.vector_store %arg12[%c0_181, %c0_182], %172 {strides = array<i32>} : memref<32x1088xf32, #tpu.memory_space<vmem>>, vector<32x1088xf32>,
    %c0_183 = arith.constant 0 : index
    %c0_184 = arith.constant 0 : index
    %174 = vector.load %arg12[%c0_183, %c0_184] : memref<32x1088xf32, #tpu.memory_space<vmem>>, vector<32x1088xf32>
    %c8_185 = arith.constant 8 : index
    %c0_186 = arith.constant 0 : index
    %c0_187 = arith.constant 0 : index
    %175 = vector.load %arg4[%c8_185, %c0_186, %c0_187] : memref<9x32x32xbf16, #tpu.memory_space<vmem>>, vector<1x32x32xbf16>
    %176 = vector.shape_cast %175 : vector<1x32x32xbf16> to vector<32x32xbf16>
    %c0_188 = arith.constant 0 : index
    %c70_189 = arith.constant 70 : index
    %177 = vector.load %arg10[%c0_188, %c70_189] : memref<32x1158xbf16, #tpu.memory_space<vmem>>, vector<32x1088xbf16>
    %cst_190 = arith.constant dense<0.000000e+00> : vector<32x1088xf32>
    %178 = tpu.matmul %176, %177, %cst_190 {dimension_numbers = #tpu.dot_dimension_numbers<[1], [0], [0], [1], [0, 0, 1, 1], [], []>} : vector<32x32xbf16>, vector<32x1088xbf16>, vector<32x1088xf32> -> vector<32x1088xf32>
    %179 = arith.addf %174, %178 : vector<32x1088xf32>
    %c0_191 = arith.constant 0 : index
    %c0_192 = arith.constant 0 : index
    %180 = vector.load %arg12[%c0_191, %c0_192] : memref<32x1088xf32, #tpu.memory_space<vmem>>, vector<32x1088xf32>
    tpu.vector_store %arg12[%c0_191, %c0_192], %179 {strides = array<i32>} : memref<32x1088xf32, #tpu.memory_space<vmem>>, vector<32x1088xf32>,
    %c0_193 = arith.constant 0 : index
    %c0_194 = arith.constant 0 : index
    %181 = vector.load %arg12[%c0_193, %c0_194] : memref<32x1088xf32, #tpu.memory_space<vmem>>, vector<32x1088xf32>
    %c0_195 = arith.constant 0 : index
    %c0_196 = arith.constant 0 : index
    %182 = vector.load %arg5[%c0_195, %c0_196] : memref<32x1xf32, #tpu.memory_space<vmem>>, vector<32x1xf32>
    %183 = vector.broadcast %182 : vector<32x1xf32> to vector<32x1088xf32>
    %184 = arith.addf %181, %183 : vector<32x1088xf32>
    %cst_197 = arith.constant 0.000000e+00 : bf16
    %185 = vector.broadcast %cst_197 : bf16 to vector<32x1158xbf16>
    %c0_198 = arith.constant 0 : index
    %c0_199 = arith.constant 0 : index
    %186 = vector.load %arg11[%c0_198, %c0_199] : memref<32x1158xbf16, #tpu.memory_space<vmem>>, vector<32x1158xbf16>
    tpu.vector_store %arg11[%c0_198, %c0_199], %185 {strides = array<i32>} : memref<32x1158xbf16, #tpu.memory_space<vmem>>, vector<32x1158xbf16>,
    %cst_200 = arith.constant 0.000000e+00 : f32
    %187 = vector.broadcast %cst_200 : f32 to vector<32x1088xf32>
    %188 = arith.maximumf %184, %187 : vector<32x1088xf32>
    %cst_201 = arith.constant 0.000000e+00 : f32
    %189 = vector.shape_cast %18 : vector<1x1088xi1> to vector<1x1088xi1>
    %190 = vector.broadcast %189 : vector<1x1088xi1> to vector<32x1088xi1>
    %191 = vector.broadcast %cst_201 : f32 to vector<32x1088xf32>
    %192 = arith.select %190, %188, %191 : vector<32x1088xi1>, vector<32x1088xf32>
    %193 = arith.truncf %192 : vector<32x1088xf32> to vector<32x1088xbf16>
    %c0_202 = arith.constant 0 : index
    %c35_203 = arith.constant 35 : index
    %194 = vector.load %arg11[%c0_202, %c35_203] : memref<32x1158xbf16, #tpu.memory_space<vmem>>, vector<32x1088xbf16>
    tpu.vector_store %arg11[%c0_202, %c35_203], %193 {strides = array<i32>} : memref<32x1158xbf16, #tpu.memory_space<vmem>>, vector<32x1088xbf16>,
    %cst_204 = arith.constant 0.000000e+00 : f32
    %195 = vector.broadcast %cst_204 : f32 to vector<8x1088xf32>
    %c0_205 = arith.constant 0 : index
    %c0_206 = arith.constant 0 : index
    %196 = vector.load %arg12[%c0_205, %c0_206] : memref<32x1088xf32, #tpu.memory_space<vmem>>, vector<8x1088xf32>
    tpu.vector_store %arg12[%c0_205, %c0_206], %195 {strides = array<i32>} : memref<32x1088xf32, #tpu.memory_space<vmem>>, vector<8x1088xf32>,
    %c0_207 = arith.constant 0 : index
    %c0_208 = arith.constant 0 : index
    %197 = vector.load %arg12[%c0_207, %c0_208] : memref<32x1088xf32, #tpu.memory_space<vmem>>, vector<8x1088xf32>
    %c0_209 = arith.constant 0 : index
    %c0_210 = arith.constant 0 : index
    %c0_211 = arith.constant 0 : index
    %198 = vector.load %arg6[%c0_209, %c0_210, %c0_211] : memref<9x8x32xbf16, #tpu.memory_space<vmem>>, vector<1x8x32xbf16>
    %199 = vector.shape_cast %198 : vector<1x8x32xbf16> to vector<8x32xbf16>
    %c0_212 = arith.constant 0 : index
    %c0_213 = arith.constant 0 : index
    %200 = vector.load %arg11[%c0_212, %c0_213] : memref<32x1158xbf16, #tpu.memory_space<vmem>>, vector<32x1088xbf16>
    %cst_214 = arith.constant dense<0.000000e+00> : vector<8x1088xf32>
    %201 = tpu.matmul %199, %200, %cst_214 {dimension_numbers = #tpu.dot_dimension_numbers<[1], [0], [0], [1], [0, 0, 1, 1], [], []>} : vector<8x32xbf16>, vector<32x1088xbf16>, vector<8x1088xf32> -> vector<8x1088xf32>
    %202 = arith.addf %197, %201 : vector<8x1088xf32>
    %c0_215 = arith.constant 0 : index
    %c0_216 = arith.constant 0 : index
    %203 = vector.load %arg12[%c0_215, %c0_216] : memref<32x1088xf32, #tpu.memory_space<vmem>>, vector<8x1088xf32>
    tpu.vector_store %arg12[%c0_215, %c0_216], %202 {strides = array<i32>} : memref<32x1088xf32, #tpu.memory_space<vmem>>, vector<8x1088xf32>,
    %c0_217 = arith.constant 0 : index
    %c0_218 = arith.constant 0 : index
    %204 = vector.load %arg12[%c0_217, %c0_218] : memref<32x1088xf32, #tpu.memory_space<vmem>>, vector<8x1088xf32>
    %c1_219 = arith.constant 1 : index
    %c0_220 = arith.constant 0 : index
    %c0_221 = arith.constant 0 : index
    %205 = vector.load %arg6[%c1_219, %c0_220, %c0_221] : memref<9x8x32xbf16, #tpu.memory_space<vmem>>, vector<1x8x32xbf16>
    %206 = vector.shape_cast %205 : vector<1x8x32xbf16> to vector<8x32xbf16>
    %c0_222 = arith.constant 0 : index
    %c1_223 = arith.constant 1 : index
    %207 = vector.load %arg11[%c0_222, %c1_223] : memref<32x1158xbf16, #tpu.memory_space<vmem>>, vector<32x1088xbf16>
    %cst_224 = arith.constant dense<0.000000e+00> : vector<8x1088xf32>
    %208 = tpu.matmul %206, %207, %cst_224 {dimension_numbers = #tpu.dot_dimension_numbers<[1], [0], [0], [1], [0, 0, 1, 1], [], []>} : vector<8x32xbf16>, vector<32x1088xbf16>, vector<8x1088xf32> -> vector<8x1088xf32>
    %209 = arith.addf %204, %208 : vector<8x1088xf32>
    %c0_225 = arith.constant 0 : index
    %c0_226 = arith.constant 0 : index
    %210 = vector.load %arg12[%c0_225, %c0_226] : memref<32x1088xf32, #tpu.memory_space<vmem>>, vector<8x1088xf32>
    tpu.vector_store %arg12[%c0_225, %c0_226], %209 {strides = array<i32>} : memref<32x1088xf32, #tpu.memory_space<vmem>>, vector<8x1088xf32>,
    %c0_227 = arith.constant 0 : index
    %c0_228 = arith.constant 0 : index
    %211 = vector.load %arg12[%c0_227, %c0_228] : memref<32x1088xf32, #tpu.memory_space<vmem>>, vector<8x1088xf32>
    %c2_229 = arith.constant 2 : index
    %c0_230 = arith.constant 0 : index
    %c0_231 = arith.constant 0 : index
    %212 = vector.load %arg6[%c2_229, %c0_230, %c0_231] : memref<9x8x32xbf16, #tpu.memory_space<vmem>>, vector<1x8x32xbf16>
    %213 = vector.shape_cast %212 : vector<1x8x32xbf16> to vector<8x32xbf16>
    %c0_232 = arith.constant 0 : index
    %c2_233 = arith.constant 2 : index
    %214 = vector.load %arg11[%c0_232, %c2_233] : memref<32x1158xbf16, #tpu.memory_space<vmem>>, vector<32x1088xbf16>
    %cst_234 = arith.constant dense<0.000000e+00> : vector<8x1088xf32>
    %215 = tpu.matmul %213, %214, %cst_234 {dimension_numbers = #tpu.dot_dimension_numbers<[1], [0], [0], [1], [0, 0, 1, 1], [], []>} : vector<8x32xbf16>, vector<32x1088xbf16>, vector<8x1088xf32> -> vector<8x1088xf32>
    %216 = arith.addf %211, %215 : vector<8x1088xf32>
    %c0_235 = arith.constant 0 : index
    %c0_236 = arith.constant 0 : index
    %217 = vector.load %arg12[%c0_235, %c0_236] : memref<32x1088xf32, #tpu.memory_space<vmem>>, vector<8x1088xf32>
    tpu.vector_store %arg12[%c0_235, %c0_236], %216 {strides = array<i32>} : memref<32x1088xf32, #tpu.memory_space<vmem>>, vector<8x1088xf32>,
    %c0_237 = arith.constant 0 : index
    %c0_238 = arith.constant 0 : index
    %218 = vector.load %arg12[%c0_237, %c0_238] : memref<32x1088xf32, #tpu.memory_space<vmem>>, vector<8x1088xf32>
    %c3_239 = arith.constant 3 : index
    %c0_240 = arith.constant 0 : index
    %c0_241 = arith.constant 0 : index
    %219 = vector.load %arg6[%c3_239, %c0_240, %c0_241] : memref<9x8x32xbf16, #tpu.memory_space<vmem>>, vector<1x8x32xbf16>
    %220 = vector.shape_cast %219 : vector<1x8x32xbf16> to vector<8x32xbf16>
    %c0_242 = arith.constant 0 : index
    %c34_243 = arith.constant 34 : index
    %221 = vector.load %arg11[%c0_242, %c34_243] : memref<32x1158xbf16, #tpu.memory_space<vmem>>, vector<32x1088xbf16>
    %cst_244 = arith.constant dense<0.000000e+00> : vector<8x1088xf32>
    %222 = tpu.matmul %220, %221, %cst_244 {dimension_numbers = #tpu.dot_dimension_numbers<[1], [0], [0], [1], [0, 0, 1, 1], [], []>} : vector<8x32xbf16>, vector<32x1088xbf16>, vector<8x1088xf32> -> vector<8x1088xf32>
    %223 = arith.addf %218, %222 : vector<8x1088xf32>
    %c0_245 = arith.constant 0 : index
    %c0_246 = arith.constant 0 : index
    %224 = vector.load %arg12[%c0_245, %c0_246] : memref<32x1088xf32, #tpu.memory_space<vmem>>, vector<8x1088xf32>
    tpu.vector_store %arg12[%c0_245, %c0_246], %223 {strides = array<i32>} : memref<32x1088xf32, #tpu.memory_space<vmem>>, vector<8x1088xf32>,
    %c0_247 = arith.constant 0 : index
    %c0_248 = arith.constant 0 : index
    %225 = vector.load %arg12[%c0_247, %c0_248] : memref<32x1088xf32, #tpu.memory_space<vmem>>, vector<8x1088xf32>
    %c4_249 = arith.constant 4 : index
    %c0_250 = arith.constant 0 : index
    %c0_251 = arith.constant 0 : index
    %226 = vector.load %arg6[%c4_249, %c0_250, %c0_251] : memref<9x8x32xbf16, #tpu.memory_space<vmem>>, vector<1x8x32xbf16>
    %227 = vector.shape_cast %226 : vector<1x8x32xbf16> to vector<8x32xbf16>
    %c0_252 = arith.constant 0 : index
    %c35_253 = arith.constant 35 : index
    %228 = vector.load %arg11[%c0_252, %c35_253] : memref<32x1158xbf16, #tpu.memory_space<vmem>>, vector<32x1088xbf16>
    %cst_254 = arith.constant dense<0.000000e+00> : vector<8x1088xf32>
    %229 = tpu.matmul %227, %228, %cst_254 {dimension_numbers = #tpu.dot_dimension_numbers<[1], [0], [0], [1], [0, 0, 1, 1], [], []>} : vector<8x32xbf16>, vector<32x1088xbf16>, vector<8x1088xf32> -> vector<8x1088xf32>
    %230 = arith.addf %225, %229 : vector<8x1088xf32>
    %c0_255 = arith.constant 0 : index
    %c0_256 = arith.constant 0 : index
    %231 = vector.load %arg12[%c0_255, %c0_256] : memref<32x1088xf32, #tpu.memory_space<vmem>>, vector<8x1088xf32>
    tpu.vector_store %arg12[%c0_255, %c0_256], %230 {strides = array<i32>} : memref<32x1088xf32, #tpu.memory_space<vmem>>, vector<8x1088xf32>,
    %c0_257 = arith.constant 0 : index
    %c0_258 = arith.constant 0 : index
    %232 = vector.load %arg12[%c0_257, %c0_258] : memref<32x1088xf32, #tpu.memory_space<vmem>>, vector<8x1088xf32>
    %c5_259 = arith.constant 5 : index
    %c0_260 = arith.constant 0 : index
    %c0_261 = arith.constant 0 : index
    %233 = vector.load %arg6[%c5_259, %c0_260, %c0_261] : memref<9x8x32xbf16, #tpu.memory_space<vmem>>, vector<1x8x32xbf16>
    %234 = vector.shape_cast %233 : vector<1x8x32xbf16> to vector<8x32xbf16>
    %c0_262 = arith.constant 0 : index
    %c36_263 = arith.constant 36 : index
    %235 = vector.load %arg11[%c0_262, %c36_263] : memref<32x1158xbf16, #tpu.memory_space<vmem>>, vector<32x1088xbf16>
    %cst_264 = arith.constant dense<0.000000e+00> : vector<8x1088xf32>
    %236 = tpu.matmul %234, %235, %cst_264 {dimension_numbers = #tpu.dot_dimension_numbers<[1], [0], [0], [1], [0, 0, 1, 1], [], []>} : vector<8x32xbf16>, vector<32x1088xbf16>, vector<8x1088xf32> -> vector<8x1088xf32>
    %237 = arith.addf %232, %236 : vector<8x1088xf32>
    %c0_265 = arith.constant 0 : index
    %c0_266 = arith.constant 0 : index
    %238 = vector.load %arg12[%c0_265, %c0_266] : memref<32x1088xf32, #tpu.memory_space<vmem>>, vector<8x1088xf32>
    tpu.vector_store %arg12[%c0_265, %c0_266], %237 {strides = array<i32>} : memref<32x1088xf32, #tpu.memory_space<vmem>>, vector<8x1088xf32>,
    %c0_267 = arith.constant 0 : index
    %c0_268 = arith.constant 0 : index
    %239 = vector.load %arg12[%c0_267, %c0_268] : memref<32x1088xf32, #tpu.memory_space<vmem>>, vector<8x1088xf32>
    %c6_269 = arith.constant 6 : index
    %c0_270 = arith.constant 0 : index
    %c0_271 = arith.constant 0 : index
    %240 = vector.load %arg6[%c6_269, %c0_270, %c0_271] : memref<9x8x32xbf16, #tpu.memory_space<vmem>>, vector<1x8x32xbf16>
    %241 = vector.shape_cast %240 : vector<1x8x32xbf16> to vector<8x32xbf16>
    %c0_272 = arith.constant 0 : index
    %c68_273 = arith.constant 68 : index
    %242 = vector.load %arg11[%c0_272, %c68_273] : memref<32x1158xbf16, #tpu.memory_space<vmem>>, vector<32x1088xbf16>
    %cst_274 = arith.constant dense<0.000000e+00> : vector<8x1088xf32>
    %243 = tpu.matmul %241, %242, %cst_274 {dimension_numbers = #tpu.dot_dimension_numbers<[1], [0], [0], [1], [0, 0, 1, 1], [], []>} : vector<8x32xbf16>, vector<32x1088xbf16>, vector<8x1088xf32> -> vector<8x1088xf32>
    %244 = arith.addf %239, %243 : vector<8x1088xf32>
    %c0_275 = arith.constant 0 : index
    %c0_276 = arith.constant 0 : index
    %245 = vector.load %arg12[%c0_275, %c0_276] : memref<32x1088xf32, #tpu.memory_space<vmem>>, vector<8x1088xf32>
    tpu.vector_store %arg12[%c0_275, %c0_276], %244 {strides = array<i32>} : memref<32x1088xf32, #tpu.memory_space<vmem>>, vector<8x1088xf32>,
    %c0_277 = arith.constant 0 : index
    %c0_278 = arith.constant 0 : index
    %246 = vector.load %arg12[%c0_277, %c0_278] : memref<32x1088xf32, #tpu.memory_space<vmem>>, vector<8x1088xf32>
    %c7_279 = arith.constant 7 : index
    %c0_280 = arith.constant 0 : index
    %c0_281 = arith.constant 0 : index
    %247 = vector.load %arg6[%c7_279, %c0_280, %c0_281] : memref<9x8x32xbf16, #tpu.memory_space<vmem>>, vector<1x8x32xbf16>
    %248 = vector.shape_cast %247 : vector<1x8x32xbf16> to vector<8x32xbf16>
    %c0_282 = arith.constant 0 : index
    %c69_283 = arith.constant 69 : index
    %249 = vector.load %arg11[%c0_282, %c69_283] : memref<32x1158xbf16, #tpu.memory_space<vmem>>, vector<32x1088xbf16>
    %cst_284 = arith.constant dense<0.000000e+00> : vector<8x1088xf32>
    %250 = tpu.matmul %248, %249, %cst_284 {dimension_numbers = #tpu.dot_dimension_numbers<[1], [0], [0], [1], [0, 0, 1, 1], [], []>} : vector<8x32xbf16>, vector<32x1088xbf16>, vector<8x1088xf32> -> vector<8x1088xf32>
    %251 = arith.addf %246, %250 : vector<8x1088xf32>
    %c0_285 = arith.constant 0 : index
    %c0_286 = arith.constant 0 : index
    %252 = vector.load %arg12[%c0_285, %c0_286] : memref<32x1088xf32, #tpu.memory_space<vmem>>, vector<8x1088xf32>
    tpu.vector_store %arg12[%c0_285, %c0_286], %251 {strides = array<i32>} : memref<32x1088xf32, #tpu.memory_space<vmem>>, vector<8x1088xf32>,
    %c0_287 = arith.constant 0 : index
    %c0_288 = arith.constant 0 : index
    %253 = vector.load %arg12[%c0_287, %c0_288] : memref<32x1088xf32, #tpu.memory_space<vmem>>, vector<8x1088xf32>
    %c8_289 = arith.constant 8 : index
    %c0_290 = arith.constant 0 : index
    %c0_291 = arith.constant 0 : index
    %254 = vector.load %arg6[%c8_289, %c0_290, %c0_291] : memref<9x8x32xbf16, #tpu.memory_space<vmem>>, vector<1x8x32xbf16>
    %255 = vector.shape_cast %254 : vector<1x8x32xbf16> to vector<8x32xbf16>
    %c0_292 = arith.constant 0 : index
    %c70_293 = arith.constant 70 : index
    %256 = vector.load %arg11[%c0_292, %c70_293] : memref<32x1158xbf16, #tpu.memory_space<vmem>>, vector<32x1088xbf16>
    %cst_294 = arith.constant dense<0.000000e+00> : vector<8x1088xf32>
    %257 = tpu.matmul %255, %256, %cst_294 {dimension_numbers = #tpu.dot_dimension_numbers<[1], [0], [0], [1], [0, 0, 1, 1], [], []>} : vector<8x32xbf16>, vector<32x1088xbf16>, vector<8x1088xf32> -> vector<8x1088xf32>
    %258 = arith.addf %253, %257 : vector<8x1088xf32>
    %c0_295 = arith.constant 0 : index
    %c0_296 = arith.constant 0 : index
    %259 = vector.load %arg12[%c0_295, %c0_296] : memref<32x1088xf32, #tpu.memory_space<vmem>>, vector<8x1088xf32>
    tpu.vector_store %arg12[%c0_295, %c0_296], %258 {strides = array<i32>} : memref<32x1088xf32, #tpu.memory_space<vmem>>, vector<8x1088xf32>,
    %c0_297 = arith.constant 0 : index
    %c0_298 = arith.constant 0 : index
    %260 = vector.load %arg12[%c0_297, %c0_298] : memref<32x1088xf32, #tpu.memory_space<vmem>>, vector<8x1088xf32>
    %c0_299 = arith.constant 0 : index
    %c0_300 = arith.constant 0 : index
    %261 = vector.load %arg7[%c0_299, %c0_300] : memref<8x1xf32, #tpu.memory_space<vmem>>, vector<8x1xf32>
    %262 = vector.broadcast %261 : vector<8x1xf32> to vector<8x1088xf32>
    %263 = arith.addf %260, %262 : vector<8x1088xf32>
    %c0_301 = arith.constant 0 : index
    %c0_302 = arith.constant 0 : index
    %c35_303 = arith.constant 35 : index
    %264 = vector.load %arg1[%c0_301, %c0_302, %c35_303] : memref<1x8x1158xf32, #tpu.memory_space<vmem>>, vector<1x1x1088xf32>
    %265 = vector.shape_cast %264 : vector<1x1x1088xf32> to vector<1x1088xf32>
    %266 = vector.broadcast %265 : vector<1x1088xf32> to vector<8x1088xf32>
    %267 = arith.addf %263, %266 : vector<8x1088xf32>
    %cst_304 = arith.constant 0.000000e+00 : f32
    %cst_305 = arith.constant 1.000000e+00 : f32
    %268 = vector.broadcast %cst_304 : f32 to vector<8x1088xf32>
    %269 = arith.maximumf %268, %267 : vector<8x1088xf32>
    %270 = vector.broadcast %cst_305 : f32 to vector<8x1088xf32>
    %271 = arith.minimumf %270, %269 : vector<8x1088xf32>
    %cst_306 = arith.constant 0.000000e+00 : f32
    %272 = vector.shape_cast %18 : vector<1x1088xi1> to vector<1x1088xi1>
    %273 = vector.broadcast %272 : vector<1x1088xi1> to vector<8x1088xi1>
    %274 = vector.broadcast %cst_306 : f32 to vector<8x1088xf32>
    %275 = arith.select %273, %271, %274 : vector<8x1088xi1>, vector<8x1088xf32>
    %c0_307 = arith.constant 0 : index
    %c0_308 = arith.constant 0 : index
    %c0_309 = arith.constant 0 : index
    %276 = vector.load %arg8[%c0_307, %c0_308, %c0_309] : memref<1x1x1088xf32, #tpu.memory_space<vmem>>, vector<1x1x1088xf32>
    %277 = vector.shape_cast %276 : vector<1x1x1088xf32> to vector<1x1088xf32>
    %cst_310 = arith.constant 0.000000e+00 : f32
    %278 = vector.broadcast %cst_310 : f32 to vector<1x1088xf32>
    %279 = arith.select %18, %277, %278 : vector<1x1088xi1>, vector<1x1088xf32>
    %cst_311 = arith.constant 0.000000e+00 : f32
    %280 = vector.broadcast %cst_311 : f32 to vector<1x1156xf32>
    %c0_312 = arith.constant 0 : index
    %c0_313 = arith.constant 0 : index
    %281 = vector.load %arg13[%c0_312, %c0_313] : memref<1x1156xf32, #tpu.memory_space<vmem>>, vector<1x1156xf32>
    tpu.vector_store %arg13[%c0_312, %c0_313], %280 {strides = array<i32>} : memref<1x1156xf32, #tpu.memory_space<vmem>>, vector<1x1156xf32>,
    %282 = vector.extract_strided_slice %275 {offsets = [0, 0], sizes = [1, 1088], strides = [1, 1]} : vector<8x1088xf32> to vector<1x1088xf32>
    %283 = vector.extract_strided_slice %275 {offsets = [4, 0], sizes = [1, 1088], strides = [1, 1]} : vector<8x1088xf32> to vector<1x1088xf32>
    %284 = arith.mulf %282, %283 : vector<1x1088xf32>
    %c0_314 = arith.constant 0 : index
    %c34_315 = arith.constant 34 : index
    %285 = vector.load %arg13[%c0_314, %c34_315] : memref<1x1156xf32, #tpu.memory_space<vmem>>, vector<1x1088xf32>
    tpu.vector_store %arg13[%c0_314, %c34_315], %279 {strides = array<i32>} : memref<1x1156xf32, #tpu.memory_space<vmem>>, vector<1x1088xf32>,
    %c0_316 = arith.constant 0 : index
    %c33 = arith.constant 33 : index
    %286 = vector.load %arg13[%c0_316, %c33] : memref<1x1156xf32, #tpu.memory_space<vmem>>, vector<1x1088xf32>
    %287 = arith.mulf %286, %284 : vector<1x1088xf32>
    %cst_317 = arith.constant 1.000000e+00 : f32
    %288 = vector.broadcast %cst_317 : f32 to vector<1x1088xf32>
    %289 = arith.subf %288, %284 : vector<1x1088xf32>
    %290 = arith.mulf %279, %289 : vector<1x1088xf32>
    %291 = arith.addf %287, %290 : vector<1x1088xf32>
    %292 = vector.extract_strided_slice %275 {offsets = [1, 0], sizes = [1, 1088], strides = [1, 1]} : vector<8x1088xf32> to vector<1x1088xf32>
    %293 = vector.extract_strided_slice %275 {offsets = [5, 0], sizes = [1, 1088], strides = [1, 1]} : vector<8x1088xf32> to vector<1x1088xf32>
    %294 = arith.mulf %292, %293 : vector<1x1088xf32>
    %c0_318 = arith.constant 0 : index
    %c34_319 = arith.constant 34 : index
    %295 = vector.load %arg13[%c0_318, %c34_319] : memref<1x1156xf32, #tpu.memory_space<vmem>>, vector<1x1088xf32>
    tpu.vector_store %arg13[%c0_318, %c34_319], %291 {strides = array<i32>} : memref<1x1156xf32, #tpu.memory_space<vmem>>, vector<1x1088xf32>,
    %c0_320 = arith.constant 0 : index
    %c35_321 = arith.constant 35 : index
    %296 = vector.load %arg13[%c0_320, %c35_321] : memref<1x1156xf32, #tpu.memory_space<vmem>>, vector<1x1088xf32>
    %297 = arith.mulf %296, %294 : vector<1x1088xf32>
    %cst_322 = arith.constant 1.000000e+00 : f32
    %298 = vector.broadcast %cst_322 : f32 to vector<1x1088xf32>
    %299 = arith.subf %298, %294 : vector<1x1088xf32>
    %300 = arith.mulf %291, %299 : vector<1x1088xf32>
    %301 = arith.addf %297, %300 : vector<1x1088xf32>
    %302 = vector.extract_strided_slice %275 {offsets = [2, 0], sizes = [1, 1088], strides = [1, 1]} : vector<8x1088xf32> to vector<1x1088xf32>
    %303 = vector.extract_strided_slice %275 {offsets = [6, 0], sizes = [1, 1088], strides = [1, 1]} : vector<8x1088xf32> to vector<1x1088xf32>
    %304 = arith.mulf %302, %303 : vector<1x1088xf32>
    %c0_323 = arith.constant 0 : index
    %c34_324 = arith.constant 34 : index
    %305 = vector.load %arg13[%c0_323, %c34_324] : memref<1x1156xf32, #tpu.memory_space<vmem>>, vector<1x1088xf32>
    tpu.vector_store %arg13[%c0_323, %c34_324], %301 {strides = array<i32>} : memref<1x1156xf32, #tpu.memory_space<vmem>>, vector<1x1088xf32>,
    %c0_325 = arith.constant 0 : index
    %c0_326 = arith.constant 0 : index
    %306 = vector.load %arg13[%c0_325, %c0_326] : memref<1x1156xf32, #tpu.memory_space<vmem>>, vector<1x1088xf32>
    %307 = arith.mulf %306, %304 : vector<1x1088xf32>
    %cst_327 = arith.constant 1.000000e+00 : f32
    %308 = vector.broadcast %cst_327 : f32 to vector<1x1088xf32>
    %309 = arith.subf %308, %304 : vector<1x1088xf32>
    %310 = arith.mulf %301, %309 : vector<1x1088xf32>
    %311 = arith.addf %307, %310 : vector<1x1088xf32>
    %312 = vector.extract_strided_slice %275 {offsets = [3, 0], sizes = [1, 1088], strides = [1, 1]} : vector<8x1088xf32> to vector<1x1088xf32>
    %313 = vector.extract_strided_slice %275 {offsets = [7, 0], sizes = [1, 1088], strides = [1, 1]} : vector<8x1088xf32> to vector<1x1088xf32>
    %314 = arith.mulf %312, %313 : vector<1x1088xf32>
    %c0_328 = arith.constant 0 : index
    %c34_329 = arith.constant 34 : index
    %315 = vector.load %arg13[%c0_328, %c34_329] : memref<1x1156xf32, #tpu.memory_space<vmem>>, vector<1x1088xf32>
    tpu.vector_store %arg13[%c0_328, %c34_329], %311 {strides = array<i32>} : memref<1x1156xf32, #tpu.memory_space<vmem>>, vector<1x1088xf32>,
    %c0_330 = arith.constant 0 : index
    %c68_331 = arith.constant 68 : index
    %316 = vector.load %arg13[%c0_330, %c68_331] : memref<1x1156xf32, #tpu.memory_space<vmem>>, vector<1x1088xf32>
    %317 = arith.mulf %316, %314 : vector<1x1088xf32>
    %cst_332 = arith.constant 1.000000e+00 : f32
    %318 = vector.broadcast %cst_332 : f32 to vector<1x1088xf32>
    %319 = arith.subf %318, %314 : vector<1x1088xf32>
    %320 = arith.mulf %311, %319 : vector<1x1088xf32>
    %321 = arith.addf %317, %320 : vector<1x1088xf32>
    %c0_333 = arith.constant 0 : index
    %c0_334 = arith.constant 0 : index
    %c0_335 = arith.constant 0 : index
    %322 = vector.load %arg9[%c0_333, %c0_334, %c0_335] : memref<1x1x1088xf32, #tpu.memory_space<vmem>>, vector<1x1x1088xf32>
    %323 = vector.shape_cast %322 : vector<1x1x1088xf32> to vector<1x1088xf32>
    %324 = vector.shape_cast %321 : vector<1x1088xf32> to vector<1x1x1088xf32>
    tpu.vector_store %arg9[%c0_333, %c0_334, %c0_335], %324 {strides = array<i32>} : memref<1x1x1088xf32, #tpu.memory_space<vmem>>, vector<1x1x1088xf32>,
    return
  }
  func.func @transform_0(%arg0: i32) -> (i32, i32, i32) {
    %c0_i32 = arith.constant 0 : i32
    %c0_i32_0 = arith.constant 0 : i32
    %c0_i32_1 = arith.constant 0 : i32
    return %arg0, %c0_i32, %c0_i32_0 : i32, i32, i32
  }
  func.func @transform_1(%arg0: i32) -> (i32, i32, i32) {
    %c0_i32 = arith.constant 0 : i32
    %c0_i32_0 = arith.constant 0 : i32
    %c0_i32_1 = arith.constant 0 : i32
    %c0_i32_2 = arith.constant 0 : i32
    return %c0_i32, %c0_i32_0, %c0_i32_1 : i32, i32, i32
  }
  func.func @transform_2(%arg0: i32) -> (i32, i32) {
    %c0_i32 = arith.constant 0 : i32
    %c0_i32_0 = arith.constant 0 : i32
    %c0_i32_1 = arith.constant 0 : i32
    return %c0_i32, %c0_i32_0 : i32, i32
  }
  func.func @transform_3(%arg0: i32) -> (i32, i32, i32) {
    %c0_i32 = arith.constant 0 : i32
    %c0_i32_0 = arith.constant 0 : i32
    %c0_i32_1 = arith.constant 0 : i32
    %c0_i32_2 = arith.constant 0 : i32
    return %c0_i32, %c0_i32_0, %c0_i32_1 : i32, i32, i32
  }
  func.func @transform_4(%arg0: i32) -> (i32, i32) {
    %c0_i32 = arith.constant 0 : i32
    %c0_i32_0 = arith.constant 0 : i32
    %c0_i32_1 = arith.constant 0 : i32
    return %c0_i32, %c0_i32_0 : i32, i32
  }
  func.func @transform_5(%arg0: i32) -> (i32, i32, i32) {
    %c0_i32 = arith.constant 0 : i32
    %c0_i32_0 = arith.constant 0 : i32
    %c0_i32_1 = arith.constant 0 : i32
    %c0_i32_2 = arith.constant 0 : i32
    return %c0_i32, %c0_i32_0, %c0_i32_1 : i32, i32, i32
  }
  func.func @transform_6(%arg0: i32) -> (i32, i32) {
    %c0_i32 = arith.constant 0 : i32
    %c0_i32_0 = arith.constant 0 : i32
    %c0_i32_1 = arith.constant 0 : i32
    return %c0_i32, %c0_i32_0 : i32, i32
  }
  func.func @transform_7(%arg0: i32) -> (i32, i32, i32) {
    %c0_i32 = arith.constant 0 : i32
    %c0_i32_0 = arith.constant 0 : i32
    %c0_i32_1 = arith.constant 0 : i32
    return %arg0, %c0_i32, %c0_i32_0 : i32, i32, i32
  }
  func.func @transform_8(%arg0: i32) -> (i32, i32, i32) {
    %c0_i32 = arith.constant 0 : i32
    %c0_i32_0 = arith.constant 0 : i32
    %c0_i32_1 = arith.constant 0 : i32
    return %arg0, %c0_i32, %c0_i32_0 : i32, i32, i32
  }
}

</mosaic_0001>

<bundles_post_ra>
// kernel: refinenet_forward.1
= control target key start
LH: loop header
LB: loop body
LE: loop exit
PB: predicated region body
PF: predicated region fallthrough
CT: control target
= control target key end

     0   :  { %s14576_s27 = smov 0   ;;  %s20033_s0 = inlined_call_operand.vmem [shape: f32[2,8,1158], index: 0, kind: input, shape index: {}]   ;;  %s20034_s1 = inlined_call_operand.vmem [shape: bf16[9,32,8], index: 1, kind: input, shape index: {}]   ;;  %s20035_s2 = inlined_call_operand.vmem [shape: f32[32,1], index: 2, kind: input, shape index: {}]   ;;  %s20036_s3 = inlined_call_operand.vmem [shape: bf16[9,32,32], index: 3, kind: input, shape index: {}]   ;;  %s20037_s4 = inlined_call_operand.vmem [shape: f32[32,1], index: 4, kind: input, shape index: {}]   ;;  %s20038_s5 = inlined_call_operand.vmem [shape: bf16[9,8,32], index: 5, kind: input, shape index: {}]   ;;  %s20039_s6 = inlined_call_operand.vmem [shape: f32[8,1], index: 6, kind: input, shape index: {}]   ;;  %s20040_s7 = inlined_call_operand.vmem [shape: f32[2,1,1088], index: 7, kind: input, shape index: {}]   ;;  %s20041_s8 = inlined_call_operand.vmem [shape: f32[2,1,1088], index: 8, kind: output, shape index: {}]  }
   0x1 LB: > { %s13736_s28 = sadd.s32 4294967295, %s14511_s27   ;;  %p13740_p0 = scmp.ge.s32.totalorder %s14511_s27, 1  ;;  %s14511_s27 = sphi %s14576_s27, %s18_s27  }
   0x2   : > { %p271_p1 = scmp.lt.s32.totalorder %s14511_s27, 3 }
   0x4   : > { %p272_p2 = pnand %p13740_p0, %p271_p1 }
   0x6   : > { %275 = sbr.rel (%p272_p2) target bundleno = 2786 (0xae2), region = 52 }
   0xd   : > { %p308_p3 = scmp.lt.s32.totalorder %s13736_s28, 1  ;;  %v14513_v0 = vmov 0   ;;  %vm597_vm0 = vcmask 1043456   ;;  %s14514_s11 = smov 127   ;;  %v14460_v18 = vld [vmem:[%s20034_s1] sm:$0xff]   ;;  %vm590_vm1 = vcmask 64512  }
   0xe   : > { %657 = vmatprep.mubr.bf16.mxu0 %v14513_v0  ;;  %4840 = vst [vmem:[#allocation2] sm:$0xff] %v14513_v0  ;;  %4848 = vst [vmem:[#allocation2 + $0x40] sm:$0xff] %v14513_v0  ;;  %710 = vmatprep.mubr.bf16.mxu1 %v14513_v0  ;;  %v14461_v24 = vld [vmem:[%s20034_s1 + $0x8] sm:$0xff]   ;;  %s14515_s16 = smov 126   ;;  %s14516_s17 = smov 94   ;;  %vm20071_vm2 = vcmask 1039360  }
   0xf   : > { %4851 = vst [vmem:[#allocation2 + $0x50] sm:$0xff] %v14513_v0  ;;  %4859 = vst [vmem:[#allocation2 + $0x90] sm:$0xff] %v14513_v0  ;;  %s20497_s28 = smov (!%p308_p3, %s13736_s28), 1  ;;  %14458 = vset.pattern.permute.xlu1 %v14513_v0  ;;  %14459 = vset.pattern.permute.xlu0 %v14513_v0  ;;  %s14517_s18 = smov 93   ;;  %v14805_v35 = vld [vmem:[%s20034_s1 + $0x10] sm:$0xff]   ;;  %v14832_v45 = vld [vmem:[%s20034_s1 + $0x18] sm:$0xff]  }
  0x10   : > { %9616 = vst [vmem:[#allocation3] sm:$0xff] %v14513_v0  ;;  %9624 = vst [vmem:[#allocation3 + $0x40] sm:$0xff] %v14513_v0  ;;  %s14412_s29 = smul.u32 80, %s20497_s28  ;;  %s14518_s19 = smov 92   ;;  %vm20052_vm3 = vcmask 1031168   ;;  %vm20049_vm4 = vcmask 769024  }
  0x11   : > { %9626 = vst [vmem:[#allocation3 + $0x50] sm:$0xff] %v14513_v0  ;;  %9634 = vst [vmem:[#allocation3 + $0x90] sm:$0xff] %v14513_v0  ;;  %s14519_s20 = smov 60   ;;  %s14520_s21 = smov 59   ;;  %vm20046_vm5 = vcmask 760832   ;;  %vm20073_vm6 = vcmask 523264  }
  0x12   : > { %s14602_s10 = scalar_lea.vmem %s20033_s0, %s14412_s29  ;;  %s14521_s26 = smov 58   ;;  %vm20045_vm7 = vcmask 752640   ;;  %vm20044_vm8 = vcmask 490496   ;;  %vm20043_vm9 = vcmask 482304   ;;  %vm20042_vm10 = vcmask 474112  }
  0x13   : > { %v1001_v1 = vld [vmem:[%s14602_s10 + $0x10] sm:$0xff]  ;;  %v1003_v2 = vld [vmem:[%s14602_s10 + $0x20] sm:$0xff]  ;;  %v1002_v3 = vld [vmem:[%s14602_s10 + $0x18] sm:$0xff]  ;;  %s14523_s12 = smov 35   ;;  %s14527_s30 = smov 33  }
  0x14   : > { %v14607_v4 = vpack.c.bf16 %v1001_v1, %v1001_v1  ;;  %v14609_v5 = vpack.c.bf16 %v1003_v2, %v1003_v2  ;;  %v1000_v6 = vld [vmem:[%s14602_s10 + $0x8] sm:$0xff]  ;;  %v999_v7 = vld [vmem:[%s14602_s10] sm:$0xff]  ;;  %v1006_v8 = vld [vmem:[%s14602_s10 + $0x38] sm:$0xff]  ;;  %v14614_v9 = vpack.c.bf16 %v1002_v3, %v1002_v3  ;;  %s14528_s9 = smov 1   ;;  %s14529_s13 = smov 2  }
  0x15   : > { %v14616_v10 = vpack.c.bf16 %v1000_v6, %v1000_v6  ;;  %v14618_v11 = vpack.c.bf16 %v999_v7, %v999_v7  ;;  %v1005_v12 = vld [vmem:[%s14602_s10 + $0x30] sm:$0xff]  ;;  %v1004_v13 = vld [vmem:[%s14602_s10 + $0x28] sm:$0xff]  ;;  %v14628_v15 = vpack.c.bf16 %v1006_v8, %v1006_v8  ;;  %v1007_v20 = vld [vmem:[%s14602_s10 + $0x40] sm:$0xff] }
  0x16   : > { %1040 = vrot.lane.b32.xlu0 %v14607_v4, %s14514_s11  ;;  %1044 = vrot.lane.b32.xlu1 %v14609_v5, %s14514_s11  ;;  %v605_v14 = vsel %vm597_vm0, %v14607_v4, 0  ;;  %v14630_v16 = vpack.c.bf16 %v1004_v13, %v1004_v13  ;;  %v14641_v19 = vpack.c.bf16 %v1005_v12, %v1005_v12  ;;  %v611_v21 = vsel %vm597_vm0, %v14609_v5, 0  ;;  %v3363_v26 = vld [vmem:[%s14602_s10 + $0x48] sm:$0xff]  ;;  %v4310_v47 = vld [vmem:[%s14602_s10 + $0x10] sm:$0xff] }
  0x17   : > { %13744 = vmatprep.subr.msk.bf16.mxu0 %vm597_vm0, %v14616_v10  ;;  %v599_v17 = vsel %vm597_vm0, %v14618_v11, 0  ;;  %13747 = vmatprep.subr.msk.bf16.mxu1 %vm597_vm0, %v14614_v9  ;;  %v14659_v23 = vpack.c.bf16 %v1007_v20, %v1007_v20  ;;  %v14784_v27 = vpack.c.bf16 %v3363_v26, %v3363_v26  ;;  %v4320_v52 = vpack.c.bf16 %v4310_v47, %v4310_v47  ;;  %v4312_v53 = vld [vmem:[%s14602_s10 + $0x20] sm:$0xff]  ;;  %v4311_v55 = vld [vmem:[%s14602_s10 + $0x18] sm:$0xff]  ;;  %v4314_v62 = vld [vmem:[%s14602_s10 + $0x30] sm:$0xff] }
  0x18   : > { %626 = vmatpush1.bf16.msra.mxu0 %v599_v17  ;;  %679 = vmatpush1.bf16.msra.mxu1 %v605_v14  ;;  %v617_v22 = vsel %vm597_vm0, %v14641_v19, 0  ;;  %v4322_v58 = vpack.c.bf16 %v4312_v53, %v4312_v53  ;;  %v4321_v61 = vpack.c.bf16 %v4311_v55, %v4311_v55  ;;  %v4313_v63 = vld [vmem:[%s14602_s10 + $0x28] sm:$0xff]  ;;  %v4316_v6 = vld [vmem:[%s14602_s10 + $0x40] sm:$0xff]  ;;  %v4315_v7 = vld [vmem:[%s14602_s10 + $0x38] sm:$0xff] }
  0x19   : > { %13750 = vmatprep.subr.msk.bf16.mxu0 %vm597_vm0, %v14630_v16  ;;  %13753 = vmatprep.subr.msk.bf16.mxu1 %vm597_vm0, %v14628_v15  ;;  %v623_v25 = vsel %vm597_vm0, %v14659_v23, 0  ;;  %v4325_v13 = vpack.c.bf16 %v4315_v7, %v4315_v7  ;;  %v14464_v17 = vld [vmem:[%s20034_s1 + $0x20] sm:$0xff]   ;;  %v14466_v47 = vld [vmem:[%s20034_s1 + $0x30] sm:$0xff]  }
  0x1a   : > { %1042 = vrot.lane.b32.xlu0 %v14614_v9, %s14514_s11  ;;  %1036 = vrot.lane.b32.xlu1 %v14618_v11, %s14514_s11 }
  0x1b   : > { %13745 = vmatmul.mubr.msk.bf16.vlgmr.msra.gmra.mrb[0].mxu0 %vm590_vm1, %v14460_v18  ;;  %13748 = vmatmul.mubr.msk.bf16.vlgmr.msra.gmra.mrb[0].mxu1 %vm590_vm1, %v14460_v18 }
  0x1c   : > { %667 = vmatprep.mubr.bf16.mxu0 %v14513_v0  ;;  %732 = vmatpush1.bf16.msra.mxu0 %v611_v21 }
  0x1d   : > { %720 = vmatprep.mubr.bf16.mxu1 %v14513_v0  ;;  %785 = vmatpush1.bf16.msra.mxu1 %v617_v22 }
  0x1e   : > { %1038 = vrot.lane.b32.xlu0 %v14616_v10, %s14514_s11  ;;  %1048 = vrot.lane.b32.xlu1 %v14641_v19, %s14514_s11 }
  0x1f   : > { %14403 = vmatprep.subr.msk.bf16.mxu0 %vm597_vm0, %v14659_v23 }
  0x22   : > { %1050 = vrot.lane.b32.xlu0 %v14628_v15, %s14514_s11  ;;  %1052 = vrot.lane.b32.xlu1 %v14659_v23, %s14514_s11 }
  0x23   : > { %13746 = vmatmul.mubr.msk.bf16.gmra.mrb[4].mxu0 %vm590_vm1, %v14461_v24  ;;  %13749 = vmatmul.mubr.msk.bf16.gmra.mrb[4].mxu1 %vm590_vm1, %v14461_v24 }
  0x24   : > { %763 = vmatprep.mubr.bf16.mxu0 %v14513_v0  ;;  %816 = vmatprep.mubr.bf16.mxu1 %v14513_v0 }
  0x26   : > { %1046 = vrot.lane.b32.xlu0 %v14630_v16, %s14514_s11  ;;  %1507 = vrot.lane.b32.xlu1 %v14618_v11, %s14515_s16 }
  0x2a   : > { %1509 = vrot.lane.b32.xlu0 %v14616_v10, %s14515_s16  ;;  %1511 = vrot.lane.b32.xlu1 %v14607_v4, %s14515_s16 }
  0x2b   : > { %13751 = vmatmul.mubr.msk.bf16.vlgmr.msra.gmra.mrb[8].mxu0 %vm590_vm1, %v14460_v18  ;;  %13754 = vmatmul.mubr.msk.bf16.vlgmr.msra.gmra.mrb[8].mxu1 %vm590_vm1, %v14460_v18 }
  0x2c   : > { %773 = vmatprep.mubr.bf16.mxu0 %v14513_v0  ;;  %14206 = vmatpush3.bf16.msra.mxu0 %v623_v25 }
  0x2d   : > { %826 = vmatprep.mubr.bf16.mxu1 %v14513_v0 }
  0x2e   : > { %1513 = vrot.lane.b32.xlu0 %v14614_v9, %s14515_s16  ;;  %1515 = vrot.lane.b32.xlu1 %v14609_v5, %s14515_s16 }
  0x32   : > { %1517 = vrot.lane.b32.xlu0 %v14630_v16, %s14515_s16  ;;  %1519 = vrot.lane.b32.xlu1 %v14641_v19, %s14515_s16 }
  0x33   : > { %13752 = vmatmul.mubr.msk.bf16.gmra.mrb[12].mxu0 %vm590_vm1, %v14461_v24  ;;  %13755 = vmatmul.mubr.msk.bf16.gmra.mrb[12].mxu1 %vm590_vm1, %v14461_v24 }
  0x34   : > { %14207 = vmatprep.mubr.msk.bf16.mxu0 %vm590_vm1, %v14460_v18  ;;  %1128 = vmatprep.mubr.bf16.mxu1 %v14513_v0 }
  0x36   : > { %1521 = vrot.lane.b32.xlu0 %v14628_v15, %s14515_s16  ;;  %1523 = vrot.lane.b32.xlu1 %v14659_v23, %s14515_s16 }
  0x3a   : > { %1982 = vrot.lane.b32.xlu0 %v14607_v4, %s14516_s17  ;;  %1984 = vrot.lane.b32.xlu1 %v14614_v9, %s14516_s17 }
  0x3b   : > { %14208 = vmatmul.mubr.msk.bf16.vlgmr.msra.gmra.mrb[16].mxu0 %vm590_vm1, %v14461_v24  ;;  %v14465_v24 = vld [vmem:[%s20034_s1 + $0x28] sm:$0xff]  }
  0x3c   : > { %1181 = vmatprep.mubr.bf16.mxu0 %v14513_v0 }
  0x3e   : > { %1986 = vrot.lane.b32.xlu0 %v14609_v5, %s14516_s17  ;;  %1978 = vrot.lane.b32.xlu1 %v14618_v11, %s14516_s17 }
  0x42   : > { %1980 = vrot.lane.b32.xlu0 %v14616_v10, %s14516_s17  ;;  %1990 = vrot.lane.b32.xlu1 %v14641_v19, %s14516_s17 }
  0x46   : > { %1992 = vrot.lane.b32.xlu0 %v14628_v15, %s14516_s17  ;;  %1994 = vrot.lane.b32.xlu1 %v14659_v23, %s14516_s17 }
  0x4a   : > { %1988 = vrot.lane.b32.xlu0 %v14630_v16, %s14516_s17  ;;  %2449 = vrot.lane.b32.xlu1 %v14618_v11, %s14517_s18 }
  0x4e   : > { %2451 = vrot.lane.b32.xlu0 %v14616_v10, %s14517_s18  ;;  %2453 = vrot.lane.b32.xlu1 %v14607_v4, %s14517_s18 }
  0x52   : > { %2455 = vrot.lane.b32.xlu0 %v14614_v9, %s14517_s18  ;;  %2457 = vrot.lane.b32.xlu1 %v14609_v5, %s14517_s18 }
  0x56   : > { %2459 = vrot.lane.b32.xlu0 %v14630_v16, %s14517_s18  ;;  %2461 = vrot.lane.b32.xlu1 %v14641_v19, %s14517_s18 }
  0x5a   : > { %2463 = vrot.lane.b32.xlu0 %v14628_v15, %s14517_s18  ;;  %2465 = vrot.lane.b32.xlu1 %v14659_v23, %s14517_s18 }
  0x5e   : > { %2924 = vrot.lane.b32.xlu0 %v14607_v4, %s14518_s19  ;;  %2926 = vrot.lane.b32.xlu1 %v14614_v9, %s14518_s19 }
  0x62   : > { %2928 = vrot.lane.b32.xlu0 %v14609_v5, %s14518_s19  ;;  %2920 = vrot.lane.b32.xlu1 %v14618_v11, %s14518_s19 }
  0x66   : > { %2922 = vrot.lane.b32.xlu0 %v14616_v10, %s14518_s19  ;;  %2932 = vrot.lane.b32.xlu1 %v14641_v19, %s14518_s19 }
  0x6a   : > { %2934 = vrot.lane.b32.xlu0 %v14628_v15, %s14518_s19  ;;  %2936 = vrot.lane.b32.xlu1 %v14659_v23, %s14518_s19 }
  0x6e   : > { %2930 = vrot.lane.b32.xlu0 %v14630_v16, %s14518_s19  ;;  %3394 = vrot.lane.b32.xlu1 %v14618_v11, %s14519_s20 }
  0x72   : > { %3396 = vrot.lane.b32.xlu0 %v14616_v10, %s14519_s20  ;;  %3398 = vrot.lane.b32.xlu1 %v14607_v4, %s14519_s20 }
  0x76   : > { %3400 = vrot.lane.b32.xlu0 %v14614_v9, %s14519_s20  ;;  %3402 = vrot.lane.b32.xlu1 %v14609_v5, %s14519_s20 }
  0x7a   : > { %3404 = vrot.lane.b32.xlu0 %v14630_v16, %s14519_s20  ;;  %3406 = vrot.lane.b32.xlu1 %v14641_v19, %s14519_s20 }
  0x7e   : > { %3408 = vrot.lane.b32.xlu0 %v14628_v15, %s14519_s20  ;;  %3410 = vrot.lane.b32.xlu1 %v14659_v23, %s14519_s20 }
  0x82   : > { %3875 = vrot.lane.b32.xlu1 %v14607_v4, %s14520_s21  ;;  %3412 = vrot.lane.b32.xlu0 %v14784_v27, %s14519_s20  ;;  %v4324_v4 = vpack.c.bf16 %v4314_v62, %v4314_v62 }
  0x86   : > { %3879 = vrot.lane.b32.xlu1 %v14609_v5, %s14520_s21  ;;  %3877 = vrot.lane.b32.xlu0 %v14614_v9, %s14520_s21  ;;  %v4323_v5 = vpack.c.bf16 %v4313_v63, %v4313_v63 }
  0x88   : > { %v1041_v28 = vpop.permute.xlu0 %1040  ;;  %v1045_v29 = vpop.permute.xlu1 %1044 }
  0x8a   : > { %3873 = vrot.lane.b32.xlu1 %v14616_v10, %s14520_s21  ;;  %3871 = vrot.lane.b32.xlu0 %v14618_v11, %s14520_s21 }
  0x8c   : > { %v1043_v30 = vpop.permute.xlu0 %1042  ;;  %v1037_v31 = vpop.permute.xlu1 %1036 }
  0x8d   : > { %v1057_v32 = vsel %vm20071_vm2, %v1041_v28, %v1043_v30  ;;  %v1058_v33 = vsel %vm20071_vm2, %v1043_v30, %v1045_v29 }
  0x8e   : > { %13767 = vmatprep.subr.msk.bf16.mxu0 %vm597_vm0, %v1058_v33  ;;  %v1076_v34 = vsel %vm597_vm0, %v1057_v32, 0  ;;  %3885 = vrot.lane.b32.xlu1 %v14628_v15, %s14520_s21 }
  0x8f   : > { %1150 = vmatpush1.bf16.msra.mxu0 %v1076_v34  ;;  %3883 = vrot.lane.b32.xlu0 %v14641_v19, %s14520_s21 }
  0x90   : > { %v1039_v36 = vpop.permute.xlu0 %1038  ;;  %v1049_v37 = vpop.permute.xlu1 %1048 }
  0x91   : > { %v1055_v38 = vsel %vm20071_vm2, %v1037_v31, %v1039_v36  ;;  %v1056_v39 = vsel %vm20071_vm2, %v1039_v36, %v1041_v28  ;;  %v14522_v31 = vmov 0.0  }
  0x92   : > { %v1070_v40 = vsel %vm597_vm0, %v1055_v38, 0  ;;  %13764 = vmatprep.subr.msk.bf16.mxu1 %vm597_vm0, %v1056_v39  ;;  %13768 = vmatmul.mubr.msk.bf16.vlgmr.msra.gmra.mrb[20].mxu0 %vm590_vm1, %v14805_v35  ;;  %13057 = vst [vmem:[#allocation5] sm:$0xff] %v14522_v31  ;;  %512 = vst.msk [vmem:[#allocation4 + $0xd0] sm:$0xff] %vm20073_vm6, %v14522_v31 }
  0x93   : > { %1097 = vmatpush1.bf16.msra.mxu1 %v1070_v40  ;;  %1191 = vmatprep.mubr.bf16.mxu0 %v14513_v0  ;;  %494 = vst.msk [vmem:[#allocation4 + $0x40] sm:$0xff] %vm20073_vm6, %v14522_v31  ;;  %503 = vst.msk [vmem:[#allocation4 + $0x88] sm:$0xff] %vm20073_vm6, %v14522_v31 }
  0x94   : > { %v1051_v41 = vpop.permute.xlu0 %1050  ;;  %v14818_v42 = vpop.permute.xlu1 %1052  ;;  %3881 = vrot.lane.b32.xlu1 %v14630_v16, %s14520_s21  ;;  %3887 = vrot.lane.b32.xlu0 %v14659_v23, %s14520_s21  ;;  %521 = vst.msk [vmem:[#allocation4 + $0x118] sm:$0xff] %vm20073_vm6, %v14522_v31 }
  0x95   : > { %v1061_v43 = vsel %vm20071_vm2, %v1049_v37, %v1051_v41  ;;  %v1062_v44 = vsel %vm20071_vm2, %v1051_v41, %v14818_v42  ;;  %v1094_v14 = vsel %vm597_vm0, %v14818_v42, 0 }
  0x96   : > { %13765 = vmatmul.mubr.msk.bf16.vlgmr.msra.gmra.mrb[16].mxu1 %vm590_vm1, %v14805_v35  ;;  %13773 = vmatprep.subr.msk.bf16.mxu0 %vm597_vm0, %v1062_v44  ;;  %v1088_v46 = vsel %vm597_vm0, %v1061_v43, 0 }
  0x97   : > { %1256 = vmatpush1.bf16.msra.mxu0 %v1088_v46  ;;  %1138 = vmatprep.mubr.bf16.mxu1 %v14513_v0 }
  0x98   : > { %v1047_v48 = vpop.permute.xlu0 %1046  ;;  %v1508_v49 = vpop.permute.xlu1 %1507  ;;  %4350 = vrot.lane.b32.xlu1 %v14616_v10, %s14521_s26  ;;  %4348 = vrot.lane.b32.xlu0 %v14618_v11, %s14521_s26  ;;  %v4326_v10 = vpack.c.bf16 %v4316_v6, %v4316_v6 }
  0x99   : > { %v1059_v50 = vsel %vm20071_vm2, %v1045_v29, %v1047_v48  ;;  %v1060_v51 = vsel %vm20071_vm2, %v1047_v48, %v1049_v37 }
  0x9a   : > { %13769 = vmatmul.mubr.msk.bf16.gmra.mrb[24].mxu0 %vm590_vm1, %v14832_v45  ;;  %13770 = vmatprep.subr.msk.bf16.mxu1 %vm597_vm0, %v1060_v51  ;;  %v1082_v54 = vsel %vm597_vm0, %v1059_v50, 0 }
  0x9b   : > { %1203 = vmatpush1.bf16.msra.mxu1 %v1082_v54  ;;  %1287 = vmatprep.mubr.bf16.mxu0 %v14513_v0  ;;  %v14467_v54 = vld [vmem:[%s20034_s1 + $0x38] sm:$0xff]  }
  0x9c   : > { %14404 = vmatprep.subr.msk.bf16.mxu1 %vm597_vm0, %v14818_v42  ;;  %v1510_v56 = vpop.permute.xlu0 %1509  ;;  %v1512_v57 = vpop.permute.xlu1 %1511  ;;  %3889 = vrot.lane.b32.xlu1 %v14784_v27, %s14520_s21 }
  0x9d   : > { %v1526_v59 = vsel %vm20052_vm3, %v1508_v49, %v1510_v56  ;;  %v1527_v60 = vsel %vm20052_vm3, %v1510_v56, %v1512_v57  ;;  %4352 = vrot.lane.b32.xlu0 %v4320_v52, %s14521_s26 }
  0x9e   : > { %13766 = vmatmul.mubr.msk.bf16.gmra.mrb[20].mxu1 %vm590_vm1, %v14832_v45  ;;  %13784 = vmatprep.subr.msk.bf16.mxu0 %vm597_vm0, %v1527_v60  ;;  %v1541_v1 = vsel %vm597_vm0, %v1526_v59, 0 }
  0x9f   : > { %1234 = vmatprep.mubr.bf16.mxu1 %v14513_v0 }
  0xa0   : > { %v1514_v2 = vpop.permute.xlu0 %1513  ;;  %v1516_v3 = vpop.permute.xlu1 %1515  ;;  %4356 = vrot.lane.b32.xlu1 %v4322_v58, %s14521_s26 }
  0xa1   : > { %4354 = vrot.lane.b32.xlu0 %v4321_v61, %s14521_s26  ;;  %v1529_v11 = vsel %vm20052_vm3, %v1514_v2, %v1516_v3  ;;  %v1528_v21 = vsel %vm20052_vm3, %v1512_v57, %v1514_v2 }
  0xa2   : > { %13774 = vmatmul.mubr.msk.bf16.vlgmr.msra.gmra.mrb[28].mxu0 %vm590_vm1, %v14805_v35  ;;  %v1547_v23 = vsel %vm597_vm0, %v1528_v21, 0 }
  0xa3   : > { %1297 = vmatprep.mubr.bf16.mxu0 %v14513_v0  ;;  %1568 = vmatpush1.bf16.msra.mxu0 %v1541_v1 }
  0xa4   : > { %v1518_v8 = vpop.permute.xlu0 %1517  ;;  %v1520_v9 = vpop.permute.xlu1 %1519  ;;  %4360 = vrot.lane.b32.xlu1 %v4324_v4, %s14521_s26 }
  0xa5   : > { %v1531_v12 = vsel %vm20052_vm3, %v1518_v8, %v1520_v9  ;;  %4358 = vrot.lane.b32.xlu0 %v4323_v5, %s14521_s26  ;;  %v1530_v16 = vsel %vm20052_vm3, %v1516_v3, %v1518_v8 }
  0xa6   : > { %13771 = vmatmul.mubr.msk.bf16.vlgmr.msra.gmra.mrb[24].mxu1 %vm590_vm1, %v14805_v35  ;;  %13790 = vmatprep.subr.msk.bf16.mxu0 %vm597_vm0, %v1531_v12  ;;  %v1553_v18 = vsel %vm597_vm0, %v1530_v16, 0  ;;  %v15011_v12 = vld [vmem:[%s20034_s1 + $0x40] sm:$0xff]  }
  0xa7   : > { %14212 = vmatpush3.bf16.msra.mxu1 %v1094_v14  ;;  %1244 = vmatprep.mubr.bf16.mxu1 %v14513_v0 }
  0xa8   : > { %13787 = vmatprep.subr.msk.bf16.mxu1 %vm597_vm0, %v1529_v11  ;;  %4364 = vrot.lane.b32.xlu1 %v4326_v10, %s14521_s26  ;;  %v1522_v15 = vpop.permute.xlu0 %1521  ;;  %v1524_v20 = vpop.permute.xlu1 %1523 }
  0xa9   : > { %4362 = vrot.lane.b32.xlu0 %v4325_v13, %s14521_s26  ;;  %v1533_v22 = vsel %vm20052_vm3, %v1522_v15, %v1524_v20  ;;  %v1532_v26 = vsel %vm20052_vm3, %v1520_v9, %v1522_v15  ;;  %v1565_v32 = vsel %vm597_vm0, %v1524_v20, 0 }
  0xaa   : > { %13775 = vmatmul.mubr.msk.bf16.gmra.mrb[32].mxu0 %vm590_vm1, %v14832_v45 }
  0xab   : > { %1599 = vmatprep.mubr.bf16.mxu0 %v14513_v0 }
  0xac   : > { %v1983_v19 = vpop.permute.xlu0 %1982  ;;  %v1985_v29 = vpop.permute.xlu1 %1984 }
  0xad   : > { %4366 = vrot.lane.b32.xlu0 %v14784_v27, %s14521_s26  ;;  %v1559_v27 = vsel %vm597_vm0, %v1532_v26, 0  ;;  %v1999_v41 = vsel %vm20049_vm4, %v1983_v19, %v1985_v29 }
  0xae   : > { %13772 = vmatmul.mubr.msk.bf16.gmra.mrb[28].mxu1 %vm590_vm1, %v14832_v45  ;;  %v2018_v43 = vsel %vm597_vm0, %v1999_v41, 0 }
  0xaf   : > { %14213 = vmatprep.mubr.msk.bf16.mxu1 %vm590_vm1, %v14805_v35 }
  0xb0   : > { %v14910_v25 = vpop.permute.xlu0 %1986  ;;  %v1979_v33 = vpop.permute.xlu1 %1978 }
  0xb1   : > { %v2000_v34 = vsel %vm20049_vm4, %v1985_v29, %v14910_v25 }
  0xb2   : > { %13785 = vmatmul.mubr.msk.bf16.vlgmr.msra.gmra.mrb[36].mxu0 %vm590_vm1, %v14464_v17 }
  0xb3   : > { %1609 = vmatprep.mubr.bf16.mxu0 %v14513_v0  ;;  %1674 = vmatpush1.bf16.msra.mxu0 %v1553_v18 }
  0xb4   : > { %14405 = vmatprep.subr.msk.bf16.mxu0 %vm597_vm0, %v1524_v20  ;;  %v1981_v28 = vpop.permute.xlu0 %1980  ;;  %v1991_v36 = vpop.permute.xlu1 %1990 }
  0xb5   : > { %v1998_v30 = vsel %vm20049_vm4, %v1981_v28, %v1983_v19  ;;  %v1997_v37 = vsel %vm20049_vm4, %v1979_v33, %v1981_v28 }
  0xb6   : > { %14214 = vmatmul.mubr.msk.bf16.vlgmr.msra.gmra.mrb[32].mxu1 %vm590_vm1, %v14832_v45  ;;  %v2012_v39 = vsel %vm597_vm0, %v1997_v37, 0 }
  0xb7   : > { %1621 = vmatpush1.bf16.msra.mxu1 %v1547_v23  ;;  %1652 = vmatprep.mubr.bf16.mxu1 %v14513_v0 }
  0xb8   : > { %13793 = vmatprep.subr.msk.bf16.mxu1 %vm597_vm0, %v1533_v22  ;;  %v1993_v35 = vpop.permute.xlu0 %1992  ;;  %v1995_v40 = vpop.permute.xlu1 %1994 }
  0xb9   : > { %v2004_v45 = vsel %vm20049_vm4, %v1993_v35, %v1995_v40  ;;  %v2003_v46 = vsel %vm20049_vm4, %v1991_v36, %v1993_v35  ;;  %v2036_v63 = vsel %vm597_vm0, %v1995_v40, 0 }
  0xba   : > { %13786 = vmatmul.mubr.msk.bf16.gmra.mrb[40].mxu0 %vm590_vm1, %v14465_v24  ;;  %v2030_v50 = vsel %vm597_vm0, %v2003_v46, 0 }
  0xbb   : > { %1705 = vmatprep.mubr.bf16.mxu0 %v14513_v0 }
  0xbc   : > { %v1989_v38 = vpop.permute.xlu0 %1988  ;;  %v2450_v44 = vpop.permute.xlu1 %2449 }
  0xbd   : > { %v2002_v42 = vsel %vm20049_vm4, %v1989_v38, %v1991_v36  ;;  %v2001_v52 = vsel %vm20049_vm4, %v14910_v25, %v1989_v38 }
  0xbe   : > { %13788 = vmatmul.mubr.msk.bf16.vlgmr.msra.gmra.mrb[36].mxu1 %vm590_vm1, %v14464_v17  ;;  %v2024_v53 = vsel %vm597_vm0, %v2001_v52, 0  ;;  %v548_v52 = vld [vmem:[#allocation4 + $0xd0] sm:$0xff] }
  0xbf   : > { %1727 = vmatpush1.bf16.msra.mxu1 %v1559_v27  ;;  %1662 = vmatprep.mubr.bf16.mxu1 %v14513_v0  ;;  %v15045_v27 = vld [vmem:[%s20034_s1 + $0x48] sm:$0xff]  }
  0xc0   : > { %13804 = vmatprep.subr.msk.bf16.mxu1 %vm597_vm0, %v1998_v30  ;;  %v2452_v48 = vpop.permute.xlu0 %2451  ;;  %v14949_v49 = vpop.permute.xlu1 %2453 }
  0xc1   : > { %v2469_v51 = vsel %vm20046_vm5, %v2452_v48, %v14949_v49  ;;  %v2468_v57 = vsel %vm20046_vm5, %v2450_v44, %v2452_v48 }
  0xc2   : > { %13791 = vmatmul.mubr.msk.bf16.vlgmr.msra.gmra.mrb[44].mxu0 %vm590_vm1, %v14464_v17  ;;  %v2483_v60 = vsel %vm597_vm0, %v2468_v57, 0  ;;  %v557_v57 = vld [vmem:[#allocation4 + $0x118] sm:$0xff] }
  0xc3   : > { %1715 = vmatprep.mubr.bf16.mxu0 %v14513_v0  ;;  %14218 = vmatpush3.bf16.msra.mxu0 %v1565_v32 }
  0xc4   : > { %13807 = vmatprep.subr.msk.bf16.mxu0 %vm597_vm0, %v2000_v34  ;;  %v2458_v55 = vpop.permute.xlu1 %2457  ;;  %v2456_v56 = vpop.permute.xlu0 %2455 }
  0xc5   : > { %v2471_v62 = vsel %vm20046_vm5, %v2456_v56, %v2458_v55  ;;  %v2470_v23 = vsel %vm20046_vm5, %v14949_v49, %v2456_v56 }
  0xc6   : > { %13789 = vmatmul.mubr.msk.bf16.gmra.mrb[40].mxu1 %vm590_vm1, %v14465_v24  ;;  %v2489_v26 = vsel %vm597_vm0, %v2470_v23, 0 }
  0xc7   : > { %1758 = vmatprep.mubr.bf16.mxu1 %v14513_v0 }
  0xc8   : > { %v2460_v58 = vpop.permute.xlu0 %2459  ;;  %v2462_v59 = vpop.permute.xlu1 %2461 }
  0xc9   : > { %v2473_v61 = vsel %vm20046_vm5, %v2460_v58, %v2462_v59  ;;  %v2472_v10 = vsel %vm20046_vm5, %v2458_v55, %v2460_v58 }
  0xca   : > { %13792 = vmatmul.mubr.msk.bf16.gmra.mrb[48].mxu0 %vm590_vm1, %v14465_v24 }
  0xcb   : > { %14219 = vmatprep.mubr.msk.bf16.mxu0 %vm590_vm1, %v14464_v17 }
  0xcc   : > { %v2464_v7 = vpop.permute.xlu0 %2463  ;;  %v2466_v21 = vpop.permute.xlu1 %2465 }
  0xcd   : > { %v2474_v34 = vsel %vm20046_vm5, %v2462_v59, %v2464_v7  ;;  %v2507_v46 = vsel %vm597_vm0, %v2466_v21, 0 }
  0xce   : > { %13794 = vmatmul.mubr.msk.bf16.vlgmr.msra.gmra.mrb[44].mxu1 %vm590_vm1, %v14464_v17  ;;  %v2495_v17 = vsel %vm597_vm0, %v2472_v10, 0  ;;  %v2501_v38 = vsel %vm597_vm0, %v2474_v34, 0  ;;  %v15117_v34 = vld [vmem:[#allocation2] sm:$0xff] }
  0xcf   : > { %1768 = vmatprep.mubr.bf16.mxu1 %v14513_v0  ;;  %2039 = vmatpush1.bf16.msra.mxu1 %v2012_v39 }
  0xd0   : > { %13810 = vmatprep.subr.msk.bf16.mxu1 %vm597_vm0, %v2002_v42  ;;  %v15005_v11 = vpop.permute.xlu0 %2924  ;;  %v2927_v32 = vpop.permute.xlu1 %2926 }
  0xd2   : > { %14220 = vmatmul.mubr.msk.bf16.vlgmr.msra.gmra.mrb[52].mxu0 %vm590_vm1, %v14465_v24 }
  0xd3   : > { %2092 = vmatpush1.bf16.msra.mxu0 %v2018_v43  ;;  %2123 = vmatprep.mubr.bf16.mxu0 %v14513_v0 }
  0xd4   : > { %13813 = vmatprep.subr.msk.bf16.mxu0 %vm597_vm0, %v2004_v45  ;;  %v15038_v25 = vpop.permute.xlu0 %2928  ;;  %v2921_v41 = vpop.permute.xlu1 %2920 }
  0xd5   : > { %v2942_v48 = vsel %vm20045_vm7, %v2927_v32, %v15038_v25 }
  0xd6   : > { %13795 = vmatmul.mubr.msk.bf16.gmra.mrb[48].mxu1 %vm590_vm1, %v14465_v24  ;;  %v2475_v24 = vsel %vm20046_vm5, %v2464_v7, %v2466_v21 }
  0xd7   : > { %2070 = vmatprep.mubr.bf16.mxu1 %v14513_v0 }
  0xd8   : > { %v2923_v39 = vpop.permute.xlu0 %2922 }
  0xda   : > { %13808 = vmatmul.mubr.msk.bf16.vlgmr.msra.gmra.mrb[56].mxu0 %vm590_vm1, %v14466_v47 }
  0xdb   : > { %2133 = vmatprep.mubr.bf16.mxu0 %v14513_v0  ;;  %2198 = vmatpush1.bf16.msra.mxu0 %v2030_v50 }
  0xdc   : > { %13824 = vmatprep.subr.msk.bf16.mxu0 %vm597_vm0, %v2469_v51  ;;  %v2935_v55 = vpop.permute.xlu0 %2934 }
  0xde   : > { %13805 = vmatmul.mubr.msk.bf16.vlgmr.msra.gmra.mrb[52].mxu1 %vm590_vm1, %v14466_v47 }
  0xdf   : > { %2145 = vmatpush1.bf16.msra.mxu1 %v2024_v53  ;;  %2080 = vmatprep.mubr.bf16.mxu1 %v14513_v0  ;;  %v2933_v53 = vpop.permute.xlu1 %2932 }
  0xe0   : > { %14406 = vmatprep.subr.msk.bf16.mxu1 %vm597_vm0, %v1995_v40  ;;  %v2940_v40 = vsel %vm20045_vm7, %v2923_v39, %v15005_v11 }
  0xe2   : > { %13809 = vmatmul.mubr.msk.bf16.gmra.mrb[60].mxu0 %vm590_vm1, %v14467_v54 }
  0xe3   : > { %2229 = vmatprep.mubr.bf16.mxu0 %v14513_v0  ;;  %v2937_v23 = vpop.permute.xlu1 %2936 }
  0xe6   : > { %13806 = vmatmul.mubr.msk.bf16.gmra.mrb[56].mxu1 %vm590_vm1, %v14467_v54 }
  0xe7   : > { %2176 = vmatprep.mubr.bf16.mxu1 %v14513_v0 }
  0xea   : > { %13814 = vmatmul.mubr.msk.bf16.vlgmr.msra.gmra.mrb[64].mxu0 %vm590_vm1, %v14466_v47 }
  0xeb   : > { %2239 = vmatprep.mubr.bf16.mxu0 %v14513_v0  ;;  %2510 = vmatpush1.bf16.msra.mxu0 %v2483_v60  ;;  %v539_v60 = vld [vmem:[#allocation4 + $0x88] sm:$0xff] }
  0xec   : > { %13830 = vmatprep.subr.msk.bf16.mxu0 %vm597_vm0, %v2473_v61 }
  0xee   : > { %13811 = vmatmul.mubr.msk.bf16.vlgmr.msra.gmra.mrb[60].mxu1 %vm590_vm1, %v14466_v47  ;;  %v14984_v1 = vpop.f32.mrb[0].mxu0  ;;  %v14986_v2 = vpop.f32.mrb[0].mxu1 }
  0xef   : > { %14224 = vmatpush3.bf16.msra.mxu1 %v2036_v63  ;;  %2186 = vmatprep.mubr.bf16.mxu1 %v14513_v0  ;;  %v14989_v3 = vpop.f32.mrb[1].mxu0  ;;  %v14991_v4 = vpop.f32.mrb[1].mxu1  ;;  %v2939_v63 = vsel %vm20045_vm7, %v2921_v41, %v2923_v39 }
  0xf0   : > { %13827 = vmatprep.subr.msk.bf16.mxu1 %vm597_vm0, %v2471_v62  ;;  %v14994_v5 = vpop.f32.mrb[2].mxu0  ;;  %v14996_v6 = vpop.f32.mrb[2].mxu1 }
  0xf1   : > { %v14998_v8 = vpop.f32.mrb[3].mxu0  ;;  %v15001_v9 = vpop.f32.mrb[3].mxu1 }
  0xf2   : > { %13815 = vmatmul.mubr.msk.bf16.gmra.mrb[68].mxu0 %vm590_vm1, %v14467_v54  ;;  %v3395_v39 = vpop.permute.xlu1 %3394 }
  0xf3   : > { %2541 = vmatprep.mubr.bf16.mxu0 %v14513_v0 }
  0xf6   : > { %13812 = vmatmul.mubr.msk.bf16.gmra.mrb[64].mxu1 %vm590_vm1, %v14467_v54  ;;  %v15013_v13 = vpop.f32.mrb[4].mxu0  ;;  %v15015_v14 = vpop.f32.mrb[4].mxu1 }
  0xf7   : > { %14225 = vmatprep.mubr.msk.bf16.mxu1 %vm590_vm1, %v14466_v47  ;;  %v15018_v15 = vpop.f32.mrb[5].mxu0  ;;  %v15020_v16 = vpop.f32.mrb[5].mxu1 }
  0xf8   : > { %v15023_v18 = vpop.f32.mrb[6].mxu0  ;;  %v15027_v20 = vpop.f32.mrb[6].mxu1 }
  0xf9   : > { %v15025_v19 = vpop.f32.mrb[7].mxu0  ;;  %v15031_v22 = vpop.f32.mrb[7].mxu1 }
  0xfa   : > { %13825 = vmatmul.mubr.msk.bf16.vlgmr.msra.gmra.mrb[72].mxu0 %vm590_vm1, %v15011_v12  ;;  %v3399_v41 = vpop.permute.xlu1 %3398 }
  0xfb   : > { %2551 = vmatprep.mubr.bf16.mxu0 %v14513_v0  ;;  %2616 = vmatpush1.bf16.msra.mxu0 %v2495_v17 }
  0xfc   : > { %14407 = vmatprep.subr.msk.bf16.mxu0 %vm597_vm0, %v2466_v21  ;;  %v2954_v21 = vsel %vm597_vm0, %v2939_v63, 0 }
  0xfe   : > { %14226 = vmatmul.mubr.msk.bf16.vlgmr.msra.gmra.mrb[68].mxu1 %vm590_vm1, %v14467_v54  ;;  %v15047_v28 = vpop.f32.mrb[8].mxu0  ;;  %v15049_v29 = vpop.f32.mrb[8].mxu1  ;;  %v530_v54 = vld [vmem:[#allocation4 + $0x40] sm:$0xff] }
  0xff   : > { %2563 = vmatpush1.bf16.msra.mxu1 %v2489_v26  ;;  %2594 = vmatprep.mubr.bf16.mxu1 %v14513_v0  ;;  %v15052_v30 = vpop.f32.mrb[9].mxu0  ;;  %v15054_v31 = vpop.f32.mrb[9].mxu1 }
 0x100   : > { %13833 = vmatprep.subr.msk.bf16.mxu1 %vm597_vm0, %v2475_v24  ;;  %v15057_v33 = vpop.f32.mrb[10].mxu0  ;;  %v15062_v36 = vpop.f32.mrb[10].mxu1  ;;  %v2941_v24 = vsel %vm20045_vm7, %v15005_v11, %v2927_v32  ;;  %v2945_v11 = vsel %vm20045_vm7, %v2933_v53, %v2935_v55 }
 0x101   : > { %v15060_v35 = vpop.f32.mrb[11].mxu0  ;;  %v15066_v37 = vpop.f32.mrb[11].mxu1 }
 0x102   : > { %13826 = vmatmul.mubr.msk.bf16.gmra.mrb[76].mxu0 %vm590_vm1, %v15045_v27 }
 0x103   : > { %2647 = vmatprep.mubr.bf16.mxu0 %v14513_v0 }
 0x106   : > { %13828 = vmatmul.mubr.msk.bf16.vlgmr.msra.gmra.mrb[72].mxu1 %vm590_vm1, %v15011_v12  ;;  %v15074_v42 = vpop.f32.mrb[12].mxu0  ;;  %v15076_v43 = vpop.f32.mrb[12].mxu1 }
 0x107   : > { %2669 = vmatpush1.bf16.msra.mxu1 %v2501_v38  ;;  %2604 = vmatprep.mubr.bf16.mxu1 %v14513_v0  ;;  %v15079_v44 = vpop.f32.mrb[13].mxu0  ;;  %v15081_v45 = vpop.f32.mrb[13].mxu1  ;;  %v2960_v38 = vsel %vm597_vm0, %v2941_v24, 0 }
 0x108   : > { %13844 = vmatprep.subr.msk.bf16.mxu1 %vm597_vm0, %v2940_v40  ;;  %v15085_v47 = vpop.f32.mrb[14].mxu0  ;;  %v15091_v50 = vpop.f32.mrb[14].mxu1  ;;  %v2946_v40 = vsel %vm20045_vm7, %v2935_v55, %v2937_v23 }
 0x109   : > { %v15089_v49 = vpop.f32.mrb[15].mxu0  ;;  %v15095_v51 = vpop.f32.mrb[15].mxu1 }
 0x10a   : > { %13831 = vmatmul.mubr.msk.bf16.vlgmr.msra.gmra.mrb[80].mxu0 %vm590_vm1, %v15011_v12 }
 0x10b   : > { %2657 = vmatprep.mubr.bf16.mxu0 %v14513_v0  ;;  %14230 = vmatpush3.bf16.msra.mxu0 %v2507_v46  ;;  %v2972_v46 = vsel %vm597_vm0, %v2945_v11, 0 }
 0x10c   : > { %13847 = vmatprep.subr.msk.bf16.mxu0 %vm597_vm0, %v2942_v48 }
 0x10e   : > { %13829 = vmatmul.mubr.msk.bf16.gmra.mrb[76].mxu1 %vm590_vm1, %v15045_v27  ;;  %v14209_v56 = vpop.f32.mrb[16].mxu0 }
 0x10f   : > { %2700 = vmatprep.mubr.bf16.mxu1 %v14513_v0  ;;  %v912_v58 = vadd.f32 %v14209_v56, %v548_v52  ;;  %v871_v59 = vpop.f32.mrb[17].mxu0  ;;  %v2931_v0 = vpop.permute.xlu0 %2930 }
 0x110   : > { %v894_v61 = vadd.f32 %v871_v59, %v530_v54  ;;  %v14210_v62 = vpop.f32.mrb[18].mxu0  ;;  %v2944_v26 = vsel %vm20045_vm7, %v2931_v0, %v2933_v53  ;;  %v2943_v52 = vsel %vm20045_vm7, %v15038_v25, %v2931_v0  ;;  %v14471_v53 = vld [vmem:[%s20034_s1 + $0x58] sm:$0xff]   ;;  %v3403_v54 = vpop.permute.xlu1 %3402 }
 0x111   : > { %948 = vst.msk [vmem:[#allocation4 + $0xd0] sm:$0xff] %vm20073_vm6, %v912_v58  ;;  %v921_v7 = vadd.f32 %v14210_v62, %v557_v57  ;;  %v874_v10 = vpop.f32.mrb[19].mxu0 }
 0x112   : > { %13832 = vmatmul.mubr.msk.bf16.gmra.mrb[84].mxu0 %vm590_vm1, %v15045_v27  ;;  %930 = vst.msk [vmem:[#allocation4 + $0x40] sm:$0xff] %vm20073_vm6, %v894_v61  ;;  %v903_v17 = vadd.f32 %v874_v10, %v539_v60  ;;  %v2978_v61 = vsel %vm597_vm0, %v2937_v23, 0  ;;  %v14472_v10 = vld [vmem:[%s20034_s1 + $0x60] sm:$0xff]  }
 0x113   : > { %14231 = vmatprep.mubr.msk.bf16.mxu0 %vm590_vm1, %v15011_v12  ;;  %957 = vst.msk [vmem:[#allocation4 + $0x118] sm:$0xff] %vm20073_vm6, %v921_v7  ;;  %v3397_v32 = vpop.permute.xlu0 %3396 }
 0x114   : > { %939 = vst.msk [vmem:[#allocation4 + $0x88] sm:$0xff] %vm20073_vm6, %v903_v17  ;;  %v3416_v48 = vsel %vm20044_vm8, %v3397_v32, %v3399_v41  ;;  %v3415_v55 = vsel %vm20044_vm8, %v3395_v39, %v3397_v32  ;;  %v3407_v57 = vpop.permute.xlu1 %3406  ;;  %v14473_v39 = vld [vmem:[%s20034_s1 + $0x68] sm:$0xff]  }
 0x115   : > { %v3431_v58 = vsel %vm597_vm0, %v3415_v55, 0 }
 0x116   : > { %13834 = vmatmul.mubr.msk.bf16.vlgmr.msra.gmra.mrb[80].mxu1 %vm590_vm1, %v15011_v12  ;;  %v14470_v12 = vld [vmem:[%s20034_s1 + $0x50] sm:$0xff]  }
 0x117   : > { %2710 = vmatprep.mubr.bf16.mxu1 %v15117_v34  ;;  %2981 = vmatpush1.bf16.msra.mxu1 %v2954_v21  ;;  %v3401_v25 = vpop.permute.xlu0 %3400 }
 0x118   : > { %13850 = vmatprep.subr.msk.bf16.mxu1 %vm597_vm0, %v2944_v26  ;;  %v3418_v60 = vsel %vm20044_vm8, %v3401_v25, %v3403_v54  ;;  %v3411_v63 = vpop.permute.xlu1 %3410  ;;  %v3417_v24 = vsel %vm20044_vm8, %v3399_v41, %v3401_v25 }
 0x11a   : > { %14232 = vmatmul.mubr.msk.bf16.vlgmr.msra.gmra.mrb[88].mxu0 %vm590_vm1, %v15045_v27 }
 0x11b   : > { %3034 = vmatpush1.bf16.msra.mxu0 %v2960_v38  ;;  %3065 = vmatprep.mubr.bf16.mxu0 %v15117_v34  ;;  %v3405_v56 = vpop.permute.xlu0 %3404  ;;  %v3437_v38 = vsel %vm597_vm0, %v3417_v24, 0 }
 0x11c   : > { %13853 = vmatprep.subr.msk.bf16.mxu0 %vm597_vm0, %v2946_v40  ;;  %v3420_v59 = vsel %vm20044_vm8, %v3405_v56, %v3407_v57  ;;  %v3419_v7 = vsel %vm20044_vm8, %v3403_v54, %v3405_v56  ;;  %v3876_v21 = vpop.permute.xlu1 %3875 }
 0x11d   : > { %v3443_v0 = vsel %vm597_vm0, %v3419_v7, 0 }
 0x11e   : > { %13835 = vmatmul.mubr.msk.bf16.gmra.mrb[84].mxu1 %vm590_vm1, %v15045_v27  ;;  %v2966_v27 = vsel %vm597_vm0, %v2943_v52, 0 }
 0x11f   : > { %3012 = vmatprep.mubr.bf16.mxu1 %v15117_v34  ;;  %v3409_v62 = vpop.permute.xlu0 %3408 }
 0x120   : > { %v3422_v26 = vsel %vm20044_vm8, %v3409_v62, %v3411_v63  ;;  %v15183_v40 = vpop.permute.xlu1 %3879  ;;  %v3421_v11 = vsel %vm20044_vm8, %v3407_v57, %v3409_v62 }
 0x122   : > { %13848 = vmatmul.mubr.msk.bf16.vlgmr.msra.gmra.mrb[92].mxu0 %vm590_vm1, %v14470_v12 }
 0x123   : > { %3075 = vmatprep.mubr.bf16.mxu0 %v15117_v34  ;;  %3140 = vmatpush1.bf16.msra.mxu0 %v2972_v46  ;;  %v3413_v17 = vpop.permute.xlu0 %3412 }
 0x124   : > { %13864 = vmatprep.subr.msk.bf16.mxu0 %vm597_vm0, %v3416_v48  ;;  %v3874_v32 = vpop.permute.xlu1 %3873 }
 0x125   : > { %v3893_v46 = vsel %vm20043_vm9, %v3874_v32, %v3876_v21 }
 0x126   : > { %13845 = vmatmul.mubr.msk.bf16.vlgmr.msra.gmra.mrb[88].mxu1 %vm590_vm1, %v14470_v12 }
 0x127   : > { %3087 = vmatpush1.bf16.msra.mxu1 %v2966_v27  ;;  %3022 = vmatprep.mubr.bf16.mxu1 %v15117_v34  ;;  %v3878_v41 = vpop.permute.xlu0 %3877 }
 0x128   : > { %14408 = vmatprep.subr.msk.bf16.mxu1 %vm597_vm0, %v2937_v23  ;;  %v3423_v23 = vsel %vm20044_vm8, %v3411_v63, %v3413_v17  ;;  %v3895_v27 = vsel %vm20043_vm9, %v3878_v41, %v15183_v40  ;;  %v4782_v63 = vld [vmem:[%s20035_s2 + $0x10] sm:$0xff] }
 0x129   : > { %v3455_v48 = vsel %vm597_vm0, %v3423_v23, 0 }
 0x12a   : > { %13849 = vmatmul.mubr.msk.bf16.gmra.mrb[96].mxu0 %vm590_vm1, %v14471_v53 }
 0x12b   : > { %3171 = vmatprep.mubr.bf16.mxu0 %v15117_v34  ;;  %v3872_v52 = vpop.permute.xlu0 %3871 }
 0x12c   : > { %v3892_v25 = vsel %vm20043_vm9, %v3872_v52, %v3874_v32 }
 0x12d   : > { %v3908_v56 = vsel %vm597_vm0, %v3892_v25, 0 }
 0x12e   : > { %13846 = vmatmul.mubr.msk.bf16.gmra.mrb[92].mxu1 %vm590_vm1, %v14471_v53 }
 0x12f   : > { %3118 = vmatprep.mubr.bf16.mxu1 %v15117_v34  ;;  %v3884_v54 = vpop.permute.xlu0 %3883 }
 0x132   : > { %13854 = vmatmul.mubr.msk.bf16.vlgmr.msra.gmra.mrb[100].mxu0 %vm590_vm1, %v14470_v12 }
 0x133   : > { %3181 = vmatprep.mubr.bf16.mxu0 %v15117_v34  ;;  %3458 = vmatpush1.bf16.msra.mxu0 %v3431_v58  ;;  %v3888_v57 = vpop.permute.xlu0 %3887  ;;  %v4780_v58 = vld [vmem:[%s20035_s2] sm:$0xff] }
 0x134   : > { %13870 = vmatprep.subr.msk.bf16.mxu0 %vm597_vm0, %v3420_v59  ;;  %v3894_v59 = vsel %vm20043_vm9, %v3876_v21, %v3878_v41  ;;  %4786 = vperm.xlu1 %14458, %v4780_v58  }
 0x136   : > { %13851 = vmatmul.mubr.msk.bf16.vlgmr.msra.gmra.mrb[96].mxu1 %vm590_vm1, %v14470_v12 }
 0x137   : > { %14236 = vmatpush3.bf16.msra.mxu1 %v2978_v61  ;;  %3128 = vmatprep.mubr.bf16.mxu1 %v15117_v34  ;;  %v3914_v61 = vsel %vm597_vm0, %v3894_v59, 0  ;;  %v15216_v62 = vpop.permute.xlu0 %4348 }
 0x138   : > { %13867 = vmatprep.subr.msk.bf16.mxu1 %vm597_vm0, %v3418_v60  ;;  %4796 = vperm.xlu1 %14458, %v4782_v63  }
 0x13a   : > { %13855 = vmatmul.mubr.msk.bf16.gmra.mrb[104].mxu0 %vm590_vm1, %v14471_v53 }
 0x13b   : > { %3489 = vmatprep.mubr.bf16.mxu0 %v15117_v34 }
 0x13e   : > { %13852 = vmatmul.mubr.msk.bf16.gmra.mrb[100].mxu1 %vm590_vm1, %v14471_v53 }
 0x13f   : > { %14237 = vmatprep.mubr.msk.bf16.mxu1 %vm590_vm1, %v14470_v12  ;;  %v3449_v12 = vsel %vm597_vm0, %v3421_v11, 0  ;;  %v15243_v11 = vpop.permute.xlu0 %4352 }
 0x142   : > { %13865 = vmatmul.mubr.msk.bf16.vlgmr.msra.gmra.mrb[108].mxu0 %vm590_vm1, %v14472_v10 }
 0x143   : > { %3499 = vmatprep.mubr.bf16.mxu0 %v15117_v34  ;;  %3564 = vmatpush1.bf16.msra.mxu0 %v3443_v0  ;;  %v4783_v0 = vld [vmem:[%s20035_s2 + $0x18] sm:$0xff] }
 0x144   : > { %14409 = vmatprep.subr.msk.bf16.mxu0 %vm597_vm0, %v3423_v23  ;;  %4801 = vperm.xlu1 %14458, %v4783_v0   ;;  %v15307_v0 = vpop.permute.xlu0 %4354 }
 0x146   : > { %14238 = vmatmul.mubr.msk.bf16.vlgmr.msra.gmra.mrb[104].mxu1 %vm590_vm1, %v14471_v53  ;;  %v3886_v53 = vpop.permute.xlu1 %3885 }
 0x147   : > { %3511 = vmatpush1.bf16.msra.mxu1 %v3437_v38  ;;  %3542 = vmatprep.mubr.bf16.mxu1 %v15117_v34  ;;  %v3899_v7 = vsel %vm20043_vm9, %v3886_v53, %v3888_v57  ;;  %v3898_v23 = vsel %vm20043_vm9, %v3884_v54, %v3886_v53  ;;  %v15241_v38 = vld [vmem:[%s20034_s1 + $0x70] sm:$0xff]  }
 0x148   : > { %13873 = vmatprep.subr.msk.bf16.mxu1 %vm597_vm0, %v3422_v26 }
 0x14a   : > { %13866 = vmatmul.mubr.msk.bf16.gmra.mrb[112].mxu0 %vm590_vm1, %v14473_v39  ;;  %v3882_v55 = vpop.permute.xlu1 %3881 }
 0x14b   : > { %3595 = vmatprep.mubr.bf16.mxu0 %v15117_v34  ;;  %v3897_v60 = vsel %vm20043_vm9, %v3882_v55, %v3884_v54  ;;  %v3896_v53 = vsel %vm20043_vm9, %v15183_v40, %v3882_v55 }
 0x14c   : > { %v3920_v55 = vsel %vm597_vm0, %v3896_v53, 0 }
 0x14e   : > { %13868 = vmatmul.mubr.msk.bf16.vlgmr.msra.gmra.mrb[108].mxu1 %vm590_vm1, %v14472_v10  ;;  %v15227_v17 = vpop.permute.xlu1 %4350 }
 0x14f   : > { %3617 = vmatpush1.bf16.msra.mxu1 %v3449_v12  ;;  %3552 = vmatprep.mubr.bf16.mxu1 %v15117_v34  ;;  %v4370_v52 = vsel %vm20042_vm10, %v15227_v17, %v15243_v11 }
 0x150   : > { %13884 = vmatprep.subr.msk.bf16.mxu1 %vm597_vm0, %v3893_v46 }
 0x152   : > { %13871 = vmatmul.mubr.msk.bf16.vlgmr.msra.gmra.mrb[116].mxu0 %vm590_vm1, %v14472_v10 }
 0x153   : > { %3605 = vmatprep.mubr.bf16.mxu0 %v15117_v34  ;;  %14242 = vmatpush3.bf16.msra.mxu0 %v3455_v48 }
 0x154   : > { %13887 = vmatprep.subr.msk.bf16.mxu0 %vm597_vm0, %v3895_v27 }
 0x156   : > { %13869 = vmatmul.mubr.msk.bf16.gmra.mrb[112].mxu1 %vm590_vm1, %v14473_v39 }
 0x157   : > { %3648 = vmatprep.mubr.bf16.mxu1 %v15117_v34 }
 0x15a   : > { %13872 = vmatmul.mubr.msk.bf16.gmra.mrb[120].mxu0 %vm590_vm1, %v14473_v39 }
 0x15b   : > { %14243 = vmatprep.mubr.msk.bf16.mxu0 %vm590_vm1, %v14472_v10 }
 0x15e   : > { %13874 = vmatmul.mubr.msk.bf16.vlgmr.msra.gmra.mrb[116].mxu1 %vm590_vm1, %v14472_v10  ;;  %v4781_v10 = vld [vmem:[%s20035_s2 + $0x8] sm:$0xff] }
 0x15f   : > { %3658 = vmatprep.mubr.bf16.mxu1 %v15117_v34  ;;  %3935 = vmatpush1.bf16.msra.mxu1 %v3908_v56 }
 0x160   : > { %13890 = vmatprep.subr.msk.bf16.mxu1 %vm597_vm0, %v3897_v60  ;;  %4791 = vperm.xlu0 %14459, %v4781_v10  }
 0x162   : > { %14244 = vmatmul.mubr.msk.bf16.vlgmr.msra.gmra.mrb[124].mxu0 %vm590_vm1, %v14473_v39 }
 0x163   : > { %3988 = vmatpush1.bf16.msra.mxu0 %v3914_v61  ;;  %4019 = vmatprep.mubr.bf16.mxu0 %v15117_v34 }
 0x164   : > { %13893 = vmatprep.subr.msk.bf16.mxu0 %vm597_vm0, %v3899_v7 }
 0x165   : > { %v1183_v21 = vpop.f32.mrb[20].mxu0 }
 0x166   : > { %v15235_v24 = vadd.f32 %v1183_v21, %v14986_v2  ;;  %v1185_v26 = vpop.f32.mrb[21].mxu0  ;;  %13875 = vmatmul.mubr.msk.bf16.gmra.mrb[120].mxu1 %vm590_vm1, %v14473_v39  ;;  %v3926_v39 = vsel %vm597_vm0, %v3898_v23, 0 }
 0x167   : > { %v15246_v12 = vadd.f32 %v1185_v26, %v14991_v4  ;;  %v1187_v32 = vpop.f32.mrb[22].mxu0  ;;  %3966 = vmatprep.mubr.bf16.mxu1 %v15117_v34 }
 0x168   : > { %v15250_v2 = vadd.f32 %v1187_v32, %v14996_v6  ;;  %v1189_v41 = vpop.f32.mrb[23].mxu0  ;;  %v3890_v6 = vpop.permute.xlu1 %3889  ;;  %v4369_v32 = vsel %vm20042_vm10, %v15216_v62, %v15227_v17 }
 0x169   : > { %v15254_v46 = vadd.f32 %v1189_v41, %v15001_v9  ;;  %v1130_v48 = vpop.f32.mrb[16].mxu1  ;;  %v3900_v59 = vsel %vm20043_vm9, %v3888_v57, %v3890_v6  ;;  %v4385_v17 = vsel %vm597_vm0, %v4369_v32, 0 }
 0x16a   : > { %v15260_v4 = vadd.f32 %v1130_v48, %v14984_v1  ;;  %v1132_v27 = vpop.f32.mrb[17].mxu1  ;;  %13888 = vmatmul.mubr.msk.bf16.vlgmr.msra.gmra.mrb[128].mxu0 %vm590_vm1, %v15241_v38 }
 0x16b   : > { %v15267_v54 = vadd.f32 %v1132_v27, %v14989_v3  ;;  %v1134_v9 = vpop.f32.mrb[18].mxu1  ;;  %4029 = vmatprep.mubr.bf16.mxu0 %v15117_v34  ;;  %4094 = vmatpush1.bf16.msra.mxu0 %v3926_v39 }
 0x16c   : > { %v15271_v25 = vadd.f32 %v1134_v9, %v14994_v5  ;;  %v1136_v1 = vpop.f32.mrb[19].mxu1  ;;  %13904 = vmatprep.subr.msk.bf16.mxu0 %vm597_vm0, %v4370_v52  ;;  %v15287_v5 = vld [vmem:[%s20034_s1 + $0x78] sm:$0xff]  }
 0x16d   : > { %v15275_v56 = vadd.f32 %v1136_v1, %v14998_v8  ;;  %v1193_v58 = vpop.f32.mrb[24].mxu0 }
 0x16e   : > { %v15279_v40 = vadd.f32 %v1193_v58, %v15015_v14  ;;  %v1195_v3 = vpop.f32.mrb[25].mxu0  ;;  %13885 = vmatmul.mubr.msk.bf16.vlgmr.msra.gmra.mrb[124].mxu1 %vm590_vm1, %v15241_v38  ;;  %v15293_v14 = vpop.permute.xlu1 %4356 }
 0x16f   : > { %v15290_v8 = vadd.f32 %v1195_v3, %v15020_v16  ;;  %4041 = vmatpush1.bf16.msra.mxu1 %v3920_v55  ;;  %v1197_v60 = vpop.f32.mrb[26].mxu0  ;;  %3976 = vmatprep.mubr.bf16.mxu1 %v15117_v34  ;;  %v4372_v3 = vsel %vm20042_vm10, %v15307_v0, %v15293_v14 }
 0x170   : > { %v15296_v57 = vadd.f32 %v1197_v60, %v15027_v20  ;;  %v1199_v61 = vpop.f32.mrb[27].mxu0  ;;  %14410 = vmatprep.subr.msk.bf16.mxu1 %vm597_vm0, %v3900_v59 }
 0x171   : > { %v15300_v63 = vadd.f32 %v1199_v61, %v15031_v22  ;;  %v1140_v7 = vpop.f32.mrb[20].mxu1 }
 0x172   : > { %v15303_v10 = vadd.f32 %v1140_v7, %v15013_v13  ;;  %v1142_v16 = vpop.f32.mrb[21].mxu1  ;;  %13889 = vmatmul.mubr.msk.bf16.gmra.mrb[132].mxu0 %vm590_vm1, %v15287_v5  ;;  %v15322_v41 = vpop.permute.xlu1 %4360 }
 0x173   : > { %v15310_v21 = vadd.f32 %v1142_v16, %v15018_v15  ;;  %v1144_v20 = vpop.f32.mrb[22].mxu1  ;;  %4125 = vmatprep.mubr.bf16.mxu0 %v15117_v34 }
 0x174   : > { %v15314_v23 = vadd.f32 %v1144_v20, %v15023_v18  ;;  %v1146_v22 = vpop.f32.mrb[23].mxu1  ;;  %v4359_v18 = vpop.permute.xlu0 %4358 }
 0x175   : > { %v15317_v26 = vadd.f32 %v1146_v22, %v15025_v19  ;;  %v1289_v13 = vpop.f32.mrb[28].mxu0  ;;  %v4374_v6 = vsel %vm20042_vm10, %v4359_v18, %v15322_v41 }
 0x176   : > { %v15325_v15 = vadd.f32 %v1289_v13, %v15049_v29  ;;  %v1291_v39 = vpop.f32.mrb[29].mxu0  ;;  %13886 = vmatmul.mubr.msk.bf16.gmra.mrb[128].mxu1 %vm590_vm1, %v15287_v5 }
 0x177   : > { %v15330_v48 = vadd.f32 %v1291_v39, %v15054_v31  ;;  %v1293_v19 = vpop.f32.mrb[30].mxu0  ;;  %4072 = vmatprep.mubr.bf16.mxu1 %v15117_v34  ;;  %v4373_v39 = vsel %vm20042_vm10, %v15293_v14, %v4359_v18 }
 0x178   : > { %v15334_v52 = vadd.f32 %v1293_v19, %v15062_v36  ;;  %v1295_v62 = vpop.f32.mrb[31].mxu0  ;;  %v4397_v18 = vsel %vm597_vm0, %v4373_v39, 0 }
 0x179   : > { %v15338_v29 = vadd.f32 %v1295_v62, %v15066_v37  ;;  %v1236_v27 = vpop.f32.mrb[24].mxu1 }
 0x17a   : > { %v15343_v53 = vadd.f32 %v1236_v27, %v15047_v28  ;;  %v1238_v31 = vpop.f32.mrb[25].mxu1  ;;  %13894 = vmatmul.mubr.msk.bf16.vlgmr.msra.gmra.mrb[136].mxu0 %vm590_vm1, %v15241_v38  ;;  %v4365_v27 = vpop.permute.xlu1 %4364 }
 0x17b   : > { %v15348_v36 = vadd.f32 %v1238_v31, %v15052_v30  ;;  %v1240_v9 = vpop.f32.mrb[26].mxu1  ;;  %4135 = vmatprep.mubr.bf16.mxu0 %v15117_v34  ;;  %4412 = vmatpush1.bf16.msra.mxu0 %v4385_v17  ;;  %v3932_v30 = vsel %vm597_vm0, %v3900_v59, 0  ;;  %v984_v31 = vld [vmem:[#allocation4 + $0xd0] sm:$0xff] }
 0x17c   : > { %v15352_v37 = vadd.f32 %v1240_v9, %v15057_v33  ;;  %v1242_v1 = vpop.f32.mrb[27].mxu1  ;;  %13910 = vmatprep.subr.msk.bf16.mxu0 %vm597_vm0, %v4374_v6 }
 0x17d   : > { %v15356_v28 = vadd.f32 %v1242_v1, %v15060_v35  ;;  %v1299_v58 = vpop.f32.mrb[32].mxu0 }
 0x17e   : > { %v15363_v55 = vadd.f32 %v1299_v58, %v15076_v43  ;;  %v1301_v60 = vpop.f32.mrb[33].mxu0  ;;  %13891 = vmatmul.mubr.msk.bf16.vlgmr.msra.gmra.mrb[132].mxu1 %vm590_vm1, %v15241_v38  ;;  %v966_v58 = vld [vmem:[#allocation4 + $0x40] sm:$0xff] }
 0x17f   : > { %v15368_v33 = vadd.f32 %v1301_v60, %v15081_v45  ;;  %14248 = vmatpush3.bf16.msra.mxu1 %v3932_v30  ;;  %v1303_v35 = vpop.f32.mrb[34].mxu0  ;;  %4082 = vmatprep.mubr.bf16.mxu1 %v15117_v34  ;;  %v4363_v45 = vpop.permute.xlu0 %4362  ;;  %v993_v30 = vld [vmem:[#allocation4 + $0x118] sm:$0xff] }
 0x180   : > { %v15372_v61 = vadd.f32 %v1303_v35, %v15091_v50  ;;  %v1305_v7 = vpop.f32.mrb[35].mxu0  ;;  %13907 = vmatprep.subr.msk.bf16.mxu1 %vm597_vm0, %v4372_v3  ;;  %v975_v35 = vld [vmem:[#allocation4 + $0x88] sm:$0xff] }
 0x181   : > { %v15376_v43 = vadd.f32 %v1305_v7, %v15095_v51  ;;  %v1246_v59 = vpop.f32.mrb[28].mxu1 }
 0x182   : > { %v15379_v16 = vadd.f32 %v1246_v59, %v15074_v42  ;;  %v1248_v20 = vpop.f32.mrb[29].mxu1  ;;  %13895 = vmatmul.mubr.msk.bf16.gmra.mrb[140].mxu0 %vm590_vm1, %v15287_v5 }
 0x183   : > { %v15384_v22 = vadd.f32 %v1248_v20, %v15079_v44  ;;  %v1250_v50 = vpop.f32.mrb[30].mxu1  ;;  %4443 = vmatprep.mubr.bf16.mxu0 %v15117_v34  ;;  %v15403_v44 = vld [vmem:[%s20034_s1 + $0x80] sm:$0xff]  }
 0x184   : > { %v15388_v13 = vadd.f32 %v1250_v50, %v15085_v47  ;;  %v1252_v51 = vpop.f32.mrb[31].mxu1  ;;  %v4367_v47 = vpop.permute.xlu0 %4366  ;;  %v4376_v50 = vsel %vm20042_vm10, %v4363_v45, %v4365_v27 }
 0x185   : > { %v15391_v32 = vadd.f32 %v1252_v51, %v15089_v49  ;;  %v1601_v42 = vpop.f32.mrb[36].mxu0  ;;  %v4377_v1 = vsel %vm20042_vm10, %v4365_v27, %v4367_v47 }
 0x186   : > { %v15396_v19 = vadd.f32 %v1601_v42, %v15260_v4  ;;  %v1603_v62 = vpop.f32.mrb[37].mxu0  ;;  %13892 = vmatmul.mubr.msk.bf16.gmra.mrb[136].mxu1 %vm590_vm1, %v15287_v5  ;;  %v15438_v42 = vld [vmem:[%s20034_s1 + $0x88] sm:$0xff]  }
 0x187   : > { %v15406_v49 = vadd.f32 %v1603_v62, %v15267_v54  ;;  %v1605_v17 = vpop.f32.mrb[38].mxu0  ;;  %14249 = vmatprep.mubr.msk.bf16.mxu1 %vm590_vm1, %v15241_v38  ;;  %v4371_v38 = vsel %vm20042_vm10, %v15243_v11, %v15307_v0 }
 0x188   : > { %v15411_v4 = vadd.f32 %v1605_v17, %v15271_v25  ;;  %v1607_v14 = vpop.f32.mrb[39].mxu0  ;;  %v4391_v51 = vsel %vm597_vm0, %v4371_v38, 0 }
 0x189   : > { %v15415_v6 = vadd.f32 %v1607_v14, %v15275_v56  ;;  %v14215_v9 = vpop.f32.mrb[32].mxu1  ;;  %v4375_v14 = vsel %vm20042_vm10, %v15322_v41, %v4363_v45 }
 0x18a   : > { %v1383_v54 = vadd.f32 %v14215_v9, %v984_v31  ;;  %v1342_v3 = vpop.f32.mrb[33].mxu1  ;;  %13905 = vmatmul.mubr.msk.bf16.vlgmr.msra.gmra.mrb[144].mxu0 %vm590_vm1, %v15403_v44  ;;  %v4403_v9 = vsel %vm597_vm0, %v4375_v14, 0 }
 0x18b   : > { %v1365_v25 = vadd.f32 %v1342_v3, %v966_v58  ;;  %v14216_v60 = vpop.f32.mrb[34].mxu1  ;;  %4453 = vmatprep.mubr.bf16.mxu0 %v15117_v34  ;;  %4518 = vmatpush1.bf16.msra.mxu0 %v4397_v18  ;;  %v4409_v3 = vsel %vm597_vm0, %v4377_v1, 0 }
 0x18c   : > { %1419 = vst.msk [vmem:[#allocation4 + $0xd0] sm:$0xff] %vm20073_vm6, %v1383_v54  ;;  %v1392_v56 = vadd.f32 %v14216_v60, %v993_v30  ;;  %v1345_v7 = vpop.f32.mrb[35].mxu1  ;;  %14411 = vmatprep.subr.msk.bf16.mxu0 %vm597_vm0, %v4377_v1 }
 0x18d   : > { %1401 = vst.msk [vmem:[#allocation4 + $0x40] sm:$0xff] %vm20073_vm6, %v1365_v25  ;;  %v1374_v59 = vadd.f32 %v1345_v7, %v975_v35  ;;  %v1611_v20 = vpop.f32.mrb[40].mxu0 }
 0x18e   : > { %1428 = vst.msk [vmem:[#allocation4 + $0x118] sm:$0xff] %vm20073_vm6, %v1392_v56  ;;  %v15430_v11 = vadd.f32 %v1611_v20, %v15303_v10  ;;  %v1613_v0 = vpop.f32.mrb[41].mxu0  ;;  %14250 = vmatmul.mubr.msk.bf16.vlgmr.msra.gmra.mrb[140].mxu1 %vm590_vm1, %v15287_v5 }
 0x18f   : > { %1410 = vst.msk [vmem:[#allocation4 + $0x88] sm:$0xff] %vm20073_vm6, %v1374_v59  ;;  %v15442_v39 = vadd.f32 %v1613_v0, %v15310_v21  ;;  %4465 = vmatpush1.bf16.msra.mxu1 %v4391_v51  ;;  %v1615_v62 = vpop.f32.mrb[42].mxu0  ;;  %4496 = vmatprep.mubr.bf16.mxu1 %v15117_v34 }
 0x190   : > { %v15446_v10 = vadd.f32 %v1615_v62, %v15314_v23  ;;  %v1617_v5 = vpop.f32.mrb[43].mxu0  ;;  %13913 = vmatprep.subr.msk.bf16.mxu1 %vm597_vm0, %v4376_v50 }
 0x191   : > { %v15450_v47 = vadd.f32 %v1617_v5, %v15317_v26  ;;  %v1654_v17 = vpop.f32.mrb[36].mxu1 }
 0x192   : > { %v15455_v21 = vadd.f32 %v1654_v17, %v15235_v24  ;;  %v1656_v18 = vpop.f32.mrb[37].mxu1  ;;  %13906 = vmatmul.mubr.msk.bf16.gmra.mrb[148].mxu0 %vm590_vm1, %v15438_v42 }
 0x193   : > { %v15460_v23 = vadd.f32 %v1656_v18, %v15246_v12  ;;  %v1658_v27 = vpop.f32.mrb[38].mxu1  ;;  %4549 = vmatprep.mubr.bf16.mxu0 %v15117_v34 }
 0x194   : > { %v15464_v26 = vadd.f32 %v1658_v27, %v15250_v2  ;;  %v1660_v31 = vpop.f32.mrb[39].mxu1  ;;  %v1437_v17 = vld [vmem:[#allocation4 + $0x40] sm:$0xff] }
 0x195   : > { %v15468_v41 = vadd.f32 %v1660_v31, %v15254_v46  ;;  %v1707_v24 = vpop.f32.mrb[44].mxu0  ;;  %v1464_v18 = vld [vmem:[#allocation4 + $0x118] sm:$0xff] }
 0x196   : > { %v15471_v45 = vadd.f32 %v1707_v24, %v15343_v53  ;;  %v1709_v54 = vpop.f32.mrb[45].mxu0  ;;  %13908 = vmatmul.mubr.msk.bf16.vlgmr.msra.gmra.mrb[144].mxu1 %vm590_vm1, %v15403_v44  ;;  %v1446_v31 = vld [vmem:[#allocation4 + $0x88] sm:$0xff] }
 0x197   : > { %v15476_v12 = vadd.f32 %v1709_v54, %v15348_v36  ;;  %v1711_v58 = vpop.f32.mrb[46].mxu0  ;;  %4571 = vmatpush1.bf16.msra.mxu1 %v4403_v9  ;;  %4506 = vmatprep.mubr.bf16.mxu1 %v15117_v34 }
 0x198   : > { %v15480_v2 = vadd.f32 %v1711_v58, %v15352_v37  ;;  %v1713_v46 = vpop.f32.mrb[47].mxu0 }
 0x199   : > { %v15484_v53 = vadd.f32 %v1713_v46, %v15356_v28  ;;  %v1664_v38 = vpop.f32.mrb[40].mxu1 }
 0x19a   : > { %v15487_v25 = vadd.f32 %v1664_v38, %v15279_v40  ;;  %v1666_v30 = vpop.f32.mrb[41].mxu1  ;;  %13911 = vmatmul.mubr.msk.bf16.vlgmr.msra.gmra.mrb[152].mxu0 %vm590_vm1, %v15403_v44 }
 0x19b   : > { %v15492_v36 = vadd.f32 %v1666_v30, %v15290_v8  ;;  %v1668_v60 = vpop.f32.mrb[42].mxu1  ;;  %4559 = vmatprep.mubr.bf16.mxu0 %v15117_v34  ;;  %14254 = vmatpush3.bf16.msra.mxu0 %v4409_v3 }
 0x19c   : > { %v15496_v37 = vadd.f32 %v1668_v60, %v15296_v57  ;;  %v1670_v28 = vpop.f32.mrb[43].mxu1 }
 0x19d   : > { %v15499_v1 = vadd.f32 %v1670_v28, %v15300_v63  ;;  %v1717_v40 = vpop.f32.mrb[48].mxu0 }
 0x19e   : > { %v15502_v56 = vadd.f32 %v1717_v40, %v15379_v16  ;;  %v1719_v35 = vpop.f32.mrb[49].mxu0  ;;  %13909 = vmatmul.mubr.msk.bf16.gmra.mrb[148].mxu1 %vm590_vm1, %v15438_v42 }
 0x19f   : > { %v15507_v8 = vadd.f32 %v1719_v35, %v15384_v22  ;;  %v1721_v7 = vpop.f32.mrb[50].mxu0  ;;  %4602 = vmatprep.mubr.bf16.mxu1 %v15117_v34 }
 0x1a0   : > { %v15511_v57 = vadd.f32 %v1721_v7, %v15388_v13  ;;  %v1723_v59 = vpop.f32.mrb[51].mxu0 }
 0x1a1   : > { %v15514_v63 = vadd.f32 %v1723_v59, %v15391_v32  ;;  %v1760_v20 = vpop.f32.mrb[44].mxu1 }
 0x1a2   : > { %v15517_v16 = vadd.f32 %v1760_v20, %v15325_v15  ;;  %v1762_v50 = vpop.f32.mrb[45].mxu1  ;;  %13912 = vmatmul.mubr.msk.bf16.gmra.mrb[156].mxu0 %vm590_vm1, %v15438_v42  ;;  %v1455_v15 = vld [vmem:[#allocation4 + $0xd0] sm:$0xff] }
 0x1a3   : > { %v15522_v22 = vadd.f32 %v1762_v50, %v15330_v48  ;;  %v1764_v0 = vpop.f32.mrb[46].mxu1  ;;  %14255 = vmatprep.mubr.msk.bf16.mxu0 %vm590_vm1, %v15403_v44 }
 0x1a4   : > { %v15527_v13 = vadd.f32 %v1764_v0, %v15334_v52  ;;  %v1766_v32 = vpop.f32.mrb[47].mxu1 }
 0x1a5   : > { %v15530_v51 = vadd.f32 %v1766_v32, %v15338_v29  ;;  %v14221_v62 = vpop.f32.mrb[52].mxu0 }
 0x1a6   : > { %v1854_v5 = vadd.f32 %v14221_v62, %v1455_v15  ;;  %v1813_v14 = vpop.f32.mrb[53].mxu0  ;;  %13914 = vmatmul.mubr.msk.bf16.vlgmr.msra.gmra.mrb[152].mxu1 %vm590_vm1, %v15403_v44 }
 0x1a7   : > { %v1836_v48 = vadd.f32 %v1813_v14, %v1437_v17  ;;  %v14222_v27 = vpop.f32.mrb[54].mxu0  ;;  %4612 = vmatprep.mubr.bf16.mxu1 %v15117_v34 }
 0x1a8   : > { %1890 = vst.msk [vmem:[#allocation4 + $0xd0] sm:$0xff] %vm20073_vm6, %v1854_v5  ;;  %v1863_v52 = vadd.f32 %v14222_v27, %v1464_v18  ;;  %v1816_v9 = vpop.f32.mrb[55].mxu0 }
 0x1a9   : > { %1872 = vst.msk [vmem:[#allocation4 + $0x40] sm:$0xff] %vm20073_vm6, %v1836_v48  ;;  %v1845_v29 = vadd.f32 %v1816_v9, %v1446_v31  ;;  %v1770_v24 = vpop.f32.mrb[48].mxu1 }
 0x1aa   : > { %1899 = vst.msk [vmem:[#allocation4 + $0x118] sm:$0xff] %vm20073_vm6, %v1863_v52  ;;  %v1852_v54 = vadd.f32 %v1770_v24, %v15363_v55  ;;  %v1772_v58 = vpop.f32.mrb[49].mxu1  ;;  %14256 = vmatmul.mubr.msk.bf16.vlgmr.msra.gmra.mrb[160].mxu0 %vm590_vm1, %v15438_v42 }
 0x1ab   : > { %1881 = vst.msk [vmem:[#allocation4 + $0x88] sm:$0xff] %vm20073_vm6, %v1845_v29  ;;  %v1853_v44 = vadd.f32 %v1772_v58, %v15368_v33  ;;  %v1774_v46 = vpop.f32.mrb[50].mxu1  ;;  %5274 = vmatprep.mubr.bf16.mxu0 %v15117_v34 }
 0x1ac   : > { %v1861_v3 = vadd.f32 %v1774_v46, %v15372_v61  ;;  %v1776_v38 = vpop.f32.mrb[51].mxu1 }
 0x1ad   : > { %v1862_v30 = vadd.f32 %v1776_v38, %v15376_v43  ;;  %v2125_v60 = vpop.f32.mrb[56].mxu0 }
 0x1ae   : > { %v15547_v28 = vadd.f32 %v2125_v60, %v15455_v21  ;;  %v2127_v55 = vpop.f32.mrb[57].mxu0  ;;  %13915 = vmatmul.mubr.msk.bf16.gmra.mrb[156].mxu1 %vm590_vm1, %v15438_v42 }
 0x1af   : > { %v15552_v40 = vadd.f32 %v2127_v55, %v15460_v23  ;;  %v2129_v33 = vpop.f32.mrb[58].mxu0  ;;  %5221 = vmatprep.mubr.bf16.mxu1 %v15117_v34 }
 0x1b0   : > { %v15556_v35 = vadd.f32 %v2129_v33, %v15464_v26  ;;  %v2131_v61 = vpop.f32.mrb[59].mxu0 }
 0x1b1   : > { %v15559_v43 = vadd.f32 %v2131_v61, %v15468_v41  ;;  %v2072_v7 = vpop.f32.mrb[52].mxu1 }
 0x1b2   : > { %v2299_v21 = vadd.f32 %v2072_v7, %v15396_v19  ;;  %v2074_v59 = vpop.f32.mrb[53].mxu1 }
 0x1b3   : > { %v2300_v20 = vadd.f32 %v2074_v59, %v15406_v49  ;;  %v2076_v42 = vpop.f32.mrb[54].mxu1 }
 0x1b4   : > { %v2308_v23 = vadd.f32 %v2076_v42, %v15411_v4  ;;  %v2078_v50 = vpop.f32.mrb[55].mxu1 }
 0x1b5   : > { %v2309_v0 = vadd.f32 %v2078_v50, %v15415_v6  ;;  %v2135_v34 = vpop.f32.mrb[60].mxu0 }
 0x1b6   : > { %v15566_v26 = vadd.f32 %v2135_v34, %v15487_v25  ;;  %v2137_v32 = vpop.f32.mrb[61].mxu0 }
 0x1b7   : > { %v15569_v41 = vadd.f32 %v2137_v32, %v15492_v36  ;;  %v2139_v15 = vpop.f32.mrb[62].mxu0 }
 0x1b8   : > { %v15572_v19 = vadd.f32 %v2139_v15, %v15496_v37  ;;  %v2141_v62 = vpop.f32.mrb[63].mxu0  ;;  %v1926_v15 = vld [vmem:[#allocation4 + $0xd0] sm:$0xff] }
 0x1b9   : > { %v15575_v49 = vadd.f32 %v2141_v62, %v15499_v1  ;;  %v2082_v4 = vpop.f32.mrb[56].mxu1 }
 0x1ba   : > { %v15578_v5 = vadd.f32 %v2082_v4, %v15430_v11  ;;  %v2084_v6 = vpop.f32.mrb[57].mxu1  ;;  %v1908_v4 = vld [vmem:[#allocation4 + $0x40] sm:$0xff] }
 0x1bb   : > { %v15581_v25 = vadd.f32 %v2084_v6, %v15442_v39  ;;  %v2086_v17 = vpop.f32.mrb[58].mxu1 }
 0x1bc   : > { %v15584_v36 = vadd.f32 %v2086_v17, %v15446_v10  ;;  %v2088_v14 = vpop.f32.mrb[59].mxu1 }
 0x1bd   : > { %v15587_v37 = vadd.f32 %v2088_v14, %v15450_v47  ;;  %v2231_v48 = vpop.f32.mrb[64].mxu0 }
 0x1be   : > { %v15590_v1 = vadd.f32 %v2231_v48, %v15517_v16  ;;  %v2233_v18 = vpop.f32.mrb[65].mxu0  ;;  %v1917_v48 = vld [vmem:[#allocation4 + $0x88] sm:$0xff] }
 0x1bf   : > { %v15593_v11 = vadd.f32 %v2233_v18, %v15522_v22  ;;  %v2235_v27 = vpop.f32.mrb[66].mxu0 }
 0x1c0   : > { %v15596_v39 = vadd.f32 %v2235_v27, %v15527_v13  ;;  %v2237_v52 = vpop.f32.mrb[67].mxu0 }
 0x1c1   : > { %v15599_v10 = vadd.f32 %v2237_v52, %v15530_v51  ;;  %v2178_v31 = vpop.f32.mrb[60].mxu1 }
 0x1c2   : > { %v15602_v47 = vadd.f32 %v2178_v31, %v15471_v45  ;;  %v2180_v9 = vpop.f32.mrb[61].mxu1 }
 0x1c3   : > { %v15605_v16 = vadd.f32 %v2180_v9, %v15476_v12  ;;  %v2182_v29 = vpop.f32.mrb[62].mxu1 }
 0x1c4   : > { %v15608_v22 = vadd.f32 %v2182_v29, %v15480_v2  ;;  %v2184_v24 = vpop.f32.mrb[63].mxu1 }
 0x1c5   : > { %v15611_v13 = vadd.f32 %v2184_v24, %v15484_v53  ;;  %v2241_v58 = vpop.f32.mrb[68].mxu0 }
 0x1c6   : > { %v15613_v46 = vadd.f32 %v2241_v58, %v1852_v54  ;;  %v2243_v51 = vpop.f32.mrb[69].mxu0 }
 0x1c7   : > { %v15615_v38 = vadd.f32 %v2243_v51, %v1853_v44  ;;  %v2245_v45 = vpop.f32.mrb[70].mxu0 }
 0x1c8   : > { %v15617_v60 = vadd.f32 %v2245_v45, %v1861_v3  ;;  %v2247_v55 = vpop.f32.mrb[71].mxu0 }
 0x1c9   : > { %v15619_v12 = vadd.f32 %v2247_v55, %v1862_v30  ;;  %v2188_v33 = vpop.f32.mrb[64].mxu1 }
 0x1ca   : > { %v15622_v2 = vadd.f32 %v2188_v33, %v15502_v56  ;;  %v2190_v61 = vpop.f32.mrb[65].mxu1 }
 0x1cb   : > { %v15625_v53 = vadd.f32 %v2190_v61, %v15507_v8  ;;  %v2192_v7 = vpop.f32.mrb[66].mxu1 }
 0x1cc   : > { %v15628_v54 = vadd.f32 %v2192_v7, %v15511_v57  ;;  %v2194_v44 = vpop.f32.mrb[67].mxu1 }
 0x1cd   : > { %v15631_v59 = vadd.f32 %v2194_v44, %v15514_v63  ;;  %v2543_v3 = vpop.f32.mrb[72].mxu0  ;;  %v1935_v63 = vld [vmem:[#allocation4 + $0x118] sm:$0xff] }
 0x1ce   : > { %v15633_v42 = vadd.f32 %v2543_v3, %v2299_v21  ;;  %v2545_v30 = vpop.f32.mrb[73].mxu0 }
 0x1cf   : > { %v15635_v50 = vadd.f32 %v2545_v30, %v2300_v20  ;;  %v2547_v56 = vpop.f32.mrb[74].mxu0 }
 0x1d0   : > { %v15637_v34 = vadd.f32 %v2547_v56, %v2308_v23  ;;  %v2549_v32 = vpop.f32.mrb[75].mxu0 }
 0x1d1   : > { %v15639_v8 = vadd.f32 %v2549_v32, %v2309_v0  ;;  %v14227_v62 = vpop.f32.mrb[68].mxu1 }
 0x1d2   : > { %v2325_v57 = vadd.f32 %v14227_v62, %v1926_v15  ;;  %v2284_v6 = vpop.f32.mrb[69].mxu1 }
 0x1d3   : > { %v2307_v17 = vadd.f32 %v2284_v6, %v1908_v4  ;;  %v14228_v14 = vpop.f32.mrb[70].mxu1 }
 0x1d4   : > { %2361 = vst.msk [vmem:[#allocation4 + $0xd0] sm:$0xff] %vm20073_vm6, %v2325_v57  ;;  %v2334_v21 = vadd.f32 %v14228_v14, %v1935_v63  ;;  %v2287_v20 = vpop.f32.mrb[71].mxu1 }
 0x1d5   : > { %2343 = vst.msk [vmem:[#allocation4 + $0x40] sm:$0xff] %vm20073_vm6, %v2307_v17  ;;  %v2316_v23 = vadd.f32 %v2287_v20, %v1917_v48  ;;  %v2553_v18 = vpop.f32.mrb[76].mxu0 }
 0x1d6   : > { %2370 = vst.msk [vmem:[#allocation4 + $0x118] sm:$0xff] %vm20073_vm6, %v2334_v21  ;;  %v15645_v0 = vadd.f32 %v2553_v18, %v15578_v5  ;;  %v2555_v27 = vpop.f32.mrb[77].mxu0 }
 0x1d7   : > { %2352 = vst.msk [vmem:[#allocation4 + $0x88] sm:$0xff] %vm20073_vm6, %v2316_v23  ;;  %v15649_v52 = vadd.f32 %v2555_v27, %v15581_v25  ;;  %v2557_v31 = vpop.f32.mrb[78].mxu0 }
 0x1d8   : > { %v15652_v9 = vadd.f32 %v2557_v31, %v15584_v36  ;;  %v2559_v29 = vpop.f32.mrb[79].mxu0 }
 0x1d9   : > { %v15655_v24 = vadd.f32 %v2559_v29, %v15587_v37  ;;  %v2596_v58 = vpop.f32.mrb[72].mxu1 }
 0x1da   : > { %v15658_v51 = vadd.f32 %v2596_v58, %v15547_v28  ;;  %v2598_v5 = vpop.f32.mrb[73].mxu1 }
 0x1db   : > { %v15661_v45 = vadd.f32 %v2598_v5, %v15552_v40  ;;  %v2600_v55 = vpop.f32.mrb[74].mxu1  ;;  %v2397_v48 = vld [vmem:[#allocation4 + $0xd0] sm:$0xff] }
 0x1dc   : > { %v15664_v25 = vadd.f32 %v2600_v55, %v15556_v35  ;;  %v2602_v33 = vpop.f32.mrb[75].mxu1  ;;  %v2379_v23 = vld [vmem:[#allocation4 + $0x40] sm:$0xff] }
 0x1dd   : > { %v15667_v36 = vadd.f32 %v2602_v33, %v15559_v43  ;;  %v2649_v61 = vpop.f32.mrb[80].mxu0 }
 0x1de   : > { %v15670_v37 = vadd.f32 %v2649_v61, %v15602_v47  ;;  %v2651_v7 = vpop.f32.mrb[81].mxu0  ;;  %v2388_v29 = vld [vmem:[#allocation4 + $0x88] sm:$0xff] }
 0x1df   : > { %v15673_v28 = vadd.f32 %v2651_v7, %v15605_v16  ;;  %v2653_v44 = vpop.f32.mrb[82].mxu0 }
 0x1e0   : > { %v15676_v40 = vadd.f32 %v2653_v44, %v15608_v22  ;;  %v2655_v3 = vpop.f32.mrb[83].mxu0 }
 0x1e1   : > { %v15679_v35 = vadd.f32 %v2655_v3, %v15611_v13  ;;  %v2606_v30 = vpop.f32.mrb[76].mxu1 }
 0x1e2   : > { %v15682_v43 = vadd.f32 %v2606_v30, %v15566_v26  ;;  %v2608_v56 = vpop.f32.mrb[77].mxu1 }
 0x1e3   : > { %v15685_v47 = vadd.f32 %v2608_v56, %v15569_v41  ;;  %v2610_v32 = vpop.f32.mrb[78].mxu1 }
 0x1e4   : > { %v15688_v16 = vadd.f32 %v2610_v32, %v15572_v19  ;;  %v2612_v15 = vpop.f32.mrb[79].mxu1 }
 0x1e5   : > { %v15691_v22 = vadd.f32 %v2612_v15, %v15575_v49  ;;  %v2659_v62 = vpop.f32.mrb[84].mxu0 }
 0x1e6   : > { %v15694_v13 = vadd.f32 %v2659_v62, %v15622_v2  ;;  %v2661_v57 = vpop.f32.mrb[85].mxu0 }
 0x1e7   : > { %v15697_v26 = vadd.f32 %v2661_v57, %v15625_v53  ;;  %v2663_v4 = vpop.f32.mrb[86].mxu0 }
 0x1e8   : > { %v15700_v41 = vadd.f32 %v2663_v4, %v15628_v54  ;;  %v2665_v6 = vpop.f32.mrb[87].mxu0 }
 0x1e9   : > { %v15703_v19 = vadd.f32 %v2665_v6, %v15631_v59  ;;  %v2702_v17 = vpop.f32.mrb[80].mxu1 }
 0x1ea   : > { %v15706_v49 = vadd.f32 %v2702_v17, %v15590_v1  ;;  %v2704_v63 = vpop.f32.mrb[81].mxu1  ;;  %v2406_v1 = vld [vmem:[#allocation4 + $0x118] sm:$0xff] }
 0x1eb   : > { %v15709_v2 = vadd.f32 %v2704_v63, %v15593_v11  ;;  %v2706_v14 = vpop.f32.mrb[82].mxu1 }
 0x1ec   : > { %v15712_v53 = vadd.f32 %v2706_v14, %v15596_v39  ;;  %v2708_v21 = vpop.f32.mrb[83].mxu1 }
 0x1ed   : > { %v15715_v54 = vadd.f32 %v2708_v21, %v15599_v10  ;;  %v14233_v20 = vpop.f32.mrb[88].mxu0 }
 0x1ee   : > { %v2796_v59 = vadd.f32 %v14233_v20, %v2397_v48  ;;  %v2755_v18 = vpop.f32.mrb[89].mxu0 }
 0x1ef   : > { %v2778_v27 = vadd.f32 %v2755_v18, %v2379_v23  ;;  %v14234_v31 = vpop.f32.mrb[90].mxu0 }
 0x1f0   : > { %2832 = vst.msk [vmem:[#allocation4 + $0xd0] sm:$0xff] %vm20073_vm6, %v2796_v59  ;;  %v2805_v11 = vadd.f32 %v14234_v31, %v2406_v1  ;;  %v2758_v58 = vpop.f32.mrb[91].mxu0 }
 0x1f1   : > { %2814 = vst.msk [vmem:[#allocation4 + $0x40] sm:$0xff] %vm20073_vm6, %v2778_v27  ;;  %v2787_v39 = vadd.f32 %v2758_v58, %v2388_v29  ;;  %v2712_v5 = vpop.f32.mrb[84].mxu1 }
 0x1f2   : > { %2841 = vst.msk [vmem:[#allocation4 + $0x118] sm:$0xff] %vm20073_vm6, %v2805_v11  ;;  %v2794_v10 = vadd.f32 %v2712_v5, %v15613_v46  ;;  %v2714_v55 = vpop.f32.mrb[85].mxu1 }
 0x1f3   : > { %2823 = vst.msk [vmem:[#allocation4 + $0x88] sm:$0xff] %vm20073_vm6, %v2787_v39  ;;  %v2795_v33 = vadd.f32 %v2714_v55, %v15615_v38  ;;  %v2716_v61 = vpop.f32.mrb[86].mxu1 }
 0x1f4   : > { %v2803_v7 = vadd.f32 %v2716_v61, %v15617_v60  ;;  %v2718_v44 = vpop.f32.mrb[87].mxu1 }
 0x1f5   : > { %v2804_v3 = vadd.f32 %v2718_v44, %v15619_v12  ;;  %v3067_v30 = vpop.f32.mrb[92].mxu0 }
 0x1f6   : > { %v15726_v56 = vadd.f32 %v3067_v30, %v15658_v51  ;;  %v3069_v32 = vpop.f32.mrb[93].mxu0 }
 0x1f7   : > { %v15729_v15 = vadd.f32 %v3069_v32, %v15661_v45  ;;  %v3071_v46 = vpop.f32.mrb[94].mxu0 }
 0x1f8   : > { %v15732_v62 = vadd.f32 %v3071_v46, %v15664_v25  ;;  %v3073_v57 = vpop.f32.mrb[95].mxu0 }
 0x1f9   : > { %v15735_v38 = vadd.f32 %v3073_v57, %v15667_v36  ;;  %v3014_v60 = vpop.f32.mrb[88].mxu1 }
 0x1fa   : > { %v3241_v4 = vadd.f32 %v3014_v60, %v15633_v42  ;;  %v3016_v12 = vpop.f32.mrb[89].mxu1 }
 0x1fb   : > { %v3242_v6 = vadd.f32 %v3016_v12, %v15635_v50  ;;  %v3018_v51 = vpop.f32.mrb[90].mxu1 }
 0x1fc   : > { %v3250_v17 = vadd.f32 %v3018_v51, %v15637_v34  ;;  %v3020_v63 = vpop.f32.mrb[91].mxu1 }
 0x1fd   : > { %v3251_v45 = vadd.f32 %v3020_v63, %v15639_v8  ;;  %v3077_v14 = vpop.f32.mrb[96].mxu0 }
 0x1fe   : > { %v15742_v25 = vadd.f32 %v3077_v14, %v15682_v43  ;;  %v3079_v21 = vpop.f32.mrb[97].mxu0 }
 0x1ff   : > { %v15745_v36 = vadd.f32 %v3079_v21, %v15685_v47  ;;  %v3081_v48 = vpop.f32.mrb[98].mxu0 }
 0x200   : > { %v15748_v42 = vadd.f32 %v3081_v48, %v15688_v16  ;;  %v3083_v20 = vpop.f32.mrb[99].mxu0  ;;  %v2868_v48 = vld [vmem:[#allocation4 + $0xd0] sm:$0xff] }
 0x201   : > { %v15751_v50 = vadd.f32 %v3083_v20, %v15691_v22  ;;  %v3024_v34 = vpop.f32.mrb[92].mxu1 }
 0x202   : > { %v15754_v59 = vadd.f32 %v3024_v34, %v15645_v0  ;;  %v3026_v8 = vpop.f32.mrb[93].mxu1  ;;  %v2850_v34 = vld [vmem:[#allocation4 + $0x40] sm:$0xff] }
 0x203   : > { %v15757_v43 = vadd.f32 %v3026_v8, %v15649_v52  ;;  %v3028_v23 = vpop.f32.mrb[94].mxu1 }
 0x204   : > { %v15760_v47 = vadd.f32 %v3028_v23, %v15652_v9  ;;  %v3030_v18 = vpop.f32.mrb[95].mxu1 }
 0x205   : > { %v15763_v16 = vadd.f32 %v3030_v18, %v15655_v24  ;;  %v3173_v27 = vpop.f32.mrb[100].mxu0 }
 0x206   : > { %v15766_v22 = vadd.f32 %v3173_v27, %v15706_v49  ;;  %v3175_v1 = vpop.f32.mrb[101].mxu0  ;;  %v2859_v27 = vld [vmem:[#allocation4 + $0x88] sm:$0xff] }
 0x207   : > { %v15769_v0 = vadd.f32 %v3175_v1, %v15709_v2  ;;  %v3177_v31 = vpop.f32.mrb[102].mxu0 }
 0x208   : > { %v15772_v52 = vadd.f32 %v3177_v31, %v15712_v53  ;;  %v3179_v11 = vpop.f32.mrb[103].mxu0 }
 0x209   : > { %v15775_v9 = vadd.f32 %v3179_v11, %v15715_v54  ;;  %v3120_v29 = vpop.f32.mrb[96].mxu1 }
 0x20a   : > { %v15778_v24 = vadd.f32 %v3120_v29, %v15670_v37  ;;  %v3122_v58 = vpop.f32.mrb[97].mxu1 }
 0x20b   : > { %v15781_v49 = vadd.f32 %v3122_v58, %v15673_v28  ;;  %v3124_v39 = vpop.f32.mrb[98].mxu1 }
 0x20c   : > { %v15784_v2 = vadd.f32 %v3124_v39, %v15676_v40  ;;  %v3126_v5 = vpop.f32.mrb[99].mxu1 }
 0x20d   : > { %v15787_v53 = vadd.f32 %v3126_v5, %v15679_v35  ;;  %v3183_v55 = vpop.f32.mrb[104].mxu0 }
 0x20e   : > { %v15789_v61 = vadd.f32 %v3183_v55, %v2794_v10  ;;  %v3185_v54 = vpop.f32.mrb[105].mxu0 }
 0x20f   : > { %v15791_v44 = vadd.f32 %v3185_v54, %v2795_v33  ;;  %v3187_v37 = vpop.f32.mrb[106].mxu0 }
 0x210   : > { %v15793_v30 = vadd.f32 %v3187_v37, %v2803_v7  ;;  %v3189_v32 = vpop.f32.mrb[107].mxu0 }
 0x211   : > { %v15795_v28 = vadd.f32 %v3189_v32, %v2804_v3  ;;  %v3130_v46 = vpop.f32.mrb[100].mxu1 }
 0x212   : > { %v15798_v40 = vadd.f32 %v3130_v46, %v15694_v13  ;;  %v3132_v57 = vpop.f32.mrb[101].mxu1 }
 0x213   : > { %v15801_v35 = vadd.f32 %v3132_v57, %v15697_v26  ;;  %v3134_v60 = vpop.f32.mrb[102].mxu1 }
 0x214   : > { %v15804_v10 = vadd.f32 %v3134_v60, %v15700_v41  ;;  %v3136_v33 = vpop.f32.mrb[103].mxu1 }
 0x215   : > { %v15807_v12 = vadd.f32 %v3136_v33, %v15703_v19  ;;  %v3491_v7 = vpop.f32.mrb[108].mxu0  ;;  %v2877_v19 = vld [vmem:[#allocation4 + $0x118] sm:$0xff] }
 0x216   : > { %v15809_v51 = vadd.f32 %v3491_v7, %v3241_v4  ;;  %v3493_v3 = vpop.f32.mrb[109].mxu0 }
 0x217   : > { %v15811_v63 = vadd.f32 %v3493_v3, %v3242_v6  ;;  %v3495_v13 = vpop.f32.mrb[110].mxu0 }
 0x218   : > { %v15813_v14 = vadd.f32 %v3495_v13, %v3250_v17  ;;  %v3497_v21 = vpop.f32.mrb[111].mxu0 }
 0x219   : > { %v15815_v26 = vadd.f32 %v3497_v21, %v3251_v45  ;;  %v14239_v20 = vpop.f32.mrb[104].mxu1 }
 0x21a   : > { %v3267_v41 = vadd.f32 %v14239_v20, %v2868_v48  ;;  %v3226_v8 = vpop.f32.mrb[105].mxu1 }
 0x21b   : > { %v3249_v23 = vadd.f32 %v3226_v8, %v2850_v34  ;;  %v14240_v18 = vpop.f32.mrb[106].mxu1 }
 0x21c   : > { %3303 = vst.msk [vmem:[#allocation4 + $0xd0] sm:$0xff] %vm20073_vm6, %v3267_v41  ;;  %v3276_v4 = vadd.f32 %v14240_v18, %v2877_v19  ;;  %v3229_v6 = vpop.f32.mrb[107].mxu1  ;;  %v20050_v18 = vlaneseq }
 0x21d   : > { %3285 = vst.msk [vmem:[#allocation4 + $0x40] sm:$0xff] %vm20073_vm6, %v3249_v23  ;;  %v3258_v17 = vadd.f32 %v3229_v6, %v2859_v27  ;;  %v3501_v1 = vpop.f32.mrb[112].mxu0 }
 0x21e   : > { %3312 = vst.msk [vmem:[#allocation4 + $0x118] sm:$0xff] %vm20073_vm6, %v3276_v4  ;;  %v15821_v45 = vadd.f32 %v3501_v1, %v15754_v59  ;;  %v3503_v31 = vpop.f32.mrb[113].mxu0 }
 0x21f   : > { %3294 = vst.msk [vmem:[#allocation4 + $0x88] sm:$0xff] %vm20073_vm6, %v3258_v17  ;;  %v15825_v11 = vadd.f32 %v3503_v31, %v15757_v43  ;;  %v3505_v29 = vpop.f32.mrb[114].mxu0 }
 0x220   : > { %v15828_v58 = vadd.f32 %v3505_v29, %v15760_v47  ;;  %v3507_v39 = vpop.f32.mrb[115].mxu0 }
 0x221   : > { %v15831_v5 = vadd.f32 %v3507_v39, %v15763_v16  ;;  %v3544_v55 = vpop.f32.mrb[108].mxu1 }
 0x222   : > { %v15834_v54 = vadd.f32 %v3544_v55, %v15726_v56  ;;  %v3546_v59 = vpop.f32.mrb[109].mxu1 }
 0x223   : > { %v15837_v37 = vadd.f32 %v3546_v59, %v15729_v15  ;;  %v3548_v32 = vpop.f32.mrb[110].mxu1  ;;  %v3339_v6 = vld [vmem:[#allocation4 + $0xd0] sm:$0xff] }
 0x224   : > { %v15840_v43 = vadd.f32 %v3548_v32, %v15732_v62  ;;  %v3550_v46 = vpop.f32.mrb[111].mxu1  ;;  %v3321_v1 = vld [vmem:[#allocation4 + $0x40] sm:$0xff] }
 0x225   : > { %v15843_v47 = vadd.f32 %v3550_v46, %v15735_v38  ;;  %v3597_v57 = vpop.f32.mrb[116].mxu0  ;;  %v3348_v39 = vld [vmem:[#allocation4 + $0x118] sm:$0xff] }
 0x226   : > { %v15846_v16 = vadd.f32 %v3597_v57, %v15778_v24  ;;  %v3599_v60 = vpop.f32.mrb[117].mxu0 }
 0x227   : > { %v15849_v56 = vadd.f32 %v3599_v60, %v15781_v49  ;;  %v3601_v33 = vpop.f32.mrb[118].mxu0 }
 0x228   : > { %v15852_v15 = vadd.f32 %v3601_v33, %v15784_v2  ;;  %v3603_v7 = vpop.f32.mrb[119].mxu0 }
 0x229   : > { %v15855_v62 = vadd.f32 %v3603_v7, %v15787_v53  ;;  %v3554_v3 = vpop.f32.mrb[112].mxu1 }
 0x22a   : > { %v15858_v38 = vadd.f32 %v3554_v3, %v15742_v25  ;;  %v3556_v13 = vpop.f32.mrb[113].mxu1 }
 0x22b   : > { %v15861_v24 = vadd.f32 %v3556_v13, %v15745_v36  ;;  %v3558_v21 = vpop.f32.mrb[114].mxu1 }
 0x22c   : > { %v15864_v49 = vadd.f32 %v3558_v21, %v15748_v42  ;;  %v3560_v48 = vpop.f32.mrb[115].mxu1 }
 0x22d   : > { %v15867_v2 = vadd.f32 %v3560_v48, %v15751_v50  ;;  %v3607_v20 = vpop.f32.mrb[120].mxu0 }
 0x22e   : > { %v15870_v53 = vadd.f32 %v3607_v20, %v15798_v40  ;;  %v3609_v41 = vpop.f32.mrb[121].mxu0 }
 0x22f   : > { %v15873_v25 = vadd.f32 %v3609_v41, %v15801_v35  ;;  %v3611_v34 = vpop.f32.mrb[122].mxu0 }
 0x230   : > { %v15876_v36 = vadd.f32 %v3611_v34, %v15804_v10  ;;  %v3613_v8 = vpop.f32.mrb[123].mxu0 }
 0x231   : > { %v15879_v42 = vadd.f32 %v3613_v8, %v15807_v12  ;;  %v3650_v23 = vpop.f32.mrb[116].mxu1 }
 0x232   : > { %v15882_v50 = vadd.f32 %v3650_v23, %v15766_v22  ;;  %v3652_v19 = vpop.f32.mrb[117].mxu1  ;;  %v15894_v22 = vand.u32 127, %v20050_v18 }
 0x233   : > { %v15885_v40 = vadd.f32 %v3652_v19, %v15769_v0  ;;  %v3654_v4 = vpop.f32.mrb[118].mxu1 }
 0x234   : > { %v15888_v35 = vadd.f32 %v3654_v4, %v15772_v52  ;;  %v3656_v27 = vpop.f32.mrb[119].mxu1  ;;  %v3330_v52 = vld [vmem:[#allocation4 + $0x88] sm:$0xff]  ;;  %v15903_v60 = vadd.s32 128, %v15894_v22 }
 0x235   : > { %v15891_v10 = vadd.f32 %v3656_v27, %v15775_v9  ;;  %v14245_v12 = vpop.f32.mrb[124].mxu0  ;;  %v15936_v27 = vadd.s32 384, %v15894_v22 }
 0x236   : > { %v3744_v17 = vadd.f32 %v14245_v12, %v3339_v6  ;;  %v3703_v31 = vpop.f32.mrb[125].mxu0 }
 0x237   : > { %v3726_v29 = vadd.f32 %v3703_v31, %v3321_v1  ;;  %v14246_v0 = vpop.f32.mrb[126].mxu0 }
 0x238   : > { %3780 = vst.msk [vmem:[#allocation4 + $0xd0] sm:$0xff] %vm20073_vm6, %v3744_v17  ;;  %v3753_v55 = vadd.f32 %v14246_v0, %v3348_v39  ;;  %v3706_v59 = vpop.f32.mrb[127].mxu0 }
 0x239   : > { %3762 = vst.msk [vmem:[#allocation4 + $0x40] sm:$0xff] %vm20073_vm6, %v3726_v29  ;;  %v3735_v9 = vadd.f32 %v3706_v59, %v3330_v52  ;;  %v3660_v32 = vpop.f32.mrb[120].mxu1 }
 0x23a   : > { %3789 = vst.msk [vmem:[#allocation4 + $0x118] sm:$0xff] %vm20073_vm6, %v3753_v55  ;;  %v15900_v46 = vadd.f32 %v3660_v32, %v15789_v61  ;;  %v3662_v57 = vpop.f32.mrb[121].mxu1  ;;  %v15916_v61 = vmul.u32.u64.low 4042322161, %v15894_v22  ;;  %v15917_v20 = vmul.u32.u64.high 4042322161, %v15894_v22, %v15916_v61 }
 0x23b   : > { %3771 = vst.msk [vmem:[#allocation4 + $0x88] sm:$0xff] %vm20073_vm6, %v3735_v9  ;;  %v15907_v33 = vadd.f32 %v3662_v57, %v15791_v44  ;;  %v3664_v7 = vpop.f32.mrb[122].mxu1  ;;  %v15923_v44 = vmul.u32.u64.low 4042322161, %v15903_v60  ;;  %v15924_v8 = vmul.u32.u64.high 4042322161, %v15903_v60, %v15923_v44 }
 0x23c   : > { %v15910_v3 = vadd.f32 %v3664_v7, %v15793_v30  ;;  %v3666_v13 = vpop.f32.mrb[123].mxu1  ;;  %v15973_v7 = vadd.s32 640, %v15894_v22 }
 0x23d   : > { %v15913_v21 = vadd.f32 %v3666_v13, %v15795_v28  ;;  %v4021_v48 = vpop.f32.mrb[128].mxu0  ;;  %v15930_v28 = vadd.s32 256, %v15894_v22  ;;  %v349_v9 = vshrl.u32 %v15924_v8, 5 }
 0x23e   : > { %v15920_v41 = vadd.f32 %v4021_v48, %v15834_v54  ;;  %v4023_v34 = vpop.f32.mrb[129].mxu0 }
 0x23f   : > { %v15927_v30 = vadd.f32 %v4023_v34, %v15837_v37  ;;  %v4025_v23 = vpop.f32.mrb[130].mxu0  ;;  %v350_v44 = vmul.u32 34, %v349_v9 }
 0x240   : > { %v15933_v19 = vadd.f32 %v4025_v23, %v15840_v43  ;;  %v4027_v4 = vpop.f32.mrb[131].mxu0  ;;  %v15948_v31 = vmul.u32.u64.low 4042322161, %v15930_v28  ;;  %v15949_v43 = vmul.u32.u64.high 4042322161, %v15930_v28, %v15948_v31 }
 0x241   : > { %v15939_v54 = vadd.f32 %v4027_v4, %v15843_v47  ;;  %v3968_v6 = vpop.f32.mrb[124].mxu1  ;;  %v15955_v47 = vmul.u32.u64.low 4042322161, %v15936_v27  ;;  %v15956_v0 = vmul.u32.u64.high 4042322161, %v15936_v27, %v15955_v47 }
 0x242   : > { %v15942_v12 = vadd.f32 %v3968_v6, %v15809_v51  ;;  %v3970_v37 = vpop.f32.mrb[125].mxu1 }
 0x243   : > { %v15945_v17 = vadd.f32 %v3970_v37, %v15811_v63  ;;  %v3972_v1 = vpop.f32.mrb[126].mxu1  ;;  %v338_v63 = vshrl.u32 %v15917_v20, 5  ;;  %v15982_v20 = vadd.s32 768, %v15894_v22  ;;  %v371_v31 = vshrl.u32 %v15956_v0, 5 }
 0x244   : > { %v15952_v29 = vadd.f32 %v3972_v1, %v15813_v14  ;;  %v3974_v39 = vpop.f32.mrb[127].mxu1  ;;  %v15967_v14 = vadd.s32 512, %v15894_v22  ;;  %v15996_v6 = vmul.u32.u64.low 4042322161, %v15973_v7  ;;  %v15997_v37 = vmul.u32.u64.high 4042322161, %v15973_v7, %v15996_v6 }
 0x245   : > { %v15959_v51 = vadd.f32 %v3974_v39, %v15815_v26  ;;  %v4031_v55 = vpop.f32.mrb[132].mxu0  ;;  %v339_v61 = vmul.u32 34, %v338_v63  ;;  %v16004_v39 = vadd.s32 896, %v15894_v22 }
 0x246   : > { %v15963_v52 = vadd.f32 %v4031_v55, %v15858_v38  ;;  %v4033_v59 = vpop.f32.mrb[133].mxu0  ;;  %v15988_v8 = vmul.u32.u64.low 4042322161, %v15967_v14  ;;  %v15989_v23 = vmul.u32.u64.high 4042322161, %v15967_v14, %v15988_v8 }
 0x247   : > { %v15970_v32 = vadd.f32 %v4033_v59, %v15861_v24  ;;  %v4035_v57 = vpop.f32.mrb[134].mxu0 }
 0x248   : > { %v15976_v26 = vadd.f32 %v4035_v57, %v15864_v49  ;;  %v4037_v13 = vpop.f32.mrb[135].mxu0  ;;  %v16023_v57 = vsub.s32 %v15903_v60, %v350_v44  ;;  %v382_v60 = vshrl.u32 %v15989_v23, 5 }
 0x249   : > { %v15979_v38 = vadd.f32 %v4037_v13, %v15867_v2  ;;  %v3978_v48 = vpop.f32.mrb[128].mxu1  ;;  %v360_v2 = vshrl.u32 %v15949_v43, 5  ;;  %v16010_v55 = vmul.u32.u64.low 4042322161, %v15982_v20  ;;  %v16011_v43 = vmul.u32.u64.high 4042322161, %v15982_v20, %v16010_v55 }
 0x24a   : > { %v15985_v34 = vadd.f32 %v3978_v48, %v15821_v45  ;;  %v3980_v24 = vpop.f32.mrb[129].mxu1  ;;  %vm432_vm13 = vcmp.ne.s32.totalorder %v16023_v57, 0  ;;  %vm441_vm14 = vcmp.lt.s32.totalorder %v16023_v57, 0 }
 0x24b   : > { %v15992_v49 = vadd.f32 %v3980_v24, %v15825_v11  ;;  %v3982_v4 = vpop.f32.mrb[130].mxu1  ;;  %v372_v24 = vmul.u32 34, %v371_v31  ;;  %vm16087_vm0 = vmand %vm441_vm14, %vm432_vm13 }
 0x24c   : > { %v16000_v1 = vadd.f32 %v3982_v4, %v15828_v58  ;;  %v3984_v45 = vpop.f32.mrb[131].mxu1  ;;  %v16017_v58 = vsub.s32 %v15894_v22, %v339_v61 }
 0x24d   : > { %v16007_v47 = vadd.f32 %v3984_v45, %v15831_v5  ;;  %v4127_v11 = vpop.f32.mrb[136].mxu0  ;;  %v361_v5 = vmul.u32 34, %v360_v2 }
 0x24e   : > { %v16014_v63 = vadd.f32 %v4127_v11, %v15882_v50  ;;  %v4129_v59 = vpop.f32.mrb[137].mxu0  ;;  %v16029_v50 = vmul.u32.u64.low 4042322161, %v16004_v39  ;;  %v16030_v8 = vmul.u32.u64.high 4042322161, %v16004_v39, %v16029_v50  ;;  %vm431_vm11 = vcmp.ne.s32.totalorder %v16017_v58, 0 }
 0x24f   : > { %v16020_v0 = vadd.f32 %v4129_v59, %v15885_v40  ;;  %v4131_v9 = vpop.f32.mrb[138].mxu0  ;;  %vm440_vm12 = vcmp.lt.s32.totalorder %v16017_v58, 0  ;;  %v459_v11 = vadd.s32 34, %v16023_v57 }
 0x250   : > { %v16026_v13 = vadd.f32 %v4131_v9, %v15888_v35  ;;  %v4133_v48 = vpop.f32.mrb[139].mxu0  ;;  %v16041_v35 = vadd.s32 1024, %v15894_v22  ;;  %v16057_v22 = vsub.s32 %v15936_v27, %v372_v24  ;;  %vm16072_vm15 = vmand %vm440_vm12, %vm431_vm11 }
 0x251   : > { %v16033_v61 = vadd.f32 %v4133_v48, %v15891_v10  ;;  %v4074_v4 = vpop.f32.mrb[132].mxu1  ;;  %v16048_v10 = vsub.s32 %v15930_v28, %v361_v5  ;;  %v458_v28 = vadd.s32 34, %v16017_v58 }
 0x252   : > { %v16036_v40 = vadd.f32 %v4074_v4, %v15846_v16  ;;  %v4076_v6 = vpop.f32.mrb[133].mxu1  ;;  %v393_v16 = vshrl.u32 %v15997_v37, 5  ;;  %v404_v37 = vshrl.u32 %v16011_v43, 5  ;;  %vm434_vm12 = vcmp.ne.s32.totalorder %v16057_v22, 0 }
 0x253   : > { %v16044_v44 = vadd.f32 %v4076_v6, %v15849_v56  ;;  %v4078_v2 = vpop.f32.mrb[134].mxu1  ;;  %v16077_v59 = vmul.u32.u64.low 4042322161, %v16041_v35  ;;  %v16078_v9 = vmul.u32.u64.high 4042322161, %v16041_v35, %v16077_v59  ;;  %vm433_vm1 = vcmp.ne.s32.totalorder %v16048_v10, 0 }
 0x254   : > { %v16052_v45 = vadd.f32 %v4078_v2, %v15852_v15  ;;  %v4080_v31 = vpop.f32.mrb[135].mxu1  ;;  %vm442_vm11 = vcmp.lt.s32.totalorder %v16048_v10, 0  ;;  %v394_v48 = vmul.u32 34, %v393_v16  ;;  %vm443_vm10 = vcmp.lt.s32.totalorder %v16057_v22, 0  ;;  %v16152_v59 = vpop.permute.xlu1 %4786 }
 0x255   : > { %v16060_v56 = vadd.f32 %v4080_v31, %v15855_v62  ;;  %v4137_v23 = vpop.f32.mrb[140].mxu0  ;;  %v383_v62 = vmul.u32 34, %v382_v60  ;;  %v467_v60 = vsel %vm16072_vm15, %v458_v28, %v16017_v58  ;;  %v16106_v2 = vadd.s32 34, %v16048_v10  ;;  %vm16118_vm13 = vmand %vm442_vm11, %vm433_vm1 }
 0x256   : > { %v16066_v15 = vadd.f32 %v4137_v23, %v15900_v46  ;;  %v4139_v55 = vpop.f32.mrb[141].mxu0  ;;  %v16123_v58 = vadd.s32 34, %v16057_v22  ;;  %vm16135_vm14 = vmand %vm443_vm10, %vm434_vm12  ;;  %vm16145_vm15 = vcmp.lt.s32.totalorder %v467_v60, 32  ;;  %v16173_v60 = vpop.permute.xlu0 %4791 }
 0x257   : > { %v16081_v5 = vadd.f32 %v4139_v55, %v15907_v33  ;;  %v4141_v43 = vpop.f32.mrb[142].mxu0  ;;  %v415_v33 = vshrl.u32 %v16030_v8, 5  ;;  %v468_v8 = vsel %vm16087_vm0, %v459_v11, %v16023_v57  ;;  %v16126_v23 = vsub.s32 %v15967_v14, %v383_v62 }
 0x258   : > { %v16094_v24 = vadd.f32 %v4141_v43, %v15910_v3  ;;  %v4143_v50 = vpop.f32.mrb[143].mxu0  ;;  %v405_v3 = vmul.u32 34, %v404_v37  ;;  %v16140_v11 = vsub.s32 %v15973_v7, %v394_v48  ;;  %v20111_v55 = vmov 0 }
 0x259   : > { %v16100_v4 = vadd.f32 %v4143_v50, %v15913_v21  ;;  %v4084_v6 = vpop.f32.mrb[136].mxu1  ;;  %v20112_v55 = vsel %vm16145_vm15, 4294967295, %v20111_v55  ;;  %vm16154_vm10 = vcmp.lt.s32.totalorder %v468_v8, 32  ;;  %v20114_v43 = vmov 0  ;;  %v3798_v21 = vld [vmem:[#allocation4 + $0x40] sm:$0xff] }
 0x25a   : > { %v16109_v16 = vadd.f32 %v4084_v6, %v15870_v53  ;;  %v4086_v31 = vpop.f32.mrb[137].mxu1  ;;  %20113 = vst [vmem:[#allocation6_spill] sm:$0xff] %v20112_v55  ;;  %v20115_v43 = vsel %vm16154_vm10, 4294967295, %v20114_v43  ;;  %v16163_v7 = vsub.s32 %v15982_v20, %v405_v3  ;;  %vm435_vm0 = vcmp.ne.s32.totalorder %v16126_v23, 0 }
 0x25b   : > { %v16129_v53 = vadd.f32 %v4086_v31, %v15873_v25  ;;  %v4088_v28 = vpop.f32.mrb[138].mxu1  ;;  %v416_v25 = vmul.u32 34, %v415_v33  ;;  %20116 = vst [vmem:[#allocation7_spill] sm:$0xff] %v20115_v43  ;;  %v426_v50 = vshrl.u32 %v16078_v9, 5  ;;  %vm444_vm1 = vcmp.lt.s32.totalorder %v16126_v23, 0  ;;  %v17210_v43 = vld [vmem:[#allocation3] sm:$0xff] }
 0x25c   : > { %v16143_v37 = vadd.f32 %v4088_v28, %v15876_v36  ;;  %v4090_v14 = vpop.f32.mrb[139].mxu1  ;;  %v469_v36 = vsel %vm16118_vm13, %v16106_v2, %v16048_v10  ;;  %v16177_v20 = vadd.s32 34, %v16126_v23  ;;  %vm436_vm11 = vcmp.ne.s32.totalorder %v16140_v11, 0  ;;  %v3816_v2 = vld [vmem:[#allocation4 + $0xd0] sm:$0xff]  ;;  %vm16202_vm9 = vmand %vm444_vm1, %vm435_vm0 }
 0x25d   : > { %v16150_v27 = vadd.f32 %v4090_v14, %v15879_v42  ;;  %v4445_v62 = vpop.f32.mrb[144].mxu0  ;;  %v470_v42 = vsel %vm16135_vm14, %v16123_v58, %v16057_v22  ;;  %vm445_vm12 = vcmp.lt.s32.totalorder %v16140_v11, 0  ;;  %v16184_v9 = vsub.s32 %v16004_v39, %v416_v25  ;;  %v3825_v25 = vld [vmem:[#allocation4 + $0x118] sm:$0xff] }
 0x25e   : > { %v4672_v46 = vadd.f32 %v4445_v62, %v15942_v12  ;;  %v4447_v48 = vpop.f32.mrb[145].mxu0  ;;  %v16189_v8 = vadd.s32 34, %v16140_v11  ;;  %vm437_vm13 = vcmp.ne.s32.totalorder %v16163_v7, 0  ;;  %v427_v14 = vmul.u32 34, %v426_v50  ;;  %vm16217_vm0 = vmand %vm445_vm12, %vm436_vm11 }
 0x25f   : > { %v4673_v33 = vadd.f32 %v4447_v48, %v15945_v17  ;;  %v4449_v6 = vpop.f32.mrb[146].mxu0  ;;  %vm446_vm14 = vcmp.lt.s32.totalorder %v16163_v7, 0  ;;  %vm438_vm8 = vcmp.ne.s32.totalorder %v16184_v9, 0  ;;  %vm447_vm7 = vcmp.lt.s32.totalorder %v16184_v9, 0 }
 0x260   : > { %v4681_v12 = vadd.f32 %v4449_v6, %v15952_v29  ;;  %v4451_v10 = vpop.f32.mrb[147].mxu0  ;;  %v4804_v22 = vadd.f32 %v16152_v59, %v4672_v46  ;;  %v3807_v6 = vld [vmem:[#allocation4 + $0x88] sm:$0xff]  ;;  %vm16209_vm5 = vcmp.lt.s32.totalorder %v469_v36, 32  ;;  %vm16233_vm1 = vcmp.lt.s32.totalorder %v470_v42, 32  ;;  %vm16241_vm11 = vmand %vm446_vm14, %vm437_vm13 }
 0x261   : > { %v4682_v17 = vadd.f32 %v4451_v10, %v15959_v51  ;;  %v14251_v3 = vpop.f32.mrb[140].mxu1  ;;  %v4805_v31 = vadd.f32 %v16152_v59, %v4673_v33  ;;  %v16193_v51 = vpop.permute.xlu1 %4796  ;;  %vm16258_vm12 = vmand %vm447_vm7, %vm438_vm8 }
 0x262   : > { %v4221_v29 = vadd.f32 %v14251_v3, %v3816_v2  ;;  %v4180_v58 = vpop.f32.mrb[141].mxu1  ;;  %v4813_v28 = vadd.f32 %v16173_v60, %v4681_v12  ;;  %v4861_v57 = vmax.f32 %v4804_v22, 0.0  ;;  %v20119_v3 = vmov 0 }
 0x263   : > { %v4203_v39 = vadd.f32 %v4180_v58, %v3798_v21  ;;  %v14252_v62 = vpop.f32.mrb[142].mxu1  ;;  %v4814_v46 = vadd.f32 %v16173_v60, %v4682_v17  ;;  %v4862_v48 = vmax.f32 %v4805_v31, 0.0  ;;  %v20120_v3 = vsel %vm16209_vm5, 4294967295, %v20119_v3 }
 0x264   : > { %4257 = vst.msk [vmem:[#allocation4 + $0xd0] sm:$0xff] %vm20073_vm6, %v4221_v29  ;;  %v4230_v33 = vadd.f32 %v14252_v62, %v3825_v25  ;;  %v4183_v10 = vpop.f32.mrb[143].mxu1  ;;  %v4870_v2 = vmax.f32 %v4813_v28, 0.0  ;;  %20121 = vst [vmem:[#allocation8_spill] sm:$0xff] %v20120_v3  ;;  %v16222_v29 = vadd.s32 34, %v16163_v7  ;;  %v16225_v21 = vadd.s32 34, %v16184_v9 }
 0x265   : > { %4239 = vst.msk [vmem:[#allocation4 + $0x40] sm:$0xff] %vm20073_vm6, %v4203_v39  ;;  %v4212_v12 = vadd.f32 %v4183_v10, %v3807_v6  ;;  %v4455_v22 = vpop.f32.mrb[148].mxu0  ;;  %v4871_v17 = vmax.f32 %v4814_v46, 0.0  ;;  %v4915_v28 = vsel %vm16145_vm15, %v4861_v57, 0.0  ;;  %v20124_v25 = vmov 0 }
 0x266   : > { %4266 = vst.msk [vmem:[#allocation4 + $0x118] sm:$0xff] %vm20073_vm6, %v4230_v33  ;;  %v4690_v36 = vadd.f32 %v4455_v22, %v15985_v34  ;;  %v4457_v58 = vpop.f32.mrb[149].mxu0  ;;  %v4924_v39 = vsel %vm16145_vm15, %v4870_v2, 0.0  ;;  %v20125_v25 = vsel %vm16233_vm1, 4294967295, %v20124_v25  ;;  %v16246_v34 = vsub.s32 %v16041_v35, %v427_v14 }
 0x267   : > { %20126 = vst [vmem:[#allocation9_spill] sm:$0xff] %v20125_v25  ;;  %4248 = vst.msk [vmem:[#allocation4 + $0x88] sm:$0xff] %vm20073_vm6, %v4212_v12  ;;  %v4691_v57 = vadd.f32 %v4457_v58, %v15992_v49  ;;  %v4459_v46 = vpop.f32.mrb[150].mxu0  ;;  %v4951_v42 = vpack.c.bf16 %v4924_v39, %v4915_v28  ;;  %v4916_v33 = vsel %vm16154_vm10, %v4862_v48, 0.0  ;;  %v4925_v6 = vsel %vm16154_vm10, %v4871_v17, 0.0  ;;  %v16269_v17 = vpop.permute.xlu1 %4801 }
 0x268   : > { %v4699_v35 = vadd.f32 %v4459_v46, %v16000_v1  ;;  %v4461_v14 = vpop.f32.mrb[151].mxu0  ;;  %v4952_v49 = vpack.c.bf16 %v4925_v6, %v4916_v33  ;;  %v4822_v2 = vadd.f32 %v16193_v51, %v4690_v36  ;;  %v471_v48 = vsel %vm16202_vm9, %v16177_v20, %v16126_v23 }
 0x269   : > { %v4700_v12 = vadd.f32 %v4461_v14, %v16007_v47  ;;  %v4498_v22 = vpop.f32.mrb[144].mxu1  ;;  %4987 = vrot.lane.b32.xlu0 %v4951_v42, %s14523_s12  ;;  %v4823_v58 = vadd.f32 %v16193_v51, %v4691_v57  ;;  %v472_v1 = vsel %vm16217_vm0, %v16189_v8, %v16140_v11  ;;  %v473_v23 = vsel %vm16241_vm11, %v16222_v29, %v16163_v7 }
 0x26a   : > { %v4674_v47 = vadd.f32 %v4498_v22, %v15920_v41  ;;  %v4500_v20 = vpop.f32.mrb[145].mxu1  ;;  %4989 = vrot.lane.b32.xlu1 %v4952_v49, %s14523_s12  ;;  %v4831_v50 = vadd.f32 %v16269_v17, %v4699_v35  ;;  %v4879_v36 = vmax.f32 %v4822_v2, 0.0  ;;  %v474_v28 = vsel %vm16258_vm12, %v16225_v21, %v16184_v9 }
 0x26b   : > { %v4675_v11 = vadd.f32 %v4500_v20, %v15927_v30  ;;  %v4502_v8 = vpop.f32.mrb[146].mxu1  ;;  %v4832_v31 = vadd.f32 %v16269_v17, %v4700_v12  ;;  %v4880_v39 = vmax.f32 %v4823_v58, 0.0  ;;  %vm16290_vm7 = vcmp.lt.s32.totalorder %v471_v48, 32 }
 0x26c   : > { %v20131_v57 = vmov 0  ;;  %v16295_v41 = vadd.s32 34, %v16246_v34  ;;  %v4683_v46 = vadd.f32 %v4502_v8, %v15933_v19  ;;  %v4504_v42 = vpop.f32.mrb[147].mxu1  ;;  %v4888_v33 = vmax.f32 %v4831_v50, 0.0 }
 0x26d   : > { %v20132_v57 = vsel %vm16290_vm7, 4294967295, %v20131_v57  ;;  %v4933_v6 = vsel %vm16145_vm15, %v4879_v36, 0.0  ;;  %v4806_v30 = vadd.f32 %v16152_v59, %v4674_v47  ;;  %v4684_v35 = vadd.f32 %v4504_v42, %v15939_v54  ;;  %v4551_v14 = vpop.f32.mrb[152].mxu0 }
 0x26e   : > { %20133 = vst [vmem:[#allocation10_spill] sm:$0xff] %v20132_v57  ;;  %v4807_v49 = vadd.f32 %v16152_v59, %v4675_v11  ;;  %v4889_v2 = vmax.f32 %v4832_v31, 0.0  ;;  %v16305_v48 = vsel %vm16154_vm10, %v4880_v39, 0.0  ;;  %v4676_v12 = vadd.f32 %v4551_v14, %v16036_v40  ;;  %v4553_v19 = vpop.f32.mrb[153].mxu0 }
 0x26f   : > { %v4942_v22 = vsel %vm16145_vm15, %v4888_v33, 0.0  ;;  %v4815_v58 = vadd.f32 %v16173_v60, %v4683_v46  ;;  %v4863_v20 = vmax.f32 %v4806_v30, 0.0  ;;  %v4677_v47 = vadd.f32 %v4553_v19, %v16044_v44  ;;  %v4555_v54 = vpop.f32.mrb[154].mxu0 }
 0x270   : > { %v4960_v50 = vpack.c.bf16 %v4942_v22, %v4933_v6  ;;  %v4816_v36 = vadd.f32 %v16173_v60, %v4684_v35  ;;  %v4864_v11 = vmax.f32 %v4807_v49, 0.0  ;;  %v4685_v8 = vadd.f32 %v4555_v54, %v16052_v45  ;;  %v4557_v31 = vpop.f32.mrb[155].mxu0 }
 0x271   : > { %v4872_v39 = vmax.f32 %v4815_v58, 0.0  ;;  %v4917_v40 = vsel %vm16209_vm5, %v4863_v20, 0.0  ;;  %v4943_v42 = vsel %vm16154_vm10, %v4889_v2, 0.0  ;;  %v4686_v46 = vadd.f32 %v4557_v31, %v16060_v56  ;;  %v4508_v33 = vpop.f32.mrb[148].mxu1 }
 0x272   : > { %5005 = vrot.lane.b32.xlu1 %v4960_v50, %s14523_s12  ;;  %v4873_v44 = vmax.f32 %v4816_v36, 0.0  ;;  %v4918_v6 = vsel %vm16233_vm1, %v4864_v11, 0.0  ;;  %v4961_v30 = vpack.c.bf16 %v4943_v42, %v16305_v48  ;;  %v4692_v45 = vadd.f32 %v4508_v33, %v15963_v52  ;;  %v4510_v35 = vpop.f32.mrb[149].mxu1 }
 0x273   : > { %v4926_v14 = vsel %vm16209_vm5, %v4872_v39, 0.0  ;;  %v4808_v49 = vadd.f32 %v16152_v59, %v4676_v12  ;;  %v4817_v2 = vadd.f32 %v16173_v60, %v4685_v8  ;;  %vm16328_vm8 = vcmp.lt.s32.totalorder %v472_v1, 32  ;;  %v4512_v22 = vpop.f32.mrb[150].mxu1 }
 0x274   : > { %v20134_v56 = vmov 0  ;;  %v4693_v19 = vadd.f32 %v4510_v35, %v15970_v32  ;;  %v4953_v58 = vpack.c.bf16 %v4926_v14, %v4917_v40  ;;  %v4927_v48 = vsel %vm16233_vm1, %v4873_v44, 0.0  ;;  %v4514_v54 = vpop.f32.mrb[151].mxu1 }
 0x275   : > { %v20135_v56 = vsel %vm16328_vm8, 4294967295, %v20134_v56  ;;  %v4809_v52 = vadd.f32 %v16152_v59, %v4677_v47  ;;  %v4701_v20 = vadd.f32 %v4512_v22, %v15976_v26  ;;  %v4954_v50 = vpack.c.bf16 %v4927_v48, %v4918_v6  ;;  %v4561_v11 = vpop.f32.mrb[156].mxu0 }
 0x276   : > { %20136 = vst [vmem:[#allocation11_spill] sm:$0xff] %v20135_v56  ;;  %v4824_v12 = vadd.f32 %v16193_v51, %v4692_v45  ;;  %v4865_v36 = vmax.f32 %v4808_v49, 0.0  ;;  %v4702_v1 = vadd.f32 %v4514_v54, %v15979_v38  ;;  %4991 = vrot.lane.b32.xlu0 %v4953_v58, %s14523_s12  ;;  %v4874_v32 = vmax.f32 %v4817_v2, 0.0  ;;  %v4563_v47 = vpop.f32.mrb[157].mxu0 }
 0x277   : > { %v4825_v8 = vadd.f32 %v16193_v51, %v4693_v19  ;;  %v4818_v31 = vadd.f32 %v16173_v60, %v4686_v46  ;;  %v4694_v39 = vadd.f32 %v4561_v11, %v16109_v16  ;;  %4993 = vrot.lane.b32.xlu1 %v4954_v50, %s14523_s12  ;;  %v4833_v26 = vadd.f32 %v16269_v17, %v4701_v20  ;;  %v4565_v46 = vpop.f32.mrb[158].mxu0 }
 0x278   : > { %v4881_v40 = vmax.f32 %v4824_v12, 0.0  ;;  %v4919_v42 = vsel %vm16290_vm7, %v4865_v36, 0.0  ;;  %vm16352_vm9 = vcmp.lt.s32.totalorder %v473_v23, 32  ;;  %v20137_v38 = vmov 0  ;;  %v4567_v62 = vpop.f32.mrb[159].mxu0  ;;  %v4293_v36 = vld [vmem:[#allocation4 + $0xd0] sm:$0xff] }
 0x279   : > { %v20138_v38 = vsel %vm16352_vm9, 4294967295, %v20137_v38  ;;  %v16357_v16 = vadd.f32 %v4563_v47, %v16129_v53  ;;  %v4928_v33 = vsel %vm16290_vm7, %v4874_v32, 0.0  ;;  %v4834_v44 = vadd.f32 %v16269_v17, %v4702_v1  ;;  %v4604_v14 = vpop.f32.mrb[152].mxu1 }
 0x27a   : > { %20139 = vst [vmem:[#allocation12_spill] sm:$0xff] %v20138_v38  ;;  %v4882_v6 = vmax.f32 %v4825_v8, 0.0  ;;  %v4703_v45 = vadd.f32 %v4565_v46, %v16143_v37  ;;  %v4890_v35 = vmax.f32 %v4833_v26, 0.0  ;;  %v4935_v7 = vsel %vm16209_vm5, %v4881_v40, 0.0  ;;  %5007 = vrot.lane.b32.xlu0 %v4961_v30, %s14523_s12  ;;  %v4606_v19 = vpop.f32.mrb[153].mxu1  ;;  %v4275_v8 = vld [vmem:[#allocation4 + $0x40] sm:$0xff] }
 0x27b   : > { %v4955_v29 = vpack.c.bf16 %v4928_v33, %v4919_v42  ;;  %v4704_v23 = vadd.f32 %v4567_v62, %v16150_v27  ;;  %v4891_v53 = vmax.f32 %v4834_v44, 0.0  ;;  %v4826_v2 = vadd.f32 %v16193_v51, %v4694_v39  ;;  %v4608_v20 = vpop.f32.mrb[154].mxu1  ;;  %v4302_v40 = vld [vmem:[#allocation4 + $0x118] sm:$0xff] }
 0x27c   : > { %v4936_v49 = vsel %vm16233_vm1, %v4882_v6, 0.0  ;;  %vm16375_vm13 = vcmp.lt.s32.totalorder %v474_v28, 32  ;;  %v20140_v37 = vmov 0  ;;  %v4678_v27 = vadd.f32 %v4604_v14, %v16014_v63  ;;  %v4610_v28 = vpop.f32.mrb[155].mxu1 }
 0x27d   : > { %v20141_v37 = vsel %vm16375_vm13, 4294967295, %v20140_v37  ;;  %v4944_v30 = vsel %vm16209_vm5, %v4890_v35, 0.0  ;;  %v4835_v22 = vadd.f32 %v16269_v17, %v4703_v45  ;;  %v4866_v58 = vmax.f32 %v4809_v52, 0.0  ;;  %v4284_v45 = vld [vmem:[#allocation4 + $0x88] sm:$0xff] }
 0x27e   : > { %20142 = vst [vmem:[#allocation13_spill] sm:$0xff] %v20141_v37  ;;  %v4679_v48 = vadd.f32 %v4606_v19, %v16020_v0  ;;  %v4962_v10 = vpack.c.bf16 %v4944_v30, %v4935_v7  ;;  %v4945_v9 = vsel %vm16233_vm1, %v4891_v53, 0.0  ;;  %v4883_v21 = vmax.f32 %v4826_v2, 0.0  ;;  %v14257_v0 = vpop.f32.mrb[160].mxu0  ;;  %4995 = vrot.lane.b32.xlu0 %v4955_v29, %s14523_s12 }
 0x27f   : > { %vm439_vm14 = vcmp.ne.s32.totalorder %v16246_v34, 0  ;;  %vm448_vm0 = vcmp.lt.s32.totalorder %v16246_v34, 0  ;;  %v4687_v63 = vadd.f32 %v4608_v20, %v16026_v13  ;;  %v4963_v54 = vpack.c.bf16 %v4945_v9, %v4936_v49  ;;  %v4657_v39 = vpop.f32.mrb[161].mxu0 }
 0x280   : > { %v4892_v50 = vmax.f32 %v4835_v22, 0.0  ;;  %v4875_v12 = vmax.f32 %v4818_v31, 0.0  ;;  %v4688_v52 = vadd.f32 %v4610_v28, %v16033_v61  ;;  %5009 = vrot.lane.b32.xlu1 %v4962_v10, %s14523_s12  ;;  %v4937_v1 = vsel %vm16290_vm7, %v4883_v21, 0.0  ;;  %v14258_v42 = vpop.f32.mrb[162].mxu0  ;;  %vm16438_vm11 = vmand %vm448_vm0, %vm439_vm14 }
 0x281   : > { %v4920_v11 = vsel %vm16328_vm8, %v4866_v58, 0.0  ;;  %v4810_v13 = vadd.f32 %v16152_v59, %v4678_v27  ;;  %v4698_v32 = vadd.f32 %v14257_v0, %v4293_v36  ;;  %v4819_v47 = vadd.f32 %v16173_v60, %v4687_v63  ;;  %v4660_v62 = vpop.f32.mrb[163].mxu0  ;;  %v4614_v53 = vpop.f32.mrb[156].mxu1 }
 0x282   : > { %v4946_v61 = vsel %vm16290_vm7, %v4892_v50, 0.0  ;;  %v4929_v31 = vsel %vm16328_vm8, %v4875_v12, 0.0  ;;  %v4680_v26 = vadd.f32 %v4657_v39, %v4275_v8  ;;  %v4707_v6 = vadd.f32 %v14258_v42, %v4302_v40  ;;  %5011 = vrot.lane.b32.xlu0 %v4963_v54, %s14523_s12  ;;  %v4616_v30 = vpop.f32.mrb[157].mxu1 }
 0x283   : > { %v4964_v46 = vpack.c.bf16 %v4946_v61, %v4937_v1  ;;  %v4956_v33 = vpack.c.bf16 %v4929_v31, %v4920_v11  ;;  %v4867_v44 = vmax.f32 %v4810_v13, 0.0  ;;  %4734 = vst.msk [vmem:[#allocation4 + $0xd0] sm:$0xff] %vm20073_vm6, %v4698_v32  ;;  %v4876_v35 = vmax.f32 %v4819_v47, 0.0  ;;  %v4618_v10 = vpop.f32.mrb[158].mxu1  ;;  %v14497_v61 = vld [vmem:[#allocation5] sm:$0xff] }
 0x284   : > { %v4811_v7 = vadd.f32 %v16152_v59, %v4679_v48  ;;  %v4820_v29 = vadd.f32 %v16173_v60, %v4688_v52  ;;  %4716 = vst.msk [vmem:[#allocation4 + $0x40] sm:$0xff] %vm20073_vm6, %v4680_v26  ;;  %v4689_v14 = vadd.f32 %v4660_v62, %v4284_v45  ;;  %v4827_v2 = vadd.f32 %v16193_v51, %v16357_v16  ;;  %v4620_v63 = vpop.f32.mrb[159].mxu1 }
 0x285   : > { %5013 = vrot.lane.b32.xlu1 %v4964_v46, %s14523_s12  ;;  %v4921_v49 = vsel %vm16352_vm9, %v4867_v44, 0.0  ;;  %v4836_v27 = vadd.f32 %v16269_v17, %v4704_v23  ;;  %4743 = vst.msk [vmem:[#allocation4 + $0x118] sm:$0xff] %vm20073_vm6, %v4707_v6  ;;  %v4696_v19 = vadd.f32 %v4614_v53, %v16066_v15  ;;  %v4930_v22 = vsel %vm16352_vm9, %v4876_v35, 0.0 }
 0x286   : > { %v4868_v58 = vmax.f32 %v4811_v7, 0.0  ;;  %v4877_v48 = vmax.f32 %v4820_v29, 0.0  ;;  %4725 = vst.msk [vmem:[#allocation4 + $0x88] sm:$0xff] %vm20073_vm6, %v4689_v14  ;;  %v4697_v20 = vadd.f32 %v4616_v30, %v16081_v5  ;;  %v4957_v9 = vpack.c.bf16 %v4930_v22, %v4921_v49  ;;  %4997 = vrot.lane.b32.xlu0 %v4956_v33, %s14523_s12 }
 0x287   : > { %v4884_v21 = vmax.f32 %v4827_v2, 0.0  ;;  %v4893_v16 = vmax.f32 %v4836_v27, 0.0  ;;  %v4705_v23 = vadd.f32 %v4618_v10, %v16094_v24  ;;  %v4828_v54 = vadd.f32 %v16193_v51, %v4696_v19 }
 0x288   : > { %v4922_v15 = vsel %vm16375_vm13, %v4868_v58, 0.0  ;;  %v4931_v28 = vsel %vm16375_vm13, %v4877_v48, 0.0  ;;  %v4706_v50 = vadd.f32 %v4620_v63, %v16100_v4  ;;  %v4829_v1 = vadd.f32 %v16193_v51, %v4697_v20 }
 0x289   : > { %4999 = vrot.lane.b32.xlu1 %v4957_v9, %s14523_s12  ;;  %v4958_v5 = vpack.c.bf16 %v4931_v28, %v4922_v15  ;;  %v4938_v12 = vsel %vm16328_vm8, %v4884_v21, 0.0  ;;  %v4947_v24 = vsel %vm16328_vm8, %v4893_v16, 0.0  ;;  %v4837_v52 = vadd.f32 %v16269_v17, %v4705_v23  ;;  %v16519_v15 = vld [vmem:[%s20036_s3] sm:$0xff]  }
 0x28a   : > { %v4885_v36 = vmax.f32 %v4828_v54, 0.0  ;;  %v4965_v0 = vpack.c.bf16 %v4947_v24, %v4938_v12  ;;  %v4838_v11 = vadd.f32 %v16269_v17, %v4706_v50  ;;  %v4770_v13 = vld [vmem:[#allocation4 + $0xd0] sm:$0xff]  ;;  %v4886_v8 = vmax.f32 %v4829_v1, 0.0  ;;  %v16536_v12 = vld [vmem:[#allocation2 + $0x40] sm:$0xff] }
 0x28b   : > { %v4894_v32 = vmax.f32 %v4837_v52, 0.0  ;;  %v4752_v39 = vld [vmem:[#allocation4 + $0x40] sm:$0xff]  ;;  %5104 = vst.msk [vmem:[#allocation4 + $0xd0] sm:$0xff] %vm20073_vm6, %v14497_v61  ;;  %5001 = vrot.lane.b32.xlu0 %v4958_v5, %s14523_s12  ;;  %v475_v26 = vsel %vm16438_vm11, %v16295_v41, %v16246_v34  ;;  %v4830_v6 = vadd.f32 %v16193_v51, %v4770_v13  ;;  %v20145_v7 = vmov 0 }
 0x28c   : > { %v4939_v31 = vsel %vm16352_vm9, %v4885_v36, 0.0  ;;  %v4895_v47 = vmax.f32 %v4838_v11, 0.0  ;;  %v4812_v40 = vadd.f32 %v16152_v59, %v4752_v39  ;;  %5086 = vst.msk [vmem:[#allocation4 + $0x40] sm:$0xff] %vm20073_vm6, %v14497_v61  ;;  %v4779_v42 = vld [vmem:[#allocation4 + $0x118] sm:$0xff]  ;;  %v4940_v33 = vsel %vm16375_vm13, %v4886_v8, 0.0  ;;  %v16556_v11 = vld [vmem:[%s20036_s3 + $0x8] sm:$0xff]  }
 0x28d   : > { %v4948_v46 = vsel %vm16352_vm9, %v4894_v32, 0.0  ;;  %v4761_v44 = vld [vmem:[#allocation4 + $0x88] sm:$0xff]  ;;  %v4839_v45 = vadd.f32 %v16269_v17, %v4779_v42  ;;  %5113 = vst.msk [vmem:[#allocation4 + $0x118] sm:$0xff] %vm20073_vm6, %v14497_v61  ;;  %vm16464_vm12 = vcmp.lt.s32.totalorder %v475_v26, 32  ;;  %v4887_v14 = vmax.f32 %v4830_v6, 0.0 }
 0x28e   : > { %v4966_v62 = vpack.c.bf16 %v4948_v46, %v4939_v31  ;;  %v4949_v59 = vsel %vm16375_vm13, %v4895_v47, 0.0  ;;  %v4821_v34 = vadd.f32 %v16173_v60, %v4761_v44  ;;  %v4869_v41 = vmax.f32 %v4812_v40, 0.0  ;;  %5095 = vst.msk [vmem:[#allocation4 + $0x88] sm:$0xff] %vm20073_vm6, %v14497_v61 }
 0x28f   : > { %v4967_v35 = vpack.c.bf16 %v4949_v59, %v4940_v33  ;;  %v20146_v7 = vsel %vm16464_vm12, 4294967295, %v20145_v7  ;;  %5015 = vrot.lane.b32.xlu0 %v4965_v0, %s14523_s12  ;;  %v4896_v17 = vmax.f32 %v4839_v45, 0.0  ;;  %v4941_v2 = vsel %vm16464_vm12, %v4887_v14, 0.0 }
 0x290   : > { %20147 = vst [vmem:[#allocation14_spill] sm:$0xff] %v20146_v7  ;;  %5017 = vrot.lane.b32.xlu1 %v4966_v62, %s14523_s12  ;;  %v4878_v51 = vmax.f32 %v4821_v34, 0.0  ;;  %v4923_v29 = vsel %vm16464_vm12, %v4869_v41, 0.0  ;;  %vm20047_vm14 = vcmask 1047832   ;;  %vm20072_vm0 = vcmask 285696  }
 0x291   : > { %v4950_v49 = vsel %vm16464_vm12, %v4896_v17, 0.0  ;;  %vm5182_vm11 = vcmask 261120  }
 0x292   : > { %v4932_v60 = vsel %vm16464_vm12, %v4878_v51, 0.0  ;;  %v4968_v27 = vpack.c.bf16 %v4950_v49, %v4941_v2 }
 0x293   : > { %v4959_v53 = vpack.c.bf16 %v4932_v60, %v4923_v29  ;;  %5019 = vrot.lane.b32.xlu0 %v4967_v35, %s14523_s12 }
 0x295   : > { %5003 = vrot.lane.b32.xlu1 %v4959_v53, %s14523_s12 }
 0x299   : > { %5021 = vrot.lane.b32.xlu1 %v4968_v27, %s14523_s12 }
 0x2db   : > { %v4988_v19 = vpop.permute.xlu0 %4987 }
 0x2dc   : > { %5059 = vst.msk [vmem:[#allocation2] sm:$0xff] %vm20047_vm14, %v4988_v19  ;;  %v4990_v30 = vpop.permute.xlu1 %4989 }
 0x2dd   : > { %v16483_v22 = vsel %vm20072_vm0, %v4988_v19, %v4990_v30 }
 0x2de   : > { %5060 = vst [vmem:[#allocation2 + $0x8] sm:$0xff] %v16483_v22  ;;  %5189 = vmatprep.subr.bf16.mxu1 %v16483_v22 }
 0x2e3   : > { %v16487_v48 = vld [vmem:[#allocation2] sm:$0xff] }
 0x2e4   : > { %v5006_v58 = vpop.permute.xlu1 %5005  ;;  %5609 = vrot.lane.b32.xlu0 %v16487_v48, %s14514_s11  ;;  %5190 = vmatpush1.bf16.msra.mxu1 %v16487_v48 }
 0x2e5   : > { %5069 = vst.msk [vmem:[#allocation2 + $0x50] sm:$0xff] %vm20047_vm14, %v5006_v58  ;;  %vm20048_vm14 = vcmask 809984  }
 0x2e8   : > { %v4992_v20 = vpop.permute.xlu0 %4991  ;;  %5611 = vrot.lane.b32.xlu0 %v16483_v22, %s14514_s11 }
 0x2e9   : > { %v16494_v10 = vsel %vm20072_vm0, %v4990_v30, %v4992_v20  ;;  %v4994_v9 = vpop.permute.xlu1 %4993 }
 0x2ea   : > { %5061 = vst [vmem:[#allocation2 + $0x10] sm:$0xff] %v16494_v10  ;;  %v16500_v21 = vsel %vm20072_vm0, %v4992_v20, %v4994_v9 }
 0x2eb   : > { %5062 = vst [vmem:[#allocation2 + $0x18] sm:$0xff] %v16500_v21  ;;  %5242 = vmatprep.subr.bf16.mxu0 %v16500_v21 }
 0x2ec   : > { %v5008_v16 = vpop.permute.xlu0 %5007  ;;  %v16504_v23 = vld [vmem:[#allocation2 + $0x50] sm:$0xff]  ;;  %5243 = vmatpush1.bf16.msra.mxu0 %v16494_v10  ;;  %6107 = vrot.lane.b32.xlu0 %v16483_v22, %s14515_s16 }
 0x2ed   : > { %v16508_v63 = vsel %vm20072_vm0, %v5006_v58, %v5008_v16  ;;  %5627 = vrot.lane.b32.xlu1 %v16504_v23, %s14514_s11 }
 0x2ee   : > { %5070 = vst [vmem:[#allocation2 + $0x58] sm:$0xff] %v16508_v63  ;;  %5191 = vmatprep.subr.bf16.mxu1 %v16508_v63 }
 0x2ef   : > { %5192 = vmatpush1.bf16.msra.mxu1 %v16504_v23 }
 0x2f0   : > { %v4996_v54 = vpop.permute.xlu0 %4995 }
 0x2f1   : > { %v16526_v5 = vsel %vm20072_vm0, %v4994_v9, %v4996_v54  ;;  %5613 = vrot.lane.b32.xlu1 %v16494_v10, %s14514_s11 }
 0x2f2   : > { %v5010_v28 = vpop.permute.xlu1 %5009  ;;  %5063 = vst [vmem:[#allocation2 + $0x20] sm:$0xff] %v16526_v5  ;;  %5617 = vrot.lane.b32.xlu0 %v16526_v5, %s14514_s11  ;;  %13920 = vmatmul.mubr.msk.bf16.vlgmr.msra.gmra.mrb[160].mxu1 %vm5182_vm11, %v16519_v15 }
 0x2f3   : > { %v16523_v50 = vsel %vm20072_vm0, %v5008_v16, %v5010_v28  ;;  %5231 = vmatprep.mubr.bf16.mxu1 %v16536_v12  ;;  %v16764_v16 = vld [vmem:[%s20036_s3 + $0x10] sm:$0xff]  }
 0x2f4   : > { %5071 = vst [vmem:[#allocation2 + $0x60] sm:$0xff] %v16523_v50  ;;  %v5012_v24 = vpop.permute.xlu0 %5011 }
 0x2f5   : > { %v16540_v36 = vsel %vm20072_vm0, %v5010_v28, %v5012_v24  ;;  %6109 = vrot.lane.b32.xlu1 %v16494_v10, %s14515_s16 }
 0x2f6   : > { %5072 = vst [vmem:[#allocation2 + $0x68] sm:$0xff] %v16540_v36  ;;  %5244 = vmatprep.subr.bf16.mxu0 %v16540_v36  ;;  %5631 = vrot.lane.b32.xlu0 %v16523_v50, %s14514_s11 }
 0x2f7   : > { %v5014_v52 = vpop.permute.xlu1 %5013  ;;  %5245 = vmatpush1.bf16.msra.mxu0 %v16523_v50 }
 0x2f8   : > { %v16543_v0 = vsel %vm20072_vm0, %v5012_v24, %v5014_v52  ;;  %v4998_v1 = vpop.permute.xlu0 %4997 }
 0x2f9   : > { %5073 = vst [vmem:[#allocation2 + $0x70] sm:$0xff] %v16543_v0  ;;  %v16559_v13 = vsel %vm20072_vm0, %v4996_v54, %v4998_v1  ;;  %5615 = vrot.lane.b32.xlu1 %v16500_v21, %s14514_s11 }
 0x2fa   : > { %5064 = vst [vmem:[#allocation2 + $0x28] sm:$0xff] %v16559_v13  ;;  %5295 = vmatprep.subr.bf16.mxu1 %v16559_v13  ;;  %5633 = vrot.lane.b32.xlu0 %v16540_v36, %s14514_s11 }
 0x2fb   : > { %v5000_v4 = vpop.permute.xlu1 %4999  ;;  %5296 = vmatpush1.bf16.msra.mxu1 %v16526_v5  ;;  %13922 = vmatmul.mubr.msk.bf16.vlgmr.msra.gmra.mrb[164].mxu0 %vm5182_vm11, %v16519_v15 }
 0x2fc   : > { %v16562_v32 = vsel %vm20072_vm0, %v4998_v1, %v5000_v4  ;;  %13921 = vmatmul.mubr.msk.bf16.gmra.mrb[164].mxu1 %vm5182_vm11, %v16556_v11  ;;  %5284 = vmatprep.mubr.bf16.mxu0 %v16536_v12 }
 0x2fd   : > { %5065 = vst [vmem:[#allocation2 + $0x30] sm:$0xff] %v16562_v32  ;;  %v5002_v8 = vpop.permute.xlu0 %5001  ;;  %5629 = vrot.lane.b32.xlu1 %v16508_v63, %s14514_s11  ;;  %5327 = vmatprep.mubr.bf16.mxu1 %v16536_v12 }
 0x2fe   : > { %v16578_v39 = vsel %vm20072_vm0, %v5000_v4, %v5002_v8  ;;  %5619 = vrot.lane.b32.xlu0 %v16559_v13, %s14514_s11 }
 0x2ff   : > { %5066 = vst [vmem:[#allocation2 + $0x38] sm:$0xff] %v16578_v39  ;;  %5348 = vmatprep.subr.bf16.mxu0 %v16578_v39 }
 0x300   : > { %5349 = vmatpush1.bf16.msra.mxu0 %v16562_v32 }
 0x301   : > { %v5016_v31 = vpop.permute.xlu0 %5015  ;;  %5635 = vrot.lane.b32.xlu1 %v16543_v0, %s14514_s11 }
 0x302   : > { %v5018_v61 = vpop.permute.xlu1 %5017  ;;  %v16589_v47 = vsel %vm20072_vm0, %v5014_v52, %v5016_v31  ;;  %5623 = vrot.lane.b32.xlu0 %v16578_v39, %s14514_s11 }
 0x303   : > { %v16592_v26 = vsel %vm20072_vm0, %v5016_v31, %v5018_v61  ;;  %5074 = vst [vmem:[#allocation2 + $0x78] sm:$0xff] %v16589_v47  ;;  %5297 = vmatprep.subr.bf16.mxu1 %v16589_v47  ;;  %13923 = vmatmul.mubr.msk.bf16.gmra.mrb[168].mxu0 %vm5182_vm11, %v16556_v11 }
 0x304   : > { %5075 = vst [vmem:[#allocation2 + $0x80] sm:$0xff] %v16592_v26  ;;  %5298 = vmatpush1.bf16.msra.mxu1 %v16543_v0  ;;  %5380 = vmatprep.mubr.bf16.mxu0 %v16536_v12 }
 0x305   : > { %v5020_v40 = vpop.permute.xlu0 %5019  ;;  %5621 = vrot.lane.b32.xlu1 %v16562_v32, %s14514_s11 }
 0x306   : > { %v16606_v42 = vsel %vm20072_vm0, %v5018_v61, %v5020_v40  ;;  %5637 = vrot.lane.b32.xlu0 %v16589_v47, %s14514_s11 }
 0x307   : > { %v5004_v46 = vpop.permute.xlu1 %5003  ;;  %5076 = vst [vmem:[#allocation2 + $0x88] sm:$0xff] %v16606_v42  ;;  %5350 = vmatprep.subr.bf16.mxu0 %v16606_v42  ;;  %13924 = vmatmul.mubr.msk.bf16.vlgmr.msra.gmra.mrb[168].mxu1 %vm5182_vm11, %v16519_v15 }
 0x308   : > { %v5031_v33 = vsel %vm20072_vm0, %v5002_v8, %v5004_v46  ;;  %5351 = vmatpush1.bf16.msra.mxu0 %v16592_v26  ;;  %5337 = vmatprep.mubr.bf16.mxu1 %v16536_v12  ;;  %v16786_v8 = vld [vmem:[%s20036_s3 + $0x18] sm:$0xff]  }
 0x309   : > { %5068 = vst.msk [vmem:[#allocation2 + $0x40] sm:$0xff] %vm20048_vm14, %v5031_v33  ;;  %5639 = vrot.lane.b32.xlu1 %v16592_v26, %s14514_s11 }
 0x30a   : > { %5641 = vrot.lane.b32.xlu0 %v16606_v42, %s14514_s11 }
 0x30b   : > { %v5022_v44 = vpop.permute.xlu1 %5021  ;;  %13926 = vmatmul.mubr.msk.bf16.vlgmr.msra.gmra.mrb[172].mxu0 %vm5182_vm11, %v16519_v15 }
 0x30c   : > { %v5039_v6 = vsel %vm20072_vm0, %v5020_v40, %v5022_v44  ;;  %5390 = vmatprep.mubr.bf16.mxu0 %v16536_v12 }
 0x30d   : > { %5077 = vst.msk [vmem:[#allocation2 + $0x90] sm:$0xff] %vm20048_vm14, %v5039_v6  ;;  %vm4849_vm14 = vcmask 48128  }
 0x30e   : > { %6105 = vrot.lane.b32.xlu0 %v16487_v48, %s14515_s16  ;;  %4860 = vst.msk [vmem:[#allocation2 + $0x98] sm:$0xff] %vm4849_vm14, %v16536_v12  ;;  %4850 = vst.msk [vmem:[#allocation2 + $0x48] sm:$0xff] %vm4849_vm14, %v16536_v12  ;;  %v17190_v25 = vld [vmem:[#allocation2 + $0x88] sm:$0xff] }
 0x30f   : > { %13925 = vmatmul.mubr.msk.bf16.gmra.mrb[172].mxu1 %vm5182_vm11, %v16556_v11  ;;  %9625 = vst.msk [vmem:[#allocation3 + $0x48] sm:$0xff] %vm4849_vm14, %v16536_v12  ;;  %9635 = vst.msk [vmem:[#allocation3 + $0x98] sm:$0xff] %vm4849_vm14, %v16536_v12  ;;  %vm20148_vm14 = vcmask 760832  }
 0x310   : > { %v16629_v45 = vld [vmem:[#allocation2 + $0x40] sm:$0xff]  ;;  %14263 = vmatprep.mubr.msk.bf16.mxu1 %vm5182_vm11, %v16519_v15 }
 0x311   : > { %5625 = vrot.lane.b32.xlu1 %v16629_v45, %s14514_s11  ;;  %14259 = vmatprep.subr.bf16.mxu1 %v16629_v45 }
 0x312   : > { %14260 = vmatpush3.bf16.msra.mxu1 %v16629_v45  ;;  %6127 = vrot.lane.b32.xlu0 %v16523_v50, %s14515_s16 }
 0x313   : > { %13927 = vmatmul.mubr.msk.bf16.gmra.mrb[176].mxu0 %vm5182_vm11, %v16556_v11 }
 0x314   : > { %v16639_v62 = vld [vmem:[#allocation2 + $0x90] sm:$0xff]  ;;  %5717 = vmatprep.mubr.bf16.mxu0 %v16536_v12 }
 0x315   : > { %5643 = vrot.lane.b32.xlu1 %v16639_v62, %s14514_s11  ;;  %14261 = vmatprep.subr.bf16.mxu1 %v16639_v62 }
 0x316   : > { %14262 = vmatpush3.bf16.msra.mxu1 %v16639_v62  ;;  %6113 = vrot.lane.b32.xlu0 %v16526_v5, %s14515_s16 }
 0x319   : > { %6125 = vrot.lane.b32.xlu1 %v16508_v63, %s14515_s16  ;;  %14264 = vmatmul.mubr.msk.bf16.vlgmr.msra.gmra.mrb[176].mxu1 %vm5182_vm11, %v16556_v11 }
 0x31a   : > { %6129 = vrot.lane.b32.xlu0 %v16540_v36, %s14515_s16  ;;  %5770 = vmatprep.mubr.bf16.mxu1 %v16536_v12 }
 0x31d   : > { %6111 = vrot.lane.b32.xlu1 %v16500_v21, %s14515_s16 }
 0x31e   : > { %6115 = vrot.lane.b32.xlu0 %v16559_v13, %s14515_s16 }
 0x321   : > { %6123 = vrot.lane.b32.xlu1 %v16504_v23, %s14515_s16 }
 0x322   : > { %6133 = vrot.lane.b32.xlu0 %v16589_v47, %s14515_s16 }
 0x325   : > { %6131 = vrot.lane.b32.xlu1 %v16543_v0, %s14515_s16 }
 0x326   : > { %6119 = vrot.lane.b32.xlu0 %v16578_v39, %s14515_s16 }
 0x329   : > { %6117 = vrot.lane.b32.xlu1 %v16562_v32, %s14515_s16 }
 0x32a   : > { %6603 = vrot.lane.b32.xlu0 %v16483_v22, %s14516_s17 }
 0x32d   : > { %6135 = vrot.lane.b32.xlu1 %v16592_v26, %s14515_s16 }
 0x32e   : > { %6601 = vrot.lane.b32.xlu0 %v16487_v48, %s14516_s17 }
 0x331   : > { %6605 = vrot.lane.b32.xlu1 %v16494_v10, %s14516_s17 }
 0x332   : > { %6137 = vrot.lane.b32.xlu0 %v16606_v42, %s14515_s16 }
 0x335   : > { %6607 = vrot.lane.b32.xlu1 %v16500_v21, %s14516_s17 }
 0x336   : > { %6609 = vrot.lane.b32.xlu0 %v16526_v5, %s14516_s17 }
 0x339   : > { %6121 = vrot.lane.b32.xlu1 %v16629_v45, %s14515_s16 }
 0x33a   : > { %6623 = vrot.lane.b32.xlu0 %v16523_v50, %s14516_s17 }
 0x33d   : > { %6139 = vrot.lane.b32.xlu1 %v16639_v62, %s14515_s16 }
 0x33e   : > { %6625 = vrot.lane.b32.xlu0 %v16540_v36, %s14516_s17 }
 0x341   : > { %6621 = vrot.lane.b32.xlu1 %v16508_v63, %s14516_s17 }
 0x342   : > { %6611 = vrot.lane.b32.xlu0 %v16559_v13, %s14516_s17 }
 0x345   : > { %6619 = vrot.lane.b32.xlu1 %v16504_v23, %s14516_s17 }
 0x346   : > { %6615 = vrot.lane.b32.xlu0 %v16578_v39, %s14516_s17 }
 0x349   : > { %6627 = vrot.lane.b32.xlu1 %v16543_v0, %s14516_s17 }
 0x34a   : > { %6629 = vrot.lane.b32.xlu0 %v16589_v47, %s14516_s17 }
 0x34d   : > { %6613 = vrot.lane.b32.xlu1 %v16562_v32, %s14516_s17 }
 0x34e   : > { %7099 = vrot.lane.b32.xlu0 %v16483_v22, %s14517_s18 }
 0x351   : > { %6631 = vrot.lane.b32.xlu1 %v16592_v26, %s14516_s17 }
 0x352   : > { %6633 = vrot.lane.b32.xlu0 %v16606_v42, %s14516_s17 }
 0x355   : > { %7101 = vrot.lane.b32.xlu1 %v16494_v10, %s14517_s18 }
 0x356   : > { %7097 = vrot.lane.b32.xlu0 %v16487_v48, %s14517_s18  ;;  %v5610_v59 = vpop.permute.xlu0 %5609 }
 0x359   : > { %6617 = vrot.lane.b32.xlu1 %v16629_v45, %s14516_s17 }
 0x35a   : > { %7119 = vrot.lane.b32.xlu0 %v16523_v50, %s14517_s18  ;;  %v5612_v34 = vpop.permute.xlu0 %5611 }
 0x35b   : > { %v5645_v60 = vsel %vm20071_vm2, %v5610_v59, %v5612_v34 }
 0x35d   : > { %6635 = vrot.lane.b32.xlu1 %v16639_v62, %s14516_s17 }
 0x35e   : > { %7105 = vrot.lane.b32.xlu0 %v16526_v5, %s14517_s18  ;;  %v16735_v41 = vpop.permute.xlu0 %6107 }
 0x35f   : > { %v5628_v35 = vpop.permute.xlu1 %5627 }
 0x361   : > { %7117 = vrot.lane.b32.xlu1 %v16508_v63, %s14517_s18 }
 0x362   : > { %7121 = vrot.lane.b32.xlu0 %v16540_v36, %s14517_s18 }
 0x363   : > { %v5614_v51 = vpop.permute.xlu1 %5613 }
 0x364   : > { %v5646_v17 = vsel %vm20071_vm2, %v5612_v34, %v5614_v51  ;;  %v5618_v29 = vpop.permute.xlu0 %5617 }
 0x365   : > { %7103 = vrot.lane.b32.xlu1 %v16500_v21, %s14517_s18  ;;  %5685 = vmatprep.subr.bf16.mxu0 %v5646_v17 }
 0x366   : > { %5686 = vmatpush1.bf16.msra.mxu0 %v5645_v60  ;;  %7107 = vrot.lane.b32.xlu0 %v16559_v13, %s14517_s18 }
 0x367   : > { %v16747_v14 = vpop.permute.xlu1 %6109 }
 0x368   : > { %v5632_v53 = vpop.permute.xlu0 %5631 }
 0x369   : > { %7115 = vrot.lane.b32.xlu1 %v16504_v23, %s14517_s18 }
 0x36a   : > { %7125 = vrot.lane.b32.xlu0 %v16589_v47, %s14517_s18 }
 0x36b   : > { %v5616_v49 = vpop.permute.xlu1 %5615 }
 0x36c   : > { %v5648_v2 = vsel %vm20071_vm2, %v5616_v49, %v5618_v29  ;;  %v5647_v27 = vsel %vm20071_vm2, %v5614_v51, %v5616_v49  ;;  %v5634_v19 = vpop.permute.xlu0 %5633 }
 0x36d   : > { %7123 = vrot.lane.b32.xlu1 %v16543_v0, %s14517_s18  ;;  %5738 = vmatprep.subr.bf16.mxu1 %v5648_v2  ;;  %v5655_v24 = vsel %vm20071_vm2, %v5632_v53, %v5634_v19 }
 0x36e   : > { %5739 = vmatpush1.bf16.msra.mxu1 %v5647_v27  ;;  %7111 = vrot.lane.b32.xlu0 %v16578_v39, %s14517_s18 }
 0x36f   : > { %v5630_v30 = vpop.permute.xlu1 %5629 }
 0x370   : > { %v5654_v58 = vsel %vm20071_vm2, %v5630_v30, %v5632_v53  ;;  %v5653_v20 = vsel %vm20071_vm2, %v5628_v35, %v5630_v30  ;;  %v5620_v9 = vpop.permute.xlu0 %5619 }
 0x371   : > { %7109 = vrot.lane.b32.xlu1 %v16562_v32, %s14517_s18  ;;  %5687 = vmatprep.subr.bf16.mxu0 %v5654_v58  ;;  %v5649_v11 = vsel %vm20071_vm2, %v5618_v29, %v5620_v9  ;;  %v6142_v29 = vsel %vm20052_vm3, %v16735_v41, %v16747_v14 }
 0x372   : > { %5688 = vmatpush1.bf16.msra.mxu0 %v5653_v20  ;;  %7595 = vrot.lane.b32.xlu0 %v16483_v22, %s14518_s19 }
 0x373   : > { %v5636_v15 = vpop.permute.xlu1 %5635 }
 0x374   : > { %v5656_v28 = vsel %vm20071_vm2, %v5634_v19, %v5636_v15  ;;  %v5624_v54 = vpop.permute.xlu0 %5623 }
 0x375   : > { %7127 = vrot.lane.b32.xlu1 %v16592_v26, %s14517_s18  ;;  %13936 = vmatmul.mubr.msk.bf16.vlgmr.msra.gmra.mrb[180].mxu0 %vm5182_vm11, %v16764_v16 }
 0x376   : > { %5740 = vmatprep.subr.bf16.mxu1 %v5656_v28  ;;  %5727 = vmatprep.mubr.bf16.mxu0 %v16536_v12 }
 0x377   : > { %5741 = vmatpush1.bf16.msra.mxu1 %v5655_v24  ;;  %v5622_v52 = vpop.permute.xlu1 %5621  ;;  %7593 = vrot.lane.b32.xlu0 %v16487_v48, %s14518_s19 }
 0x378   : > { %v5650_v1 = vsel %vm20071_vm2, %v5620_v9, %v5622_v52  ;;  %v5638_v4 = vpop.permute.xlu0 %5637  ;;  %v5651_v59 = vsel %vm20071_vm2, %v5622_v52, %v5624_v54 }
 0x379   : > { %7597 = vrot.lane.b32.xlu1 %v16494_v10, %s14518_s19  ;;  %5791 = vmatprep.subr.bf16.mxu0 %v5650_v1  ;;  %v5657_v46 = vsel %vm20071_vm2, %v5636_v15, %v5638_v4 }
 0x37a   : > { %13938 = vmatmul.mubr.msk.bf16.vlgmr.msra.gmra.mrb[180].mxu1 %vm5182_vm11, %v16764_v16  ;;  %5792 = vmatpush1.bf16.msra.mxu0 %v5649_v11 }
 0x37b   : > { %5780 = vmatprep.mubr.bf16.mxu1 %v16536_v12  ;;  %v5640_v61 = vpop.permute.xlu1 %5639  ;;  %7129 = vrot.lane.b32.xlu0 %v16606_v42, %s14517_s18 }
 0x37c   : > { %v5658_v31 = vsel %vm20071_vm2, %v5638_v4, %v5640_v61  ;;  %v5642_v40 = vpop.permute.xlu0 %5641 }
 0x37d   : > { %7599 = vrot.lane.b32.xlu1 %v16500_v21, %s14518_s19  ;;  %13937 = vmatmul.mubr.msk.bf16.gmra.mrb[184].mxu0 %vm5182_vm11, %v16786_v8  ;;  %v5659_v17 = vsel %vm20071_vm2, %v5640_v61, %v5642_v40 }
 0x37e   : > { %5793 = vmatprep.subr.bf16.mxu0 %v5658_v31  ;;  %5823 = vmatprep.mubr.bf16.mxu0 %v16536_v12 }
 0x37f   : > { %5794 = vmatpush1.bf16.msra.mxu0 %v5657_v46  ;;  %7601 = vrot.lane.b32.xlu0 %v16526_v5, %s14518_s19 }
 0x380   : > { %v6106_v33 = vpop.permute.xlu0 %6105 }
 0x381   : > { %7113 = vrot.lane.b32.xlu1 %v16629_v45, %s14517_s18  ;;  %v6141_v49 = vsel %vm20052_vm3, %v6106_v33, %v16735_v41 }
 0x382   : > { %13939 = vmatmul.mubr.msk.bf16.gmra.mrb[184].mxu1 %vm5182_vm11, %v16786_v8 }
 0x383   : > { %v5626_v44 = vpop.permute.xlu1 %5625  ;;  %5876 = vmatprep.mubr.bf16.mxu1 %v16536_v12  ;;  %7615 = vrot.lane.b32.xlu0 %v16523_v50, %s14518_s19 }
 0x384   : > { %v5652_v6 = vsel %vm20071_vm2, %v5624_v54, %v5626_v44  ;;  %14267 = vmatprep.subr.bf16.mxu0 %v5626_v44  ;;  %v6128_v34 = vpop.permute.xlu0 %6127  ;;  %v16860_v54 = vld [vmem:[%s20036_s3 + $0x20] sm:$0xff]  }
 0x385   : > { %7131 = vrot.lane.b32.xlu1 %v16639_v62, %s14517_s18  ;;  %5844 = vmatprep.subr.bf16.mxu1 %v5652_v6 }
 0x386   : > { %5845 = vmatpush1.bf16.msra.mxu1 %v5651_v59  ;;  %13940 = vmatmul.mubr.msk.bf16.vlgmr.msra.gmra.mrb[188].mxu0 %vm5182_vm11, %v16764_v16 }
 0x387   : > { %v5644_v35 = vpop.permute.xlu1 %5643  ;;  %14268 = vmatpush3.bf16.msra.mxu0 %v5626_v44  ;;  %5833 = vmatprep.mubr.bf16.mxu0 %v16536_v12 }
 0x388   : > { %v5660_v51 = vsel %vm20071_vm2, %v5642_v40, %v5644_v35  ;;  %14269 = vmatprep.subr.bf16.mxu0 %v5644_v35  ;;  %v6114_v60 = vpop.permute.xlu0 %6113  ;;  %7617 = vrot.lane.b32.xlu0 %v16540_v36, %s14518_s19 }
 0x389   : > { %7613 = vrot.lane.b32.xlu1 %v16508_v63, %s14518_s19  ;;  %5846 = vmatprep.subr.bf16.mxu1 %v5660_v51 }
 0x38a   : > { %5847 = vmatpush1.bf16.msra.mxu1 %v5659_v17 }
 0x38b   : > { %6181 = vmatprep.subr.bf16.mxu1 %v6142_v29  ;;  %v6126_v53 = vpop.permute.xlu1 %6125  ;;  %14270 = vmatpush3.bf16.msra.mxu0 %v5644_v35 }
 0x38c   : > { %v6150_v2 = vsel %vm20052_vm3, %v6126_v53, %v6128_v34  ;;  %v6130_v27 = vpop.permute.xlu0 %6129  ;;  %7603 = vrot.lane.b32.xlu0 %v16559_v13, %s14518_s19 }
 0x38d   : > { %7611 = vrot.lane.b32.xlu1 %v16504_v23, %s14518_s19  ;;  %13942 = vmatmul.mubr.msk.bf16.vlgmr.msra.gmra.mrb[188].mxu1 %vm5182_vm11, %v16764_v16 }
 0x38e   : > { %6182 = vmatpush1.bf16.msra.mxu1 %v6141_v49  ;;  %5886 = vmatprep.mubr.bf16.mxu1 %v16536_v12 }
 0x38f   : > { %v6112_v19 = vpop.permute.xlu1 %6111  ;;  %13941 = vmatmul.mubr.msk.bf16.gmra.mrb[192].mxu0 %vm5182_vm11, %v16786_v8  ;;  %6183 = vmatprep.subr.bf16.mxu1 %v6150_v2 }
 0x390   : > { %v6144_v41 = vsel %vm20052_vm3, %v6112_v19, %v6114_v60  ;;  %14271 = vmatprep.mubr.msk.bf16.mxu0 %vm5182_vm11, %v16764_v16  ;;  %v6116_v30 = vpop.permute.xlu0 %6115  ;;  %7607 = vrot.lane.b32.xlu0 %v16578_v39, %s14518_s19  ;;  %v6143_v15 = vsel %vm20052_vm3, %v16747_v14, %v6112_v19  ;;  %v6151_v14 = vsel %vm20052_vm3, %v6128_v34, %v6130_v27 }
 0x391   : > { %7619 = vrot.lane.b32.xlu1 %v16543_v0, %s14518_s19  ;;  %6234 = vmatprep.subr.bf16.mxu0 %v6144_v41  ;;  %v6145_v4 = vsel %vm20052_vm3, %v6114_v60, %v6116_v30 }
 0x393   : > { %v6124_v58 = vpop.permute.xlu1 %6123 }
 0x394   : > { %v6149_v20 = vsel %vm20052_vm3, %v6124_v58, %v6126_v53  ;;  %v6134_v9 = vpop.permute.xlu0 %6133  ;;  %7621 = vrot.lane.b32.xlu0 %v16589_v47, %s14518_s19 }
 0x395   : > { %7605 = vrot.lane.b32.xlu1 %v16562_v32, %s14518_s19  ;;  %13943 = vmatmul.mubr.msk.bf16.gmra.mrb[192].mxu1 %vm5182_vm11, %v16786_v8 }
 0x396   : > { %6184 = vmatpush1.bf16.msra.mxu1 %v6149_v20  ;;  %6213 = vmatprep.mubr.bf16.mxu1 %v16536_v12 }
 0x397   : > { %v6132_v16 = vpop.permute.xlu1 %6131  ;;  %14272 = vmatmul.mubr.msk.bf16.vlgmr.msra.gmra.mrb[196].mxu0 %vm5182_vm11, %v16786_v8 }
 0x398   : > { %6235 = vmatpush1.bf16.msra.mxu0 %v6143_v15  ;;  %v6152_v28 = vsel %vm20052_vm3, %v6130_v27, %v6132_v16  ;;  %6266 = vmatprep.mubr.bf16.mxu0 %v16536_v12  ;;  %v6120_v24 = vpop.permute.xlu0 %6119  ;;  %v6153_v31 = vsel %vm20052_vm3, %v6132_v16, %v6134_v9 }
 0x399   : > { %7623 = vrot.lane.b32.xlu1 %v16592_v26, %s14518_s19  ;;  %6236 = vmatprep.subr.bf16.mxu0 %v6152_v28 }
 0x39a   : > { %8095 = vrot.lane.b32.xlu0 %v16483_v22, %s14519_s20  ;;  %v16884_v22 = vld [vmem:[%s20036_s3 + $0x28] sm:$0xff]  }
 0x39b   : > { %v6118_v52 = vpop.permute.xlu1 %6117 }
 0x39c   : > { %6237 = vmatpush1.bf16.msra.mxu0 %v6151_v14  ;;  %v6146_v1 = vsel %vm20052_vm3, %v6116_v30, %v6118_v52  ;;  %v6604_v11 = vpop.permute.xlu0 %6603  ;;  %v16964_v30 = vld [vmem:[%s20036_s3 + $0x30] sm:$0xff]  }
 0x39d   : > { %8097 = vrot.lane.b32.xlu1 %v16494_v10, %s14519_s20  ;;  %13952 = vmatmul.mubr.msk.bf16.vlgmr.msra.gmra.mrb[196].mxu1 %vm5182_vm11, %v16860_v54 }
 0x39e   : > { %6287 = vmatprep.subr.bf16.mxu1 %v6146_v1  ;;  %6223 = vmatprep.mubr.bf16.mxu1 %v16536_v12 }
 0x39f   : > { %6288 = vmatpush1.bf16.msra.mxu1 %v6145_v4  ;;  %v6136_v8 = vpop.permute.xlu1 %6135  ;;  %13954 = vmatmul.mubr.msk.bf16.vlgmr.msra.gmra.mrb[200].mxu0 %vm5182_vm11, %v16860_v54 }
 0x3a0   : > { %v6154_v61 = vsel %vm20052_vm3, %v6134_v9, %v6136_v8  ;;  %7625 = vrot.lane.b32.xlu0 %v16606_v42, %s14518_s19  ;;  %6276 = vmatprep.mubr.bf16.mxu0 %v16536_v12  ;;  %v6602_v40 = vpop.permute.xlu0 %6601  ;;  %v16968_v9 = vld [vmem:[#allocation2 + $0x8] sm:$0xff] }
 0x3a1   : > { %7609 = vrot.lane.b32.xlu1 %v16629_v45, %s14518_s19  ;;  %6289 = vmatprep.subr.bf16.mxu1 %v6154_v61 }
 0x3a3   : > { %6290 = vmatpush1.bf16.msra.mxu1 %v6153_v31  ;;  %v6606_v46 = vpop.permute.xlu1 %6605 }
 0x3a4   : > { %8093 = vrot.lane.b32.xlu0 %v16487_v48, %s14519_s20  ;;  %v6138_v33 = vpop.permute.xlu0 %6137  ;;  %v6638_v17 = vsel %vm20049_vm4, %v6604_v11, %v6606_v46 }
 0x3a5   : > { %7627 = vrot.lane.b32.xlu1 %v16639_v62, %s14518_s19  ;;  %13953 = vmatmul.mubr.msk.bf16.gmra.mrb[200].mxu1 %vm5182_vm11, %v16884_v22 }
 0x3a6   : > { %6319 = vmatprep.mubr.bf16.mxu1 %v16536_v12 }
 0x3a7   : > { %v6608_v44 = vpop.permute.xlu1 %6607  ;;  %13955 = vmatmul.mubr.msk.bf16.gmra.mrb[204].mxu0 %vm5182_vm11, %v16884_v22 }
 0x3a8   : > { %8117 = vrot.lane.b32.xlu0 %v16523_v50, %s14519_s20  ;;  %6372 = vmatprep.mubr.bf16.mxu0 %v16536_v12  ;;  %v16901_v48 = vpop.permute.xlu0 %6609  ;;  %v6147_v50 = vsel %vm20052_vm3, %v6118_v52, %v6120_v24  ;;  %v6639_v27 = vsel %vm20049_vm4, %v6606_v46, %v6608_v44  ;;  %v16996_v52 = vld [vmem:[%s20036_s3 + $0x38] sm:$0xff]   ;;  %v17018_v46 = vld [vmem:[#allocation2 + $0x20] sm:$0xff] }
 0x3a9   : > { %8115 = vrot.lane.b32.xlu1 %v16508_v63, %s14519_s20 }
 0x3ab   : > { %v6122_v6 = vpop.permute.xlu1 %6121 }
 0x3ac   : > { %14275 = vmatprep.subr.bf16.mxu1 %v6122_v6  ;;  %v6148_v59 = vsel %vm20052_vm3, %v6120_v24, %v6122_v6  ;;  %8101 = vrot.lane.b32.xlu0 %v16526_v5, %s14519_s20  ;;  %v6624_v63 = vpop.permute.xlu0 %6623  ;;  %v6640_v5 = vsel %vm20049_vm4, %v6608_v44, %v16901_v48 }
 0x3ad   : > { %8099 = vrot.lane.b32.xlu1 %v16500_v21, %s14519_s20  ;;  %13956 = vmatmul.mubr.msk.bf16.vlgmr.msra.gmra.mrb[204].mxu1 %vm5182_vm11, %v16860_v54  ;;  %v6155_v21 = vsel %vm20052_vm3, %v6136_v8, %v6138_v33 }
 0x3ae   : > { %6340 = vmatprep.subr.bf16.mxu0 %v6148_v59  ;;  %14276 = vmatpush3.bf16.msra.mxu1 %v6122_v6 }
 0x3af   : > { %6341 = vmatpush1.bf16.msra.mxu0 %v6147_v50  ;;  %v6140_v34 = vpop.permute.xlu1 %6139  ;;  %6329 = vmatprep.mubr.bf16.mxu1 %v16536_v12 }
 0x3b0   : > { %14277 = vmatprep.subr.bf16.mxu1 %v6140_v34  ;;  %v6156_v35 = vsel %vm20052_vm3, %v6138_v33, %v6140_v34  ;;  %8119 = vrot.lane.b32.xlu0 %v16540_v36, %s14519_s20  ;;  %v6626_v51 = vpop.permute.xlu0 %6625  ;;  %v17020_v33 = vld [vmem:[#allocation2 + $0x18] sm:$0xff] }
 0x3b1   : > { %8113 = vrot.lane.b32.xlu1 %v16504_v23, %s14519_s20  ;;  %6342 = vmatprep.subr.bf16.mxu0 %v6156_v35  ;;  %v6637_v23 = vsel %vm20049_vm4, %v6602_v40, %v6604_v11 }
 0x3b2   : > { %14278 = vmatpush3.bf16.msra.mxu1 %v6140_v34 }
 0x3b3   : > { %6343 = vmatpush1.bf16.msra.mxu0 %v6155_v21  ;;  %v6622_v29 = vpop.permute.xlu1 %6621  ;;  %6730 = vmatprep.subr.bf16.mxu1 %v6640_v5  ;;  %v17042_v21 = vld [vmem:[#allocation2 + $0x60] sm:$0xff] }
 0x3b4   : > { %6677 = vmatprep.subr.bf16.mxu0 %v6638_v17  ;;  %8103 = vrot.lane.b32.xlu0 %v16559_v13, %s14519_s20  ;;  %v6612_v36 = vpop.permute.xlu0 %6611  ;;  %v6646_v53 = vsel %vm20049_vm4, %v6622_v29, %v6624_v63 }
 0x3b5   : > { %8121 = vrot.lane.b32.xlu1 %v16543_v0, %s14519_s20  ;;  %13957 = vmatmul.mubr.msk.bf16.gmra.mrb[208].mxu1 %vm5182_vm11, %v16884_v22  ;;  %v6641_v15 = vsel %vm20049_vm4, %v16901_v48, %v6612_v36 }
 0x3b6   : > { %13958 = vmatmul.mubr.msk.bf16.vlgmr.msra.gmra.mrb[208].mxu0 %vm5182_vm11, %v16860_v54  ;;  %14279 = vmatprep.mubr.msk.bf16.mxu1 %vm5182_vm11, %v16860_v54 }
 0x3b7   : > { %6678 = vmatpush1.bf16.msra.mxu0 %v6637_v23  ;;  %v6620_v60 = vpop.permute.xlu1 %6619  ;;  %6382 = vmatprep.mubr.bf16.mxu0 %v16536_v12 }
 0x3b8   : > { %v6645_v0 = vsel %vm20049_vm4, %v6620_v60, %v6622_v29  ;;  %6679 = vmatprep.subr.bf16.mxu0 %v6646_v53  ;;  %8123 = vrot.lane.b32.xlu0 %v16589_v47, %s14519_s20  ;;  %v6616_v13 = vpop.permute.xlu0 %6615  ;;  %v16947_v47 = vld [vmem:[#allocation2 + $0x48] sm:$0xff] }
 0x3b9   : > { %8105 = vrot.lane.b32.xlu1 %v16562_v32, %s14519_s20  ;;  %v16951_v32 = vld [vmem:[#allocation2 + $0x98] sm:$0xff] }
 0x3bb   : > { %6680 = vmatpush1.bf16.msra.mxu0 %v6645_v0  ;;  %v6628_v49 = vpop.permute.xlu1 %6627 }
 0x3bc   : > { %v6648_v2 = vsel %vm20049_vm4, %v6626_v51, %v6628_v49  ;;  %8107 = vrot.lane.b32.xlu0 %v16578_v39, %s14519_s20  ;;  %v6630_v19 = vpop.permute.xlu0 %6629 }
 0x3bd   : > { %8125 = vrot.lane.b32.xlu1 %v16592_v26, %s14519_s20  ;;  %14280 = vmatmul.mubr.msk.bf16.vlgmr.msra.gmra.mrb[212].mxu1 %vm5182_vm11, %v16884_v22  ;;  %v6647_v26 = vsel %vm20049_vm4, %v6624_v63, %v6626_v51  ;;  %v6649_v1 = vsel %vm20049_vm4, %v6628_v49, %v6630_v19  ;;  %v17046_v51 = vld [vmem:[#allocation2 + $0x58] sm:$0xff] }
 0x3be   : > { %13959 = vmatmul.mubr.msk.bf16.gmra.mrb[212].mxu0 %vm5182_vm11, %v16884_v22  ;;  %6731 = vmatpush1.bf16.msra.mxu1 %v6639_v27 }
 0x3bf   : > { %6732 = vmatprep.subr.bf16.mxu1 %v6648_v2  ;;  %v6614_v41 = vpop.permute.xlu1 %6613  ;;  %6709 = vmatprep.mubr.bf16.mxu0 %v16536_v12  ;;  %v17075_v2 = vld [vmem:[#allocation2 + $0x68] sm:$0xff] }
 0x3c0   : > { %v6642_v39 = vsel %vm20049_vm4, %v6612_v36, %v6614_v41  ;;  %6762 = vmatprep.mubr.bf16.mxu1 %v16536_v12  ;;  %8111 = vrot.lane.b32.xlu0 %v16947_v47, %s14519_s20  ;;  %v16966_v58 = vpop.permute.xlu0 %7099  ;;  %v6643_v22 = vsel %vm20049_vm4, %v6614_v41, %v6616_v13 }
 0x3c1   : > { %8131 = vrot.lane.b32.xlu1 %v16951_v32, %s14519_s20  ;;  %6783 = vmatprep.subr.bf16.mxu0 %v6642_v39 }
 0x3c2   : > { %6733 = vmatpush1.bf16.msra.mxu1 %v6647_v26 }
 0x3c3   : > { %v6632_v20 = vpop.permute.xlu1 %6631 }
 0x3c4   : > { %8601 = vrot.lane.b32.xlu0 %v16968_v9, %s14520_s21  ;;  %v6650_v16 = vsel %vm20049_vm4, %v6630_v19, %v6632_v20  ;;  %v6634_v28 = vpop.permute.xlu0 %6633 }
 0x3c5   : > { %8603 = vrot.lane.b32.xlu1 %v16494_v10, %s14520_s21  ;;  %13970 = vmatmul.mubr.msk.bf16.vlgmr.msra.gmra.mrb[216].mxu1 %vm5182_vm11, %v16964_v30  ;;  %v16985_v10 = vpop.f32.mrb[160].mxu1  ;;  %v6651_v59 = vsel %vm20049_vm4, %v6632_v20, %v6634_v28 }
 0x3c6   : > { %13968 = vmatmul.mubr.msk.bf16.vlgmr.msra.gmra.mrb[216].mxu0 %vm5182_vm11, %v16964_v30  ;;  %6772 = vmatprep.mubr.bf16.mxu1 %v16536_v12  ;;  %v16989_v24 = vpop.f32.mrb[161].mxu1 }
 0x3c7   : > { %6784 = vmatpush1.bf16.msra.mxu0 %v6641_v15  ;;  %v16982_v54 = vpop.permute.xlu1 %7101  ;;  %6719 = vmatprep.mubr.bf16.mxu0 %v16536_v12  ;;  %v16998_v14 = vpop.f32.mrb[162].mxu1 }
 0x3c8   : > { %6785 = vmatprep.subr.bf16.mxu0 %v6650_v16  ;;  %8127 = vrot.lane.b32.xlu0 %v16606_v42, %s14519_s20  ;;  %v7098_v4 = vpop.permute.xlu0 %7097  ;;  %v17001_v11 = vpop.f32.mrb[163].mxu1  ;;  %v17003_v42 = vld [vmem:[#allocation2] sm:$0xff]  ;;  %v7134_v34 = vsel %vm20148_vm14, %v16966_v58, %v16982_v54  ;;  %v17089_v16 = vld [vmem:[#allocation2 + $0x70] sm:$0xff] }
 0x3c9   : > { %8109 = vrot.lane.b32.xlu1 %v16629_v45, %s14519_s20  ;;  %v7133_v23 = vsel %vm20148_vm14, %v7098_v4, %v16966_v58 }
 0x3cb   : > { %6786 = vmatpush1.bf16.msra.mxu0 %v6649_v1  ;;  %v6618_v8 = vpop.permute.xlu1 %6617  ;;  %v17101_v1 = vld [vmem:[#allocation2 + $0x28] sm:$0xff] }
 0x3cc   : > { %14283 = vmatprep.subr.bf16.mxu0 %v6618_v8  ;;  %v6644_v61 = vsel %vm20049_vm4, %v6616_v13, %v6618_v8  ;;  %8599 = vrot.lane.b32.xlu0 %v17003_v42, %s14520_s21  ;;  %v17015_v31 = vpop.permute.xlu0 %7119  ;;  %v17068_v13 = vld [vmem:[#allocation2 + $0x50] sm:$0xff] }
 0x3cd   : > { %8129 = vrot.lane.b32.xlu1 %v16639_v62, %s14519_s20  ;;  %13971 = vmatmul.mubr.msk.bf16.gmra.mrb[220].mxu1 %vm5182_vm11, %v16996_v52 }
 0x3ce   : > { %13969 = vmatmul.mubr.msk.bf16.gmra.mrb[220].mxu0 %vm5182_vm11, %v16996_v52  ;;  %6836 = vmatprep.subr.bf16.mxu1 %v6644_v61  ;;  %v17026_v44 = vpop.f32.mrb[164].mxu0 }
 0x3cf   : > { %6837 = vmatpush1.bf16.msra.mxu1 %v6643_v22  ;;  %v6636_v40 = vpop.permute.xlu1 %6635  ;;  %6815 = vmatprep.mubr.bf16.mxu0 %v16536_v12  ;;  %v17030_v48 = vpop.f32.mrb[165].mxu0 }
 0x3d0   : > { %v6652_v62 = vsel %vm20049_vm4, %v6634_v28, %v6636_v40  ;;  %6868 = vmatprep.mubr.bf16.mxu1 %v16536_v12  ;;  %8607 = vrot.lane.b32.xlu0 %v17018_v46, %s14520_s21  ;;  %v17032_v6 = vpop.f32.mrb[164].mxu1  ;;  %v17035_v50 = vpop.permute.xlu0 %7105  ;;  %vm20149_vm4 = vmmov %vm20148_vm14 }
 0x3d1   : > { %8605 = vrot.lane.b32.xlu1 %v17020_v33, %s14520_s21  ;;  %6838 = vmatprep.subr.bf16.mxu1 %v6652_v62  ;;  %v17037_v63 = vpop.f32.mrb[166].mxu0  ;;  %v17050_v17 = vpop.f32.mrb[165].mxu1  ;;  %vm20150_vm14 = vmmov %vm20149_vm4 }
 0x3d2   : > { %v17044_v5 = vpop.f32.mrb[167].mxu0  ;;  %v17054_v29 = vpop.f32.mrb[166].mxu1  ;;  %vm20155_vm3 = vmmov %vm20149_vm4 }
 0x3d3   : > { %6839 = vmatpush1.bf16.msra.mxu1 %v6651_v59  ;;  %v7118_v35 = vpop.permute.xlu1 %7117  ;;  %v17064_v60 = vpop.f32.mrb[167].mxu1 }
 0x3d4   : > { %7173 = vmatprep.subr.bf16.mxu1 %v7134_v34  ;;  %8623 = vrot.lane.b32.xlu0 %v17042_v21, %s14520_s21  ;;  %v17062_v36 = vpop.permute.xlu0 %7121  ;;  %v7142_v0 = vsel %vm20149_vm4, %v7118_v35, %v17015_v31  ;;  %v17120_v34 = vld [vmem:[#allocation2 + $0x38] sm:$0xff] }
 0x3d5   : > { %8621 = vrot.lane.b32.xlu1 %v17046_v51, %s14520_s21 }
 0x3d6   : > { %13972 = vmatmul.mubr.msk.bf16.vlgmr.msra.gmra.mrb[224].mxu0 %vm5182_vm11, %v16964_v30  ;;  %13974 = vmatmul.mubr.msk.bf16.vlgmr.msra.gmra.mrb[224].mxu1 %vm5182_vm11, %v16964_v30  ;;  %v17070_v49 = vpop.f32.mrb[168].mxu0 }
 0x3d7   : > { %14284 = vmatpush3.bf16.msra.mxu0 %v6618_v8  ;;  %7174 = vmatpush1.bf16.msra.mxu1 %v7133_v23  ;;  %v7104_v53 = vpop.permute.xlu1 %7103  ;;  %v17079_v19 = vpop.f32.mrb[169].mxu0 }
 0x3d8   : > { %14285 = vmatprep.subr.bf16.mxu0 %v6636_v40  ;;  %7175 = vmatprep.subr.bf16.mxu1 %v7142_v0  ;;  %v7136_v27 = vsel %vm20150_vm14, %v7104_v53, %v17035_v50  ;;  %v7108_v41 = vpop.permute.xlu0 %7107  ;;  %v17084_v39 = vpop.f32.mrb[170].mxu0  ;;  %vm20154_vm14 = vmmov %vm20149_vm4  ;;  %v7135_v18 = vsel %vm20149_vm4, %v16982_v54, %v7104_v53 }
 0x3d9   : > { %8619 = vrot.lane.b32.xlu1 %v17068_v13, %s14520_s21  ;;  %6825 = vmatprep.mubr.bf16.mxu0 %v16536_v12  ;;  %v17086_v58 = vpop.f32.mrb[171].mxu0  ;;  %v7137_v7 = vsel %vm20155_vm3, %v17035_v50, %v7108_v41 }
 0x3da   : > { %6878 = vmatprep.mubr.bf16.mxu1 %v16536_v12  ;;  %8625 = vrot.lane.b32.xlu0 %v17075_v2, %s14520_s21  ;;  %v17091_v15 = vpop.f32.mrb[168].mxu1 }
 0x3db   : > { %14286 = vmatpush3.bf16.msra.mxu0 %v6636_v40  ;;  %v7116_v26 = vpop.permute.xlu1 %7115  ;;  %v17095_v28 = vpop.f32.mrb[169].mxu1  ;;  %v17111_v40 = vld [vmem:[#allocation2 + $0x30] sm:$0xff] }
 0x3dc   : > { %v7141_v20 = vsel %vm20149_vm4, %v7116_v26, %v7118_v35  ;;  %7226 = vmatprep.subr.bf16.mxu0 %v7136_v27  ;;  %v7126_v4 = vpop.permute.xlu0 %7125  ;;  %v17103_v8 = vpop.f32.mrb[170].mxu1  ;;  %v17125_v35 = vld [vmem:[%s20036_s3 + $0x40] sm:$0xff]   ;;  %vm20162_vm4 = vmmov %vm20155_vm3 }
 0x3dd   : > { %8627 = vrot.lane.b32.xlu1 %v17089_v16, %s14520_s21  ;;  %7176 = vmatpush1.bf16.msra.mxu1 %v7141_v20  ;;  %v17109_v22 = vpop.f32.mrb[171].mxu1  ;;  %v17137_v26 = vld [vmem:[#allocation2 + $0x80] sm:$0xff]  ;;  %v7143_v53 = vsel %vm20162_vm4, %v17015_v31, %v17062_v36  ;;  %vm20167_vm4 = vmmov %vm20155_vm3 }
 0x3de   : > { %13973 = vmatmul.mubr.msk.bf16.gmra.mrb[228].mxu0 %vm5182_vm11, %v16996_v52  ;;  %13975 = vmatmul.mubr.msk.bf16.gmra.mrb[228].mxu1 %vm5182_vm11, %v16996_v52  ;;  %v17114_v62 = vpop.f32.mrb[172].mxu0 }
 0x3df   : > { %v7124_v61 = vpop.permute.xlu1 %7123  ;;  %8609 = vrot.lane.b32.xlu0 %v17101_v1, %s14520_s21  ;;  %14287 = vmatprep.mubr.msk.bf16.mxu0 %vm5182_vm11, %v16964_v30  ;;  %v17118_v59 = vpop.f32.mrb[173].mxu0 }
 0x3e0   : > { %7205 = vmatprep.mubr.bf16.mxu1 %v16536_v12  ;;  %20151 = vst [vmem:[#allocation15_spill] sm:$0xff] %v17118_v59  ;;  %v17127_v30 = vpop.permute.xlu0 %7111  ;;  %v17129_v23 = vpop.f32.mrb[174].mxu0 }
 0x3e1   : > { %8611 = vrot.lane.b32.xlu1 %v17111_v40, %s14520_s21  ;;  %20152 = vst [vmem:[#allocation16_spill] sm:$0xff] %v17129_v23  ;;  %v17135_v27 = vpop.f32.mrb[175].mxu0  ;;  %v9057_v23 = vld [vmem:[#allocation2 + $0x10] sm:$0xff] }
 0x3e2   : > { %20153 = vst [vmem:[#allocation17_spill] sm:$0xff] %v17135_v27  ;;  %v17153_v38 = vpop.f32.mrb[172].mxu1 }
 0x3e3   : > { %v17131_v0 = vpop.permute.xlu1 %7109  ;;  %8613 = vrot.lane.b32.xlu0 %v17120_v34, %s14520_s21  ;;  %20156 = vst [vmem:[#allocation18_spill] sm:$0xff] %v17153_v38  ;;  %v17161_v57 = vpop.f32.mrb[173].mxu1 }
 0x3e4   : > { %v7138_v20 = vsel %vm20154_vm14, %v7108_v41, %v17131_v0  ;;  %v17151_v37 = vpop.permute.xlu0 %7595  ;;  %vm20157_vm14 = vmmov %vm20155_vm3  ;;  %20158 = vst [vmem:[#allocation19_spill] sm:$0xff] %v17161_v57  ;;  %v17167_v50 = vpop.f32.mrb[174].mxu1 }
 0x3e5   : > { %8631 = vrot.lane.b32.xlu1 %v17137_v26, %s14520_s21  ;;  %7279 = vmatprep.subr.bf16.mxu1 %v7138_v20  ;;  %v7144_v20 = vsel %vm20157_vm14, %v17062_v36, %v7124_v61  ;;  %20159 = vst [vmem:[#allocation20_spill] sm:$0xff] %v17167_v50  ;;  %vm20163_vm14 = vmmov %vm20155_vm3  ;;  %v17196_v36 = vld [vmem:[#allocation2 + $0x90] sm:$0xff] }
 0x3e6   : > { %14288 = vmatmul.mubr.msk.bf16.vlgmr.msra.gmra.mrb[232].mxu0 %vm5182_vm11, %v16996_v52  ;;  %13984 = vmatmul.mubr.msk.bf16.vlgmr.msra.gmra.mrb[232].mxu1 %vm5182_vm11, %v17125_v35  ;;  %v17159_v52 = vld [vmem:[#allocation2 + $0x78] sm:$0xff]  ;;  %v7145_v41 = vsel %vm20163_vm14, %v7124_v61, %v7126_v4  ;;  %vm20168_vm14 = vmmov %vm20155_vm3 }
 0x3e7   : > { %7227 = vmatpush1.bf16.msra.mxu0 %v7135_v18  ;;  %7280 = vmatpush1.bf16.msra.mxu1 %v7137_v7  ;;  %v17157_v56 = vpop.permute.xlu1 %7127  ;;  %v17171_v18 = vpop.f32.mrb[176].mxu0 }
 0x3e8   : > { %7228 = vmatprep.subr.bf16.mxu0 %v7144_v20  ;;  %8629 = vrot.lane.b32.xlu0 %v17159_v52, %s14520_s21  ;;  %v7146_v54 = vsel %vm20155_vm3, %v7126_v4, %v17157_v56  ;;  %20160 = vst [vmem:[#allocation21_spill] sm:$0xff] %v17171_v18  ;;  %v17173_v7 = vpop.f32.mrb[175].mxu1  ;;  %v17184_v20 = vld [vmem:[%s20036_s3 + $0x48] sm:$0xff]   ;;  %v5140_v4 = vld [vmem:[#allocation4 + $0xd0] sm:$0xff] }
 0x3e9   : > { %8615 = vrot.lane.b32.xlu1 %v16629_v45, %s14520_s21  ;;  %7281 = vmatprep.subr.bf16.mxu1 %v7146_v54  ;;  %20161 = vst [vmem:[#allocation22_spill] sm:$0xff] %v17173_v7  ;;  %v17186_v45 = vpop.f32.mrb[177].mxu0  ;;  %v17192_v31 = vpop.permute.xlu0 %7593  ;;  %v5131_v18 = vld [vmem:[#allocation4 + $0x88] sm:$0xff] }
 0x3ea   : > { %7215 = vmatprep.mubr.bf16.mxu1 %v16536_v12  ;;  %7258 = vmatprep.mubr.bf16.mxu0 %v16536_v12  ;;  %20164 = vst [vmem:[#allocation23_spill] sm:$0xff] %v17186_v45  ;;  %v17198_v12 = vpop.f32.mrb[178].mxu0  ;;  %v5149_v45 = vld [vmem:[#allocation4 + $0x118] sm:$0xff] }
 0x3eb   : > { %7229 = vmatpush1.bf16.msra.mxu0 %v7143_v53  ;;  %7282 = vmatpush1.bf16.msra.mxu1 %v7145_v41  ;;  %v17188_v54 = vpop.permute.xlu1 %7597  ;;  %20165 = vst [vmem:[#allocation24_spill] sm:$0xff] %v17198_v12  ;;  %v17202_v61 = vpop.f32.mrb[179].mxu0  ;;  %v5122_v41 = vld [vmem:[#allocation4 + $0x40] sm:$0xff] }
 0x3ec   : > { %8633 = vrot.lane.b32.xlu0 %v17190_v25, %s14520_s21  ;;  %20166 = vst [vmem:[#allocation25_spill] sm:$0xff] %v17202_v61  ;;  %v14265_v53 = vpop.f32.mrb[176].mxu1 }
 0x3ed   : > { %8635 = vrot.lane.b32.xlu1 %v17196_v36, %s14520_s21  ;;  %v7130_v55 = vpop.permute.xlu0 %7129  ;;  %v5476_v12 = vadd.f32 %v14265_v53, %v5140_v4  ;;  %v5435_v61 = vpop.f32.mrb[177].mxu1 }
 0x3ee   : > { %13985 = vmatmul.mubr.msk.bf16.gmra.mrb[236].mxu1 %vm5182_vm11, %v17184_v20  ;;  %13986 = vmatmul.mubr.msk.bf16.vlgmr.msra.gmra.mrb[236].mxu0 %vm5182_vm11, %v17125_v35  ;;  %v5458_v7 = vadd.f32 %v5435_v61, %v5122_v41  ;;  %v14266_v50 = vpop.f32.mrb[178].mxu1 }
 0x3ef   : > { %v17208_v3 = vpop.permute.xlu1 %7599  ;;  %7268 = vmatprep.mubr.bf16.mxu0 %v17210_v43  ;;  %7311 = vmatprep.mubr.bf16.mxu1 %v17210_v43  ;;  %5512 = vst.msk [vmem:[#allocation4 + $0xd0] sm:$0xff] %vm20073_vm6, %v5476_v12  ;;  %v5485_v57 = vadd.f32 %v14266_v50, %v5149_v45  ;;  %v5438_v38 = vpop.f32.mrb[179].mxu1  ;;  %v7147_v50 = vsel %vm20155_vm3, %v17157_v56, %v7130_v55 }
 0x3f0   : > { %8617 = vrot.lane.b32.xlu0 %v16947_v47, %s14520_s21  ;;  %5494 = vst.msk [vmem:[#allocation4 + $0x40] sm:$0xff] %vm20073_vm6, %v5458_v7  ;;  %v5467_v4 = vadd.f32 %v5438_v38, %v5131_v18  ;;  %v7139_v38 = vsel %vm20167_vm4, %v17131_v0, %v17127_v30  ;;  %vm20169_vm4 = vcmask 752640  }
 0x3f1   : > { %9107 = vrot.lane.b32.xlu1 %v16968_v9, %s14521_s26  ;;  %v17219_v59 = vpop.permute.xlu0 %7601  ;;  %5521 = vst.msk [vmem:[#allocation4 + $0x118] sm:$0xff] %vm20073_vm6, %v5485_v57 }
 0x3f2   : > { %5503 = vst.msk [vmem:[#allocation4 + $0x88] sm:$0xff] %vm20073_vm6, %v5467_v4 }
 0x3f3   : > { %v7114_v27 = vpop.permute.xlu1 %7113 }
 0x3f4   : > { %14291 = vmatprep.subr.bf16.mxu1 %v7114_v27  ;;  %9109 = vrot.lane.b32.xlu0 %v9057_v23, %s14521_s26  ;;  %v7140_v53 = vsel %vm20155_vm3, %v17127_v30, %v7114_v27  ;;  %vm20171_vm3 = vmmov %vm20169_vm4 }
 0x3f5   : > { %8637 = vrot.lane.b32.xlu1 %v16951_v32, %s14520_s21  ;;  %7332 = vmatprep.subr.bf16.mxu0 %v7140_v53  ;;  %v7616_v23 = vpop.permute.xlu0 %7615  ;;  %v7629_v56 = vsel %vm20171_vm3, %v17192_v31, %v17151_v37 }
 0x3f6   : > { %13987 = vmatmul.mubr.msk.bf16.gmra.mrb[240].mxu0 %vm5182_vm11, %v17184_v20  ;;  %13988 = vmatmul.mubr.msk.bf16.vlgmr.msra.gmra.mrb[240].mxu1 %vm5182_vm11, %v17125_v35 }
 0x3f7   : > { %14292 = vmatpush3.bf16.msra.mxu1 %v7114_v27  ;;  %7333 = vmatpush1.bf16.msra.mxu0 %v7139_v38  ;;  %v7132_v9 = vpop.permute.xlu1 %7131  ;;  %v9557_v38 = vld [vmem:[%s20037_s4 + $0x8] sm:$0xff] }
 0x3f8   : > { %14293 = vmatprep.subr.bf16.mxu1 %v7132_v9  ;;  %9105 = vrot.lane.b32.xlu0 %v17003_v42, %s14521_s26  ;;  %v7148_v57 = vsel %vm20168_vm14, %v7130_v55, %v7132_v9  ;;  %v7630_v42 = vsel %vm20169_vm4, %v17151_v37, %v17188_v54  ;;  %vm20170_vm14 = vmmov %vm20169_vm4 }
 0x3f9   : > { %9127 = vrot.lane.b32.xlu1 %v17046_v51, %s14521_s26  ;;  %7334 = vmatprep.subr.bf16.mxu0 %v7148_v57  ;;  %v7632_v51 = vsel %vm20170_vm14, %v17208_v3, %v17219_v59  ;;  %vm20172_vm4 = vmmov %vm20171_vm3 }
 0x3fa   : > { %7321 = vmatprep.mubr.bf16.mxu1 %v17210_v43  ;;  %7364 = vmatprep.mubr.bf16.mxu0 %v17210_v43  ;;  %v7618_v55 = vpop.permute.xlu0 %7617  ;;  %vm20173_vm14 = vmmov %vm20171_vm3 }
 0x3fb   : > { %14294 = vmatpush3.bf16.msra.mxu1 %v7132_v9  ;;  %7335 = vmatpush1.bf16.msra.mxu0 %v7147_v50  ;;  %v7614_v30 = vpop.permute.xlu1 %7613  ;;  %v9559_v50 = vld [vmem:[%s20037_s4 + $0x18] sm:$0xff] }
 0x3fc   : > { %7669 = vmatprep.subr.bf16.mxu0 %v7630_v42  ;;  %9129 = vrot.lane.b32.xlu0 %v17042_v21, %s14521_s26  ;;  %v7638_v0 = vsel %vm20172_vm4, %v7614_v30, %v7616_v23  ;;  %vm20174_vm4 = vmmov %vm20171_vm3 }
 0x3fd   : > { %9111 = vrot.lane.b32.xlu1 %v17020_v33, %s14521_s26  ;;  %7722 = vmatprep.subr.bf16.mxu1 %v7632_v51 }
 0x3fe   : > { %13989 = vmatmul.mubr.msk.bf16.gmra.mrb[244].mxu1 %vm5182_vm11, %v17184_v20  ;;  %13990 = vmatmul.mubr.msk.bf16.vlgmr.msra.gmra.mrb[244].mxu0 %vm5182_vm11, %v17125_v35  ;;  %v7604_v37 = vpop.permute.xlu0 %7603 }
 0x3ff   : > { %7670 = vmatpush1.bf16.msra.mxu0 %v7629_v56  ;;  %v7612_v21 = vpop.permute.xlu1 %7611  ;;  %7374 = vmatprep.mubr.bf16.mxu0 %v17210_v43 }
 0x400   : > { %v7637_v33 = vsel %vm20173_vm14, %v7612_v21, %v7614_v30  ;;  %9113 = vrot.lane.b32.xlu0 %v17018_v46, %s14521_s26  ;;  %7671 = vmatprep.subr.bf16.mxu0 %v7638_v0  ;;  %v7631_v46 = vsel %vm20174_vm4, %v17188_v54, %v17208_v3  ;;  %vm20175_vm14 = vmmov %vm20171_vm3  ;;  %v17294_v3 = vld [vmem:[%s20036_s3 + $0x50] sm:$0xff]  }
 0x401   : > { %9125 = vrot.lane.b32.xlu1 %v17068_v13, %s14521_s26  ;;  %14295 = vmatprep.mubr.msk.bf16.mxu1 %vm5182_vm11, %v17125_v35  ;;  %vm20176_vm4 = vmmov %vm20171_vm3 }
 0x402   : > { %v7608_v13 = vpop.permute.xlu0 %7607 }
 0x403   : > { %7672 = vmatpush1.bf16.msra.mxu0 %v7637_v33  ;;  %v7620_v27 = vpop.permute.xlu1 %7619 }
 0x404   : > { %9131 = vrot.lane.b32.xlu0 %v17075_v2, %s14521_s26  ;;  %v7640_v18 = vsel %vm20171_vm3, %v7618_v55, %v7620_v27 }
 0x405   : > { %9133 = vrot.lane.b32.xlu1 %v17089_v16, %s14521_s26  ;;  %v7639_v16 = vsel %vm20171_vm3, %v7616_v23, %v7618_v55 }
 0x406   : > { %13991 = vmatmul.mubr.msk.bf16.gmra.mrb[248].mxu0 %vm5182_vm11, %v17184_v20  ;;  %14296 = vmatmul.mubr.msk.bf16.vlgmr.msra.gmra.mrb[248].mxu1 %vm5182_vm11, %v17184_v20  ;;  %v7622_v7 = vpop.permute.xlu0 %7621 }
 0x407   : > { %7723 = vmatpush1.bf16.msra.mxu1 %v7631_v46  ;;  %v7606_v35 = vpop.permute.xlu1 %7605  ;;  %7701 = vmatprep.mubr.bf16.mxu0 %v17210_v43 }
 0x408   : > { %7724 = vmatprep.subr.bf16.mxu1 %v7640_v18  ;;  %9115 = vrot.lane.b32.xlu0 %v17101_v1, %s14521_s26  ;;  %v7634_v2 = vsel %vm20175_vm14, %v7604_v37, %v7606_v35  ;;  %vm20177_vm14 = vmmov %vm20171_vm3 }
 0x409   : > { %9117 = vrot.lane.b32.xlu1 %v17111_v40, %s14521_s26  ;;  %7775 = vmatprep.subr.bf16.mxu0 %v7634_v2  ;;  %v7633_v40 = vsel %vm20177_vm14, %v17219_v59, %v7604_v37  ;;  %v17318_v59 = vld [vmem:[%s20036_s3 + $0x58] sm:$0xff]   ;;  %vm20179_vm14 = vmmov %vm20171_vm3 }
 0x40a   : > { %7754 = vmatprep.mubr.bf16.mxu1 %v17210_v43  ;;  %v7635_v61 = vsel %vm20179_vm14, %v7606_v35, %v7608_v13  ;;  %vm20181_vm14 = vcmask 490496  }
 0x40b   : > { %7725 = vmatpush1.bf16.msra.mxu1 %v7639_v16  ;;  %v7624_v20 = vpop.permute.xlu1 %7623 }
 0x40c   : > { %9135 = vrot.lane.b32.xlu0 %v17159_v52, %s14521_s26  ;;  %v7642_v1 = vsel %vm20176_vm4, %v7622_v7, %v7624_v20  ;;  %v8096_v45 = vpop.permute.xlu0 %8095  ;;  %v7641_v52 = vsel %vm20171_vm3, %v7620_v27, %v7622_v7  ;;  %vm20178_vm4 = vmmov %vm20171_vm3  ;;  %v17372_v27 = vld [vmem:[%s20036_s3 + $0x60] sm:$0xff]  }
 0x40d   : > { %9137 = vrot.lane.b32.xlu1 %v17137_v26, %s14521_s26  ;;  %v9063_v26 = vld [vmem:[#allocation2 + $0x40] sm:$0xff] }
 0x40e   : > { %14000 = vmatmul.mubr.msk.bf16.vlgmr.msra.gmra.mrb[252].mxu0 %vm5182_vm11, %v17294_v3  ;;  %14002 = vmatmul.mubr.msk.bf16.vlgmr.msra.gmra.mrb[252].mxu1 %vm5182_vm11, %v17294_v3 }
 0x40f   : > { %7776 = vmatpush1.bf16.msra.mxu0 %v7633_v40  ;;  %v17307_v54 = vpop.permute.xlu1 %8097  ;;  %7711 = vmatprep.mubr.bf16.mxu0 %v17210_v43 }
 0x410   : > { %9119 = vrot.lane.b32.xlu0 %v17120_v34, %s14521_s26  ;;  %7777 = vmatprep.subr.bf16.mxu0 %v7642_v1 }
 0x411   : > { %9121 = vrot.lane.b32.xlu1 %v9063_v26, %s14521_s26  ;;  %7764 = vmatprep.mubr.bf16.mxu1 %v17210_v43 }
 0x412   : > { %v7626_v31 = vpop.permute.xlu0 %7625 }
 0x413   : > { %7778 = vmatpush1.bf16.msra.mxu0 %v7641_v52  ;;  %v7610_v12 = vpop.permute.xlu1 %7609 }
 0x414   : > { %14299 = vmatprep.subr.bf16.mxu0 %v7610_v12  ;;  %9139 = vrot.lane.b32.xlu0 %v17190_v25, %s14521_s26  ;;  %v7636_v34 = vsel %vm20178_vm4, %v7608_v13, %v7610_v12  ;;  %vm20180_vm4 = vmmov %vm20171_vm3 }
 0x415   : > { %9141 = vrot.lane.b32.xlu1 %v17196_v36, %s14521_s26  ;;  %7828 = vmatprep.subr.bf16.mxu1 %v7636_v34  ;;  %v9556_v36 = vld [vmem:[%s20037_s4] sm:$0xff]  ;;  %v7643_v53 = vsel %vm20180_vm4, %v7624_v20, %v7626_v31 }
 0x416   : > { %14001 = vmatmul.mubr.msk.bf16.gmra.mrb[0].mxu0 %vm5182_vm11, %v17318_v59  ;;  %14003 = vmatmul.mubr.msk.bf16.gmra.mrb[0].mxu1 %vm5182_vm11, %v17318_v59  ;;  %v8094_v41 = vpop.permute.xlu0 %8093 }
 0x417   : > { %7829 = vmatpush1.bf16.msra.mxu1 %v7635_v61  ;;  %v7628_v4 = vpop.permute.xlu1 %7627  ;;  %7807 = vmatprep.mubr.bf16.mxu0 %v17210_v43 }
 0x418   : > { %9123 = vrot.lane.b32.xlu0 %v16947_v47, %s14521_s26  ;;  %v7644_v25 = vsel %vm20171_vm3, %v7626_v31, %v7628_v4  ;;  %7860 = vmatprep.mubr.bf16.mxu1 %v17210_v43  ;;  %v8134_v47 = vsel %vm20181_vm14, %v8096_v45, %v17307_v54  ;;  %vm20182_vm3 = vmmov %vm20181_vm14 }
 0x419   : > { %9143 = vrot.lane.b32.xlu1 %v16951_v32, %s14521_s26  ;;  %7830 = vmatprep.subr.bf16.mxu1 %v7644_v25  ;;  %v9558_v32 = vld [vmem:[%s20037_s4 + $0x10] sm:$0xff]  ;;  %v8133_v23 = vsel %vm20182_vm3, %v8094_v41, %v8096_v45  ;;  %vm20183_vm4 = vmmov %vm20182_vm3  ;;  %v17391_v45 = vld [vmem:[%s20036_s3 + $0x68] sm:$0xff]  }
 0x41a   : > { %v8118_v9 = vpop.permute.xlu0 %8117  ;;  %vm20184_vm14 = vmmov %vm20182_vm3 }
 0x41b   : > { %7831 = vmatpush1.bf16.msra.mxu1 %v7643_v53  ;;  %v8116_v57 = vpop.permute.xlu1 %8115  ;;  %vm20187_vm2 = vmmov %vm20182_vm3 }
 0x41c   : > { %8175 = vmatprep.subr.bf16.mxu1 %v8134_v47  ;;  %9562 = vperm.xlu0 %14459, %v9556_v36   ;;  %v8143_v51 = vsel %vm20183_vm4, %v8116_v57, %v8118_v9  ;;  %vm20185_vm4 = vmmov %vm20182_vm3 }
 0x41d   : > { %9567 = vperm.xlu1 %14458, %v9557_v38   ;;  %vm20189_vm0 = vmmov %vm20187_vm2 }
 0x41e   : > { %14004 = vmatmul.mubr.msk.bf16.vlgmr.msra.gmra.mrb[4].mxu0 %vm5182_vm11, %v17294_v3  ;;  %14006 = vmatmul.mubr.msk.bf16.vlgmr.msra.gmra.mrb[4].mxu1 %vm5182_vm11, %v17294_v3  ;;  %v8102_v42 = vpop.permute.xlu0 %8101  ;;  %vm20190_vm6 = vmmov %vm20189_vm0 }
 0x41f   : > { %14300 = vmatpush3.bf16.msra.mxu0 %v7610_v12  ;;  %8176 = vmatpush1.bf16.msra.mxu1 %v8133_v23  ;;  %v8100_v30 = vpop.permute.xlu1 %8099 }
 0x420   : > { %14301 = vmatprep.subr.bf16.mxu0 %v7628_v4  ;;  %9572 = vperm.xlu0 %14459, %v9558_v32   ;;  %v8136_v55 = vsel %vm20184_vm14, %v8100_v30, %v8102_v42  ;;  %vm20186_vm14 = vmmov %vm20182_vm3 }
 0x421   : > { %9577 = vperm.xlu1 %14458, %v9559_v50   ;;  %8177 = vmatprep.subr.bf16.mxu1 %v8143_v51  ;;  %v8135_v35 = vsel %vm20186_vm14, %v17307_v54, %v8100_v30  ;;  %vm20193_vm14 = vmmov %vm20189_vm0  ;;  %v17425_v51 = vld [vmem:[#allocation5] sm:$0xff] }
 0x422   : > { %7817 = vmatprep.mubr.bf16.mxu0 %v17210_v43  ;;  %7870 = vmatprep.mubr.bf16.mxu1 %v17210_v43  ;;  %v8120_v56 = vpop.permute.xlu0 %8119 }
 0x423   : > { %14302 = vmatpush3.bf16.msra.mxu0 %v7628_v4  ;;  %v8114_v21 = vpop.permute.xlu1 %8113  ;;  %v8144_v1 = vsel %vm20189_vm0, %v8118_v9, %v8120_v56 }
 0x424   : > { %v8142_v0 = vsel %vm20182_vm3, %v8114_v21, %v8116_v57  ;;  %8228 = vmatprep.subr.bf16.mxu0 %v8136_v55  ;;  %v5450_v55 = vadd.f32 %v17425_v51, %v16985_v10 }
 0x425   : > { %8178 = vmatpush1.bf16.msra.mxu1 %v8142_v0  ;;  %v5459_v0 = vadd.f32 %v17425_v51, %v16998_v14 }
 0x426   : > { %14005 = vmatmul.mubr.msk.bf16.gmra.mrb[8].mxu0 %vm5182_vm11, %v17318_v59  ;;  %14007 = vmatmul.mubr.msk.bf16.gmra.mrb[8].mxu1 %vm5182_vm11, %v17318_v59  ;;  %v8104_v33 = vpop.permute.xlu0 %8103 }
 0x427   : > { %v8122_v37 = vpop.permute.xlu1 %8121  ;;  %14303 = vmatprep.mubr.msk.bf16.mxu0 %vm5182_vm11, %v17294_v3  ;;  %8207 = vmatprep.mubr.bf16.mxu1 %v17210_v43  ;;  %v8137_v2 = vsel %vm20182_vm3, %v8102_v42, %v8104_v33  ;;  %vm20194_vm3 = vmmov %vm20189_vm0 }
 0x428   : > { %v8145_v3 = vsel %vm20187_vm2, %v8120_v56, %v8122_v37  ;;  %v5451_v56 = vadd.f32 %v17425_v51, %v16989_v24  ;;  %v5452_v24 = vadd.f32 %v17425_v51, %v17026_v44  ;;  %v5461_v44 = vadd.f32 %v17425_v51, %v17037_v63 }
 0x429   : > { %v5468_v63 = vadd.f32 %v17425_v51, %v17032_v6  ;;  %v5477_v6 = vadd.f32 %v17425_v51, %v17054_v29 }
 0x42a   : > { %v8124_v18 = vpop.permute.xlu0 %8123 }
 0x42b   : > { %v8106_v46 = vpop.permute.xlu1 %8105  ;;  %v8146_v40 = vsel %vm20190_vm6, %v8122_v37, %v8124_v18  ;;  %vm20192_vm6 = vmmov %vm20189_vm0 }
 0x42c   : > { %v8138_v13 = vsel %vm20185_vm4, %v8104_v33, %v8106_v46  ;;  %vm20188_vm4 = vmmov %vm20187_vm2 }
 0x42d   : > { %8281 = vmatprep.subr.bf16.mxu1 %v8138_v13  ;;  %vm20191_vm2 = vmmov %vm20189_vm0 }
 0x42e   : > { %14304 = vmatmul.mubr.msk.bf16.vlgmr.msra.gmra.mrb[12].mxu0 %vm5182_vm11, %v17318_v59  ;;  %14016 = vmatmul.mubr.msk.bf16.vlgmr.msra.gmra.mrb[12].mxu1 %vm5182_vm11, %v17372_v27  ;;  %v8108_v16 = vpop.permute.xlu0 %8107 }
 0x42f   : > { %8229 = vmatpush1.bf16.msra.mxu0 %v8135_v35  ;;  %8282 = vmatpush1.bf16.msra.mxu1 %v8137_v2  ;;  %v8126_v7 = vpop.permute.xlu1 %8125  ;;  %v8139_v41 = vsel %vm20189_vm0, %v8106_v46, %v8108_v16 }
 0x430   : > { %8230 = vmatprep.subr.bf16.mxu0 %v8145_v3  ;;  %v8147_v20 = vsel %vm20188_vm4, %v8124_v18, %v8126_v7  ;;  %8217 = vmatprep.mubr.bf16.mxu1 %v17210_v43  ;;  %vm20195_vm4 = vmmov %vm20189_vm0 }
 0x431   : > { %8283 = vmatprep.subr.bf16.mxu1 %v8147_v20  ;;  %8260 = vmatprep.mubr.bf16.mxu0 %v17210_v43 }
 0x432   : > { %v8112_v54 = vpop.permute.xlu0 %8111 }
 0x433   : > { %8231 = vmatpush1.bf16.msra.mxu0 %v8144_v1  ;;  %8284 = vmatpush1.bf16.msra.mxu1 %v8146_v40  ;;  %v8132_v26 = vpop.permute.xlu1 %8131  ;;  %v5462_v40 = vadd.f32 %v17425_v51, %v17044_v5 }
 0x436   : > { %14017 = vmatmul.mubr.msk.bf16.gmra.mrb[16].mxu1 %vm5182_vm11, %v17391_v45  ;;  %14018 = vmatmul.mubr.msk.bf16.vlgmr.msra.gmra.mrb[16].mxu0 %vm5182_vm11, %v17372_v27  ;;  %v8602_v52 = vpop.permute.xlu0 %8601 }
 0x437   : > { %v8604_v59 = vpop.permute.xlu1 %8603  ;;  %8270 = vmatprep.mubr.bf16.mxu0 %v17210_v43  ;;  %8313 = vmatprep.mubr.bf16.mxu1 %v17210_v43 }
 0x43a   : > { %v8128_v31 = vpop.permute.xlu0 %8127 }
 0x43b   : > { %v8110_v12 = vpop.permute.xlu1 %8109  ;;  %v8148_v38 = vsel %vm20195_vm4, %v8126_v7, %v8128_v31 }
 0x43c   : > { %v8140_v34 = vsel %vm20191_vm2, %v8108_v16, %v8110_v12  ;;  %v8141_v61 = vsel %vm20192_vm6, %v8110_v12, %v8112_v54  ;;  %vm20196_vm2 = vcmask 482304   ;;  %v5453_v16 = vadd.f32 %v17425_v51, %v17030_v48 }
 0x43d   : > { %8334 = vmatprep.subr.bf16.mxu0 %v8140_v34  ;;  %14307 = vmatprep.subr.bf16.mxu1 %v8141_v61  ;;  %v8640_v47 = vsel %vm20196_vm2, %v8602_v52, %v8604_v59  ;;  %vm20197_vm6 = vmmov %vm20196_vm2  ;;  %v5469_v12 = vadd.f32 %v17425_v51, %v17050_v17  ;;  %v5478_v17 = vadd.f32 %v17425_v51, %v17064_v60 }
 0x43e   : > { %14019 = vmatmul.mubr.msk.bf16.gmra.mrb[20].mxu0 %vm5182_vm11, %v17391_v45  ;;  %14020 = vmatmul.mubr.msk.bf16.vlgmr.msra.gmra.mrb[20].mxu1 %vm5182_vm11, %v17372_v27  ;;  %v8600_v4 = vpop.permute.xlu0 %8599  ;;  %vm20198_vm0 = vmmov %vm20196_vm2 }
 0x43f   : > { %8335 = vmatpush1.bf16.msra.mxu0 %v8139_v41  ;;  %14308 = vmatpush3.bf16.msra.mxu1 %v8141_v61  ;;  %v8130_v25 = vpop.permute.xlu1 %8129  ;;  %v8639_v23 = vsel %vm20198_vm0, %v8600_v4, %v8602_v52  ;;  %vm20201_vm4 = vmmov %vm20198_vm0  ;;  %v17479_v41 = vld [vmem:[%s20036_s3 + $0x70] sm:$0xff]  }
 0x440   : > { %v8149_v36 = vsel %vm20193_vm14, %v8128_v31, %v8130_v25  ;;  %v8150_v53 = vsel %vm20194_vm3, %v8130_v25, %v8132_v26  ;;  %8323 = vmatprep.mubr.bf16.mxu1 %v17210_v43  ;;  %8366 = vmatprep.mubr.bf16.mxu0 %v17210_v43  ;;  %vm20199_vm14 = vmmov %vm20198_vm0 }
 0x441   : > { %8336 = vmatprep.subr.bf16.mxu0 %v8149_v36  ;;  %14309 = vmatprep.subr.bf16.mxu1 %v8150_v53  ;;  %vm20200_vm3 = vmmov %vm20198_vm0 }
 0x442   : > { %v17411_v9 = vpop.permute.xlu0 %8607  ;;  %vm20202_vm2 = vmmov %vm20198_vm0 }
 0x443   : > { %8337 = vmatpush1.bf16.msra.mxu0 %v8148_v38  ;;  %14310 = vmatpush3.bf16.msra.mxu1 %v8150_v53  ;;  %v8606_v57 = vpop.permute.xlu1 %8605 }
 0x444   : > { %8681 = vmatprep.subr.bf16.mxu0 %v8640_v47  ;;  %v8642_v32 = vsel %vm20197_vm6, %v8606_v57, %v17411_v9  ;;  %vm20203_vm6 = vmmov %vm20198_vm0 }
 0x445   : > { %8734 = vmatprep.subr.bf16.mxu1 %v8642_v32 }
 0x446   : > { %14021 = vmatmul.mubr.msk.bf16.gmra.mrb[24].mxu1 %vm5182_vm11, %v17391_v45  ;;  %14022 = vmatmul.mubr.msk.bf16.vlgmr.msra.gmra.mrb[24].mxu0 %vm5182_vm11, %v17372_v27  ;;  %v8624_v50 = vpop.permute.xlu0 %8623 }
 0x447   : > { %8682 = vmatpush1.bf16.msra.mxu0 %v8639_v23  ;;  %v8622_v42 = vpop.permute.xlu1 %8621  ;;  %8376 = vmatprep.mubr.bf16.mxu0 %v17210_v43 }
 0x448   : > { %14311 = vmatprep.mubr.msk.bf16.mxu1 %vm5182_vm11, %v17372_v27  ;;  %v8649_v30 = vsel %vm20199_vm14, %v8622_v42, %v8624_v50  ;;  %v5719_v21 = vpop.f32.mrb[180].mxu0  ;;  %v5460_v27 = vadd.f32 %v17425_v51, %v17001_v11  ;;  %v8641_v11 = vsel %vm20201_vm4, %v8604_v59, %v8606_v57  ;;  %v5470_v57 = vadd.f32 %v17425_v51, %v17070_v49  ;;  %vm20204_vm14 = vmmov %vm20198_vm0 }
 0x449   : > { %8683 = vmatprep.subr.bf16.mxu0 %v8649_v30  ;;  %v17433_v37 = vadd.f32 %v5719_v21, %v5450_v55  ;;  %v5721_v18 = vpop.f32.mrb[181].mxu0  ;;  %v5479_v30 = vadd.f32 %v17425_v51, %v17084_v39  ;;  %v5480_v21 = vadd.f32 %v17425_v51, %v17086_v58  ;;  %v17525_v58 = vld [vmem:[%s20036_s3 + $0x78] sm:$0xff]   ;;  %vm20206_vm4 = vmmov %vm20198_vm0 }
 0x44a   : > { %v17438_v13 = vadd.f32 %v5721_v18, %v5451_v56  ;;  %v5723_v10 = vpop.f32.mrb[182].mxu0 }
 0x44b   : > { %v8620_v33 = vpop.permute.xlu1 %8619  ;;  %v17442_v2 = vadd.f32 %v5723_v10, %v5459_v0  ;;  %v5725_v14 = vpop.f32.mrb[183].mxu0 }
 0x44c   : > { %v8648_v46 = vsel %vm20200_vm3, %v8620_v33, %v8622_v42  ;;  %v8626_v35 = vpop.permute.xlu0 %8625  ;;  %v17451_v3 = vadd.f32 %v5725_v14, %v5460_v27  ;;  %v5455_v27 = vadd.f32 %v17425_v51, %v17095_v28  ;;  %vm20205_vm3 = vmmov %vm20198_vm0  ;;  %v5464_v28 = vadd.f32 %v17425_v51, %v17109_v22 }
 0x44d   : > { %8684 = vmatpush1.bf16.msra.mxu0 %v8648_v46  ;;  %v5772_v7 = vpop.f32.mrb[180].mxu1  ;;  %v8650_v5 = vsel %vm20203_vm6, %v8624_v50, %v8626_v35  ;;  %v5471_v50 = vadd.f32 %v17425_v51, %v17079_v19  ;;  %vm20208_vm6 = vmmov %vm20198_vm0 }
 0x44e   : > { %14023 = vmatmul.mubr.msk.bf16.gmra.mrb[28].mxu0 %vm5182_vm11, %v17391_v45  ;;  %14312 = vmatmul.mubr.msk.bf16.vlgmr.msra.gmra.mrb[28].mxu1 %vm5182_vm11, %v17391_v45  ;;  %v17457_v1 = vadd.f32 %v5772_v7, %v5452_v24  ;;  %v5774_v48 = vpop.f32.mrb[181].mxu1  ;;  %v5463_v24 = vadd.f32 %v17425_v51, %v17103_v8 }
 0x44f   : > { %8735 = vmatpush1.bf16.msra.mxu1 %v8641_v11  ;;  %v17455_v20 = vpop.permute.xlu1 %8627  ;;  %8713 = vmatprep.mubr.bf16.mxu0 %v17210_v43  ;;  %v17462_v45 = vadd.f32 %v5774_v48, %v5453_v16  ;;  %v5776_v26 = vpop.f32.mrb[182].mxu1 }
 0x450   : > { %v8651_v54 = vsel %vm20202_vm2, %v8626_v35, %v17455_v20  ;;  %8766 = vmatprep.mubr.bf16.mxu1 %v17210_v43  ;;  %v17469_v52 = vadd.f32 %v5776_v26, %v5461_v44  ;;  %v5778_v31 = vpop.f32.mrb[183].mxu1  ;;  %v5729_v61 = vpop.f32.mrb[184].mxu0  ;;  %vm20207_vm2 = vmmov %vm20198_vm0 }
 0x451   : > { %8736 = vmatprep.subr.bf16.mxu1 %v8651_v54  ;;  %v8610_v59 = vpop.permute.xlu0 %8609  ;;  %v17474_v34 = vadd.f32 %v5778_v31, %v5462_v40  ;;  %v17483_v25 = vadd.f32 %v5729_v61, %v5468_v63  ;;  %v5731_v36 = vpop.f32.mrb[185].mxu0  ;;  %v20209_v31 = vld [vmem:[#allocation15_spill] sm:$0xff] }
 0x452   : > { %v17487_v53 = vadd.f32 %v5731_v36, %v5469_v12  ;;  %v5733_v47 = vpop.f32.mrb[186].mxu0  ;;  %v8643_v60 = vsel %vm20204_vm14, %v17411_v9, %v8610_v59  ;;  %v5454_v9 = vadd.f32 %v17425_v51, %v17091_v15  ;;  %v5457_v12 = vadd.f32 %v17425_v51, %v20209_v31  ;;  %vm20212_vm14 = vmmov %vm20198_vm0  ;;  %v20220_v31 = vld [vmem:[#allocation23_spill] sm:$0xff] }
 0x453   : > { %8737 = vmatpush1.bf16.msra.mxu1 %v8650_v5  ;;  %v8612_v4 = vpop.permute.xlu1 %8611  ;;  %v17492_v32 = vadd.f32 %v5733_v47, %v5477_v6  ;;  %v5735_v23 = vpop.f32.mrb[187].mxu0  ;;  %v20210_v6 = vld [vmem:[#allocation16_spill] sm:$0xff] }
 0x454   : > { %v8644_v38 = vsel %vm20198_vm0, %v8610_v59, %v8612_v4  ;;  %v17502_v42 = vadd.f32 %v5735_v23, %v5478_v17  ;;  %v5456_v59 = vadd.f32 %v17425_v51, %v17114_v62  ;;  %v20211_v62 = vld [vmem:[#allocation17_spill] sm:$0xff] }
 0x455   : > { %8787 = vmatprep.subr.bf16.mxu0 %v8644_v38  ;;  %v8614_v29 = vpop.permute.xlu0 %8613  ;;  %v5782_v49 = vpop.f32.mrb[184].mxu1  ;;  %v5466_v38 = vadd.f32 %v17425_v51, %v20211_v62 }
 0x456   : > { %14032 = vmatmul.mubr.msk.bf16.vlgmr.msra.gmra.mrb[32].mxu0 %vm5182_vm11, %v17479_v41  ;;  %14034 = vmatmul.mubr.msk.bf16.vlgmr.msra.gmra.mrb[32].mxu1 %vm5182_vm11, %v17479_v41  ;;  %v17506_v56 = vadd.f32 %v5782_v49, %v5470_v57  ;;  %v5784_v19 = vpop.f32.mrb[185].mxu1  ;;  %v8645_v22 = vsel %vm20208_vm6, %v8612_v4, %v8614_v29  ;;  %v5465_v4 = vadd.f32 %v17425_v51, %v20210_v6 }
 0x457   : > { %8788 = vmatpush1.bf16.msra.mxu0 %v8643_v60  ;;  %v8632_v55 = vpop.permute.xlu1 %8631  ;;  %8723 = vmatprep.mubr.bf16.mxu0 %v17210_v43  ;;  %v17511_v0 = vadd.f32 %v5784_v19, %v5471_v50  ;;  %v5786_v33 = vpop.f32.mrb[186].mxu1  ;;  %v20213_v50 = vld [vmem:[#allocation18_spill] sm:$0xff] }
 0x458   : > { %8776 = vmatprep.mubr.bf16.mxu1 %v17210_v43  ;;  %v17516_v18 = vadd.f32 %v5786_v33, %v5479_v30  ;;  %v5788_v39 = vpop.f32.mrb[187].mxu1  ;;  %v5472_v60 = vadd.f32 %v17425_v51, %v20213_v50  ;;  %v20215_v33 = vld [vmem:[#allocation19_spill] sm:$0xff] }
 0x459   : > { %v17520_v10 = vadd.f32 %v5788_v39, %v5480_v21  ;;  %v5825_v35 = vpop.f32.mrb[188].mxu0 }
 0x45a   : > { %v8630_v46 = vpop.permute.xlu0 %8629  ;;  %v17529_v15 = vadd.f32 %v5825_v35, %v5454_v9  ;;  %v5827_v16 = vpop.f32.mrb[189].mxu0  ;;  %v5473_v9 = vadd.f32 %v17425_v51, %v20215_v33 }
 0x45b   : > { %v8616_v14 = vpop.permute.xlu1 %8615  ;;  %v8653_v11 = vsel %vm20205_vm3, %v8630_v46, %v8632_v55  ;;  %v17534_v7 = vadd.f32 %v5827_v16, %v5455_v27  ;;  %v5829_v48 = vpop.f32.mrb[190].mxu0  ;;  %v8652_v40 = vsel %vm20207_vm2, %v17455_v20, %v8630_v46  ;;  %vm20214_vm3 = vmmov %vm20198_vm0  ;;  %v20216_v46 = vld [vmem:[#allocation20_spill] sm:$0xff]  ;;  %v20217_v16 = vld [vmem:[#allocation22_spill] sm:$0xff] }
 0x45c   : > { %8789 = vmatprep.subr.bf16.mxu0 %v8653_v11  ;;  %v8646_v44 = vsel %vm20206_vm4, %v8614_v29, %v8616_v14  ;;  %v17539_v8 = vadd.f32 %v5829_v48, %v5463_v24  ;;  %v5831_v54 = vpop.f32.mrb[191].mxu0  ;;  %v5482_v11 = vadd.f32 %v17425_v51, %v20217_v16  ;;  %v20218_v48 = vld [vmem:[#allocation21_spill] sm:$0xff]  ;;  %vm20219_vm4 = vcmask 474112   ;;  %vm20221_vm2 = vmmov %vm20198_vm0 }
 0x45d   : > { %8840 = vmatprep.subr.bf16.mxu1 %v8646_v44  ;;  %8790 = vmatpush1.bf16.msra.mxu0 %v8652_v40  ;;  %v17546_v63 = vadd.f32 %v5831_v54, %v5464_v28  ;;  %v5474_v40 = vadd.f32 %v17425_v51, %v20218_v48  ;;  %vm20224_vm6 = vmmov %vm20219_vm4 }
 0x45e   : > { %14033 = vmatmul.mubr.msk.bf16.gmra.mrb[36].mxu0 %vm5182_vm11, %v17525_v58  ;;  %14035 = vmatmul.mubr.msk.bf16.gmra.mrb[36].mxu1 %vm5182_vm11, %v17525_v58  ;;  %v8634_v26 = vpop.permute.xlu0 %8633 }
 0x45f   : > { %8841 = vmatpush1.bf16.msra.mxu1 %v8645_v22  ;;  %v8636_v20 = vpop.permute.xlu1 %8635  ;;  %8819 = vmatprep.mubr.bf16.mxu0 %v17210_v43  ;;  %v8654_v29 = vsel %vm20212_vm14, %v8632_v55, %v8634_v26  ;;  %v5481_v55 = vadd.f32 %v17425_v51, %v20216_v46  ;;  %vm20226_vm14 = vmmov %vm20219_vm4 }
 0x460   : > { %v5878_v5 = vpop.f32.mrb[188].mxu1  ;;  %v8655_v61 = vsel %vm20198_vm0, %v8634_v26, %v8636_v20  ;;  %8872 = vmatprep.mubr.bf16.mxu1 %v17210_v43  ;;  %vm20225_vm0 = vcmask 523264  }
 0x461   : > { %v17557_v36 = vadd.f32 %v5878_v5, %v5456_v59  ;;  %v5880_v17 = vpop.f32.mrb[189].mxu1  ;;  %8842 = vmatprep.subr.bf16.mxu1 %v8655_v61 }
 0x462   : > { %v17561_v47 = vadd.f32 %v5880_v17, %v5457_v12  ;;  %v5882_v57 = vpop.f32.mrb[190].mxu1  ;;  %v8618_v23 = vpop.permute.xlu0 %8617  ;;  %v5475_v12 = vadd.f32 %v17425_v51, %v20220_v31 }
 0x463   : > { %v17566_v49 = vadd.f32 %v5882_v57, %v5465_v4  ;;  %8843 = vmatpush1.bf16.msra.mxu1 %v8654_v29  ;;  %v5884_v30 = vpop.f32.mrb[191].mxu1  ;;  %v9108_v19 = vpop.permute.xlu1 %9107  ;;  %v8647_v21 = vsel %vm20214_vm3, %v8616_v14, %v8618_v23  ;;  %v20222_v4 = vld [vmem:[#allocation24_spill] sm:$0xff]  ;;  %v20223_v57 = vld [vmem:[#allocation25_spill] sm:$0xff]  ;;  %vm20227_vm3 = vmmov %vm20225_vm0 }
 0x464   : > { %v17571_v39 = vadd.f32 %v5884_v30, %v5466_v38  ;;  %v5835_v27 = vpop.f32.mrb[192].mxu0  ;;  %14315 = vmatprep.subr.bf16.mxu0 %v8647_v21  ;;  %v5483_v17 = vadd.f32 %v17425_v51, %v20222_v4  ;;  %v5484_v29 = vadd.f32 %v17425_v51, %v20223_v57 }
 0x465   : > { %v17575_v35 = vadd.f32 %v5835_v27, %v5472_v60  ;;  %v5837_v24 = vpop.f32.mrb[193].mxu0  ;;  %v5548_v27 = vld [vmem:[#allocation4 + $0xd0] sm:$0xff] }
 0x466   : > { %v17579_v28 = vadd.f32 %v5837_v24, %v5473_v9  ;;  %14036 = vmatmul.mubr.msk.bf16.vlgmr.msra.gmra.mrb[40].mxu0 %vm5182_vm11, %v17479_v41  ;;  %14038 = vmatmul.mubr.msk.bf16.vlgmr.msra.gmra.mrb[40].mxu1 %vm5182_vm11, %v17479_v41  ;;  %v5839_v14 = vpop.f32.mrb[194].mxu0  ;;  %v17585_v44 = vpop.permute.xlu0 %9109  ;;  %v5530_v24 = vld [vmem:[#allocation4 + $0x40] sm:$0xff] }
 0x467   : > { %v17589_v54 = vadd.f32 %v5839_v14, %v5481_v55  ;;  %14316 = vmatpush3.bf16.msra.mxu0 %v8647_v21  ;;  %v5841_v22 = vpop.f32.mrb[195].mxu0  ;;  %v8638_v26 = vpop.permute.xlu1 %8637  ;;  %v9146_v59 = vsel %vm20219_vm4, %v9108_v19, %v17585_v44  ;;  %8829 = vmatprep.mubr.bf16.mxu0 %v17210_v43  ;;  %vm20228_vm4 = vmmov %vm20225_vm0 }
 0x468   : > { %v17596_v5 = vadd.f32 %v5841_v22, %v5482_v11  ;;  %v5888_v61 = vpop.f32.mrb[192].mxu1  ;;  %v8656_v6 = vsel %vm20221_vm2, %v8636_v20, %v8638_v26  ;;  %9187 = vmatprep.subr.bf16.mxu1 %v9146_v59  ;;  %8882 = vmatprep.mubr.bf16.mxu1 %v17210_v43  ;;  %v5557_v11 = vld [vmem:[#allocation4 + $0x118] sm:$0xff]  ;;  %vm20229_vm2 = vmmov %vm20225_vm0 }
 0x469   : > { %v17602_v62 = vadd.f32 %v5888_v61, %v5474_v40  ;;  %v5890_v38 = vpop.f32.mrb[193].mxu1  ;;  %14317 = vmatprep.subr.bf16.mxu0 %v8656_v6  ;;  %v5539_v40 = vld [vmem:[#allocation4 + $0x88] sm:$0xff] }
 0x46a   : > { %v17606_v23 = vadd.f32 %v5890_v38, %v5475_v12  ;;  %v5892_v50 = vpop.f32.mrb[194].mxu1  ;;  %v9106_v60 = vpop.permute.xlu0 %9105 }
 0x46b   : > { %v17608_v30 = vadd.f32 %v5892_v50, %v5483_v17  ;;  %14318 = vmatpush3.bf16.msra.mxu0 %v8656_v6  ;;  %v9145_v20 = vsel %vm20224_vm6, %v9106_v60, %v9108_v19  ;;  %v5894_v21 = vpop.f32.mrb[195].mxu1  ;;  %v9128_v33 = vpop.permute.xlu1 %9127 }
 0x46c   : > { %v17611_v9 = vadd.f32 %v5894_v21, %v5484_v29  ;;  %v14273_v46 = vpop.f32.mrb[196].mxu0  ;;  %9188 = vmatpush1.bf16.msra.mxu1 %v9145_v20 }
 0x46d   : > { %v5972_v55 = vadd.f32 %v14273_v46, %v5548_v27  ;;  %v5931_v16 = vpop.f32.mrb[197].mxu0 }
 0x46e   : > { %v5954_v51 = vadd.f32 %v5931_v16, %v5530_v24  ;;  %14037 = vmatmul.mubr.msk.bf16.gmra.mrb[44].mxu0 %vm5182_vm11, %v17525_v58  ;;  %14039 = vmatmul.mubr.msk.bf16.gmra.mrb[44].mxu1 %vm5182_vm11, %v17525_v58  ;;  %v14274_v14 = vpop.f32.mrb[198].mxu0  ;;  %v9130_v19 = vpop.permute.xlu0 %9129 }
 0x46f   : > { %6008 = vst.msk [vmem:[#allocation4 + $0xd0] sm:$0xff] %vm20225_vm0, %v5972_v55  ;;  %v5981_v48 = vadd.f32 %v14274_v14, %v5557_v11  ;;  %v5934_v22 = vpop.f32.mrb[199].mxu0  ;;  %v9112_v26 = vpop.permute.xlu1 %9111  ;;  %v9155_v59 = vsel %vm20226_vm14, %v9128_v33, %v9130_v19  ;;  %14319 = vmatprep.mubr.msk.bf16.mxu0 %vm5182_vm11, %v17479_v41  ;;  %9219 = vmatprep.mubr.bf16.mxu1 %v17210_v43  ;;  %vm20230_vm0 = vmmov %vm20224_vm6 }
 0x470   : > { %5990 = vst.msk [vmem:[#allocation4 + $0x40] sm:$0xff] %vm20227_vm3, %v5954_v51  ;;  %v5963_v31 = vadd.f32 %v5934_v22, %v5539_v40  ;;  %v6215_v12 = vpop.f32.mrb[196].mxu1  ;;  %9189 = vmatprep.subr.bf16.mxu1 %v9155_v59  ;;  %vm20231_vm14 = vmmov %vm20230_vm0 }
 0x471   : > { %6017 = vst.msk [vmem:[#allocation4 + $0x118] sm:$0xff] %vm20228_vm4, %v5981_v48  ;;  %v17625_v61 = vadd.f32 %v6215_v12, %v17433_v37  ;;  %v6217_v6 = vpop.f32.mrb[197].mxu1  ;;  %vm20232_vm3 = vmmov %vm20230_vm0 }
 0x472   : > { %5999 = vst.msk [vmem:[#allocation4 + $0x88] sm:$0xff] %vm20229_vm2, %v5963_v31  ;;  %v17629_v4 = vadd.f32 %v6217_v6, %v17438_v13  ;;  %v6219_v17 = vpop.f32.mrb[198].mxu1  ;;  %v9114_v41 = vpop.permute.xlu0 %9113  ;;  %v17642_v13 = vld [vmem:[%s20036_s3 + $0x80] sm:$0xff]   ;;  %vm20233_vm4 = vmmov %vm20230_vm0 }
 0x473   : > { %v17632_v38 = vadd.f32 %v6219_v17, %v17442_v2  ;;  %v6221_v57 = vpop.f32.mrb[199].mxu1  ;;  %v9126_v29 = vpop.permute.xlu1 %9125  ;;  %v9148_v50 = vsel %vm20224_vm6, %v9112_v26, %v9114_v41  ;;  %vm20234_vm2 = vmmov %vm20230_vm0 }
 0x474   : > { %v17636_v60 = vadd.f32 %v6221_v57, %v17451_v3  ;;  %v9154_v37 = vsel %vm20230_vm0, %v9126_v29, %v9128_v33  ;;  %v6268_v20 = vpop.f32.mrb[200].mxu0  ;;  %9240 = vmatprep.subr.bf16.mxu0 %v9148_v50  ;;  %v9147_v33 = vsel %vm20231_vm14, %v17585_v44, %v9112_v26  ;;  %vm20235_vm6 = vmmov %vm20230_vm0 }
 0x475   : > { %v17645_v21 = vadd.f32 %v6268_v20, %v17457_v1  ;;  %v6270_v2 = vpop.f32.mrb[201].mxu0  ;;  %9190 = vmatpush1.bf16.msra.mxu1 %v9154_v37  ;;  %vm20236_vm14 = vmmov %vm20230_vm0 }
 0x476   : > { %v17648_v27 = vadd.f32 %v6270_v2, %v17462_v45  ;;  %14320 = vmatmul.mubr.msk.bf16.vlgmr.msra.gmra.mrb[48].mxu0 %vm5182_vm11, %v17525_v58  ;;  %v6272_v3 = vpop.f32.mrb[202].mxu0  ;;  %v9132_v46 = vpop.permute.xlu0 %9131 }
 0x477   : > { %v17655_v55 = vadd.f32 %v6272_v3, %v17469_v52  ;;  %9241 = vmatpush1.bf16.msra.mxu0 %v9147_v33  ;;  %v6274_v24 = vpop.f32.mrb[203].mxu0  ;;  %v9134_v1 = vpop.permute.xlu1 %9133  ;;  %9272 = vmatprep.mubr.bf16.mxu0 %v17210_v43 }
 0x478   : > { %v17659_v16 = vadd.f32 %v6274_v24, %v17474_v34  ;;  %v6225_v45 = vpop.f32.mrb[200].mxu1  ;;  %14048 = vmatmul.mubr.msk.bf16.vlgmr.msra.gmra.mrb[48].mxu1 %vm5182_vm11, %v17642_v13  ;;  %v9157_v58 = vsel %vm20232_vm3, %v9132_v46, %v9134_v1  ;;  %v9156_v34 = vsel %vm20233_vm4, %v9130_v19, %v9132_v46  ;;  %vm20237_vm3 = vmmov %vm20230_vm0 }
 0x479   : > { %v17665_v44 = vadd.f32 %v6225_v45, %v17483_v25  ;;  %v6227_v51 = vpop.f32.mrb[201].mxu1  ;;  %9242 = vmatprep.subr.bf16.mxu0 %v9157_v58  ;;  %9229 = vmatprep.mubr.bf16.mxu1 %v17210_v43  ;;  %vm20238_vm4 = vmmov %vm20230_vm0 }
 0x47a   : > { %v17669_v52 = vadd.f32 %v6227_v51, %v17487_v53  ;;  %v6229_v11 = vpop.f32.mrb[202].mxu1  ;;  %v9116_v14 = vpop.permute.xlu0 %9115  ;;  %v17682_v53 = vld [vmem:[%s20036_s3 + $0x88] sm:$0xff]  }
 0x47b   : > { %v17673_v48 = vadd.f32 %v6229_v11, %v17492_v32  ;;  %9243 = vmatpush1.bf16.msra.mxu0 %v9156_v34  ;;  %v6231_v40 = vpop.f32.mrb[203].mxu1  ;;  %v9118_v22 = vpop.permute.xlu1 %9117  ;;  %v9149_v32 = vsel %vm20235_vm6, %v9114_v41, %v9116_v14  ;;  %v14501_v34 = vld [vmem:[#allocation3] sm:$0xff]  ;;  %vm20240_vm6 = vmmov %vm20230_vm0 }
 0x47c   : > { %v17676_v25 = vadd.f32 %v6231_v40, %v17502_v42  ;;  %v6278_v26 = vpop.f32.mrb[204].mxu0  ;;  %v9150_v59 = vsel %vm20234_vm2, %v9116_v14, %v9118_v22  ;;  %vm20239_vm2 = vmmov %vm20230_vm0 }
 0x47d   : > { %v17685_v19 = vadd.f32 %v6278_v26, %v17506_v56  ;;  %v6280_v31 = vpop.f32.mrb[205].mxu0  ;;  %9293 = vmatprep.subr.bf16.mxu1 %v9150_v59 }
 0x47e   : > { %v17689_v12 = vadd.f32 %v6280_v31, %v17511_v0  ;;  %14050 = vmatmul.mubr.msk.bf16.vlgmr.msra.gmra.mrb[52].mxu0 %vm5182_vm11, %v17642_v13  ;;  %v6282_v42 = vpop.f32.mrb[206].mxu0  ;;  %9294 = vmatpush1.bf16.msra.mxu1 %v9149_v32  ;;  %v9136_v6 = vpop.permute.xlu0 %9135 }
 0x47f   : > { %v17694_v17 = vadd.f32 %v6282_v42, %v17516_v18  ;;  %v6284_v57 = vpop.f32.mrb[207].mxu0  ;;  %v9138_v29 = vpop.permute.xlu1 %9137  ;;  %9282 = vmatprep.mubr.bf16.mxu0 %v17210_v43  ;;  %v9158_v18 = vsel %vm20236_vm14, %v9134_v1, %v9136_v6  ;;  %vm20241_vm14 = vmmov %vm20230_vm0 }
 0x480   : > { %v17698_v56 = vadd.f32 %v6284_v57, %v17520_v10  ;;  %v6321_v41 = vpop.f32.mrb[204].mxu1  ;;  %14049 = vmatmul.mubr.msk.bf16.gmra.mrb[52].mxu1 %vm5182_vm11, %v17682_v53  ;;  %v9159_v0 = vsel %vm20230_vm0, %v9136_v6, %v9138_v29 }
 0x481   : > { %v17704_v50 = vadd.f32 %v6321_v41, %v17529_v15  ;;  %v6323_v37 = vpop.f32.mrb[205].mxu1  ;;  %9295 = vmatprep.subr.bf16.mxu1 %v9159_v0  ;;  %9325 = vmatprep.mubr.bf16.mxu1 %v17210_v43 }
 0x482   : > { %v17709_v20 = vadd.f32 %v6323_v37, %v17534_v7  ;;  %v6325_v10 = vpop.f32.mrb[206].mxu1  ;;  %9296 = vmatpush1.bf16.msra.mxu1 %v9158_v18  ;;  %v9120_v2 = vpop.permute.xlu0 %9119  ;;  %v6026_v37 = vld [vmem:[#allocation4 + $0x40] sm:$0xff] }
 0x483   : > { %v17712_v3 = vadd.f32 %v6325_v10, %v17539_v8  ;;  %v6327_v33 = vpop.f32.mrb[207].mxu1  ;;  %v9122_v46 = vpop.permute.xlu1 %9121  ;;  %v9151_v7 = vsel %vm20238_vm4, %v9118_v22, %v9120_v2 }
 0x484   : > { %v17715_v15 = vadd.f32 %v6327_v33, %v17546_v63  ;;  %v9152_v24 = vsel %vm20237_vm3, %v9120_v2, %v9122_v46  ;;  %v6053_v33 = vld [vmem:[#allocation4 + $0x118] sm:$0xff]  ;;  %vm20242_vm3 = vcmask 523264  }
 0x485   : > { %9346 = vmatprep.subr.bf16.mxu0 %v9152_v24  ;;  %vm20243_vm4 = vmmov %vm20242_vm3 }
 0x486   : > { %14051 = vmatmul.mubr.msk.bf16.gmra.mrb[56].mxu0 %vm5182_vm11, %v17682_v53  ;;  %v9140_v1 = vpop.permute.xlu0 %9139 }
 0x487   : > { %9347 = vmatpush1.bf16.msra.mxu0 %v9151_v7  ;;  %v9142_v45 = vpop.permute.xlu1 %9141  ;;  %9378 = vmatprep.mubr.bf16.mxu0 %v17210_v43  ;;  %v9160_v26 = vsel %vm20240_vm6, %v9138_v29, %v9140_v1 }
 0x488   : > { %v6331_v8 = vpop.f32.mrb[208].mxu1  ;;  %14052 = vmatmul.mubr.msk.bf16.vlgmr.msra.gmra.mrb[56].mxu1 %vm5182_vm11, %v17642_v13  ;;  %v9161_v63 = vsel %vm20239_vm2, %v9140_v1, %v9142_v45  ;;  %vm20244_vm2 = vmmov %vm20242_vm3 }
 0x489   : > { %v17726_v58 = vadd.f32 %v6331_v8, %v17575_v35  ;;  %v6374_v51 = vpop.f32.mrb[208].mxu0  ;;  %v6333_v11 = vpop.f32.mrb[209].mxu1  ;;  %9348 = vmatprep.subr.bf16.mxu0 %v9161_v63  ;;  %9335 = vmatprep.mubr.bf16.mxu1 %v14501_v34  ;;  %vm20245_vm6 = vmmov %vm20244_vm2 }
 0x48a   : > { %v17729_v14 = vadd.f32 %v6374_v51, %v17557_v36  ;;  %v17732_v40 = vadd.f32 %v6333_v11, %v17579_v28  ;;  %v6376_v43 = vpop.f32.mrb[209].mxu0  ;;  %v6335_v22 = vpop.f32.mrb[210].mxu1 }
 0x48b   : > { %v17736_v59 = vadd.f32 %v6376_v43, %v17561_v47  ;;  %v17739_v35 = vadd.f32 %v6335_v22, %v17589_v54  ;;  %v6378_v31 = vpop.f32.mrb[210].mxu0  ;;  %9349 = vmatpush1.bf16.msra.mxu0 %v9160_v26  ;;  %v9124_v32 = vpop.permute.xlu0 %9123 }
 0x48c   : > { %v17742_v42 = vadd.f32 %v6378_v31, %v17566_v49  ;;  %v6337_v36 = vpop.f32.mrb[211].mxu1  ;;  %v6380_v6 = vpop.f32.mrb[211].mxu0  ;;  %v9153_v28 = vsel %vm20230_vm0, %v9122_v46, %v9124_v32  ;;  %v6044_v49 = vld [vmem:[#allocation4 + $0xd0] sm:$0xff]  ;;  %vm20246_vm0 = vmmov %vm20244_vm2 }
 0x48d   : > { %v17746_v57 = vadd.f32 %v6337_v36, %v17596_v5  ;;  %v17749_v29 = vadd.f32 %v6380_v6, %v17571_v39  ;;  %v9144_v47 = vpop.permute.xlu1 %9143  ;;  %14323 = vmatprep.subr.bf16.mxu1 %v9153_v28 }
 0x48e   : > { %14054 = vmatmul.mubr.msk.bf16.vlgmr.msra.gmra.mrb[60].mxu0 %vm5182_vm11, %v17642_v13  ;;  %14324 = vmatpush3.bf16.msra.mxu1 %v9153_v28  ;;  %v9162_v54 = vsel %vm20241_vm14, %v9142_v45, %v9144_v47  ;;  %v6035_v45 = vld [vmem:[#allocation4 + $0x88] sm:$0xff]  ;;  %vm20247_vm14 = vmmov %vm20246_vm0 }
 0x48f   : > { %14325 = vmatprep.subr.bf16.mxu1 %v9162_v54  ;;  %9388 = vmatprep.mubr.bf16.mxu0 %v14501_v34 }
 0x490   : > { %v14281_v41 = vpop.f32.mrb[212].mxu1  ;;  %14053 = vmatmul.mubr.msk.bf16.gmra.mrb[60].mxu1 %vm5182_vm11, %v17682_v53 }
 0x491   : > { %v6384_v5 = vpop.f32.mrb[212].mxu0  ;;  %v6468_v0 = vadd.f32 %v14281_v41, %v6044_v49  ;;  %v6427_v39 = vpop.f32.mrb[213].mxu1  ;;  %14327 = vmatprep.mubr.msk.bf16.mxu1 %vm5182_vm11, %v17642_v13 }
 0x492   : > { %v17759_v18 = vadd.f32 %v6384_v5, %v17602_v62  ;;  %v6386_v10 = vpop.f32.mrb[213].mxu0  ;;  %v6450_v2 = vadd.f32 %v6427_v39, %v6026_v37  ;;  %v14282_v46 = vpop.f32.mrb[214].mxu1  ;;  %14326 = vmatpush3.bf16.msra.mxu1 %v9162_v54 }
 0x493   : > { %6504 = vst.msk [vmem:[#allocation4 + $0xd0] sm:$0xff] %vm20242_vm3, %v6468_v0  ;;  %v17763_v24 = vadd.f32 %v6386_v10, %v17606_v23  ;;  %v6388_v7 = vpop.f32.mrb[214].mxu0  ;;  %v6477_v1 = vadd.f32 %v14282_v46, %v6053_v33  ;;  %v6430_v8 = vpop.f32.mrb[215].mxu1  ;;  %vm20248_vm3 = vmmov %vm20246_vm0 }
 0x494   : > { %6486 = vst.msk [vmem:[#allocation4 + $0x40] sm:$0xff] %vm20243_vm4, %v6450_v2  ;;  %v17767_v13 = vadd.f32 %v6388_v7, %v17608_v30  ;;  %v6390_v62 = vpop.f32.mrb[215].mxu0  ;;  %v6459_v63 = vadd.f32 %v6430_v8, %v6035_v45  ;;  %vm20249_vm4 = vmmov %vm20246_vm0 }
 0x495   : > { %6513 = vst.msk [vmem:[#allocation4 + $0x118] sm:$0xff] %vm20244_vm2, %v6477_v1  ;;  %v17771_v51 = vadd.f32 %v6390_v62, %v17611_v9  ;;  %vm20250_vm2 = vmmov %vm20246_vm0 }
 0x496   : > { %6495 = vst.msk [vmem:[#allocation4 + $0x88] sm:$0xff] %vm20245_vm6, %v6459_v63  ;;  %14055 = vmatmul.mubr.msk.bf16.gmra.mrb[64].mxu0 %vm5182_vm11, %v17682_v53  ;;  %vm20251_vm6 = vmmov %vm20246_vm0 }
 0x497   : > { %9904 = vmatprep.mubr.bf16.mxu0 %v14501_v34 }
 0x498   : > { %v6764_v23 = vpop.f32.mrb[216].mxu1  ;;  %14328 = vmatmul.mubr.msk.bf16.vlgmr.msra.gmra.mrb[64].mxu1 %vm5182_vm11, %v17682_v53 }
 0x499   : > { %v6711_v11 = vpop.f32.mrb[216].mxu0  ;;  %v17779_v30 = vadd.f32 %v6764_v23, %v17645_v21  ;;  %v6766_v43 = vpop.f32.mrb[217].mxu1  ;;  %9945 = vmatprep.mubr.bf16.mxu1 %v14501_v34 }
 0x49a   : > { %v17782_v22 = vadd.f32 %v6711_v11, %v17625_v61  ;;  %v6713_v9 = vpop.f32.mrb[217].mxu0  ;;  %v17785_v26 = vadd.f32 %v6766_v43, %v17648_v27  ;;  %v6768_v31 = vpop.f32.mrb[218].mxu1 }
 0x49b   : > { %v17788_v32 = vadd.f32 %v6713_v9, %v17629_v4  ;;  %v6715_v36 = vpop.f32.mrb[218].mxu0  ;;  %v17791_v53 = vadd.f32 %v6768_v31, %v17655_v55  ;;  %v6770_v6 = vpop.f32.mrb[219].mxu1 }
 0x49c   : > { %v17794_v21 = vadd.f32 %v6715_v36, %v17632_v38  ;;  %v6717_v34 = vpop.f32.mrb[219].mxu0  ;;  %v17797_v61 = vadd.f32 %v6770_v6, %v17659_v16 }
 0x49d   : > { %v17800_v28 = vadd.f32 %v6717_v34, %v17636_v60 }
 0x4a0   : > { %v6774_v27 = vpop.f32.mrb[220].mxu1 }
 0x4a1   : > { %v6721_v47 = vpop.f32.mrb[220].mxu0  ;;  %v17803_v4 = vadd.f32 %v6774_v27, %v17685_v19  ;;  %v6776_v49 = vpop.f32.mrb[221].mxu1 }
 0x4a2   : > { %v17806_v54 = vadd.f32 %v6721_v47, %v17665_v44  ;;  %v6723_v55 = vpop.f32.mrb[221].mxu0  ;;  %v17812_v41 = vadd.f32 %v6776_v49, %v17689_v12  ;;  %v6778_v5 = vpop.f32.mrb[222].mxu1 }
 0x4a3   : > { %v17809_v38 = vadd.f32 %v6723_v55, %v17669_v52  ;;  %v6725_v16 = vpop.f32.mrb[222].mxu0  ;;  %v17818_v0 = vadd.f32 %v6778_v5, %v17694_v17  ;;  %v6780_v37 = vpop.f32.mrb[223].mxu1 }
 0x4a4   : > { %v17815_v60 = vadd.f32 %v6725_v16, %v17673_v48  ;;  %v6727_v19 = vpop.f32.mrb[223].mxu0  ;;  %v17824_v39 = vadd.f32 %v6780_v37, %v17698_v56  ;;  %v6549_v16 = vld [vmem:[#allocation4 + $0x118] sm:$0xff]  ;;  %v6531_v37 = vld [vmem:[#allocation4 + $0x88] sm:$0xff] }
 0x4a5   : > { %v17821_v44 = vadd.f32 %v6727_v19, %v17676_v25 }
 0x4a9   : > { %v6817_v52 = vpop.f32.mrb[224].mxu0  ;;  %v6870_v10 = vpop.f32.mrb[224].mxu1 }
 0x4aa   : > { %v17827_v12 = vadd.f32 %v6817_v52, %v17704_v50  ;;  %v17830_v2 = vadd.f32 %v6870_v10, %v17729_v14  ;;  %v6819_v48 = vpop.f32.mrb[225].mxu0  ;;  %v6872_v33 = vpop.f32.mrb[225].mxu1 }
 0x4ab   : > { %v17833_v17 = vadd.f32 %v6819_v48, %v17709_v20  ;;  %v17836_v46 = vadd.f32 %v6872_v33, %v17736_v59  ;;  %v6821_v25 = vpop.f32.mrb[226].mxu0  ;;  %v6874_v7 = vpop.f32.mrb[226].mxu1 }
 0x4ac   : > { %v17839_v56 = vadd.f32 %v6821_v25, %v17712_v3  ;;  %v17842_v1 = vadd.f32 %v6874_v7, %v17742_v42  ;;  %v6823_v50 = vpop.f32.mrb[227].mxu0  ;;  %v6876_v45 = vpop.f32.mrb[227].mxu1 }
 0x4ad   : > { %v17845_v14 = vadd.f32 %v6823_v50, %v17715_v15  ;;  %v17848_v8 = vadd.f32 %v6876_v45, %v17749_v29 }
 0x4b1   : > { %v6827_v20 = vpop.f32.mrb[228].mxu0  ;;  %v6880_v62 = vpop.f32.mrb[228].mxu1 }
 0x4b2   : > { %v17851_v59 = vadd.f32 %v6827_v20, %v17726_v58  ;;  %v17854_v63 = vadd.f32 %v6880_v62, %v17759_v18  ;;  %v6829_v3 = vpop.f32.mrb[229].mxu0  ;;  %v6882_v23 = vpop.f32.mrb[229].mxu1 }
 0x4b3   : > { %v17857_v42 = vadd.f32 %v6829_v3, %v17732_v40  ;;  %v17860_v11 = vadd.f32 %v6882_v23, %v17763_v24  ;;  %v6831_v15 = vpop.f32.mrb[230].mxu0  ;;  %v6884_v43 = vpop.f32.mrb[230].mxu1  ;;  %v6540_v40 = vld [vmem:[#allocation4 + $0xd0] sm:$0xff] }
 0x4b4   : > { %v17863_v29 = vadd.f32 %v6831_v15, %v17739_v35  ;;  %v17866_v9 = vadd.f32 %v6884_v43, %v17767_v13  ;;  %v6833_v58 = vpop.f32.mrb[231].mxu0  ;;  %v6886_v31 = vpop.f32.mrb[231].mxu1  ;;  %v6522_v35 = vld [vmem:[#allocation4 + $0x40] sm:$0xff] }
 0x4b5   : > { %v17869_v18 = vadd.f32 %v6833_v58, %v17746_v57  ;;  %v17872_v36 = vadd.f32 %v6886_v31, %v17771_v51 }
 0x4b9   : > { %v14289_v6 = vpop.f32.mrb[232].mxu0  ;;  %v7207_v24 = vpop.f32.mrb[232].mxu1 }
 0x4ba   : > { %v6964_v34 = vadd.f32 %v14289_v6, %v6540_v40  ;;  %v17875_v27 = vadd.f32 %v7207_v24, %v17782_v22  ;;  %v6923_v47 = vpop.f32.mrb[233].mxu0  ;;  %v7209_v55 = vpop.f32.mrb[233].mxu1 }
 0x4bb   : > { %v6946_v13 = vadd.f32 %v6923_v47, %v6522_v35  ;;  %v17878_v49 = vadd.f32 %v7209_v55, %v17788_v32  ;;  %v14290_v57 = vpop.f32.mrb[234].mxu0  ;;  %v7211_v5 = vpop.f32.mrb[234].mxu1 }
 0x4bc   : > { %7000 = vst.msk [vmem:[#allocation4 + $0xd0] sm:$0xff] %vm20246_vm0, %v6964_v34  ;;  %v6973_v51 = vadd.f32 %v14290_v57, %v6549_v16  ;;  %v17882_v19 = vadd.f32 %v7211_v5, %v17794_v21  ;;  %v6926_v52 = vpop.f32.mrb[235].mxu0  ;;  %v7213_v22 = vpop.f32.mrb[235].mxu1 }
 0x4bd   : > { %6982 = vst.msk [vmem:[#allocation4 + $0x40] sm:$0xff] %vm20247_vm14, %v6946_v13  ;;  %v6955_v10 = vadd.f32 %v6926_v52, %v6531_v37  ;;  %v17886_v48 = vadd.f32 %v7213_v22, %v17800_v28  ;;  %vm20252_vm14 = vmmov %vm20246_vm0 }
 0x4be   : > { %7009 = vst.msk [vmem:[#allocation4 + $0x118] sm:$0xff] %vm20248_vm3, %v6973_v51  ;;  %vm20253_vm3 = vmmov %vm20246_vm0 }
 0x4bf   : > { %6991 = vst.msk [vmem:[#allocation4 + $0x88] sm:$0xff] %vm20249_vm4, %v6955_v10  ;;  %vm20254_vm4 = vmmov %vm20246_vm0 }
 0x4c1   : > { %v7217_v32 = vpop.f32.mrb[236].mxu1  ;;  %v7260_v33 = vpop.f32.mrb[236].mxu0 }
 0x4c2   : > { %v17891_v25 = vadd.f32 %v7217_v32, %v17806_v54  ;;  %v17894_v21 = vadd.f32 %v7260_v33, %v17779_v30  ;;  %v7219_v7 = vpop.f32.mrb[237].mxu1  ;;  %v7262_v50 = vpop.f32.mrb[237].mxu0 }
 0x4c3   : > { %v17897_v45 = vadd.f32 %v7219_v7, %v17809_v38  ;;  %v17900_v28 = vadd.f32 %v7262_v50, %v17785_v26  ;;  %v7221_v20 = vpop.f32.mrb[238].mxu1  ;;  %v7264_v62 = vpop.f32.mrb[238].mxu0  ;;  %v7036_v22 = vld [vmem:[#allocation4 + $0xd0] sm:$0xff] }
 0x4c4   : > { %v17903_v3 = vadd.f32 %v7221_v20, %v17815_v60  ;;  %v17906_v23 = vadd.f32 %v7264_v62, %v17791_v53  ;;  %v7223_v54 = vpop.f32.mrb[239].mxu1  ;;  %v7266_v15 = vpop.f32.mrb[239].mxu0  ;;  %v7018_v33 = vld [vmem:[#allocation4 + $0x40] sm:$0xff] }
 0x4c5   : > { %v17909_v30 = vadd.f32 %v7223_v54, %v17821_v44  ;;  %v17912_v43 = vadd.f32 %v7266_v15, %v17797_v61 }
 0x4c9   : > { %v7270_v38 = vpop.f32.mrb[240].mxu0  ;;  %v7313_v58 = vpop.f32.mrb[240].mxu1 }
 0x4ca   : > { %v17915_v26 = vadd.f32 %v7270_v38, %v17803_v4  ;;  %v17918_v31 = vadd.f32 %v7313_v58, %v17827_v12  ;;  %v7272_v60 = vpop.f32.mrb[241].mxu0  ;;  %v7315_v40 = vpop.f32.mrb[241].mxu1 }
 0x4cb   : > { %v17921_v53 = vadd.f32 %v7272_v60, %v17812_v41  ;;  %v17924_v6 = vadd.f32 %v7315_v40, %v17833_v17  ;;  %v7274_v44 = vpop.f32.mrb[242].mxu0  ;;  %v7317_v24 = vpop.f32.mrb[242].mxu1 }
 0x4cc   : > { %v17927_v61 = vadd.f32 %v7274_v44, %v17818_v0  ;;  %v17930_v34 = vadd.f32 %v7317_v24, %v17839_v56  ;;  %v7276_v4 = vpop.f32.mrb[243].mxu0  ;;  %v7319_v35 = vpop.f32.mrb[243].mxu1 }
 0x4cd   : > { %v17933_v12 = vadd.f32 %v7276_v4, %v17824_v39  ;;  %v17936_v47 = vadd.f32 %v7319_v35, %v17845_v14 }
 0x4d1   : > { %v7323_v41 = vpop.f32.mrb[244].mxu1  ;;  %v7366_v55 = vpop.f32.mrb[244].mxu0 }
 0x4d2   : > { %v17939_v17 = vadd.f32 %v7323_v41, %v17851_v59  ;;  %v17942_v13 = vadd.f32 %v7366_v55, %v17830_v2  ;;  %v7325_v0 = vpop.f32.mrb[245].mxu1  ;;  %v7368_v16 = vpop.f32.mrb[245].mxu0 }
 0x4d3   : > { %v17945_v56 = vadd.f32 %v7325_v0, %v17857_v42  ;;  %v17948_v57 = vadd.f32 %v7368_v16, %v17836_v46  ;;  %v7327_v39 = vpop.f32.mrb[246].mxu1  ;;  %v7370_v5 = vpop.f32.mrb[246].mxu0 }
 0x4d4   : > { %v17951_v14 = vadd.f32 %v7327_v39, %v17863_v29  ;;  %v17954_v51 = vadd.f32 %v7370_v5, %v17842_v1  ;;  %v7329_v59 = vpop.f32.mrb[247].mxu1  ;;  %v7372_v37 = vpop.f32.mrb[247].mxu0 }
 0x4d5   : > { %v17957_v2 = vadd.f32 %v7329_v59, %v17869_v18  ;;  %v17960_v52 = vadd.f32 %v7372_v37, %v17848_v8  ;;  %v7045_v18 = vld [vmem:[#allocation4 + $0x118] sm:$0xff] }
 0x4d9   : > { %v7376_v42 = vpop.f32.mrb[248].mxu0  ;;  %v14297_v46 = vpop.f32.mrb[248].mxu1 }
 0x4da   : > { %v17963_v10 = vadd.f32 %v7376_v42, %v17854_v63  ;;  %v7460_v32 = vadd.f32 %v14297_v46, %v7036_v22  ;;  %v7378_v29 = vpop.f32.mrb[249].mxu0  ;;  %v7419_v7 = vpop.f32.mrb[249].mxu1  ;;  %v7027_v63 = vld [vmem:[#allocation4 + $0x88] sm:$0xff] }
 0x4db   : > { %v17966_v1 = vadd.f32 %v7378_v29, %v17860_v11  ;;  %v7442_v50 = vadd.f32 %v7419_v7, %v7018_v33  ;;  %v7380_v20 = vpop.f32.mrb[250].mxu0  ;;  %v14298_v62 = vpop.f32.mrb[250].mxu1 }
 0x4dc   : > { %7496 = vst.msk [vmem:[#allocation4 + $0xd0] sm:$0xff] %vm20250_vm2, %v7460_v32  ;;  %v17970_v8 = vadd.f32 %v7380_v20, %v17866_v9  ;;  %v7469_v54 = vadd.f32 %v14298_v62, %v7045_v18  ;;  %v7382_v15 = vpop.f32.mrb[251].mxu0  ;;  %v7422_v38 = vpop.f32.mrb[251].mxu1  ;;  %vm20255_vm2 = vmmov %vm20246_vm0 }
 0x4dd   : > { %7478 = vst.msk [vmem:[#allocation4 + $0x40] sm:$0xff] %vm20251_vm6, %v7442_v50  ;;  %v17974_v58 = vadd.f32 %v7382_v15, %v17872_v36  ;;  %v7451_v11 = vadd.f32 %v7422_v38, %v7027_v63  ;;  %vm20256_vm6 = vmmov %vm20246_vm0 }
 0x4de   : > { %7505 = vst.msk [vmem:[#allocation4 + $0x118] sm:$0xff] %vm20246_vm0, %v7469_v54 }
 0x4df   : > { %7487 = vst.msk [vmem:[#allocation4 + $0x88] sm:$0xff] %vm20252_vm14, %v7451_v11  ;;  %vm20257_vm14 = vmmov %vm20246_vm0 }
 0x4e1   : > { %v7703_v60 = vpop.f32.mrb[252].mxu0  ;;  %v7756_v40 = vpop.f32.mrb[252].mxu1 }
 0x4e2   : > { %v17979_v44 = vadd.f32 %v7703_v60, %v17875_v27  ;;  %v17982_v9 = vadd.f32 %v7756_v40, %v17894_v21  ;;  %v7705_v24 = vpop.f32.mrb[253].mxu0  ;;  %v7758_v4 = vpop.f32.mrb[253].mxu1 }
 0x4e3   : > { %v17985_v35 = vadd.f32 %v7705_v24, %v17878_v49  ;;  %v17988_v36 = vadd.f32 %v7758_v4, %v17900_v28  ;;  %v7707_v41 = vpop.f32.mrb[254].mxu0  ;;  %v7760_v55 = vpop.f32.mrb[254].mxu1 }
 0x4e4   : > { %v17991_v0 = vadd.f32 %v7707_v41, %v17882_v19  ;;  %v17994_v16 = vadd.f32 %v7760_v55, %v17906_v23  ;;  %v7709_v27 = vpop.f32.mrb[255].mxu0  ;;  %v7762_v39 = vpop.f32.mrb[255].mxu1 }
 0x4e5   : > { %v17997_v21 = vadd.f32 %v7709_v27, %v17886_v48  ;;  %v18000_v5 = vadd.f32 %v7762_v39, %v17912_v43 }
 0x4e9   : > { %v7713_v49 = vpop.f32.mrb[0].mxu0  ;;  %v7766_v59 = vpop.f32.mrb[0].mxu1 }
 0x4ea   : > { %v18003_v28 = vadd.f32 %v7713_v49, %v17891_v25  ;;  %v18006_v37 = vadd.f32 %v7766_v59, %v17915_v26  ;;  %v7715_v19 = vpop.f32.mrb[1].mxu0  ;;  %v7768_v42 = vpop.f32.mrb[1].mxu1 }
 0x4eb   : > { %v18009_v23 = vadd.f32 %v7715_v19, %v17897_v45  ;;  %v18012_v22 = vadd.f32 %v7768_v42, %v17921_v53  ;;  %v7717_v48 = vpop.f32.mrb[2].mxu0  ;;  %v7770_v46 = vpop.f32.mrb[2].mxu1 }
 0x4ec   : > { %v18015_v43 = vadd.f32 %v7717_v48, %v17903_v3  ;;  %v18018_v32 = vadd.f32 %v7770_v46, %v17927_v61  ;;  %v7719_v25 = vpop.f32.mrb[3].mxu0  ;;  %v7772_v29 = vpop.f32.mrb[3].mxu1  ;;  %v7541_v48 = vld [vmem:[#allocation4 + $0x118] sm:$0xff] }
 0x4ed   : > { %v18021_v26 = vadd.f32 %v7719_v25, %v17909_v30  ;;  %v18024_v33 = vadd.f32 %v7772_v29, %v17933_v12  ;;  %v7523_v29 = vld [vmem:[#allocation4 + $0x88] sm:$0xff] }
 0x4f1   : > { %v7809_v45 = vpop.f32.mrb[4].mxu0  ;;  %v7862_v7 = vpop.f32.mrb[4].mxu1 }
 0x4f2   : > { %v18027_v53 = vadd.f32 %v7809_v45, %v17918_v31  ;;  %v18030_v50 = vadd.f32 %v7862_v7, %v17942_v13  ;;  %v7811_v3 = vpop.f32.mrb[5].mxu0  ;;  %v7864_v20 = vpop.f32.mrb[5].mxu1 }
 0x4f3   : > { %v18033_v61 = vadd.f32 %v7811_v3, %v17924_v6  ;;  %v18036_v18 = vadd.f32 %v7864_v20, %v17948_v57  ;;  %v7813_v30 = vpop.f32.mrb[6].mxu0  ;;  %v7866_v62 = vpop.f32.mrb[6].mxu1 }
 0x4f4   : > { %v18039_v12 = vadd.f32 %v7813_v30, %v17930_v34  ;;  %v18042_v54 = vadd.f32 %v7866_v62, %v17954_v51  ;;  %v7815_v31 = vpop.f32.mrb[7].mxu0  ;;  %v7868_v15 = vpop.f32.mrb[7].mxu1 }
 0x4f5   : > { %v18045_v13 = vadd.f32 %v7815_v31, %v17936_v47  ;;  %v18048_v63 = vadd.f32 %v7868_v15, %v17960_v52 }
 0x4f9   : > { %v7819_v6 = vpop.f32.mrb[8].mxu0  ;;  %v7872_v38 = vpop.f32.mrb[8].mxu1 }
 0x4fa   : > { %v18051_v57 = vadd.f32 %v7819_v6, %v17939_v17  ;;  %v18054_v11 = vadd.f32 %v7872_v38, %v17963_v10  ;;  %v7821_v34 = vpop.f32.mrb[9].mxu0  ;;  %v7874_v60 = vpop.f32.mrb[9].mxu1 }
 0x4fb   : > { %v18057_v51 = vadd.f32 %v7821_v34, %v17945_v56  ;;  %v18060_v40 = vadd.f32 %v7874_v60, %v17966_v1  ;;  %v7823_v47 = vpop.f32.mrb[10].mxu0  ;;  %v7876_v24 = vpop.f32.mrb[10].mxu1  ;;  %v7532_v56 = vld [vmem:[#allocation4 + $0xd0] sm:$0xff] }
 0x4fc   : > { %v18063_v52 = vadd.f32 %v7823_v47, %v17951_v14  ;;  %v18066_v4 = vadd.f32 %v7876_v24, %v17970_v8  ;;  %v7825_v17 = vpop.f32.mrb[11].mxu0  ;;  %v7878_v41 = vpop.f32.mrb[11].mxu1  ;;  %v7514_v14 = vld [vmem:[#allocation4 + $0x40] sm:$0xff] }
 0x4fd   : > { %v18069_v10 = vadd.f32 %v7825_v17, %v17957_v2  ;;  %v18072_v55 = vadd.f32 %v7878_v41, %v17974_v58 }
 0x501   : > { %v14305_v27 = vpop.f32.mrb[12].mxu0  ;;  %v8209_v1 = vpop.f32.mrb[12].mxu1 }
 0x502   : > { %v7956_v39 = vadd.f32 %v14305_v27, %v7532_v56  ;;  %v18075_v49 = vadd.f32 %v8209_v1, %v17979_v44  ;;  %v7915_v59 = vpop.f32.mrb[13].mxu0  ;;  %v8211_v19 = vpop.f32.mrb[13].mxu1 }
 0x503   : > { %v7938_v8 = vadd.f32 %v7915_v59, %v7514_v14  ;;  %v18078_v42 = vadd.f32 %v8211_v19, %v17985_v35  ;;  %v14306_v2 = vpop.f32.mrb[14].mxu0  ;;  %v8213_v46 = vpop.f32.mrb[14].mxu1 }
 0x504   : > { %7992 = vst.msk [vmem:[#allocation4 + $0xd0] sm:$0xff] %vm20253_vm3, %v7956_v39  ;;  %v7965_v58 = vadd.f32 %v14306_v2, %v7541_v48  ;;  %v18082_v25 = vadd.f32 %v8213_v46, %v17991_v0  ;;  %v7918_v45 = vpop.f32.mrb[15].mxu0  ;;  %v8215_v44 = vpop.f32.mrb[15].mxu1  ;;  %vm20258_vm3 = vmmov %vm20246_vm0 }
 0x505   : > { %7974 = vst.msk [vmem:[#allocation4 + $0x40] sm:$0xff] %vm20254_vm4, %v7938_v8  ;;  %v7947_v7 = vadd.f32 %v7918_v45, %v7523_v29  ;;  %v18086_v3 = vadd.f32 %v8215_v44, %v17997_v21  ;;  %vm20259_vm4 = vmmov %vm20246_vm0 }
 0x506   : > { %8001 = vst.msk [vmem:[#allocation4 + $0x118] sm:$0xff] %vm20255_vm2, %v7965_v58  ;;  %vm20260_vm2 = vmmov %vm20246_vm0 }
 0x507   : > { %7983 = vst.msk [vmem:[#allocation4 + $0x88] sm:$0xff] %vm20256_vm6, %v7947_v7  ;;  %vm20261_vm6 = vmmov %vm20246_vm0 }
 0x509   : > { %v8219_v35 = vpop.f32.mrb[16].mxu1  ;;  %v8262_v20 = vpop.f32.mrb[16].mxu0 }
 0x50a   : > { %v18091_v30 = vadd.f32 %v8219_v35, %v18003_v28  ;;  %v18094_v0 = vadd.f32 %v8262_v20, %v17982_v9  ;;  %v8221_v62 = vpop.f32.mrb[17].mxu1  ;;  %v8264_v31 = vpop.f32.mrb[17].mxu0 }
 0x50b   : > { %v18097_v15 = vadd.f32 %v8221_v62, %v18009_v23  ;;  %v18100_v21 = vadd.f32 %v8264_v31, %v17988_v36  ;;  %v8223_v6 = vpop.f32.mrb[18].mxu1  ;;  %v8266_v38 = vpop.f32.mrb[18].mxu0  ;;  %v8028_v44 = vld [vmem:[#allocation4 + $0xd0] sm:$0xff] }
 0x50c   : > { %v18103_v34 = vadd.f32 %v8223_v6, %v18015_v43  ;;  %v18106_v60 = vadd.f32 %v8266_v38, %v17994_v16  ;;  %v8225_v28 = vpop.f32.mrb[19].mxu1  ;;  %v8268_v47 = vpop.f32.mrb[19].mxu0  ;;  %v8010_v20 = vld [vmem:[#allocation4 + $0x40] sm:$0xff] }
 0x50d   : > { %v18109_v9 = vadd.f32 %v8225_v28, %v18021_v26  ;;  %v18112_v24 = vadd.f32 %v8268_v47, %v18000_v5 }
 0x511   : > { %v8272_v23 = vpop.f32.mrb[20].mxu0  ;;  %v8315_v17 = vpop.f32.mrb[20].mxu1 }
 0x512   : > { %v18115_v36 = vadd.f32 %v8272_v23, %v18006_v37  ;;  %v18118_v41 = vadd.f32 %v8315_v17, %v18027_v53  ;;  %v8274_v43 = vpop.f32.mrb[21].mxu0  ;;  %v8317_v56 = vpop.f32.mrb[21].mxu1 }
 0x513   : > { %v18121_v16 = vadd.f32 %v8274_v43, %v18012_v22  ;;  %v18124_v27 = vadd.f32 %v8317_v56, %v18033_v61  ;;  %v8276_v26 = vpop.f32.mrb[22].mxu0  ;;  %v8319_v1 = vpop.f32.mrb[22].mxu1 }
 0x514   : > { %v18127_v5 = vadd.f32 %v8276_v26, %v18018_v32  ;;  %v18130_v39 = vadd.f32 %v8319_v1, %v18039_v12  ;;  %v8278_v37 = vpop.f32.mrb[23].mxu0  ;;  %v8321_v14 = vpop.f32.mrb[23].mxu1 }
 0x515   : > { %v18133_v53 = vadd.f32 %v8278_v37, %v18024_v33  ;;  %v18136_v59 = vadd.f32 %v8321_v14, %v18045_v13 }
 0x519   : > { %v8325_v22 = vpop.f32.mrb[24].mxu1  ;;  %v8368_v19 = vpop.f32.mrb[24].mxu0 }
 0x51a   : > { %v18139_v61 = vadd.f32 %v8325_v22, %v18051_v57  ;;  %v18142_v8 = vadd.f32 %v8368_v19, %v18030_v50  ;;  %v8327_v32 = vpop.f32.mrb[25].mxu1  ;;  %v8370_v48 = vpop.f32.mrb[25].mxu0 }
 0x51b   : > { %v18145_v12 = vadd.f32 %v8327_v32, %v18057_v51  ;;  %v18148_v2 = vadd.f32 %v8370_v48, %v18036_v18  ;;  %v8329_v33 = vpop.f32.mrb[26].mxu1  ;;  %v8372_v46 = vpop.f32.mrb[26].mxu0 }
 0x51c   : > { %v18151_v13 = vadd.f32 %v8329_v33, %v18063_v52  ;;  %v18154_v58 = vadd.f32 %v8372_v46, %v18042_v54  ;;  %v8331_v57 = vpop.f32.mrb[27].mxu1  ;;  %v8374_v29 = vpop.f32.mrb[27].mxu0 }
 0x51d   : > { %v18157_v50 = vadd.f32 %v8331_v57, %v18069_v10  ;;  %v18160_v45 = vadd.f32 %v8374_v29, %v18048_v63  ;;  %v8037_v10 = vld [vmem:[#allocation4 + $0x118] sm:$0xff] }
 0x521   : > { %v8378_v51 = vpop.f32.mrb[28].mxu0  ;;  %v14313_v18 = vpop.f32.mrb[28].mxu1 }
 0x522   : > { %v18163_v7 = vadd.f32 %v8378_v51, %v18054_v11  ;;  %v8462_v35 = vadd.f32 %v14313_v18, %v8028_v44  ;;  %v8380_v52 = vpop.f32.mrb[29].mxu0  ;;  %v8421_v62 = vpop.f32.mrb[29].mxu1  ;;  %v8019_v11 = vld [vmem:[#allocation4 + $0x88] sm:$0xff] }
 0x523   : > { %v18166_v54 = vadd.f32 %v8380_v52, %v18060_v40  ;;  %v8444_v31 = vadd.f32 %v8421_v62, %v8010_v20  ;;  %v8382_v6 = vpop.f32.mrb[30].mxu0  ;;  %v14314_v38 = vpop.f32.mrb[30].mxu1 }
 0x524   : > { %8498 = vst.msk [vmem:[#allocation4 + $0xd0] sm:$0xff] %vm20246_vm0, %v8462_v35  ;;  %v18170_v63 = vadd.f32 %v8382_v6, %v18066_v4  ;;  %v8471_v28 = vadd.f32 %v14314_v38, %v8037_v10  ;;  %v8384_v47 = vpop.f32.mrb[31].mxu0  ;;  %v8424_v23 = vpop.f32.mrb[31].mxu1 }
 0x525   : > { %8480 = vst.msk [vmem:[#allocation4 + $0x40] sm:$0xff] %vm20257_vm14, %v8444_v31  ;;  %v18174_v17 = vadd.f32 %v8384_v47, %v18072_v55  ;;  %v8453_v40 = vadd.f32 %v8424_v23, %v8019_v11  ;;  %vm20262_vm14 = vmmov %vm20246_vm0 }
 0x526   : > { %8507 = vst.msk [vmem:[#allocation4 + $0x118] sm:$0xff] %vm20258_vm3, %v8471_v28  ;;  %vm20271_vm3 = vmmov %vm20246_vm0 }
 0x527   : > { %8489 = vst.msk [vmem:[#allocation4 + $0x88] sm:$0xff] %vm20259_vm4, %v8453_v40  ;;  %vm20272_vm4 = vmmov %vm20246_vm0 }
 0x529   : > { %v8715_v43 = vpop.f32.mrb[32].mxu0  ;;  %v8768_v56 = vpop.f32.mrb[32].mxu1 }
 0x52a   : > { %v18179_v26 = vadd.f32 %v8715_v43, %v18075_v49  ;;  %v18182_v4 = vadd.f32 %v8768_v56, %v18094_v0  ;;  %v8717_v1 = vpop.f32.mrb[33].mxu0  ;;  %v8770_v37 = vpop.f32.mrb[33].mxu1 }
 0x52b   : > { %v18185_v14 = vadd.f32 %v8717_v1, %v18078_v42  ;;  %v18188_v55 = vadd.f32 %v8770_v37, %v18100_v21  ;;  %v8719_v22 = vpop.f32.mrb[34].mxu0  ;;  %v8772_v19 = vpop.f32.mrb[34].mxu1 }
 0x52c   : > { %v18191_v32 = vadd.f32 %v8719_v22, %v18082_v25  ;;  %v18194_v48 = vadd.f32 %v8772_v19, %v18106_v60  ;;  %v8721_v49 = vpop.f32.mrb[35].mxu0  ;;  %v8774_v33 = vpop.f32.mrb[35].mxu1 }
 0x52d   : > { %v18197_v0 = vadd.f32 %v8721_v49, %v18086_v3  ;;  %v18200_v46 = vadd.f32 %v8774_v33, %v18112_v24  ;;  %v8516_v33 = vld [vmem:[#allocation4 + $0x40] sm:$0xff] }
 0x531   : > { %v8725_v42 = vpop.f32.mrb[36].mxu0  ;;  %v8778_v57 = vpop.f32.mrb[36].mxu1 }
 0x532   : > { %v18203_v21 = vadd.f32 %v8725_v42, %v18091_v30  ;;  %v18206_v29 = vadd.f32 %v8778_v57, %v18115_v36  ;;  %v8727_v25 = vpop.f32.mrb[37].mxu0  ;;  %v8780_v51 = vpop.f32.mrb[37].mxu1 }
 0x533   : > { %v18209_v60 = vadd.f32 %v8727_v25, %v18097_v15  ;;  %v18212_v44 = vadd.f32 %v8780_v51, %v18121_v16  ;;  %v8729_v3 = vpop.f32.mrb[38].mxu0  ;;  %v8782_v18 = vpop.f32.mrb[38].mxu1  ;;  %v8543_v25 = vld [vmem:[#allocation4 + $0x118] sm:$0xff] }
 0x534   : > { %v18215_v24 = vadd.f32 %v8729_v3, %v18103_v34  ;;  %v18218_v35 = vadd.f32 %v8782_v18, %v18127_v5  ;;  %v8731_v30 = vpop.f32.mrb[39].mxu0  ;;  %v8784_v52 = vpop.f32.mrb[39].mxu1  ;;  %v8525_v3 = vld [vmem:[#allocation4 + $0x88] sm:$0xff] }
 0x535   : > { %v18221_v36 = vadd.f32 %v8731_v30, %v18109_v9  ;;  %v18224_v20 = vadd.f32 %v8784_v52, %v18133_v53  ;;  %v18276_v52 = vpop.permute.xlu0 %9562 }
 0x539   : > { %v8821_v15 = vpop.f32.mrb[40].mxu0  ;;  %v8874_v62 = vpop.f32.mrb[40].mxu1 }
 0x53a   : > { %v18227_v16 = vadd.f32 %v8821_v15, %v18118_v41  ;;  %v18230_v31 = vadd.f32 %v8874_v62, %v18142_v8  ;;  %v8823_v34 = vpop.f32.mrb[41].mxu0  ;;  %v8876_v6 = vpop.f32.mrb[41].mxu1 }
 0x53b   : > { %v18233_v5 = vadd.f32 %v8823_v34, %v18124_v27  ;;  %v18236_v10 = vadd.f32 %v8876_v6, %v18148_v2  ;;  %v8825_v9 = vpop.f32.mrb[42].mxu0  ;;  %v8878_v38 = vpop.f32.mrb[42].mxu1 }
 0x53c   : > { %v18239_v53 = vadd.f32 %v8825_v9, %v18130_v39  ;;  %v18242_v28 = vadd.f32 %v8878_v38, %v18154_v58  ;;  %v8827_v41 = vpop.f32.mrb[43].mxu0  ;;  %v8880_v47 = vpop.f32.mrb[43].mxu1 }
 0x53d   : > { %v18245_v8 = vadd.f32 %v8827_v41, %v18136_v59  ;;  %v18248_v11 = vadd.f32 %v8880_v47, %v18160_v45  ;;  %v18283_v38 = vpop.permute.xlu1 %9567 }
 0x541   : > { %v8831_v27 = vpop.f32.mrb[44].mxu0  ;;  %v8884_v23 = vpop.f32.mrb[44].mxu1 }
 0x542   : > { %v18251_v2 = vadd.f32 %v8831_v27, %v18139_v61  ;;  %v18254_v40 = vadd.f32 %v8884_v23, %v18163_v7  ;;  %v8833_v39 = vpop.f32.mrb[45].mxu0  ;;  %v8886_v43 = vpop.f32.mrb[45].mxu1 }
 0x543   : > { %v18257_v58 = vadd.f32 %v8833_v39, %v18145_v12  ;;  %v18260_v56 = vadd.f32 %v8886_v43, %v18166_v54  ;;  %v8835_v59 = vpop.f32.mrb[46].mxu0  ;;  %v8888_v1 = vpop.f32.mrb[46].mxu1  ;;  %v8534_v12 = vld [vmem:[#allocation4 + $0xd0] sm:$0xff] }
 0x544   : > { %v18263_v45 = vadd.f32 %v8835_v59, %v18151_v13  ;;  %v18266_v37 = vadd.f32 %v8888_v1, %v18170_v63  ;;  %v8837_v61 = vpop.f32.mrb[47].mxu0  ;;  %v8890_v22 = vpop.f32.mrb[47].mxu1 }
 0x545   : > { %v18269_v7 = vadd.f32 %v8837_v61, %v18157_v50  ;;  %v18272_v19 = vadd.f32 %v8890_v22, %v18174_v17 }
 0x549   : > { %v14321_v49 = vpop.f32.mrb[48].mxu0 }
 0x54a   : > { %v8968_v54 = vadd.f32 %v14321_v49, %v8534_v12  ;;  %v8927_v42 = vpop.f32.mrb[49].mxu0 }
 0x54b   : > { %v8950_v57 = vadd.f32 %v8927_v42, %v8516_v33  ;;  %v14322_v13 = vpop.f32.mrb[50].mxu0  ;;  %v9221_v51 = vpop.f32.mrb[48].mxu1 }
 0x54c   : > { %9004 = vst.msk [vmem:[#allocation4 + $0xd0] sm:$0xff] %vm20260_vm2, %v8968_v54  ;;  %v8977_v63 = vadd.f32 %v14322_v13, %v8543_v25  ;;  %v8930_v18 = vpop.f32.mrb[51].mxu0  ;;  %v9448_v50 = vadd.f32 %v9221_v51, %v18179_v26  ;;  %v9223_v30 = vpop.f32.mrb[49].mxu1  ;;  %vm20273_vm2 = vmmov %vm20246_vm0 }
 0x54d   : > { %8986 = vst.msk [vmem:[#allocation4 + $0x40] sm:$0xff] %vm20261_vm6, %v8950_v57  ;;  %v8959_v17 = vadd.f32 %v8930_v18, %v8525_v3  ;;  %v9449_v15 = vadd.f32 %v9223_v30, %v18185_v14  ;;  %v9225_v62 = vpop.f32.mrb[50].mxu1  ;;  %v18305_v30 = vpop.permute.xlu0 %9572  ;;  %vm20274_vm6 = vmmov %vm20246_vm0 }
 0x54e   : > { %9013 = vst.msk [vmem:[#allocation4 + $0x118] sm:$0xff] %vm20246_vm0, %v8977_v63  ;;  %v9457_v34 = vadd.f32 %v9225_v62, %v18191_v32  ;;  %v9227_v6 = vpop.f32.mrb[51].mxu1  ;;  %v9580_v9 = vadd.f32 %v18276_v52, %v9448_v50 }
 0x54f   : > { %8995 = vst.msk [vmem:[#allocation4 + $0x88] sm:$0xff] %vm20262_vm14, %v8959_v17  ;;  %v9458_v26 = vadd.f32 %v9227_v6, %v18197_v0  ;;  %v9581_v41 = vadd.f32 %v18276_v52, %v9449_v15  ;;  %vm20276_vm14 = vcmask 1047832  }
 0x550   : > { %v9589_v47 = vadd.f32 %v18283_v38, %v9457_v34  ;;  %v9636_v27 = vmax.f32 %v9580_v9, 0.0  ;;  %v18309_v34 = vpop.permute.xlu1 %9577 }
 0x551   : > { %v9274_v14 = vpop.f32.mrb[52].mxu0  ;;  %v9590_v23 = vadd.f32 %v18283_v38, %v9458_v26  ;;  %v9637_v39 = vmax.f32 %v9581_v41, 0.0 }
 0x552   : > { %v9450_v32 = vadd.f32 %v9274_v14, %v18182_v4  ;;  %v9276_v43 = vpop.f32.mrb[53].mxu0  ;;  %v9645_v59 = vmax.f32 %v9589_v47, 0.0  ;;  %v9672_v0 = vsel %vm16145_vm15, %v9636_v27, 0.0 }
 0x553   : > { %v9451_v1 = vadd.f32 %v9276_v43, %v18188_v55  ;;  %v9278_v61 = vpop.f32.mrb[54].mxu0  ;;  %v9231_v22 = vpop.f32.mrb[52].mxu1  ;;  %v9646_v49 = vmax.f32 %v9590_v23, 0.0  ;;  %v9673_v33 = vsel %vm16154_vm10, %v9637_v39, 0.0 }
 0x554   : > { %v9459_v42 = vadd.f32 %v9278_v61, %v18194_v48  ;;  %v9466_v57 = vadd.f32 %v9231_v22, %v18203_v21  ;;  %v9280_v25 = vpop.f32.mrb[55].mxu0  ;;  %v9233_v13 = vpop.f32.mrb[53].mxu1  ;;  %v9681_v4 = vsel %vm16145_vm15, %v9645_v59, 0.0  ;;  %v9582_v55 = vadd.f32 %v18276_v52, %v9450_v32 }
 0x555   : > { %v9460_v51 = vadd.f32 %v9280_v25, %v18200_v46  ;;  %v9467_v63 = vadd.f32 %v9233_v13, %v18209_v60  ;;  %v9235_v3 = vpop.f32.mrb[54].mxu1  ;;  %v9708_v18 = vpack.c.bf16 %v9681_v4, %v9672_v0  ;;  %v9682_v50 = vsel %vm16154_vm10, %v9646_v49, 0.0 }
 0x556   : > { %v9475_v48 = vadd.f32 %v9235_v3, %v18215_v24  ;;  %v9237_v21 = vpop.f32.mrb[55].mxu1  ;;  %v9709_v17 = vpack.c.bf16 %v9682_v50, %v9673_v33  ;;  %v9591_v15 = vadd.f32 %v18283_v38, %v9459_v42  ;;  %v9638_v62 = vmax.f32 %v9582_v55, 0.0 }
 0x557   : > { %v9476_v46 = vadd.f32 %v9237_v21, %v18221_v36  ;;  %9744 = vrot.lane.b32.xlu0 %v9708_v18, %s14523_s12  ;;  %v9598_v60 = vadd.f32 %v18305_v30, %v9466_v57  ;;  %v9583_v6 = vadd.f32 %v18276_v52, %v9451_v1  ;;  %v9592_v9 = vadd.f32 %v18283_v38, %v9460_v51 }
 0x558   : > { %9746 = vrot.lane.b32.xlu1 %v9709_v17, %s14523_s12  ;;  %v9647_v24 = vmax.f32 %v9591_v15, 0.0  ;;  %v9674_v41 = vsel %vm16209_vm5, %v9638_v62, 0.0  ;;  %v9607_v47 = vadd.f32 %v18309_v34, %v9475_v48  ;;  %v9599_v27 = vadd.f32 %v18305_v30, %v9467_v63 }
 0x559   : > { %v9284_v14 = vpop.f32.mrb[56].mxu0  ;;  %v9654_v36 = vmax.f32 %v9598_v60, 0.0  ;;  %v9639_v23 = vmax.f32 %v9583_v6, 0.0  ;;  %v9648_v39 = vmax.f32 %v9592_v9, 0.0  ;;  %v9608_v32 = vadd.f32 %v18309_v34, %v9476_v46 }
 0x55a   : > { %v9468_v43 = vadd.f32 %v9284_v14, %v18206_v29  ;;  %v9286_v59 = vpop.f32.mrb[57].mxu0  ;;  %v9683_v1 = vsel %vm16209_vm5, %v9647_v24, 0.0  ;;  %v9663_v61 = vmax.f32 %v9607_v47, 0.0  ;;  %v9655_v22 = vmax.f32 %v9599_v27, 0.0 }
 0x55b   : > { %v9469_v0 = vadd.f32 %v9286_v59, %v18212_v44  ;;  %v9288_v49 = vpop.f32.mrb[58].mxu0  ;;  %v9327_v33 = vpop.f32.mrb[56].mxu1  ;;  %v9710_v42 = vpack.c.bf16 %v9683_v1, %v9674_v41  ;;  %v9690_v57 = vsel %vm16145_vm15, %v9654_v36, 0.0  ;;  %v9675_v13 = vsel %vm16233_vm1, %v9639_v23, 0.0 }
 0x55c   : > { %v9477_v4 = vadd.f32 %v9288_v49, %v18218_v35  ;;  %v9290_v29 = vpop.f32.mrb[59].mxu0  ;;  %v9452_v55 = vadd.f32 %v9327_v33, %v18227_v16  ;;  %v9329_v51 = vpop.f32.mrb[57].mxu1  ;;  %v9699_v63 = vsel %vm16145_vm15, %v9663_v61, 0.0  ;;  %v9684_v44 = vsel %vm16233_vm1, %v9648_v39, 0.0 }
 0x55d   : > { %v9478_v3 = vadd.f32 %v9290_v29, %v18224_v20  ;;  %v9453_v18 = vadd.f32 %v9329_v51, %v18233_v5  ;;  %v9331_v50 = vpop.f32.mrb[58].mxu1  ;;  %9748 = vrot.lane.b32.xlu0 %v9710_v42, %s14523_s12  ;;  %v9717_v48 = vpack.c.bf16 %v9699_v63, %v9690_v57  ;;  %v9711_v21 = vpack.c.bf16 %v9684_v44, %v9675_v13 }
 0x55e   : > { %v9461_v35 = vadd.f32 %v9331_v50, %v18239_v53  ;;  %v9333_v17 = vpop.f32.mrb[59].mxu1  ;;  %v9664_v16 = vmax.f32 %v9608_v32, 0.0  ;;  %v9691_v15 = vsel %vm16154_vm10, %v9655_v22, 0.0  ;;  %v9600_v62 = vadd.f32 %v18305_v30, %v9468_v43 }
 0x55f   : > { %v9462_v46 = vadd.f32 %v9333_v17, %v18245_v8  ;;  %9762 = vrot.lane.b32.xlu1 %v9717_v48, %s14523_s12  ;;  %v9609_v20 = vadd.f32 %v18309_v34, %v9477_v4  ;;  %v9601_v5 = vadd.f32 %v18305_v30, %v9469_v0  ;;  %v9610_v60 = vadd.f32 %v18309_v34, %v9478_v3 }
 0x560   : > { %v9700_v53 = vsel %vm16154_vm10, %v9664_v16, 0.0  ;;  %v9656_v6 = vmax.f32 %v9600_v62, 0.0  ;;  %v9584_v9 = vadd.f32 %v18276_v52, %v9452_v55  ;;  %v9593_v24 = vadd.f32 %v18283_v38, %v9461_v35 }
 0x561   : > { %v9380_v41 = vpop.f32.mrb[60].mxu0  ;;  %9750 = vrot.lane.b32.xlu0 %v9711_v21, %s14523_s12  ;;  %v9718_v8 = vpack.c.bf16 %v9700_v53, %v9691_v15  ;;  %v9665_v47 = vmax.f32 %v9609_v20, 0.0  ;;  %v9657_v27 = vmax.f32 %v9601_v5, 0.0  ;;  %v9666_v14 = vmax.f32 %v9610_v60, 0.0 }
 0x562   : > { %v9454_v36 = vadd.f32 %v9380_v41, %v18230_v31  ;;  %v9382_v23 = vpop.f32.mrb[61].mxu0  ;;  %v9692_v39 = vsel %vm16209_vm5, %v9656_v6, 0.0  ;;  %v9640_v32 = vmax.f32 %v9584_v9, 0.0  ;;  %v9649_v43 = vmax.f32 %v9593_v24, 0.0 }
 0x563   : > { %v9455_v59 = vadd.f32 %v9382_v23, %v18236_v10  ;;  %v9384_v1 = vpop.f32.mrb[62].mxu0  ;;  %v9337_v61 = vpop.f32.mrb[60].mxu1  ;;  %v9701_v22 = vsel %vm16209_vm5, %v9665_v47, 0.0  ;;  %v9693_v0 = vsel %vm16233_vm1, %v9657_v27, 0.0  ;;  %v9702_v49 = vsel %vm16233_vm1, %v9666_v14, 0.0  ;;  %v9040_v47 = vld [vmem:[#allocation4 + $0xd0] sm:$0xff] }
 0x564   : > { %v9463_v31 = vadd.f32 %v9384_v1, %v18242_v28  ;;  %v9470_v33 = vadd.f32 %v9337_v61, %v18251_v2  ;;  %v9386_v42 = vpop.f32.mrb[63].mxu0  ;;  %v9339_v57 = vpop.f32.mrb[61].mxu1  ;;  %v9719_v13 = vpack.c.bf16 %v9701_v22, %v9692_v39  ;;  %v9720_v4 = vpack.c.bf16 %v9702_v49, %v9693_v0 }
 0x565   : > { %v9464_v10 = vadd.f32 %v9386_v42, %v18248_v11  ;;  %v9471_v29 = vadd.f32 %v9339_v57, %v18257_v58  ;;  %v9341_v55 = vpop.f32.mrb[62].mxu1  ;;  %9764 = vrot.lane.b32.xlu0 %v9718_v8, %s14523_s12  ;;  %v9676_v63 = vsel %vm16290_vm7, %v9640_v32, 0.0  ;;  %v9685_v44 = vsel %vm16290_vm7, %v9649_v43, 0.0 }
 0x566   : > { %v9479_v28 = vadd.f32 %v9341_v55, %v18263_v45  ;;  %v9343_v2 = vpop.f32.mrb[63].mxu1  ;;  %9766 = vrot.lane.b32.xlu1 %v9719_v13, %s14523_s12  ;;  %v9712_v3 = vpack.c.bf16 %v9685_v44, %v9676_v63  ;;  %v9585_v50 = vadd.f32 %v18276_v52, %v9453_v18  ;;  %v9594_v11 = vadd.f32 %v18283_v38, %v9462_v46  ;;  %v9031_v13 = vld [vmem:[#allocation4 + $0x88] sm:$0xff] }
 0x567   : > { %v9480_v58 = vadd.f32 %v9343_v2, %v18269_v7  ;;  %v9586_v48 = vadd.f32 %v18276_v52, %v9454_v36  ;;  %v9595_v21 = vadd.f32 %v18283_v38, %v9463_v31  ;;  %v9587_v35 = vadd.f32 %v18276_v52, %v9455_v59  ;;  %v9022_v59 = vld [vmem:[#allocation4 + $0x40] sm:$0xff]  ;;  %v9049_v31 = vld [vmem:[#allocation4 + $0x118] sm:$0xff] }
 0x568   : > { %v9641_v17 = vmax.f32 %v9585_v50, 0.0  ;;  %v9650_v16 = vmax.f32 %v9594_v11, 0.0  ;;  %v9596_v45 = vadd.f32 %v18283_v38, %v9464_v10  ;;  %v9602_v15 = vadd.f32 %v18305_v30, %v9470_v33 }
 0x569   : > { %v9390_v62 = vpop.f32.mrb[64].mxu0  ;;  %9768 = vrot.lane.b32.xlu0 %v9720_v4, %s14523_s12  ;;  %v9642_v18 = vmax.f32 %v9586_v48, 0.0  ;;  %v9651_v20 = vmax.f32 %v9595_v21, 0.0  ;;  %v9643_v46 = vmax.f32 %v9587_v35, 0.0  ;;  %v9611_v7 = vadd.f32 %v18309_v34, %v9479_v28 }
 0x56a   : > { %v9472_v5 = vadd.f32 %v9390_v62, %v18254_v40  ;;  %v9392_v60 = vpop.f32.mrb[65].mxu0  ;;  %9752 = vrot.lane.b32.xlu1 %v9712_v3, %s14523_s12  ;;  %v9677_v6 = vsel %vm16328_vm8, %v9641_v17, 0.0  ;;  %v9686_v9 = vsel %vm16328_vm8, %v9650_v16, 0.0  ;;  %v9652_v24 = vmax.f32 %v9596_v45, 0.0 }
 0x56b   : > { %v9473_v41 = vadd.f32 %v9392_v60, %v18260_v56  ;;  %v9394_v8 = vpop.f32.mrb[66].mxu0  ;;  %v14329_v27 = vpop.f32.mrb[64].mxu1  ;;  %v9713_v14 = vpack.c.bf16 %v9686_v9, %v9677_v6  ;;  %v9678_v23 = vsel %vm16352_vm9, %v9642_v18, 0.0  ;;  %v9687_v40 = vsel %vm16352_vm9, %v9651_v20, 0.0 }
 0x56c   : > { %v9481_v39 = vadd.f32 %v9394_v8, %v18266_v37  ;;  %v9396_v32 = vpop.f32.mrb[67].mxu0  ;;  %v9474_v43 = vadd.f32 %v14329_v27, %v9040_v47  ;;  %v9433_v1 = vpop.f32.mrb[65].mxu1  ;;  %v9714_v61 = vpack.c.bf16 %v9687_v40, %v9678_v23  ;;  %v9679_v56 = vsel %vm16375_vm13, %v9643_v46, 0.0  ;;  %v18434_v47 = vld [vmem:[#allocation5] sm:$0xff] }
 0x56d   : > { %v9482_v0 = vadd.f32 %v9396_v32, %v18272_v19  ;;  %v9456_v49 = vadd.f32 %v9433_v1, %v9022_v59  ;;  %v14330_v33 = vpop.f32.mrb[66].mxu1  ;;  %9754 = vrot.lane.b32.xlu0 %v9713_v14, %s14523_s12  ;;  %v9688_v42 = vsel %vm16375_vm13, %v9652_v24, 0.0  ;;  %v9658_v57 = vmax.f32 %v9602_v15, 0.0 }
 0x56e   : > { %9510 = vst.msk [vmem:[#allocation4 + $0xd0] sm:$0xff] %vm20271_vm3, %v9474_v43  ;;  %v9483_v37 = vadd.f32 %v14330_v33, %v9049_v31  ;;  %v9436_v4 = vpop.f32.mrb[67].mxu1  ;;  %9756 = vrot.lane.b32.xlu1 %v9714_v61, %s14523_s12  ;;  %v9715_v10 = vpack.c.bf16 %v9688_v42, %v9679_v56  ;;  %v9667_v55 = vmax.f32 %v9611_v7, 0.0  ;;  %v9603_v19 = vadd.f32 %v18305_v30, %v9471_v29 }
 0x56f   : > { %9492 = vst.msk [vmem:[#allocation4 + $0x40] sm:$0xff] %vm20272_vm4, %v9456_v49  ;;  %v9465_v63 = vadd.f32 %v9436_v4, %v9031_v13  ;;  %v9694_v44 = vsel %vm16290_vm7, %v9658_v57, 0.0  ;;  %v9612_v28 = vadd.f32 %v18309_v34, %v9480_v58  ;;  %v9604_v2 = vadd.f32 %v18305_v30, %v9472_v5 }
 0x570   : > { %9519 = vst.msk [vmem:[#allocation4 + $0x118] sm:$0xff] %vm20273_vm2, %v9483_v37  ;;  %v9703_v3 = vsel %vm16290_vm7, %v9667_v55, 0.0  ;;  %v9659_v50 = vmax.f32 %v9603_v19, 0.0  ;;  %v9613_v11 = vadd.f32 %v18309_v34, %v9481_v39  ;;  %v9605_v29 = vadd.f32 %v18305_v30, %v9473_v41  ;;  %vm20279_vm2 = vmmov %vm20276_vm14 }
 0x571   : > { %9501 = vst.msk [vmem:[#allocation4 + $0x88] sm:$0xff] %vm20274_vm6, %v9465_v63  ;;  %9758 = vrot.lane.b32.xlu0 %v9715_v10, %s14523_s12  ;;  %v9721_v48 = vpack.c.bf16 %v9703_v3, %v9694_v44  ;;  %v9668_v21 = vmax.f32 %v9612_v28, 0.0  ;;  %v9660_v35 = vmax.f32 %v9604_v2, 0.0  ;;  %v9614_v58 = vadd.f32 %v18309_v34, %v9482_v0 }
 0x572   : > { %v9669_v17 = vmax.f32 %v9613_v11, 0.0  ;;  %v9661_v16 = vmax.f32 %v9605_v29, 0.0  ;;  %v9695_v45 = vsel %vm16328_vm8, %v9659_v50, 0.0  ;;  %vm20277_vm3 = vcmask 285696   ;;  %v18497_v50 = vld [vmem:[%s20038_s5] sm:$0xf] }
 0x573   : > { %9770 = vrot.lane.b32.xlu1 %v9721_v48, %s14523_s12  ;;  %v9704_v15 = vsel %vm16328_vm8, %v9668_v21, 0.0  ;;  %v9670_v62 = vmax.f32 %v9614_v58, 0.0  ;;  %v9696_v20 = vsel %vm16352_vm9, %v9660_v35, 0.0  ;;  %vm20278_vm4 = vmmov %vm20277_vm3  ;;  %v18513_v35 = vld [vmem:[#allocation3 + $0x40] sm:$0xff] }
 0x574   : > { %v9722_v18 = vpack.c.bf16 %v9704_v15, %v9695_v45  ;;  %v9705_v46 = vsel %vm16352_vm9, %v9669_v17, 0.0  ;;  %v9697_v5 = vsel %vm16375_vm13, %v9661_v16, 0.0  ;;  %vm20280_vm6 = vmmov %vm20277_vm3 }
 0x575   : > { %v9723_v7 = vpack.c.bf16 %v9705_v46, %v9696_v20  ;;  %v9706_v60 = vsel %vm16375_vm13, %v9670_v62, 0.0  ;;  %v9546_v6 = vld [vmem:[#allocation4 + $0xd0] sm:$0xff] }
 0x576   : > { %9772 = vrot.lane.b32.xlu0 %v9722_v18, %s14523_s12  ;;  %v9724_v9 = vpack.c.bf16 %v9706_v60, %v9697_v5  ;;  %v9606_v24 = vadd.f32 %v18305_v30, %v9546_v6  ;;  %v9528_v41 = vld [vmem:[#allocation4 + $0x40] sm:$0xff] }
 0x577   : > { %9774 = vrot.lane.b32.xlu1 %v9723_v7, %s14523_s12  ;;  %v9555_v8 = vld [vmem:[#allocation4 + $0x118] sm:$0xff]  ;;  %9840 = vst.msk [vmem:[#allocation4 + $0x40] sm:$0xff] %vm20246_vm0, %v18434_v47  ;;  %v9588_v40 = vadd.f32 %v18276_v52, %v9528_v41  ;;  %vm20281_vm0 = vmmov %vm20277_vm3 }
 0x578   : > { %v9615_v27 = vadd.f32 %v18309_v34, %v9555_v8  ;;  %v9662_v14 = vmax.f32 %v9606_v24, 0.0  ;;  %v9537_v23 = vld [vmem:[#allocation4 + $0x88] sm:$0xff] }
 0x579   : > { %v9597_v39 = vadd.f32 %v18283_v38, %v9537_v23  ;;  %v9644_v61 = vmax.f32 %v9588_v40, 0.0 }
 0x57a   : > { %9776 = vrot.lane.b32.xlu0 %v9724_v9, %s14523_s12  ;;  %v9671_v30 = vmax.f32 %v9615_v27, 0.0  ;;  %v9698_v59 = vsel %vm16464_vm12, %v9662_v14, 0.0 }
 0x57b   : > { %v9653_v32 = vmax.f32 %v9597_v39, 0.0  ;;  %v9680_v52 = vsel %vm16464_vm12, %v9644_v61, 0.0 }
 0x57c   : > { %v9707_v1 = vsel %vm16464_vm12, %v9671_v30, 0.0 }
 0x57d   : > { %v9725_v56 = vpack.c.bf16 %v9707_v1, %v9698_v59  ;;  %v9689_v34 = vsel %vm16464_vm12, %v9653_v32, 0.0 }
 0x57e   : > { %v9716_v38 = vpack.c.bf16 %v9689_v34, %v9680_v52 }
 0x57f   : > { %9778 = vrot.lane.b32.xlu1 %v9725_v56, %s14523_s12 }
 0x583   : > { %9760 = vrot.lane.b32.xlu1 %v9716_v38, %s14523_s12 }
 0x5c9   : > { %v9745_v0 = vpop.permute.xlu0 %9744 }
 0x5ca   : > { %9814 = vst.msk [vmem:[#allocation3] sm:$0xff] %vm20276_vm14, %v9745_v0  ;;  %v9747_v49 = vpop.permute.xlu1 %9746  ;;  %vm20282_vm14 = vmmov %vm20281_vm0 }
 0x5cb   : > { %v18454_v31 = vsel %vm20277_vm3, %v9745_v0, %v9747_v49  ;;  %vm20283_vm3 = vmmov %vm20281_vm0 }
 0x5cc   : > { %9872 = vmatprep.subr.bf16.mxu0 %v18454_v31 }
 0x5cf   : > { %v9749_v33 = vpop.permute.xlu0 %9748 }
 0x5d0   : > { %v18458_v42 = vsel %vm20278_vm4, %v9747_v49, %v9749_v33  ;;  %vm20284_vm4 = vmmov %vm20281_vm0 }
 0x5d1   : > { %v9763_v57 = vpop.permute.xlu1 %9762  ;;  %v18460_v37 = vld [vmem:[#allocation3] sm:$0xff]  ;;  %10145 = vrot.lane.b32.xlu1 %v18458_v42, %s14514_s11 }
 0x5d2   : > { %9823 = vst.msk [vmem:[#allocation3 + $0x50] sm:$0xff] %vm20279_vm2, %v9763_v57  ;;  %10141 = vrot.lane.b32.xlu0 %v18460_v37, %s14514_s11  ;;  %9873 = vmatpush1.bf16.msra.mxu0 %v18460_v37  ;;  %vm20285_vm2 = vmmov %vm20281_vm0 }
 0x5d3   : > { %v9751_v13 = vpop.permute.xlu0 %9750 }
 0x5d4   : > { %v18469_v4 = vsel %vm20280_vm6, %v9749_v33, %v9751_v13  ;;  %vm20286_vm6 = vmmov %vm20281_vm0 }
 0x5d5   : > { %9913 = vmatprep.subr.bf16.mxu1 %v18469_v4  ;;  %10487 = vrot.lane.b32.xlu1 %v18458_v42, %s14515_s16 }
 0x5d6   : > { %10483 = vrot.lane.b32.xlu0 %v18460_v37, %s14515_s16  ;;  %9914 = vmatpush1.bf16.msra.mxu1 %v18458_v42 }
 0x5d7   : > { %v9765_v10 = vpop.permute.xlu0 %9764 }
 0x5d8   : > { %v18478_v55 = vsel %vm20281_vm0, %v9763_v57, %v9765_v10  ;;  %v9767_v19 = vpop.permute.xlu1 %9766 }
 0x5d9   : > { %v18481_v63 = vsel %vm20282_vm14, %v9765_v10, %v9767_v19  ;;  %10829 = vrot.lane.b32.xlu1 %v18458_v42, %s14516_s17  ;;  %9874 = vmatprep.subr.bf16.mxu0 %v18478_v55  ;;  %v18486_v44 = vld [vmem:[#allocation3 + $0x50] sm:$0xff]  ;;  %vm20287_vm14 = vmmov %vm20281_vm0 }
 0x5da   : > { %10825 = vrot.lane.b32.xlu0 %v18460_v37, %s14516_s17  ;;  %9875 = vmatpush1.bf16.msra.mxu0 %v18486_v44 }
 0x5db   : > { %v9769_v28 = vpop.permute.xlu0 %9768 }
 0x5dc   : > { %v18492_v2 = vsel %vm20283_vm3, %v9767_v19, %v9769_v28  ;;  %v9753_v3 = vpop.permute.xlu1 %9752  ;;  %vm20288_vm3 = vmmov %vm20281_vm0 }
 0x5dd   : > { %v18500_v11 = vsel %vm20284_vm4, %v9751_v13, %v9753_v3  ;;  %11171 = vrot.lane.b32.xlu1 %v18458_v42, %s14517_s18  ;;  %9915 = vmatprep.subr.bf16.mxu1 %v18492_v2  ;;  %vm20289_vm4 = vmmov %vm20281_vm0 }
 0x5de   : > { %11167 = vrot.lane.b32.xlu0 %v18460_v37, %s14517_s18  ;;  %9916 = vmatpush1.bf16.msra.mxu1 %v18481_v63 }
 0x5df   : > { %v9755_v29 = vpop.permute.xlu0 %9754  ;;  %14058 = vmatmul.mubr.msk.bf16.vlgmr.msra.gmra.mrb[68].mxu0 %vm5182_vm11, %v18497_v50 }
 0x5e0   : > { %v18511_v48 = vsel %vm20285_vm2, %v9753_v3, %v9755_v29  ;;  %v9757_v21 = vpop.permute.xlu1 %9756  ;;  %9986 = vmatprep.mubr.bf16.mxu0 %v18513_v35  ;;  %vm20290_vm2 = vmmov %vm20281_vm0 }
 0x5e1   : > { %v18517_v58 = vsel %vm20286_vm6, %v9755_v29, %v9757_v21  ;;  %11513 = vrot.lane.b32.xlu1 %v18458_v42, %s14518_s19  ;;  %9954 = vmatprep.subr.bf16.mxu0 %v18511_v48  ;;  %vm20291_vm6 = vmmov %vm20281_vm0 }
 0x5e2   : > { %11509 = vrot.lane.b32.xlu0 %v18460_v37, %s14518_s19  ;;  %9955 = vmatpush1.bf16.msra.mxu0 %v18500_v11 }
 0x5e3   : > { %v9759_v17 = vpop.permute.xlu0 %9758  ;;  %14059 = vmatmul.mubr.msk.bf16.vlgmr.msra.gmra.mrb[68].mxu1 %vm5182_vm11, %v18497_v50 }
 0x5e4   : > { %v18528_v16 = vsel %vm20281_vm0, %v9757_v21, %v9759_v17  ;;  %10027 = vmatprep.mubr.bf16.mxu1 %v18513_v35  ;;  %vm20292_vm0 = vcmask 809984  }
 0x5e5   : > { %v9771_v45 = vpop.permute.xlu1 %9770  ;;  %10159 = vrot.lane.b32.xlu1 %v18486_v44, %s14514_s11  ;;  %9995 = vmatprep.subr.bf16.mxu1 %v18528_v16 }
 0x5e6   : > { %v18535_v15 = vsel %vm20287_vm14, %v9769_v28, %v9771_v45  ;;  %10143 = vrot.lane.b32.xlu0 %v18454_v31, %s14514_s11  ;;  %9996 = vmatpush1.bf16.msra.mxu1 %v18517_v58  ;;  %vm20293_vm14 = vmmov %vm20290_vm2 }
 0x5e8   : > { %v9773_v62 = vpop.permute.xlu0 %9772 }
 0x5e9   : > { %v18541_v18 = vsel %vm20288_vm3, %v9771_v45, %v9773_v62  ;;  %v9775_v20 = vpop.permute.xlu1 %9774  ;;  %10501 = vrot.lane.b32.xlu1 %v18486_v44, %s14515_s16  ;;  %vm20294_vm3 = vmmov %vm20292_vm0 }
 0x5ea   : > { %v18546_v46 = vsel %vm20289_vm4, %v9773_v62, %v9775_v20  ;;  %10147 = vrot.lane.b32.xlu0 %v18469_v4, %s14514_s11  ;;  %9956 = vmatprep.subr.bf16.mxu0 %v18541_v18  ;;  %vm14524_vm4 = vmmov 0  }
 0x5eb   : > { %9957 = vmatpush1.bf16.msra.mxu0 %v18535_v15 }
 0x5ec   : > { %v9777_v7 = vpop.permute.xlu0 %9776  ;;  %14331 = vmatprep.subr.bf16.mxu0 %v18434_v47 }
 0x5ed   : > { %v18554_v5 = vsel %vm20290_vm2, %v9775_v20, %v9777_v7  ;;  %10843 = vrot.lane.b32.xlu1 %v18486_v44, %s14516_s17  ;;  %vm20298_vm2 = vcmask 1039360  }
 0x5ee   : > { %10485 = vrot.lane.b32.xlu0 %v18454_v31, %s14515_s16  ;;  %9997 = vmatprep.subr.bf16.mxu1 %v18554_v5 }
 0x5ef   : > { %9998 = vmatpush1.bf16.msra.mxu1 %v18546_v46  ;;  %14060 = vmatmul.mubr.msk.bf16.vlgmr.msra.gmra.mrb[72].mxu0 %vm5182_vm11, %v18497_v50 }
 0x5f0   : > { %14335 = vmatprep.mubr.msk.bf16.mxu0 %vm14524_vm4, %v18434_v47 }
 0x5f1   : > { %v9779_v60 = vpop.permute.xlu1 %9778  ;;  %11185 = vrot.lane.b32.xlu1 %v18486_v44, %s14517_s18 }
 0x5f2   : > { %v9795_v6 = vsel %vm20291_vm6, %v9777_v7, %v9779_v60  ;;  %10489 = vrot.lane.b32.xlu0 %v18469_v4, %s14515_s16  ;;  %14061 = vmatmul.mubr.msk.bf16.vlgmr.msra.gmra.mrb[72].mxu1 %vm5182_vm11, %v18497_v50  ;;  %vm20299_vm6 = vmmov %vm20298_vm2 }
 0x5f3   : > { %9831 = vst.msk [vmem:[#allocation3 + $0x90] sm:$0xff] %vm20292_vm0, %v9795_v6  ;;  %10246 = vmatprep.mubr.bf16.mxu1 %v18513_v35  ;;  %vm20307_vm0 = vmmov %vm20298_vm2 }
 0x5f5   : > { %v9761_v9 = vpop.permute.xlu1 %9760  ;;  %11527 = vrot.lane.b32.xlu1 %v18486_v44, %s14518_s19 }
 0x5f6   : > { %v9787_v24 = vsel %vm20293_vm14, %v9759_v17, %v9761_v9  ;;  %10827 = vrot.lane.b32.xlu0 %v18454_v31, %s14516_s17  ;;  %vm20308_vm14 = vmmov %vm20307_vm0 }
 0x5f7   : > { %9822 = vst.msk [vmem:[#allocation3 + $0x40] sm:$0xff] %vm20294_vm3, %v9787_v24  ;;  %vm20310_vm3 = vmmov %vm20307_vm0 }
 0x5f9   : > { %10161 = vrot.lane.b32.xlu1 %v18478_v55, %s14514_s11 }
 0x5fa   : > { %10831 = vrot.lane.b32.xlu0 %v18469_v4, %s14516_s17  ;;  %v18593_v8 = vld [vmem:[#allocation3 + $0x90] sm:$0xff] }
 0x5fd   : > { %10503 = vrot.lane.b32.xlu1 %v18478_v55, %s14515_s16 }
 0x5fe   : > { %v18585_v41 = vld [vmem:[#allocation3 + $0x40] sm:$0xff]  ;;  %11169 = vrot.lane.b32.xlu0 %v18454_v31, %s14517_s18 }
 0x5ff   : > { %14332 = vmatpush3.bf16.msra.mxu0 %v18585_v41 }
 0x600   : > { %14333 = vmatprep.subr.bf16.mxu0 %v18434_v47 }
 0x601   : > { %10507 = vrot.lane.b32.xlu1 %v18492_v2, %s14515_s16 }
 0x602   : > { %11173 = vrot.lane.b32.xlu0 %v18469_v4, %s14517_s18 }
 0x603   : > { %14334 = vmatpush3.bf16.msra.mxu0 %v18593_v8 }
 0x605   : > { %10845 = vrot.lane.b32.xlu1 %v18478_v55, %s14516_s17 }
 0x606   : > { %11511 = vrot.lane.b32.xlu0 %v18454_v31, %s14518_s19  ;;  %14336 = vmatmul.mubr.msk.bf16.vlgmr.msra.gmra.mrb[76].mxu0 %vm5182_vm11, %v18497_v50 }
 0x607   : > { %10287 = vmatprep.mubr.bf16.mxu0 %v18513_v35 }
 0x609   : > { %11187 = vrot.lane.b32.xlu1 %v18478_v55, %s14517_s18 }
 0x60a   : > { %11515 = vrot.lane.b32.xlu0 %v18469_v4, %s14518_s19 }
 0x60d   : > { %11191 = vrot.lane.b32.xlu1 %v18492_v2, %s14517_s18 }
 0x60e   : > { %10163 = vrot.lane.b32.xlu0 %v18481_v63, %s14514_s11 }
 0x611   : > { %11529 = vrot.lane.b32.xlu1 %v18478_v55, %s14518_s19 }
 0x612   : > { %10165 = vrot.lane.b32.xlu0 %v18492_v2, %s14514_s11 }
 0x615   : > { %10149 = vrot.lane.b32.xlu1 %v18500_v11, %s14514_s11 }
 0x616   : > { %10505 = vrot.lane.b32.xlu0 %v18481_v63, %s14515_s16 }
 0x619   : > { %10491 = vrot.lane.b32.xlu1 %v18500_v11, %s14515_s16 }
 0x61a   : > { %10847 = vrot.lane.b32.xlu0 %v18481_v63, %s14516_s17 }
 0x61d   : > { %10833 = vrot.lane.b32.xlu1 %v18500_v11, %s14516_s17 }
 0x61e   : > { %10849 = vrot.lane.b32.xlu0 %v18492_v2, %s14516_s17 }
 0x621   : > { %11175 = vrot.lane.b32.xlu1 %v18500_v11, %s14517_s18 }
 0x622   : > { %11189 = vrot.lane.b32.xlu0 %v18481_v63, %s14517_s18 }
 0x625   : > { %11517 = vrot.lane.b32.xlu1 %v18500_v11, %s14518_s19 }
 0x626   : > { %11531 = vrot.lane.b32.xlu0 %v18481_v63, %s14518_s19 }
 0x629   : > { %10153 = vrot.lane.b32.xlu1 %v18517_v58, %s14514_s11 }
 0x62a   : > { %11533 = vrot.lane.b32.xlu0 %v18492_v2, %s14518_s19 }
 0x62d   : > { %10495 = vrot.lane.b32.xlu1 %v18517_v58, %s14515_s16 }
 0x62e   : > { %10151 = vrot.lane.b32.xlu0 %v18511_v48, %s14514_s11 }
 0x631   : > { %10837 = vrot.lane.b32.xlu1 %v18517_v58, %s14516_s17 }
 0x632   : > { %10155 = vrot.lane.b32.xlu0 %v18528_v16, %s14514_s11 }
 0x635   : > { %11179 = vrot.lane.b32.xlu1 %v18517_v58, %s14517_s18 }
 0x636   : > { %10493 = vrot.lane.b32.xlu0 %v18511_v48, %s14515_s16 }
 0x639   : > { %11521 = vrot.lane.b32.xlu1 %v18517_v58, %s14518_s19 }
 0x63a   : > { %10497 = vrot.lane.b32.xlu0 %v18528_v16, %s14515_s16 }
 0x63d   : > { %10167 = vrot.lane.b32.xlu1 %v18535_v15, %s14514_s11 }
 0x63e   : > { %10835 = vrot.lane.b32.xlu0 %v18511_v48, %s14516_s17 }
 0x641   : > { %10851 = vrot.lane.b32.xlu1 %v18535_v15, %s14516_s17 }
 0x642   : > { %10839 = vrot.lane.b32.xlu0 %v18528_v16, %s14516_s17 }
 0x643   : > { %v18667_v27 = vpop.permute.xlu1 %10145 }
 0x644   : > { %v10142_v14 = vpop.permute.xlu0 %10141 }
 0x645   : > { %11535 = vrot.lane.b32.xlu1 %v18535_v15, %s14518_s19 }
 0x646   : > { %11177 = vrot.lane.b32.xlu0 %v18511_v48, %s14517_s18 }
 0x647   : > { %v18673_v23 = vpop.permute.xlu1 %10487 }
 0x648   : > { %v18675_v40 = vpop.permute.xlu0 %10483 }
 0x649   : > { %10171 = vrot.lane.b32.xlu1 %v18546_v46, %s14514_s11 }
 0x64a   : > { %11181 = vrot.lane.b32.xlu0 %v18528_v16, %s14517_s18 }
 0x64b   : > { %v18681_v39 = vpop.permute.xlu1 %10829 }
 0x64c   : > { %v18683_v30 = vpop.permute.xlu0 %10825 }
 0x64d   : > { %10513 = vrot.lane.b32.xlu1 %v18546_v46, %s14515_s16 }
 0x64e   : > { %11519 = vrot.lane.b32.xlu0 %v18511_v48, %s14518_s19 }
 0x64f   : > { %v18689_v32 = vpop.permute.xlu1 %11171 }
 0x650   : > { %v18691_v59 = vpop.permute.xlu0 %11167 }
 0x651   : > { %20295 = vst [vmem:[#allocation15_spill] sm:$0xff] %v18691_v59  ;;  %10855 = vrot.lane.b32.xlu1 %v18546_v46, %s14516_s17 }
 0x652   : > { %10509 = vrot.lane.b32.xlu0 %v18535_v15, %s14515_s16 }
 0x653   : > { %v18697_v1 = vpop.permute.xlu1 %11513 }
 0x654   : > { %20296 = vst [vmem:[#allocation16_spill] sm:$0xff] %v18697_v1  ;;  %v18699_v61 = vpop.permute.xlu0 %11509 }
 0x655   : > { %20297 = vst [vmem:[#allocation17_spill] sm:$0xff] %v18699_v61  ;;  %11197 = vrot.lane.b32.xlu1 %v18546_v46, %s14517_s18 }
 0x656   : > { %11193 = vrot.lane.b32.xlu0 %v18535_v15, %s14517_s18 }
 0x657   : > { %v10160_v56 = vpop.permute.xlu1 %10159 }
 0x658   : > { %v10144_v34 = vpop.permute.xlu0 %10143 }
 0x659   : > { %v10178_v52 = vsel %vm20298_vm2, %v10144_v34, %v18667_v27  ;;  %v10177_v38 = vsel %vm20299_vm6, %v10142_v14, %v10144_v34  ;;  %10175 = vrot.lane.b32.xlu1 %v18593_v8, %s14514_s11  ;;  %vm20311_vm2 = vmmov %vm20307_vm0 }
 0x65a   : > { %10169 = vrot.lane.b32.xlu0 %v18541_v18, %s14514_s11  ;;  %10214 = vmatprep.subr.bf16.mxu1 %v10178_v52  ;;  %v18796_v52 = vld [vmem:[%s20038_s5 + $0x4] sm:$0xf]  ;;  %vm20317_vm6 = vmmov %vm20307_vm0 }
 0x65b   : > { %10215 = vmatpush1.bf16.msra.mxu1 %v10177_v38  ;;  %v18712_v0 = vpop.permute.xlu1 %10501 }
 0x65c   : > { %v10148_v49 = vpop.permute.xlu0 %10147 }
 0x65d   : > { %10517 = vrot.lane.b32.xlu1 %v18593_v8, %s14515_s16 }
 0x65e   : > { %10173 = vrot.lane.b32.xlu0 %v18554_v5, %s14514_s11 }
 0x65f   : > { %v18718_v33 = vpop.permute.xlu1 %10843 }
 0x660   : > { %v18720_v57 = vpop.permute.xlu0 %10485 }
 0x661   : > { %10859 = vrot.lane.b32.xlu1 %v18593_v8, %s14516_s17 }
 0x662   : > { %10511 = vrot.lane.b32.xlu0 %v18541_v18, %s14515_s16 }
 0x663   : > { %v18726_v13 = vpop.permute.xlu1 %11185 }
 0x664   : > { %20300 = vst [vmem:[#allocation18_spill] sm:$0xff] %v18726_v13  ;;  %v18728_v10 = vpop.permute.xlu0 %10489 }
 0x665   : > { %11201 = vrot.lane.b32.xlu1 %v18593_v8, %s14517_s18 }
 0x666   : > { %10515 = vrot.lane.b32.xlu0 %v18554_v5, %s14515_s16 }
 0x667   : > { %v18734_v19 = vpop.permute.xlu1 %11527 }
 0x668   : > { %20301 = vst [vmem:[#allocation19_spill] sm:$0xff] %v18734_v19  ;;  %v18736_v28 = vpop.permute.xlu0 %10827 }
 0x669   : > { %10157 = vrot.lane.b32.xlu1 %v18585_v41, %s14514_s11 }
 0x66a   : > { %10853 = vrot.lane.b32.xlu0 %v18541_v18, %s14516_s17 }
 0x66b   : > { %v10162_v3 = vpop.permute.xlu1 %10161 }
 0x66c   : > { %v18742_v50 = vpop.permute.xlu0 %10831  ;;  %v10185_v14 = vsel %vm20308_vm14, %v10160_v56, %v10162_v3  ;;  %vm20320_vm14 = vmmov %vm20307_vm0 }
 0x66d   : > { %11539 = vrot.lane.b32.xlu1 %v18546_v46, %s14518_s19 }
 0x66e   : > { %10857 = vrot.lane.b32.xlu0 %v18554_v5, %s14516_s17 }
 0x66f   : > { %v18748_v29 = vpop.permute.xlu1 %10503 }
 0x670   : > { %v18750_v21 = vpop.permute.xlu0 %11169 }
 0x671   : > { %11543 = vrot.lane.b32.xlu1 %v18593_v8, %s14518_s19 }
 0x672   : > { %11195 = vrot.lane.b32.xlu0 %v18541_v18, %s14517_s18 }
 0x673   : > { %v18756_v17 = vpop.permute.xlu1 %10507 }
 0x674   : > { %v18758_v45 = vpop.permute.xlu0 %11173 }
 0x675   : > { %20302 = vst [vmem:[#allocation20_spill] sm:$0xff] %v18758_v45  ;;  %11859 = vrot.lane.b32.xlu1 %v18458_v42, %s14519_s20 }
 0x676   : > { %11199 = vrot.lane.b32.xlu0 %v18554_v5, %s14517_s18 }
 0x677   : > { %v18764_v62 = vpop.permute.xlu1 %10845 }
 0x678   : > { %v18766_v20 = vpop.permute.xlu0 %11511 }
 0x679   : > { %20303 = vst [vmem:[#allocation22_spill] sm:$0xff] %v18766_v20  ;;  %10499 = vrot.lane.b32.xlu1 %v18585_v41, %s14515_s16  ;;  %v18898_v20 = vld [vmem:[#allocation3 + $0x98] sm:$0xff] }
 0x67a   : > { %11537 = vrot.lane.b32.xlu0 %v18541_v18, %s14518_s19 }
 0x67b   : > { %v18772_v7 = vpop.permute.xlu1 %11187 }
 0x67c   : > { %20304 = vst [vmem:[#allocation21_spill] sm:$0xff] %v18772_v7  ;;  %v18774_v60 = vpop.permute.xlu0 %11515 }
 0x67d   : > { %20305 = vst [vmem:[#allocation23_spill] sm:$0xff] %v18774_v60  ;;  %11863 = vrot.lane.b32.xlu1 %v18500_v11, %s14519_s20 }
 0x67e   : > { %11523 = vrot.lane.b32.xlu0 %v18528_v16, %s14518_s19 }
 0x67f   : > { %v18780_v6 = vpop.permute.xlu1 %11191 }
 0x680   : > { %20306 = vst [vmem:[#allocation24_spill] sm:$0xff] %v18780_v6  ;;  %v18782_v9 = vpop.permute.xlu0 %10163 }
 0x681   : > { %v10186_v24 = vsel %vm20307_vm0, %v10162_v3, %v18782_v9  ;;  %11877 = vrot.lane.b32.xlu1 %v18478_v55, %s14519_s20 }
 0x682   : > { %11541 = vrot.lane.b32.xlu0 %v18554_v5, %s14518_s19  ;;  %10216 = vmatprep.subr.bf16.mxu1 %v10186_v24 }
 0x683   : > { %10217 = vmatpush1.bf16.msra.mxu1 %v10185_v14  ;;  %v18791_v34 = vpop.permute.xlu1 %11529  ;;  %v10179_v14 = vsel %vm20311_vm2, %v18667_v27, %v10148_v49  ;;  %vm20328_vm2 = vmmov %vm20307_vm0 }
 0x684   : > { %20309 = vst [vmem:[#allocation25_spill] sm:$0xff] %v18791_v34  ;;  %v10166_v38 = vpop.permute.xlu0 %10165 }
 0x685   : > { %11881 = vrot.lane.b32.xlu1 %v18492_v2, %s14519_s20 }
 0x686   : > { %11857 = vrot.lane.b32.xlu0 %v18454_v31, %s14519_s20  ;;  %14064 = vmatmul.mubr.msk.bf16.vlgmr.msra.gmra.mrb[76].mxu1 %vm5182_vm11, %v18796_v52 }
 0x687   : > { %v10150_v24 = vpop.permute.xlu1 %10149  ;;  %10328 = vmatprep.mubr.bf16.mxu1 %v18513_v35 }
 0x688   : > { %v18805_v56 = vpop.permute.xlu0 %10505  ;;  %v10180_v3 = vsel %vm20310_vm3, %v10148_v49, %v10150_v24  ;;  %vm20321_vm3 = vmmov %vm20307_vm0 }
 0x689   : > { %11875 = vrot.lane.b32.xlu1 %v18486_v44, %s14519_s20  ;;  %10255 = vmatprep.subr.bf16.mxu0 %v10180_v3 }
 0x68a   : > { %11861 = vrot.lane.b32.xlu0 %v18469_v4, %s14519_s20  ;;  %10256 = vmatpush1.bf16.msra.mxu0 %v10179_v14 }
 0x68b   : > { %v18814_v43 = vpop.permute.xlu1 %10491 }
 0x68c   : > { %v18816_v22 = vpop.permute.xlu0 %10847 }
 0x68d   : > { %11867 = vrot.lane.b32.xlu1 %v18517_v58, %s14519_s20 }
 0x68e   : > { %11855 = vrot.lane.b32.xlu0 %v18460_v37, %s14519_s20 }
 0x68f   : > { %v18822_v36 = vpop.permute.xlu1 %10833 }
 0x690   : > { %v18824_v3 = vpop.permute.xlu0 %10849 }
 0x691   : > { %10841 = vrot.lane.b32.xlu1 %v18585_v41, %s14516_s17  ;;  %s14413_s17 = smul.u32 9, %s20497_s28 }
 0x692   : > { %11879 = vrot.lane.b32.xlu0 %v18481_v63, %s14519_s20 }
 0x693   : > { %v18830_v27 = vpop.permute.xlu1 %11175  ;;  %s19712_s29 = scalar_lea.vmem %s20040_s7, %s14413_s17  ;;  %s320_s14 = scalar_lea.vmem %s20041_s8, %s14413_s17 }
 0x694   : > { %20312 = vst [vmem:[#allocation26_spill] sm:$0xff] %v18830_v27  ;;  %v18832_v49 = vpop.permute.xlu0 %11189 }
 0x695   : > { %20313 = vst [vmem:[#allocation27_spill] sm:$0xff] %v18832_v49  ;;  %11887 = vrot.lane.b32.xlu1 %v18546_v46, %s14519_s20 }
 0x696   : > { %11883 = vrot.lane.b32.xlu0 %v18535_v15, %s14519_s20 }
 0x697   : > { %v18838_v14 = vpop.permute.xlu1 %11517 }
 0x698   : > { %20314 = vst [vmem:[#allocation28_spill] sm:$0xff] %v18838_v14  ;;  %v18840_v53 = vpop.permute.xlu0 %11531 }
 0x699   : > { %20315 = vst [vmem:[#allocation29_spill] sm:$0xff] %v18840_v53  ;;  %11891 = vrot.lane.b32.xlu1 %v18593_v8, %s14519_s20 }
 0x69a   : > { %11865 = vrot.lane.b32.xlu0 %v18511_v48, %s14519_s20 }
 0x69b   : > { %v18846_v51 = vpop.permute.xlu1 %10153 }
 0x69c   : > { %v18848_v25 = vpop.permute.xlu0 %11533 }
 0x69d   : > { %20316 = vst [vmem:[#allocation30_spill] sm:$0xff] %v18848_v25  ;;  %12211 = vrot.lane.b32.xlu1 %v18458_v42, %s14520_s21 }
 0x69e   : > { %11869 = vrot.lane.b32.xlu0 %v18528_v16, %s14519_s20 }
 0x69f   : > { %v18854_v26 = vpop.permute.xlu1 %10495 }
 0x6a0   : > { %v10152_v54 = vpop.permute.xlu0 %10151 }
 0x6a1   : > { %v10182_v12 = vsel %vm20317_vm6, %v10152_v54, %v18846_v51  ;;  %v10181_v60 = vsel %vm20307_vm0, %v10150_v24, %v10152_v54  ;;  %11183 = vrot.lane.b32.xlu1 %v18585_v41, %s14517_s18  ;;  %vm20329_vm6 = vmmov %vm20307_vm0 }
 0x6a2   : > { %11885 = vrot.lane.b32.xlu0 %v18541_v18, %s14519_s20  ;;  %10296 = vmatprep.subr.bf16.mxu1 %v10182_v12  ;;  %v18879_v12 = vld [vmem:[#allocation3 + $0x48] sm:$0xff] }
 0x6a3   : > { %10297 = vmatpush1.bf16.msra.mxu1 %v10181_v60  ;;  %v18863_v25 = vpop.permute.xlu1 %10837 }
 0x6a4   : > { %v18865_v14 = vpop.permute.xlu0 %10155 }
 0x6a5   : > { %12207 = vrot.lane.b32.xlu1 %v18460_v37, %s14520_s21 }
 0x6a6   : > { %11889 = vrot.lane.b32.xlu0 %v18554_v5, %s14519_s20 }
 0x6a7   : > { %v18871_v19 = vpop.permute.xlu1 %11179 }
 0x6a8   : > { %20318 = vst [vmem:[#allocation31_spill] sm:$0xff] %v18871_v19  ;;  %v18873_v54 = vpop.permute.xlu0 %10493 }
 0x6a9   : > { %12231 = vrot.lane.b32.xlu1 %v18481_v63, %s14520_s21 }
 0x6aa   : > { %12209 = vrot.lane.b32.xlu0 %v18454_v31, %s14520_s21 }
 0x6ab   : > { %v18881_v60 = vpop.permute.xlu1 %11521 }
 0x6ac   : > { %20319 = vst [vmem:[#allocation32_spill] sm:$0xff] %v18881_v60  ;;  %v18883_v24 = vpop.permute.xlu0 %10497  ;;  %v10187_v60 = vsel %vm20321_vm3, %v18782_v9, %v10166_v38  ;;  %vm20331_vm3 = vmmov %vm20307_vm0 }
 0x6ad   : > { %12227 = vrot.lane.b32.xlu1 %v18486_v44, %s14520_s21 }
 0x6ae   : > { %11873 = vrot.lane.b32.xlu0 %v18879_v12, %s14519_s20 }
 0x6af   : > { %v10168_v34 = vpop.permute.xlu1 %10167 }
 0x6b0   : > { %v18889_v53 = vpop.permute.xlu0 %10835  ;;  %v10188_v61 = vsel %vm20320_vm14, %v10166_v38, %v10168_v34  ;;  %vm20330_vm14 = vmmov %vm20307_vm0 }
 0x6b1   : > { %12215 = vrot.lane.b32.xlu1 %v18500_v11, %s14520_s21  ;;  %10257 = vmatprep.subr.bf16.mxu0 %v10188_v61 }
 0x6b2   : > { %12229 = vrot.lane.b32.xlu0 %v18478_v55, %s14520_s21  ;;  %10258 = vmatpush1.bf16.msra.mxu0 %v10187_v60 }
 0x6b3   : > { %v18900_v1 = vpop.permute.xlu1 %10851 }
 0x6b4   : > { %v18902_v19 = vpop.permute.xlu0 %10839 }
 0x6b5   : > { %12219 = vrot.lane.b32.xlu1 %v18517_v58, %s14520_s21  ;;  %14065 = vmatmul.mubr.msk.bf16.vlgmr.msra.gmra.mrb[80].mxu0 %vm5182_vm11, %v18796_v52 }
 0x6b6   : > { %11893 = vrot.lane.b32.xlu0 %v18898_v20, %s14519_s20  ;;  %10369 = vmatprep.mubr.bf16.mxu0 %v18513_v35 }
 0x6b7   : > { %v18911_v61 = vpop.permute.xlu1 %11535 }
 0x6b8   : > { %20322 = vst [vmem:[#allocation33_spill] sm:$0xff] %v18911_v61  ;;  %v18913_v9 = vpop.permute.xlu0 %11177 }
 0x6b9   : > { %20323 = vst [vmem:[#allocation34_spill] sm:$0xff] %v18913_v9  ;;  %11525 = vrot.lane.b32.xlu1 %v18585_v41, %s14518_s19 }
 0x6ba   : > { %12213 = vrot.lane.b32.xlu0 %v18469_v4, %s14520_s21 }
 0x6bb   : > { %v10172_v38 = vpop.permute.xlu1 %10171 }
 0x6bc   : > { %v18919_v60 = vpop.permute.xlu0 %11181 }
 0x6bd   : > { %20324 = vst [vmem:[#allocation35_spill] sm:$0xff] %v18919_v60  ;;  %12235 = vrot.lane.b32.xlu1 %v18535_v15, %s14520_s21 }
 0x6be   : > { %12217 = vrot.lane.b32.xlu0 %v18511_v48, %s14520_s21 }
 0x6bf   : > { %v18925_v13 = vpop.permute.xlu1 %10513 }
 0x6c0   : > { %v18927_v61 = vpop.permute.xlu0 %11519 }
 0x6c1   : > { %20325 = vst [vmem:[#allocation36_spill] sm:$0xff] %v18927_v61  ;;  %12239 = vrot.lane.b32.xlu1 %v18546_v46, %s14520_s21 }
 0x6c2   : > { %12233 = vrot.lane.b32.xlu0 %v18492_v2, %s14520_s21 }
 0x6c3   : > { %v18933_v9 = vpop.permute.xlu1 %10855 }
 0x6c4   : > { %v18935_v6 = vpop.permute.xlu0 %10509 }
 0x6c5   : > { %12241 = vrot.lane.b32.xlu1 %v18554_v5, %s14520_s21 }
 0x6c6   : > { %12237 = vrot.lane.b32.xlu0 %v18541_v18, %s14520_s21 }
 0x6c7   : > { %v18941_v60 = vpop.permute.xlu1 %11197 }
 0x6c8   : > { %20326 = vst [vmem:[#allocation37_spill] sm:$0xff] %v18941_v60  ;;  %v18943_v7 = vpop.permute.xlu0 %11193 }
 0x6c9   : > { %20327 = vst [vmem:[#allocation38_spill] sm:$0xff] %v18943_v7  ;;  %11871 = vrot.lane.b32.xlu1 %v18585_v41, %s14519_s20 }
 0x6ca   : > { %12221 = vrot.lane.b32.xlu0 %v18528_v16, %s14520_s21 }
 0x6cb   : > { %v10176_v61 = vpop.permute.xlu1 %10175 }
 0x6cc   : > { %v10170_v49 = vpop.permute.xlu0 %10169 }
 0x6cd   : > { %v10190_v59 = vsel %vm20328_vm2, %v10170_v49, %v10172_v38  ;;  %v10189_v45 = vsel %vm20329_vm6, %v10168_v34, %v10170_v49  ;;  %12245 = vrot.lane.b32.xlu1 %v18898_v20, %s14520_s21  ;;  %vm20332_vm2 = vcmask 1031168   ;;  %vm20333_vm6 = vmmov %vm20307_vm0 }
 0x6ce   : > { %12225 = vrot.lane.b32.xlu0 %v18879_v12, %s14520_s21  ;;  %10298 = vmatprep.subr.bf16.mxu1 %v10190_v59 }
 0x6cf   : > { %10299 = vmatpush1.bf16.msra.mxu1 %v10189_v45  ;;  %v18955_v60 = vpop.permute.xlu1 %10517 }
 0x6d0   : > { %v10174_v7 = vpop.permute.xlu0 %10173  ;;  %14339 = vmatprep.subr.bf16.mxu1 %v18434_v47 }
 0x6d1   : > { %12563 = vrot.lane.b32.xlu1 %v18458_v42, %s14521_s26 }
 0x6d2   : > { %12243 = vrot.lane.b32.xlu0 %v18593_v8, %s14520_s21  ;;  %14066 = vmatmul.mubr.msk.bf16.vlgmr.msra.gmra.mrb[80].mxu1 %vm5182_vm11, %v18796_v52 }
 0x6d3   : > { %v18964_v34 = vpop.permute.xlu1 %10859  ;;  %14343 = vmatprep.mubr.msk.bf16.mxu1 %vm14524_vm4, %v18434_v47 }
 0x6d4   : > { %v18968_v59 = vpop.permute.xlu0 %10511 }
 0x6d5   : > { %12567 = vrot.lane.b32.xlu1 %v18500_v11, %s14521_s26 }
 0x6d6   : > { %12561 = vrot.lane.b32.xlu0 %v18454_v31, %s14521_s26  ;;  %v10183_v31 = vsel %vm20330_vm14, %v18846_v51, %v18865_v14  ;;  %v10191_v51 = vsel %vm20333_vm6, %v10172_v38, %v10174_v7 }
 0x6d7   : > { %v18974_v42 = vpop.permute.xlu1 %11201 }
 0x6d8   : > { %v18976_v45 = vpop.permute.xlu0 %10515 }
 0x6d9   : > { %12581 = vrot.lane.b32.xlu1 %v18478_v55, %s14521_s26 }
 0x6da   : > { %12565 = vrot.lane.b32.xlu0 %v18469_v4, %s14521_s26  ;;  %v10192_v4 = vsel %vm20331_vm3, %v10174_v7, %v10176_v61 }
 0x6db   : > { %v10158_v49 = vpop.permute.xlu1 %10157 }
 0x6dc   : > { %v18982_v27 = vpop.permute.xlu0 %10853  ;;  %14340 = vmatpush3.bf16.msra.mxu1 %v10158_v49  ;;  %v10184_v11 = vsel %vm20307_vm0, %v18865_v14, %v10158_v49  ;;  %vm20334_vm0 = vmmov %vm20332_vm2 }
 0x6dd   : > { %12585 = vrot.lane.b32.xlu1 %v18492_v2, %s14521_s26  ;;  %10337 = vmatprep.subr.bf16.mxu0 %v10184_v11  ;;  %v10522_v2 = vsel %vm20332_vm2, %v18728_v10, %v18814_v43  ;;  %vm20335_vm14 = vmmov %vm20334_vm0  ;;  %v10529_v7 = vsel %vm20334_vm0, %v18805_v56, %v18756_v17 }
 0x6de   : > { %12559 = vrot.lane.b32.xlu0 %v18460_v37, %s14521_s26  ;;  %10338 = vmatpush1.bf16.msra.mxu0 %v10183_v31  ;;  %v10520_v37 = vsel %vm20334_vm0, %v18720_v57, %v18673_v23  ;;  %vm20336_vm3 = vmmov %vm20334_vm0 }
 0x6df   : > { %10339 = vmatprep.subr.bf16.mxu0 %v10192_v4  ;;  %14341 = vmatprep.subr.bf16.mxu1 %v18434_v47  ;;  %v18995_v55 = vpop.permute.xlu1 %11539  ;;  %vm20337_vm2 = vmmov %vm20334_vm0 }
 0x6e0   : > { %v18997_v49 = vpop.permute.xlu0 %10857  ;;  %14342 = vmatpush3.bf16.msra.mxu1 %v10176_v61  ;;  %v10521_v61 = vsel %vm20335_vm14, %v18673_v23, %v18728_v10  ;;  %v10519_v23 = vsel %vm20337_vm2, %v18675_v40, %v18720_v57  ;;  %vm20338_vm6 = vmmov %vm20334_vm0 }
 0x6e1   : > { %12223 = vrot.lane.b32.xlu1 %v18585_v41, %s14520_s21  ;;  %10597 = vmatprep.subr.bf16.mxu1 %v10522_v2  ;;  %vm20339_vm14 = vmmov %vm20334_vm0 }
 0x6e2   : > { %12583 = vrot.lane.b32.xlu0 %v18481_v63, %s14521_s26  ;;  %10340 = vmatpush1.bf16.msra.mxu0 %v10191_v51  ;;  %v10530_v63 = vsel %vm20336_vm3, %v18756_v17, %v18935_v6  ;;  %v10527_v40 = vsel %vm20339_vm14, %v18712_v0, %v18748_v29  ;;  %vm20340_vm3 = vmmov %vm20334_vm0  ;;  %v10525_v0 = vsel %vm20334_vm0, %v18854_v26, %v18883_v24 }
 0x6e3   : > { %14344 = vmatmul.mubr.msk.bf16.vlgmr.msra.gmra.mrb[84].mxu1 %vm5182_vm11, %v18796_v52  ;;  %10556 = vmatprep.subr.bf16.mxu0 %v10520_v37  ;;  %v19012_v14 = vpop.permute.xlu1 %11543  ;;  %v10524_v57 = vsel %vm20340_vm3, %v18873_v54, %v18854_v26  ;;  %vm20341_vm2 = vmmov %vm20334_vm0 }
 0x6e4   : > { %v19017_v11 = vpop.permute.xlu0 %11195  ;;  %10598 = vmatpush1.bf16.msra.mxu1 %v10521_v61  ;;  %10629 = vmatprep.mubr.bf16.mxu1 %v18513_v35  ;;  %vm20343_vm14 = vmmov %vm20334_vm0 }
 0x6e5   : > { %12579 = vrot.lane.b32.xlu1 %v18486_v44, %s14521_s26  ;;  %14067 = vmatmul.mubr.msk.bf16.vlgmr.msra.gmra.mrb[84].mxu0 %vm5182_vm11, %v18796_v52  ;;  %v10528_v44 = vsel %vm20338_vm6, %v18748_v29, %v18805_v56  ;;  %vm20342_vm6 = vmmov %vm20334_vm0 }
 0x6e6   : > { %12587 = vrot.lane.b32.xlu0 %v18535_v15, %s14521_s26  ;;  %10599 = vmatprep.subr.bf16.mxu1 %v10530_v63  ;;  %v19046_v15 = vld [vmem:[%s20038_s5 + $0x8] sm:$0xf]  ;;  %vm20344_vm3 = vmmov %vm20334_vm0 }
 0x6e7   : > { %10557 = vmatpush1.bf16.msra.mxu0 %v10519_v23  ;;  %v19035_v10 = vpop.permute.xlu1 %11859  ;;  %10588 = vmatprep.mubr.bf16.mxu0 %v18513_v35 }
 0x6e8   : > { %v19041_v52 = vpop.permute.xlu0 %11199  ;;  %10558 = vmatprep.subr.bf16.mxu0 %v10528_v44  ;;  %10600 = vmatpush1.bf16.msra.mxu1 %v10529_v7 }
 0x6e9   : > { %12571 = vrot.lane.b32.xlu1 %v18517_v58, %s14521_s26 }
 0x6ea   : > { %12569 = vrot.lane.b32.xlu0 %v18511_v48, %s14521_s26  ;;  %v10523_v48 = vsel %vm20342_vm6, %v18814_v43, %v18873_v54  ;;  %vm20346_vm6 = vmmov %vm20334_vm0 }
 0x6eb   : > { %10559 = vmatpush1.bf16.msra.mxu0 %v10527_v40  ;;  %14071 = vmatmul.mubr.msk.bf16.vlgmr.msra.gmra.mrb[88].mxu1 %vm5182_vm11, %v19046_v15  ;;  %v10500_v17 = vpop.permute.xlu1 %10499  ;;  %v10533_v43 = vsel %vm20346_vm6, %v18925_v13, %v18976_v45 }
 0x6ec   : > { %v19060_v56 = vpop.permute.xlu0 %11537  ;;  %10638 = vmatprep.subr.bf16.mxu0 %v10524_v57  ;;  %v10526_v58 = vsel %vm20341_vm2, %v18883_v24, %v10500_v17  ;;  %10711 = vmatprep.mubr.bf16.mxu1 %v18513_v35  ;;  %vm20345_vm2 = vmmov %vm20334_vm0  ;;  %vm20347_vm0 = vcmask 769024  }
 0x6ed   : > { %12591 = vrot.lane.b32.xlu1 %v18546_v46, %s14521_s26  ;;  %10679 = vmatprep.subr.bf16.mxu1 %v10526_v58  ;;  %v10532_v46 = vsel %vm20343_vm14, %v18968_v59, %v18925_v13  ;;  %v10531_v26 = vsel %vm20345_vm2, %v18935_v6, %v18968_v59  ;;  %v10862_v54 = vsel %vm20347_vm0, %v18736_v28, %v18681_v39  ;;  %vm20348_vm14 = vmmov %vm20347_vm0  ;;  %v19156_v59 = vpop.f32.mrb[68].mxu1  ;;  %v9849_v58 = vld [vmem:[#allocation4 + $0x40] sm:$0xff] }
 0x6ee   : > { %12573 = vrot.lane.b32.xlu0 %v18528_v16, %s14521_s26  ;;  %14070 = vmatmul.mubr.msk.bf16.vlgmr.msra.gmra.mrb[88].mxu0 %vm5182_vm11, %v19046_v15  ;;  %v10534_v16 = vsel %vm20344_vm3, %v18976_v45, %v18955_v60  ;;  %vm20349_vm3 = vmmov %vm20347_vm0  ;;  %v19165_v4 = vpop.f32.mrb[69].mxu1  ;;  %v10871_v23 = vsel %vm20347_vm0, %v18816_v22, %v18824_v3 }
 0x6ef   : > { %10639 = vmatpush1.bf16.msra.mxu0 %v10523_v48  ;;  %10680 = vmatpush1.bf16.msra.mxu1 %v10525_v0  ;;  %v19083_v29 = vpop.permute.xlu1 %11863  ;;  %vm20350_vm2 = vmmov %vm20347_vm0  ;;  %v9951_v63 = vpop.f32.mrb[70].mxu1 }
 0x6f0   : > { %v19085_v38 = vpop.permute.xlu0 %11523  ;;  %10640 = vmatprep.subr.bf16.mxu0 %v10532_v46  ;;  %10681 = vmatprep.subr.bf16.mxu1 %v10534_v16  ;;  %vm20351_vm6 = vmmov %vm20347_vm0 }
 0x6f1   : > { %12575 = vrot.lane.b32.xlu1 %v18585_v41, %s14521_s26  ;;  %10670 = vmatprep.mubr.bf16.mxu0 %v18513_v35 }
 0x6f2   : > { %12589 = vrot.lane.b32.xlu0 %v18541_v18, %s14521_s26  ;;  %v10861_v18 = vsel %vm20348_vm14, %v18683_v30, %v18736_v28  ;;  %v10869_v30 = vsel %vm20350_vm2, %v18718_v33, %v18764_v62  ;;  %v10864_v28 = vsel %vm20351_vm6, %v18742_v50, %v18822_v36  ;;  %v19152_v33 = vld [vmem:[%s20038_s5 + $0xc] sm:$0xf]  ;;  %vm20352_vm14 = vmmov %vm20347_vm0 }
 0x6f3   : > { %10641 = vmatpush1.bf16.msra.mxu0 %v10531_v26  ;;  %10682 = vmatpush1.bf16.msra.mxu1 %v10533_v43  ;;  %v19101_v41 = vpop.permute.xlu1 %11877  ;;  %v10863_v45 = vsel %vm20352_vm14, %v18681_v39, %v18742_v50  ;;  %vm20354_vm2 = vmmov %vm20347_vm0 }
 0x6f4   : > { %v19103_v24 = vpop.permute.xlu0 %11541  ;;  %10898 = vmatprep.subr.bf16.mxu1 %v10862_v54  ;;  %14347 = vmatprep.subr.bf16.mxu0 %v18434_v47  ;;  %v10872_v51 = vsel %vm20354_vm2, %v18824_v3, %v18900_v1  ;;  %vm20355_vm6 = vmmov %vm20347_vm0 }
 0x6f5   : > { %12595 = vrot.lane.b32.xlu1 %v18593_v8, %s14521_s26  ;;  %v12869_v8 = vld [vmem:[%s20039_s6] sm:$0xff]  ;;  %v10874_v50 = vsel %vm20355_vm6, %v18982_v27, %v18933_v9  ;;  %vm20356_vm14 = vmmov %vm20347_vm0 }
 0x6f6   : > { %12593 = vrot.lane.b32.xlu0 %v18554_v5, %s14521_s26  ;;  %14072 = vmatmul.mubr.msk.bf16.vlgmr.msra.gmra.mrb[92].mxu0 %vm5182_vm11, %v19046_v15  ;;  %v10870_v5 = vsel %vm20349_vm3, %v18764_v62, %v18816_v22  ;;  %v19154_v62 = vpop.f32.mrb[68].mxu0  ;;  %vm20353_vm3 = vmmov %vm20347_vm0 }
 0x6f7   : > { %14073 = vmatmul.mubr.msk.bf16.vlgmr.msra.gmra.mrb[92].mxu1 %vm5182_vm11, %v19046_v15  ;;  %14348 = vmatpush3.bf16.msra.mxu0 %v10500_v17  ;;  %v19117_v13 = vpop.permute.xlu1 %11881  ;;  %v19163_v31 = vpop.f32.mrb[69].mxu0  ;;  %v10865_v2 = vsel %vm20353_vm3, %v18822_v36, %v18889_v53  ;;  %vm20357_vm3 = vmmov %vm20347_vm0 }
 0x6f8   : > { %v19119_v6 = vpop.permute.xlu0 %11857  ;;  %10899 = vmatpush1.bf16.msra.mxu1 %v10861_v18  ;;  %14349 = vmatprep.subr.bf16.mxu0 %v18434_v47  ;;  %v9910_v61 = vpop.f32.mrb[70].mxu0  ;;  %vm20358_vm2 = vmmov %vm20347_vm0 }
 0x6f9   : > { %10900 = vmatprep.subr.bf16.mxu1 %v10870_v5  ;;  %12597 = vrot.lane.b32.xlu1 %v18898_v20, %s14521_s26  ;;  %v9952_v36 = vpop.f32.mrb[71].mxu1  ;;  %vm20359_vm6 = vmmov %vm20347_vm0  ;;  %v20369_v61 = vld [vmem:[#allocation27_spill] sm:$0xff] }
 0x6fa   : > { %12577 = vrot.lane.b32.xlu0 %v18879_v12, %s14521_s26  ;;  %14351 = vmatprep.mubr.msk.bf16.mxu0 %vm14524_vm4, %v18434_v47  ;;  %v19189_v7 = vpop.f32.mrb[72].mxu1  ;;  %v10876_v16 = vsel %vm20359_vm6, %v18997_v49, %v18964_v34  ;;  %s14526_s26 = smov 34  }
 0x6fb   : > { %14350 = vmatpush3.bf16.msra.mxu0 %v18955_v60  ;;  %v19141_v20 = vpop.permute.xlu1 %11875  ;;  %10930 = vmatprep.mubr.bf16.mxu1 %v18513_v35  ;;  %v10866_v60 = vsel %vm20347_vm0, %v18889_v53, %v18863_v25  ;;  %v9911_v53 = vpop.f32.mrb[71].mxu0  ;;  %vm20360_vm0 = vcmask 523264  }
 0x6fc   : > { %v19144_v12 = vpop.permute.xlu0 %11861  ;;  %10901 = vmatpush1.bf16.msra.mxu1 %v10869_v30  ;;  %10939 = vmatprep.subr.bf16.mxu0 %v10864_v28  ;;  %v19187_v44 = vpop.f32.mrb[72].mxu0  ;;  %v19223_v30 = vld [vmem:[#allocation5] sm:$0xff] }
 0x6fd   : > { %10980 = vmatprep.subr.bf16.mxu1 %v10866_v60  ;;  %v19194_v57 = vpop.f32.mrb[73].mxu0  ;;  %v19201_v0 = vpop.f32.mrb[73].mxu1 }
 0x6fe   : > { %12872 = vperm.xlu0 %14459, %v12869_v8   ;;  %14352 = vmatmul.mubr.msk.bf16.vlgmr.msra.gmra.mrb[96].mxu0 %vm5182_vm11, %v19046_v15  ;;  %v10873_v15 = vsel %vm20356_vm14, %v18900_v1, %v18982_v27  ;;  %v9992_v3 = vpop.f32.mrb[74].mxu0  ;;  %v10867_v1 = vsel %vm20358_vm2, %v18863_v25, %v18902_v19  ;;  %v10033_v46 = vpop.f32.mrb[74].mxu1  ;;  %vm20361_vm14 = vmmov %vm20358_vm2 }
 0x6ff   : > { %14076 = vmatmul.mubr.msk.bf16.vlgmr.msra.gmra.mrb[96].mxu1 %vm5182_vm11, %v19152_v33  ;;  %10940 = vmatpush1.bf16.msra.mxu0 %v10863_v45  ;;  %v19175_v37 = vpop.permute.xlu1 %11867  ;;  %v9993_v48 = vpop.f32.mrb[75].mxu0  ;;  %v10875_v8 = vsel %vm20361_vm14, %v18933_v9, %v18997_v49  ;;  %v20363_v45 = vld [vmem:[#allocation26_spill] sm:$0xff]  ;;  %v20366_v49 = vld [vmem:[#allocation15_spill] sm:$0xff] }
 0x700   : > { %v19177_v39 = vpop.permute.xlu0 %11855  ;;  %10981 = vmatpush1.bf16.msra.mxu1 %v10865_v2  ;;  %10941 = vmatprep.subr.bf16.mxu0 %v10872_v51  ;;  %v10070_v27 = vpop.f32.mrb[76].mxu0  ;;  %v20364_v2 = vld [vmem:[#allocation20_spill] sm:$0xff]  ;;  %v20379_v3 = vld [vmem:[#allocation34_spill] sm:$0xff]  ;;  %v20380_v46 = vld [vmem:[#allocation35_spill] sm:$0xff] }
 0x701   : > { %10982 = vmatprep.subr.bf16.mxu1 %v10874_v50  ;;  %10971 = vmatprep.mubr.bf16.mxu0 %v18513_v35  ;;  %v10084_v43 = vadd.f32 %v10070_v27, %v9849_v58  ;;  %v14337_v54 = vpop.f32.mrb[77].mxu0  ;;  %v10034_v25 = vpop.f32.mrb[75].mxu1  ;;  %v20370_v50 = vld [vmem:[#allocation21_spill] sm:$0xff] }
 0x702   : > { %11012 = vmatprep.mubr.bf16.mxu1 %v18513_v35  ;;  %v10073_v5 = vpop.f32.mrb[78].mxu0 }
 0x703   : > { %10942 = vmatpush1.bf16.msra.mxu0 %v10871_v23  ;;  %v10842_v40 = vpop.permute.xlu1 %10841  ;;  %10093 = vst.msk [vmem:[#allocation4 + $0x40] sm:$0xff] %vm20360_vm0, %v10084_v43  ;;  %v20372_v23 = vld [vmem:[#allocation38_spill] sm:$0xff]  ;;  %v20384_v5 = vld [vmem:[#allocation37_spill] sm:$0xff] }
 0x704   : > { %v19196_v17 = vpop.permute.xlu0 %11879  ;;  %10983 = vmatpush1.bf16.msra.mxu1 %v10873_v15  ;;  %v10868_v22 = vsel %vm20357_vm3, %v18902_v19, %v10842_v40  ;;  %v14338_v19 = vpop.f32.mrb[79].mxu0  ;;  %vm20362_vm3 = vcmask 760832  }
 0x705   : > { %11021 = vmatprep.subr.bf16.mxu0 %v10868_v22  ;;  %14355 = vmatprep.subr.bf16.mxu1 %v18434_v47  ;;  %vm20365_vm2 = vmmov %vm20362_vm3  ;;  %v20378_v22 = vld [vmem:[#allocation31_spill] sm:$0xff] }
 0x706   : > { %14077 = vmatmul.mubr.msk.bf16.vlgmr.msra.gmra.mrb[100].mxu0 %vm5182_vm11, %v19152_v33  ;;  %v11206_v9 = vsel %vm20365_vm2, %v20364_v2, %v20363_v45  ;;  %vm20367_vm6 = vmmov %vm20365_vm2 }
 0x707   : > { %14078 = vmatmul.mubr.msk.bf16.vlgmr.msra.gmra.mrb[100].mxu1 %vm5182_vm11, %v19152_v33  ;;  %11022 = vmatpush1.bf16.msra.mxu0 %v10867_v1  ;;  %v19213_v26 = vpop.permute.xlu1 %11887  ;;  %v11203_v51 = vsel %vm20367_vm6, %v20366_v49, %v18750_v21  ;;  %vm20368_vm0 = vmmov %vm20365_vm2  ;;  %v14081_v1 = vld [vmem:[%s20038_s5 + $0x10] sm:$0xf] }
 0x708   : > { %v19215_v18 = vpop.permute.xlu0 %11883  ;;  %14356 = vmatpush3.bf16.msra.mxu1 %v10842_v40  ;;  %11023 = vmatprep.subr.bf16.mxu0 %v10876_v16  ;;  %vm20371_vm14 = vmmov %vm20368_vm0  ;;  %v11208_v58 = vsel %vm20368_vm0, %v20379_v3, %v20378_v22 }
 0x709   : > { %14357 = vmatprep.subr.bf16.mxu1 %v18434_v47  ;;  %11053 = vmatprep.mubr.bf16.mxu0 %v18513_v35  ;;  %v11204_v47 = vsel %vm20362_vm3, %v18750_v21, %v18689_v32  ;;  %v11212_v63 = vsel %vm20371_vm14, %v20370_v50, %v20369_v61  ;;  %v20373_v21 = vld [vmem:[#allocation24_spill] sm:$0xff]  ;;  %vm20374_vm3 = vmmov %vm20368_vm0 }
 0x70a   : > { %14359 = vmatprep.mubr.msk.bf16.mxu1 %vm14524_vm4, %v19223_v30  ;;  %v11214_v15 = vsel %vm20374_vm3, %v20373_v21, %v20372_v23  ;;  %vm20376_vm2 = vmmov %vm20368_vm0 }
 0x70b   : > { %11024 = vmatpush1.bf16.msra.mxu0 %v10875_v8  ;;  %v19230_v28 = vpop.permute.xlu1 %11891  ;;  %vm20377_vm6 = vmmov %vm20368_vm0 }
 0x70c   : > { %v19232_v60 = vpop.permute.xlu0 %11865  ;;  %14358 = vmatpush3.bf16.msra.mxu1 %v18964_v34  ;;  %11240 = vmatprep.subr.bf16.mxu0 %v11204_v47  ;;  %v11205_v34 = vsel %vm20368_vm0, %v18689_v32, %v20364_v2  ;;  %v11213_v40 = vsel %vm20377_vm6, %v20369_v61, %v20373_v21  ;;  %vm20381_vm14 = vmmov %vm20368_vm0  ;;  %v11218_v47 = vsel %vm20368_vm0, %v19041_v52, %v18974_v42  ;;  %v20394_v21 = vld [vmem:[#allocation25_spill] sm:$0xff] }
 0x70d   : > { %11281 = vmatprep.subr.bf16.mxu1 %v11206_v9  ;;  %vm20382_vm3 = vmmov %vm20368_vm0 }
 0x70e   : > { %14079 = vmatmul.mubr.msk.bf16.vlgmr.msra.gmra.mrb[104].mxu0 %vm5182_vm11, %v19152_v33  ;;  %v11207_v43 = vsel %vm20382_vm3, %v20363_v45, %v20379_v3  ;;  %vm20385_vm6 = vmmov %vm20368_vm0 }
 0x70f   : > { %14360 = vmatmul.mubr.msk.bf16.vlgmr.msra.gmra.mrb[104].mxu1 %vm5182_vm11, %v19152_v33  ;;  %11241 = vmatpush1.bf16.msra.mxu0 %v11203_v51  ;;  %v19251_v53 = vpop.permute.xlu1 %12211  ;;  %v20375_v33 = vld [vmem:[#allocation18_spill] sm:$0xff]  ;;  %v11216_v25 = vsel %vm20385_vm6, %v19017_v11, %v20384_v5  ;;  %vm20387_vm3 = vmmov %vm20368_vm0  ;;  %v20388_v51 = vld [vmem:[#allocation16_spill] sm:$0xff] }
 0x710   : > { %v19253_v36 = vpop.permute.xlu0 %11869  ;;  %11282 = vmatpush1.bf16.msra.mxu1 %v11205_v34  ;;  %11242 = vmatprep.subr.bf16.mxu0 %v11212_v63  ;;  %v11211_v32 = vsel %vm20376_vm2, %v20375_v33, %v20370_v50  ;;  %vm20383_vm2 = vmmov %vm20368_vm0  ;;  %v11217_v2 = vsel %vm20387_vm3, %v20384_v5, %v19041_v52  ;;  %v20389_v34 = vld [vmem:[#allocation22_spill] sm:$0xff]  ;;  %v20396_v33 = vld [vmem:[#allocation19_spill] sm:$0xff] }
 0x711   : > { %11283 = vmatprep.subr.bf16.mxu1 %v11214_v15  ;;  %11272 = vmatprep.mubr.bf16.mxu0 %v18513_v35  ;;  %v11209_v54 = vsel %vm20383_vm2, %v20378_v22, %v20380_v46  ;;  %vm20390_vm2 = vcmask 752640   ;;  %v20399_v22 = vld [vmem:[#allocation23_spill] sm:$0xff] }
 0x712   : > { %11313 = vmatprep.mubr.bf16.mxu1 %v18513_v35  ;;  %v11546_v61 = vsel %vm20390_vm2, %v20389_v34, %v20388_v51  ;;  %vm20392_vm6 = vmmov %vm20390_vm2 }
 0x713   : > { %11243 = vmatpush1.bf16.msra.mxu0 %v11211_v32  ;;  %v11184_v48 = vpop.permute.xlu1 %11183 }
 0x714   : > { %v19272_v27 = vpop.permute.xlu0 %11885  ;;  %11284 = vmatpush1.bf16.msra.mxu1 %v11213_v40  ;;  %11322 = vmatprep.subr.bf16.mxu0 %v11208_v58  ;;  %v11210_v16 = vsel %vm20381_vm14, %v20380_v46, %v11184_v48  ;;  %vm20386_vm14 = vmmov %vm20368_vm0  ;;  %v20398_v40 = vld [vmem:[#allocation28_spill] sm:$0xff] }
 0x715   : > { %11363 = vmatprep.subr.bf16.mxu1 %v11210_v16  ;;  %v11215_v45 = vsel %vm20386_vm14, %v20372_v23, %v19017_v11  ;;  %v20391_v11 = vld [vmem:[#allocation17_spill] sm:$0xff]  ;;  %vm20395_vm0 = vmmov %vm20390_vm2  ;;  %v20401_v46 = vld [vmem:[#allocation32_spill] sm:$0xff] }
 0x716   : > { %14082 = vmatmul.mubr.msk.bf16.vlgmr.msra.gmra.mrb[108].mxu0 %vm5182_vm11, %v14081_v1  ;;  %v11545_v52 = vsel %vm20392_vm6, %v20391_v11, %v20389_v34  ;;  %v20393_v23 = vld [vmem:[#allocation29_spill] sm:$0xff]  ;;  %vm20397_vm14 = vmmov %vm20395_vm0  ;;  %v20402_v16 = vld [vmem:[#allocation36_spill] sm:$0xff] }
 0x717   : > { %14083 = vmatmul.mubr.msk.bf16.vlgmr.msra.gmra.mrb[108].mxu1 %vm5182_vm11, %v14081_v1  ;;  %11323 = vmatpush1.bf16.msra.mxu0 %v11207_v43  ;;  %v19287_v19 = vpop.permute.xlu1 %12207  ;;  %v11554_v15 = vsel %vm20395_vm0, %v20394_v21, %v20393_v23  ;;  %v11553_v32 = vsel %vm20397_vm14, %v20396_v33, %v20394_v21  ;;  %vm20400_vm3 = vmmov %vm20395_vm0  ;;  %v11549_v5 = vsel %vm20395_vm0, %v20398_v40, %v20402_v16 }
 0x718   : > { %v19289_v8 = vpop.permute.xlu0 %11889  ;;  %11364 = vmatpush1.bf16.msra.mxu1 %v11209_v54  ;;  %11324 = vmatprep.subr.bf16.mxu0 %v11216_v25  ;;  %v11548_v3 = vsel %vm20400_vm3, %v20399_v22, %v20398_v40  ;;  %vm20403_vm2 = vmmov %vm20395_vm0  ;;  %v20405_v25 = vld [vmem:[#allocation33_spill] sm:$0xff] }
 0x719   : > { %11365 = vmatprep.subr.bf16.mxu1 %v11218_v47  ;;  %11354 = vmatprep.mubr.bf16.mxu0 %v18513_v35  ;;  %v11550_v43 = vsel %vm20403_vm2, %v20402_v16, %v20401_v46  ;;  %vm20404_vm6 = vmmov %vm20395_vm0  ;;  %v20406_v47 = vld [vmem:[#allocation30_spill] sm:$0xff] }
 0x71a   : > { %11395 = vmatprep.mubr.bf16.mxu1 %v18513_v35  ;;  %v11547_v54 = vsel %vm20404_vm6, %v20388_v51, %v20399_v22  ;;  %vm20407_vm14 = vmmov %vm20395_vm0 }
 0x71b   : > { %11325 = vmatpush1.bf16.msra.mxu0 %v11215_v45  ;;  %v19302_v9 = vpop.permute.xlu1 %12231  ;;  %v11556_v45 = vsel %vm20407_vm14, %v20406_v47, %v20405_v25  ;;  %vm20408_vm3 = vmmov %vm20395_vm0 }
 0x71c   : > { %v19304_v49 = vpop.permute.xlu0 %12209  ;;  %11366 = vmatpush1.bf16.msra.mxu1 %v11217_v2  ;;  %14363 = vmatprep.subr.bf16.mxu0 %v19223_v30  ;;  %vm20409_vm2 = vmmov %vm20395_vm0 }
 0x71d   : > { %11582 = vmatprep.subr.bf16.mxu1 %v11546_v61  ;;  %v11555_v51 = vsel %vm20409_vm2, %v20393_v23, %v20406_v47  ;;  %vm20410_vm6 = vmmov %vm20395_vm0 }
 0x71e   : > { %14084 = vmatmul.mubr.msk.bf16.vlgmr.msra.gmra.mrb[112].mxu0 %vm5182_vm11, %v14081_v1  ;;  %v11557_v61 = vsel %vm20410_vm6, %v20405_v25, %v19060_v56  ;;  %vm20411_vm14 = vmmov %vm20395_vm0  ;;  %vm20414_vm6 = vcmask 490496  }
 0x71f   : > { %14085 = vmatmul.mubr.msk.bf16.vlgmr.msra.gmra.mrb[112].mxu1 %vm5182_vm11, %v14081_v1  ;;  %14364 = vmatpush3.bf16.msra.mxu0 %v11184_v48  ;;  %v19315_v50 = vpop.permute.xlu1 %12227  ;;  %v11551_v23 = vsel %vm20411_vm14, %v20401_v46, %v19085_v38  ;;  %vm20413_vm2 = vmmov %vm20395_vm0 }
 0x720   : > { %v19317_v63 = vpop.permute.xlu0 %11873  ;;  %11583 = vmatpush1.bf16.msra.mxu1 %v11545_v52  ;;  %14365 = vmatprep.subr.bf16.mxu0 %v19223_v30 }
 0x721   : > { %11584 = vmatprep.subr.bf16.mxu1 %v11554_v15  ;;  %14367 = vmatprep.mubr.msk.bf16.mxu0 %vm14524_vm4, %v19223_v30 }
 0x722   : > { %11614 = vmatprep.mubr.bf16.mxu1 %v18513_v35 }
 0x723   : > { %14366 = vmatpush3.bf16.msra.mxu0 %v18974_v42  ;;  %v19333_v58 = vpop.permute.xlu1 %12215  ;;  %v14087_v42 = vld [vmem:[%s20038_s5 + $0x14] sm:$0xf] }
 0x724   : > { %v19335_v48 = vpop.permute.xlu0 %12229  ;;  %11585 = vmatpush1.bf16.msra.mxu1 %v11553_v32  ;;  %11623 = vmatprep.subr.bf16.mxu0 %v11548_v3  ;;  %v11896_v32 = vsel %vm20414_vm6, %v19119_v6, %v19035_v10 }
 0x725   : > { %11664 = vmatprep.subr.bf16.mxu1 %v11550_v43 }
 0x726   : > { %14368 = vmatmul.mubr.msk.bf16.vlgmr.msra.gmra.mrb[116].mxu0 %vm5182_vm11, %v14081_v1  ;;  %v11558_v1 = vsel %vm20408_vm3, %v19060_v56, %v18995_v55  ;;  %vm20412_vm3 = vmmov %vm20395_vm0 }
 0x727   : > { %14088 = vmatmul.mubr.msk.bf16.vlgmr.msra.gmra.mrb[116].mxu1 %vm5182_vm11, %v14087_v42  ;;  %11624 = vmatpush1.bf16.msra.mxu0 %v11547_v54  ;;  %v19354_v2 = vpop.permute.xlu1 %12219  ;;  %v11560_v56 = vsel %vm20412_vm3, %v19103_v24, %v19012_v14 }
 0x728   : > { %v19356_v34 = vpop.permute.xlu0 %11893  ;;  %11665 = vmatpush1.bf16.msra.mxu1 %v11549_v5  ;;  %11625 = vmatprep.subr.bf16.mxu0 %v11556_v45 }
 0x729   : > { %11666 = vmatprep.subr.bf16.mxu1 %v11558_v1  ;;  %11655 = vmatprep.mubr.bf16.mxu0 %v18513_v35  ;;  %v20429_v1 = vlaneseq }
 0x72a   : > { %11696 = vmatprep.mubr.bf16.mxu1 %v18513_v35 }
 0x72b   : > { %11626 = vmatpush1.bf16.msra.mxu0 %v11555_v51  ;;  %v11526_v11 = vpop.permute.xlu1 %11525  ;;  %v12885_v51 = vld [vmem:[%s14602_s10] ss:$8 sm:$0xf0] }
 0x72c   : > { %v19369_v52 = vpop.permute.xlu0 %12213  ;;  %11667 = vmatpush1.bf16.msra.mxu1 %v11557_v61  ;;  %v11552_v21 = vsel %vm20395_vm0, %v19085_v38, %v11526_v11  ;;  %v11559_v38 = vsel %vm20413_vm2, %v18995_v55, %v19103_v24  ;;  %vm20415_vm0 = vmmov %vm20414_vm6 }
 0x72d   : > { %11705 = vmatprep.subr.bf16.mxu0 %v11552_v21  ;;  %14371 = vmatprep.subr.bf16.mxu1 %v19223_v30  ;;  %v11898_v3 = vsel %vm20415_vm0, %v19144_v12, %v19083_v29  ;;  %vm20416_vm14 = vmmov %vm20415_vm0 }
 0x72e   : > { %14089 = vmatmul.mubr.msk.bf16.vlgmr.msra.gmra.mrb[120].mxu0 %vm5182_vm11, %v14087_v42  ;;  %v11895_v55 = vsel %vm20416_vm14, %v19177_v39, %v19119_v6  ;;  %vm20417_vm3 = vmmov %vm20415_vm0 }
 0x72f   : > { %14090 = vmatmul.mubr.msk.bf16.vlgmr.msra.gmra.mrb[120].mxu1 %vm5182_vm11, %v14087_v42  ;;  %11706 = vmatpush1.bf16.msra.mxu0 %v11551_v23  ;;  %v19382_v15 = vpop.permute.xlu1 %12235  ;;  %v11897_v24 = vsel %vm20417_vm3, %v19035_v10, %v19144_v12  ;;  %vm20418_vm2 = vmmov %vm20415_vm0  ;;  %v11904_v10 = vsel %vm20415_vm0, %v19141_v20, %v19101_v41  ;;  %v11901_v20 = vsel %vm20415_vm0, %v19175_v37, %v19253_v36 }
 0x730   : > { %v19384_v33 = vpop.permute.xlu0 %12217  ;;  %14372 = vmatpush3.bf16.msra.mxu1 %v11526_v11  ;;  %11707 = vmatprep.subr.bf16.mxu0 %v11560_v56  ;;  %vm20419_vm6 = vmmov %vm20415_vm0 }
 0x731   : > { %14373 = vmatprep.subr.bf16.mxu1 %v19223_v30  ;;  %11737 = vmatprep.mubr.bf16.mxu0 %v18513_v35  ;;  %v11907_v6 = vsel %vm20419_vm6, %v19117_v13, %v19215_v18  ;;  %vm20420_vm14 = vmmov %vm20415_vm0 }
 0x732   : > { %14375 = vmatprep.mubr.msk.bf16.mxu1 %vm14524_vm4, %v19223_v30  ;;  %v11906_v12 = vsel %vm20420_vm14, %v19196_v17, %v19117_v13  ;;  %vm20421_vm3 = vmmov %vm20415_vm0 }
 0x733   : > { %11708 = vmatpush1.bf16.msra.mxu0 %v11559_v38  ;;  %v19396_v40 = vpop.permute.xlu1 %12239  ;;  %v11900_v39 = vsel %vm20421_vm3, %v19232_v60, %v19175_v37  ;;  %vm20423_vm6 = vmmov %vm20415_vm0 }
 0x734   : > { %v19398_v22 = vpop.permute.xlu0 %12233  ;;  %14374 = vmatpush3.bf16.msra.mxu1 %v19012_v14  ;;  %11934 = vmatprep.subr.bf16.mxu0 %v11896_v32  ;;  %v11905_v14 = vsel %vm20418_vm2, %v19101_v41, %v19196_v17  ;;  %vm20422_vm2 = vmmov %vm20415_vm0  ;;  %v11899_v13 = vsel %vm20423_vm6, %v19083_v29, %v19232_v60 }
 0x735   : > { %11975 = vmatprep.subr.bf16.mxu1 %v11898_v3  ;;  %vm20424_vm14 = vmmov %vm20415_vm0 }
 0x736   : > { %14091 = vmatmul.mubr.msk.bf16.vlgmr.msra.gmra.mrb[124].mxu0 %vm5182_vm11, %v14087_v42  ;;  %v11909_v17 = vsel %vm20424_vm14, %v19272_v27, %v19213_v26  ;;  %vm20425_vm3 = vmmov %vm20415_vm0 }
 0x737   : > { %14376 = vmatmul.mubr.msk.bf16.vlgmr.msra.gmra.mrb[124].mxu1 %vm5182_vm11, %v14087_v42  ;;  %11935 = vmatpush1.bf16.msra.mxu0 %v11895_v55  ;;  %v19415_v46 = vpop.permute.xlu1 %12241  ;;  %v19436_v42 = vld [vmem:[%s20038_s5 + $0x18] sm:$0xf]  ;;  %v11911_v29 = vsel %vm20425_vm3, %v19289_v8, %v19230_v28  ;;  %vm20427_vm6 = vmmov %vm20415_vm0 }
 0x738   : > { %v19417_v16 = vpop.permute.xlu0 %12237  ;;  %11976 = vmatpush1.bf16.msra.mxu1 %v11897_v24  ;;  %11936 = vmatprep.subr.bf16.mxu0 %v11905_v14  ;;  %v11910_v60 = vsel %vm20427_vm6, %v19213_v26, %v19289_v8 }
 0x739   : > { %11977 = vmatprep.subr.bf16.mxu1 %v11907_v6  ;;  %11966 = vmatprep.mubr.bf16.mxu0 %v18513_v35 }
 0x73a   : > { %12007 = vmatprep.mubr.bf16.mxu1 %v18513_v35 }
 0x73b   : > { %11937 = vmatpush1.bf16.msra.mxu0 %v11904_v10  ;;  %v11872_v43 = vpop.permute.xlu1 %11871 }
 0x73c   : > { %v19438_v54 = vpop.permute.xlu0 %12221  ;;  %11978 = vmatpush1.bf16.msra.mxu1 %v11906_v12  ;;  %12016 = vmatprep.subr.bf16.mxu0 %v11900_v39  ;;  %v11902_v41 = vsel %vm20422_vm2, %v19253_v36, %v11872_v43  ;;  %vm20426_vm2 = vmmov %vm20415_vm0  ;;  %vm20428_vm0 = vcmask 482304  }
 0x73d   : > { %12057 = vmatprep.subr.bf16.mxu1 %v11902_v41  ;;  %v11908_v37 = vsel %vm20426_vm2, %v19215_v18, %v19272_v27  ;;  %v12248_v45 = vsel %vm20428_vm0, %v19304_v49, %v19251_v53  ;;  %v19479_v18 = vshrl.u32 %v20429_v1, 7  ;;  %v12884_v27 = vld [vmem:[%s14602_s10] ss:$8 sm:$0xf]  ;;  %vm20430_vm14 = vmmov %vm20426_vm2  ;;  %v12256_v32 = vsel %vm20428_vm0, %v19315_v50, %v19335_v48  ;;  %v19535_v50 = vld [vmem:[%s20038_s5 + $0x1c] sm:$0xf] }
 0x73e   : > { %14094 = vmatmul.mubr.msk.bf16.vlgmr.msra.gmra.mrb[128].mxu0 %vm5182_vm11, %v19436_v42  ;;  %v11903_v26 = vsel %vm20430_vm14, %v11872_v43, %v19317_v63  ;;  %v19487_v8 = vor.u32 %v12885_v51, %v12884_v27  ;;  %vm20431_vm3 = vmmov %vm20428_vm0  ;;  %v12259_v39 = vsel %vm20428_vm0, %v19398_v22, %v19382_v15 }
 0x73f   : > { %14095 = vmatmul.mubr.msk.bf16.vlgmr.msra.gmra.mrb[128].mxu1 %vm5182_vm11, %v19436_v42  ;;  %12017 = vmatpush1.bf16.msra.mxu0 %v11899_v13  ;;  %v19455_v5 = vpop.permute.xlu1 %12245  ;;  %v19490_v61 = vsub.s32 0, %v19479_v18  ;;  %v12247_v11 = vsel %vm20431_vm3, %v19287_v19, %v19304_v49  ;;  %vm20432_vm2 = vmmov %vm20428_vm0  ;;  %v12897_v19 = vsub.s32 1, %v19479_v18  ;;  %v11912_v49 = vsel %vm20427_vm6, %v19230_v28, %v19356_v34 }
 0x740   : > { %v19457_v25 = vpop.permute.xlu0 %12225  ;;  %12058 = vmatpush1.bf16.msra.mxu1 %v11901_v20  ;;  %12018 = vmatprep.subr.bf16.mxu0 %v11909_v17  ;;  %v12257_v63 = vsel %vm20432_vm2, %v19335_v48, %v19302_v9  ;;  %v12901_v38 = vsub.s32 2, %v19479_v18  ;;  %vm20433_vm14 = vmmov %vm20428_vm0  ;;  %v12905_v14 = vsub.s32 3, %v19479_v18  ;;  %v12909_v10 = vsub.s32 4, %v19479_v18 }
 0x741   : > { %12059 = vmatprep.subr.bf16.mxu1 %v11911_v29  ;;  %12048 = vmatprep.mubr.bf16.mxu0 %v18513_v35  ;;  %v12894_v56 = vrot.slane %v19487_v8, %v19490_v61  ;;  %v12250_v3 = vsel %vm20433_vm14, %v19369_v52, %v19333_v58  ;;  %v12898_v28 = vrot.slane %v19487_v8, %v12897_v19  ;;  %vm20434_vm3 = vmmov %vm20428_vm0  ;;  %v12913_v20 = vsub.s32 5, %v19479_v18 }
 0x742   : > { %12089 = vmatprep.mubr.bf16.mxu1 %v18513_v35  ;;  %v12252_v24 = vsel %vm20434_vm3, %v19384_v33, %v19354_v2  ;;  %v12902_v48 = vrot.slane %v19487_v8, %v12901_v38  ;;  %vm20435_vm2 = vmmov %vm20428_vm0  ;;  %v10076_v29 = vadd.f32 %v19223_v30, %v19154_v62 }
 0x743   : > { %12019 = vmatpush1.bf16.msra.mxu0 %v11908_v37  ;;  %v19470_v36 = vpop.permute.xlu1 %12563  ;;  %12927 = vrot.lane.b32.xlu1 %v12894_v56, %s14517_s18  ;;  %v12249_v6 = vsel %vm20435_vm2, %v19251_v53, %v19369_v52  ;;  %vm20436_vm6 = vmmov %vm20428_vm0  ;;  %v12906_v52 = vrot.slane %v19487_v8, %v12905_v14  ;;  %v12914_v37 = vrot.slane %v19487_v8, %v12913_v20 }
 0x744   : > { %v19472_v47 = vpop.permute.xlu0 %12243  ;;  %12060 = vmatpush1.bf16.msra.mxu1 %v11910_v60  ;;  %14379 = vmatprep.subr.bf16.mxu0 %v19223_v30  ;;  %v12251_v12 = vsel %vm20436_vm6, %v19333_v58, %v19384_v33  ;;  %vm20437_vm14 = vmmov %vm20428_vm0  ;;  %v12910_v33 = vrot.slane %v19487_v8, %v12909_v10 }
 0x745   : > { %12286 = vmatprep.subr.bf16.mxu1 %v12248_v45  ;;  %12929 = vrot.lane.b32.xlu0 %v12898_v28, %s14517_s18  ;;  %v12261_v58 = vsel %vm20437_vm14, %v19417_v16, %v19396_v40  ;;  %vm20438_vm3 = vmmov %vm20428_vm0 }
 0x746   : > { %14096 = vmatmul.mubr.msk.bf16.vlgmr.msra.gmra.mrb[132].mxu0 %vm5182_vm11, %v19436_v42  ;;  %vm20439_vm2 = vmmov %vm20428_vm0 }
 0x747   : > { %14097 = vmatmul.mubr.msk.bf16.vlgmr.msra.gmra.mrb[132].mxu1 %vm5182_vm11, %v19436_v42  ;;  %14380 = vmatpush3.bf16.msra.mxu0 %v11903_v26  ;;  %v19497_v21 = vpop.permute.xlu1 %12567  ;;  %v12260_v41 = vsel %vm20439_vm2, %v19382_v15, %v19417_v16  ;;  %vm20440_vm6 = vmmov %vm20428_vm0  ;;  %v12917_v15 = vsub.s32 6, %v19479_v18 }
 0x748   : > { %v19499_v23 = vpop.permute.xlu0 %12561  ;;  %12287 = vmatpush1.bf16.msra.mxu1 %v12247_v11  ;;  %14381 = vmatprep.subr.bf16.mxu0 %v19223_v30  ;;  %vm20441_vm14 = vmmov %vm20428_vm0 }
 0x749   : > { %12288 = vmatprep.subr.bf16.mxu1 %v12257_v63  ;;  %14383 = vmatprep.mubr.msk.bf16.mxu0 %vm14524_vm4, %v19223_v30  ;;  %v12253_v16 = vsel %vm20441_vm14, %v19354_v2, %v19438_v54  ;;  %v10077_v2 = vadd.f32 %v19223_v30, %v19163_v31  ;;  %v12918_v62 = vrot.slane %v19487_v8, %v12917_v15  ;;  %vm20443_vm2 = vmmov %vm20428_vm0 }
 0x74a   : > { %12318 = vmatprep.mubr.bf16.mxu1 %v18513_v35  ;;  %12931 = vrot.lane.b32.xlu1 %v12902_v48, %s14517_s18  ;;  %v12262_v31 = vsel %vm20443_vm2, %v19396_v40, %v19415_v46 }
 0x74b   : > { %14382 = vmatpush3.bf16.msra.mxu0 %v11912_v49  ;;  %v19522_v55 = vpop.permute.xlu1 %12581  ;;  %12933 = vrot.lane.b32.xlu0 %v12906_v52, %s14517_s18  ;;  %v14105_v52 = vld [vmem:[%s20038_s5 + $0x20] sm:$0xf] }
 0x74c   : > { %v19527_v34 = vpop.permute.xlu0 %12565  ;;  %12289 = vmatpush1.bf16.msra.mxu1 %v12256_v32  ;;  %12327 = vmatprep.subr.bf16.mxu0 %v12250_v3  ;;  %v14111_v32 = vld [vmem:[%s14602_s10 + $0x40] ss:$8 sm:$0x1] }
 0x74d   : > { %12368 = vmatprep.subr.bf16.mxu1 %v12252_v24  ;;  %v12926_v28 = vrot.slane %v14111_v32, %v19490_v61  ;;  %v10102_v32 = vld [vmem:[#allocation4 + $0x40] sm:$0xff] }
 0x74e   : > { %14384 = vmatmul.mubr.msk.bf16.vlgmr.msra.gmra.mrb[136].mxu0 %vm5182_vm11, %v19436_v42  ;;  %v12258_v42 = vsel %vm20438_vm3, %v19302_v9, %v19398_v22  ;;  %12935 = vrot.lane.b32.xlu1 %v12910_v33, %s14517_s18  ;;  %vm20442_vm3 = vmmov %vm20428_vm0 }
 0x74f   : > { %14100 = vmatmul.mubr.msk.bf16.vlgmr.msra.gmra.mrb[136].mxu1 %vm5182_vm11, %v19535_v50  ;;  %12328 = vmatpush1.bf16.msra.mxu0 %v12249_v6  ;;  %v19557_v53 = vpop.permute.xlu1 %12585 }
 0x750   : > { %v12560_v43 = vpop.permute.xlu0 %12559  ;;  %12369 = vmatpush1.bf16.msra.mxu1 %v12251_v12  ;;  %12329 = vmatprep.subr.bf16.mxu0 %v12259_v39 }
 0x751   : > { %12370 = vmatprep.subr.bf16.mxu1 %v12261_v58  ;;  %12359 = vmatprep.mubr.bf16.mxu0 %v18513_v35 }
 0x752   : > { %12400 = vmatprep.mubr.bf16.mxu1 %v18513_v35  ;;  %12937 = vrot.lane.b32.xlu0 %v12914_v37, %s14517_s18  ;;  %v10079_v37 = vadd.f32 %v19223_v30, %v19165_v4 }
 0x753   : > { %12330 = vmatpush1.bf16.msra.mxu0 %v12258_v42  ;;  %v12224_v13 = vpop.permute.xlu1 %12223  ;;  %12939 = vrot.lane.b32.xlu1 %v12918_v62, %s14517_s18 }
 0x754   : > { %v19579_v17 = vpop.permute.xlu0 %12583  ;;  %12371 = vmatpush1.bf16.msra.mxu1 %v12260_v41  ;;  %v12254_v9 = vsel %vm20440_vm6, %v19438_v54, %v12224_v13  ;;  %v12255_v22 = vsel %vm20428_vm0, %v12224_v13, %v19457_v25  ;;  %v12263_v25 = vsel %vm20442_vm3, %v19415_v46, %v19472_v47  ;;  %v12921_v54 = vsub.s32 7, %v19479_v18  ;;  %vm20444_vm6 = vmmov %vm20428_vm0 }
 0x755   : > { %12409 = vmatprep.subr.bf16.mxu0 %v12254_v9  ;;  %14387 = vmatprep.subr.bf16.mxu1 %v19223_v30  ;;  %v12264_v63 = vsel %vm20444_vm6, %v19472_v47, %v19455_v5  ;;  %vm20445_vm0 = vcmask 474112  }
 0x756   : > { %14101 = vmatmul.mubr.msk.bf16.vlgmr.msra.gmra.mrb[140].mxu0 %vm5182_vm11, %v19535_v50  ;;  %v12922_v11 = vrot.slane %v19487_v8, %v12921_v54  ;;  %v12600_v40 = vsel %vm20445_vm0, %v19499_v23, %v19470_v36  ;;  %vm20446_vm14 = vmmov %vm20445_vm0 }
 0x757   : > { %14102 = vmatmul.mubr.msk.bf16.vlgmr.msra.gmra.mrb[140].mxu1 %vm5182_vm11, %v19535_v50  ;;  %12410 = vmatpush1.bf16.msra.mxu0 %v12253_v16  ;;  %v12580_v60 = vpop.permute.xlu1 %12579  ;;  %v12602_v8 = vsel %vm20446_vm14, %v19527_v34, %v19497_v21  ;;  %vm20447_vm3 = vmmov %vm20445_vm0 }
 0x758   : > { %v19608_v45 = vpop.permute.xlu0 %12587  ;;  %14388 = vmatpush3.bf16.msra.mxu1 %v12255_v22  ;;  %12411 = vmatprep.subr.bf16.mxu0 %v12263_v25  ;;  %v12599_v47 = vsel %vm20447_vm3, %v12560_v43, %v19499_v23  ;;  %vm20448_vm2 = vmmov %vm20445_vm0 }
 0x759   : > { %14389 = vmatprep.subr.bf16.mxu1 %v19223_v30  ;;  %12441 = vmatprep.mubr.bf16.mxu0 %v18513_v35  ;;  %v10248_v27 = vpop.f32.mrb[76].mxu1  ;;  %v12601_v24 = vsel %vm20448_vm2, %v19470_v36, %v19527_v34  ;;  %vm20449_vm6 = vmmov %vm20445_vm0  ;;  %v12611_v12 = vsel %vm20445_vm0, %v19557_v53, %v19608_v45 }
 0x75a   : > { %14391 = vmatprep.mubr.msk.bf16.mxu1 %vm14524_vm4, %v19223_v30  ;;  %v19617_v51 = vadd.f32 %v10248_v27, %v10076_v29  ;;  %v10250_v26 = vpop.f32.mrb[77].mxu1  ;;  %12941 = vrot.lane.b32.xlu0 %v12922_v11, %s14517_s18  ;;  %v12609_v48 = vsel %vm20449_vm6, %v19522_v55, %v19579_v17  ;;  %vm20450_vm14 = vmmov %vm20445_vm0  ;;  %v10078_v29 = vadd.f32 %v19223_v30, %v19156_v59 }
 0x75b   : > { %12412 = vmatpush1.bf16.msra.mxu0 %v12262_v31  ;;  %v12572_v46 = vpop.permute.xlu1 %12571  ;;  %v19629_v56 = vadd.f32 %v10250_v26, %v10077_v2  ;;  %v10252_v49 = vpop.f32.mrb[78].mxu1  ;;  %v12608_v36 = vsel %vm20450_vm14, %v12580_v60, %v19522_v55  ;;  %12943 = vrot.lane.b32.xlu1 %v12926_v28, %s14517_s18  ;;  %vm20451_vm3 = vmmov %vm20445_vm0  ;;  %v10080_v31 = vadd.f32 %v19223_v30, %v19187_v44 }
 0x75c   : > { %v12570_v3 = vpop.permute.xlu0 %12569  ;;  %14390 = vmatpush3.bf16.msra.mxu1 %v12264_v63  ;;  %12638 = vmatprep.subr.bf16.mxu0 %v12600_v40  ;;  %v10253_v5 = vpop.f32.mrb[79].mxu1  ;;  %v12610_v34 = vsel %vm20451_vm3, %v19579_v17, %v19557_v53  ;;  %vm20452_vm2 = vmmov %vm20445_vm0  ;;  %v10081_v26 = vadd.f32 %v19223_v30, %v19194_v57  ;;  %v10083_v44 = vadd.f32 %v19223_v30, %v19201_v0 }
 0x75d   : > { %12679 = vmatprep.subr.bf16.mxu1 %v12602_v8  ;;  %vm20453_vm6 = vmmov %vm20445_vm0 }
 0x75e   : > { %14103 = vmatmul.mubr.msk.bf16.vlgmr.msra.gmra.mrb[144].mxu0 %vm5182_vm11, %v19535_v50  ;;  %vm20454_vm14 = vmmov %vm20445_vm0 }
 0x75f   : > { %14392 = vmatmul.mubr.msk.bf16.vlgmr.msra.gmra.mrb[144].mxu1 %vm5182_vm11, %v19535_v50  ;;  %12639 = vmatpush1.bf16.msra.mxu0 %v12599_v47  ;;  %v12592_v23 = vpop.permute.xlu1 %12591  ;;  %v12604_v50 = vsel %vm20452_vm2, %v12570_v3, %v12572_v46  ;;  %v12603_v33 = vsel %vm20454_vm14, %v19497_v21, %v12570_v3  ;;  %vm20455_vm3 = vmmov %vm20445_vm0  ;;  %v10082_v3 = vadd.f32 %v19223_v30, %v19189_v7 }
 0x760   : > { %v12574_v6 = vpop.permute.xlu0 %12573  ;;  %12680 = vmatpush1.bf16.msra.mxu1 %v12601_v24  ;;  %12640 = vmatprep.subr.bf16.mxu0 %v12609_v48  ;;  %vm20456_vm2 = vmmov %vm20445_vm0 }
 0x761   : > { %12681 = vmatprep.subr.bf16.mxu1 %v12611_v12  ;;  %12670 = vmatprep.mubr.bf16.mxu0 %v18513_v35  ;;  %v12605_v53 = vsel %vm20455_vm3, %v12572_v46, %v12574_v6  ;;  %vm20458_vm14 = vmmov %vm20445_vm0 }
 0x762   : > { %12711 = vmatprep.mubr.bf16.mxu1 %v18513_v35  ;;  %vm20459_vm3 = vmmov %vm20445_vm0 }
 0x763   : > { %12641 = vmatpush1.bf16.msra.mxu0 %v12608_v36  ;;  %v12576_v39 = vpop.permute.xlu1 %12575 }
 0x764   : > { %v12590_v43 = vpop.permute.xlu0 %12589  ;;  %12682 = vmatpush1.bf16.msra.mxu1 %v12610_v34  ;;  %12720 = vmatprep.subr.bf16.mxu0 %v12604_v50  ;;  %v12606_v55 = vsel %vm20453_vm6, %v12574_v6, %v12576_v39  ;;  %vm20457_vm6 = vmmov %vm20445_vm0 }
 0x765   : > { %12761 = vmatprep.subr.bf16.mxu1 %v12606_v55  ;;  %v12613_v58 = vsel %vm20445_vm0, %v12590_v43, %v12592_v23  ;;  %v12612_v21 = vsel %vm20445_vm0, %v19608_v45, %v12590_v43 }
 0x766   : > { %14106 = vmatmul.mubr.msk.bf16.vlgmr.msra.gmra.mrb[148].mxu0 %vm5182_vm11, %v14105_v52 }
 0x767   : > { %14107 = vmatmul.mubr.msk.bf16.vlgmr.msra.gmra.mrb[148].mxu1 %vm5182_vm11, %v14105_v52  ;;  %12721 = vmatpush1.bf16.msra.mxu0 %v12603_v33  ;;  %v12596_v41 = vpop.permute.xlu1 %12595 }
 0x768   : > { %v12594_v42 = vpop.permute.xlu0 %12593  ;;  %12762 = vmatpush1.bf16.msra.mxu1 %v12605_v53  ;;  %12722 = vmatprep.subr.bf16.mxu0 %v12613_v58 }
 0x769   : > { %v12614_v13 = vsel %vm20456_vm2, %v12592_v23, %v12594_v42  ;;  %v12615_v17 = vsel %vm20457_vm6, %v12594_v42, %v12596_v41  ;;  %12752 = vmatprep.mubr.bf16.mxu0 %v18513_v35  ;;  %12793 = vmatprep.mubr.bf16.mxu1 %v18513_v35  ;;  %v12999_v42 = vld [vmem:[%s19712_s29] sm:$0xff]  ;;  %vm13060_vm6 = vcmp.lt.s32.totalorder %v20429_v1, 132 }
 0x76a   : > { %12763 = vmatprep.subr.bf16.mxu1 %v12615_v17  ;;  %13062 = vst.msk [vmem:[#allocation5 + $0x8] sm:$0x3] %vm13060_vm6, %v19223_v30 }
 0x76b   : > { %12723 = vmatpush1.bf16.msra.mxu0 %v12612_v21  ;;  %v12598_v16 = vpop.permute.xlu1 %12597 }
 0x76c   : > { %v12578_v9 = vpop.permute.xlu0 %12577  ;;  %12764 = vmatpush1.bf16.msra.mxu1 %v12614_v13  ;;  %14395 = vmatprep.subr.bf16.mxu0 %v19223_v30  ;;  %v12616_v35 = vsel %vm20459_vm3, %v12596_v41, %v12598_v16  ;;  %v13010_v13 = vrot.slane %v12999_v42, %v12897_v19 }
 0x76d   : > { %v12607_v22 = vsel %vm20458_vm14, %v12576_v39, %v12578_v9  ;;  %v13018_v9 = vrot.slane %v12999_v42, %v12905_v14  ;;  %v13026_v14 = vrot.slane %v12999_v42, %v12913_v20 }
 0x76e   : > { %14108 = vmatmul.mubr.msk.bf16.vlgmr.msra.gmra.mrb[152].mxu0 %vm5182_vm11, %v14105_v52 }
 0x76f   : > { %14109 = vmatmul.mubr.msk.bf16.vlgmr.msra.gmra.mrb[152].mxu1 %vm5182_vm11, %v14105_v52  ;;  %14396 = vmatpush3.bf16.msra.mxu0 %v12607_v22  ;;  %v13006_v22 = vrot.slane %v12999_v42, %v19490_v61  ;;  %v13030_v61 = vrot.slane %v12999_v42, %v12917_v15  ;;  %v13034_v15 = vrot.slane %v12999_v42, %v12921_v54 }
 0x770   : > { %14397 = vmatprep.subr.bf16.mxu0 %v19223_v30  ;;  %14399 = vmatprep.mubr.msk.bf16.mxu0 %vm14524_vm4, %v19223_v30 }
 0x773   : > { %14398 = vmatpush3.bf16.msra.mxu0 %v12616_v35 }
 0x776   : > { %14400 = vmatmul.mubr.msk.bf16.vlgmr.msra.gmra.mrb[156].mxu0 %vm5182_vm11, %v14105_v52  ;;  %vm20460_vm11 = vcmask 523264  }
 0x777   : > { %vm20469_vm4 = vmmov %vm20460_vm11 }
 0x778   : > { %vm20471_vm2 = vmmov %vm20469_vm4 }
 0x779   : > { %vm20472_vm0 = vmmov %vm20471_vm2 }
 0x77a   : > { %vm20473_vm14 = vmmov %vm20472_vm0 }
 0x77b   : > { %vm20474_vm3 = vmmov %vm20472_vm0 }
 0x788   : > { %v10289_v25 = vpop.f32.mrb[80].mxu0 }
 0x789   : > { %v10420_v60 = vadd.f32 %v10289_v25, %v10078_v29  ;;  %v10291_v2 = vpop.f32.mrb[81].mxu0 }
 0x78a   : > { %v10421_v62 = vadd.f32 %v10291_v2, %v10079_v37  ;;  %v10293_v45 = vpop.f32.mrb[82].mxu0  ;;  %v14525_v37 = vmov 1966171168  }
 0x78b   : > { %v10294_v27 = vpop.f32.mrb[83].mxu0  ;;  %v13113_v25 = vunpack.c.l.s4 %v14525_v37  ;;  %v13022_v45 = vrot.slane %v12999_v42, %v12909_v10 }
 0x78d   : > { %v13114_v20 = vunpack.c.0.s8 %v13113_v25 }
 0x7a5   : > { %v10330_v11 = vpop.f32.mrb[80].mxu1 }
 0x7a6   : > { %v10422_v63 = vadd.f32 %v10330_v11, %v10080_v31  ;;  %v10332_v40 = vpop.f32.mrb[81].mxu1  ;;  %v19734_v31 = vsel %vm16145_vm15, %v13006_v22, 0.0  ;;  %v19738_v11 = vsel %vm16154_vm10, %v13010_v13, 0.0 }
 0x7a7   : > { %v10423_v46 = vadd.f32 %v10332_v40, %v10081_v26  ;;  %v10334_v59 = vpop.f32.mrb[82].mxu1 }
 0x7a8   : > { %v10335_v49 = vpop.f32.mrb[83].mxu1 }
 0x7a9   : > { %v19752_v49 = vsel %vm16290_vm7, %v13022_v45, 0.0 }
 0x7b6   : > { %v10412_v4 = vpop.f32.mrb[84].mxu1 }
 0x7b7   : > { %v10426_v8 = vadd.f32 %v10412_v4, %v10102_v32  ;;  %v14345_v5 = vpop.f32.mrb[85].mxu1 }
 0x7b8   : > { %v10371_v47 = vpop.f32.mrb[84].mxu0  ;;  %v10415_v28 = vpop.f32.mrb[86].mxu1 }
 0x7b9   : > { %v10424_v57 = vadd.f32 %v10371_v47, %v10082_v3  ;;  %v10373_v24 = vpop.f32.mrb[85].mxu0  ;;  %10435 = vst.msk [vmem:[#allocation4 + $0x40] sm:$0xff] %vm20460_vm11, %v10426_v8  ;;  %v14346_v48 = vpop.f32.mrb[87].mxu1  ;;  %v13108_v3 = vcombine.low %v19734_v31, %v19738_v11  ;;  %vm20475_vm11 = vmmov %vm20472_vm0 }
 0x7ba   : > { %v10425_v23 = vadd.f32 %v10373_v24, %v10083_v44  ;;  %v10375_v6 = vpop.f32.mrb[86].mxu0  ;;  %v19764_v24 = vsel %vm16352_vm9, %v13030_v61, 0.0  ;;  %v19767_v48 = vsub.s32 %v13114_v20, %v19479_v18 }
 0x7bb   : > { %v10376_v12 = vpop.f32.mrb[87].mxu0 }
 0x7be   : > { %v10631_v36 = vpop.f32.mrb[88].mxu1 }
 0x7bf   : > { %v19700_v34 = vadd.f32 %v10631_v36, %v10420_v60  ;;  %v10633_v7 = vpop.f32.mrb[89].mxu1 }
 0x7c0   : > { %v19703_v50 = vadd.f32 %v10633_v7, %v10421_v62  ;;  %v10635_v39 = vpop.f32.mrb[90].mxu1  ;;  %v10444_v32 = vld [vmem:[#allocation4 + $0x40] sm:$0xff] }
 0x7c1   : > { %v10590_v0 = vpop.f32.mrb[88].mxu0  ;;  %v10636_v52 = vpop.f32.mrb[91].mxu1  ;;  %v19773_v39 = vsel %vm16375_vm13, %v13034_v15, 0.0 }
 0x7c2   : > { %v10760_v43 = vadd.f32 %v10590_v0, %v19617_v51  ;;  %v10592_v55 = vpop.f32.mrb[89].mxu0 }
 0x7c3   : > { %v10761_v58 = vadd.f32 %v10592_v55, %v19629_v56  ;;  %v10594_v33 = vpop.f32.mrb[90].mxu0  ;;  %v13014_v56 = vrot.slane %v12999_v42, %v12901_v38 }
 0x7c4   : > { %v10595_v53 = vpop.f32.mrb[91].mxu0  ;;  %v13111_v33 = vcombine.low %v19764_v24, %v19773_v39 }
 0x7c5   : > { %v19742_v40 = vsel %vm16209_vm5, %v13014_v56, 0.0 }
 0x7c9   : > { %v10672_v41 = vpop.f32.mrb[92].mxu0 }
 0x7ca   : > { %v10764_v17 = vadd.f32 %v10672_v41, %v10422_v63  ;;  %v10713_v21 = vpop.f32.mrb[92].mxu1  ;;  %v10674_v51 = vpop.f32.mrb[93].mxu0  ;;  %v13139_v41 = vrot.slane %v13111_v33, %v19767_v48 }
 0x7cb   : > { %v19722_v16 = vadd.f32 %v10713_v21, %v10424_v57  ;;  %v10765_v35 = vadd.f32 %v10674_v51, %v10423_v46  ;;  %v10715_v29 = vpop.f32.mrb[93].mxu1  ;;  %v10676_v60 = vpop.f32.mrb[94].mxu0  ;;  %v19746_v46 = vsel %vm16233_vm1, %v13018_v9, 0.0  ;;  %v19760_v57 = vsel %vm16328_vm8, %v13026_v14, 0.0 }
 0x7cc   : > { %v19724_v2 = vadd.f32 %v10715_v29, %v10425_v23  ;;  %v10717_v19 = vpop.f32.mrb[94].mxu1  ;;  %v10677_v62 = vpop.f32.mrb[95].mxu0  ;;  %v13109_v8 = vcombine.low %v19742_v40, %v19746_v46  ;;  %v13110_v36 = vcombine.low %v19752_v49, %v19760_v57 }
 0x7cd   : > { %v10718_v38 = vpop.f32.mrb[95].mxu1  ;;  %v14112_v62 = vld [vmem:[%s19712_s29 + $0x8] ss:$0 sm:$0xff] }
 0x7ce   : > { %v13125_v53 = vrot.slane %v13109_v8, %v19767_v48  ;;  %v13132_v42 = vrot.slane %v13110_v36, %v19767_v48 }
 0x7d0   : > { %v13141_v21 = vcombine.low %v13132_v42, %v13139_v41 }
 0x7d1   : > { %v10754_v4 = vpop.f32.mrb[96].mxu0 }
 0x7d2   : > { %v10768_v5 = vadd.f32 %v10754_v4, %v10444_v32  ;;  %v10932_v44 = vpop.f32.mrb[96].mxu1  ;;  %v14353_v47 = vpop.f32.mrb[97].mxu0  ;;  %v13155_v29 = vrot.slane %v13141_v21, %v19767_v48  ;;  %v19789_v32 = vsel %vm16464_vm12, %v14112_v62, 0.0 }
 0x7d3   : > { %v11102_v23 = vadd.f32 %v10932_v44, %v10760_v43  ;;  %v10934_v6 = vpop.f32.mrb[97].mxu1  ;;  %v10757_v12 = vpop.f32.mrb[98].mxu0  ;;  %v13118_v43 = vrot.slane %v13108_v3, %v19767_v48 }
 0x7d4   : > { %10777 = vst.msk [vmem:[#allocation4 + $0x40] sm:$0xff] %vm20469_vm4, %v10768_v5  ;;  %v11103_v0 = vadd.f32 %v10934_v6, %v10761_v58  ;;  %v10936_v52 = vpop.f32.mrb[98].mxu1  ;;  %v14354_v55 = vpop.f32.mrb[99].mxu0  ;;  %vm20476_vm4 = vcmask 760832  }
 0x7d5   : > { %v10937_v18 = vpop.f32.mrb[99].mxu1  ;;  %v13140_v13 = vcombine.low %v13118_v43, %v13125_v53 }
 0x7d7   : > { %v13148_v58 = vrot.slane %v13140_v13, %v19767_v48 }
 0x7d9   : > { %v10973_v51 = vpop.f32.mrb[100].mxu0  ;;  %v13156_v61 = vcombine.low %v13148_v58, %v13155_v29 }
 0x7da   : > { %v11104_v56 = vadd.f32 %v10973_v51, %v19700_v34  ;;  %v11014_v9 = vpop.f32.mrb[100].mxu1  ;;  %v10975_v22 = vpop.f32.mrb[101].mxu0 }
 0x7db   : > { %v11106_v37 = vadd.f32 %v11014_v9, %v10764_v17  ;;  %v11105_v25 = vadd.f32 %v10975_v22, %v19703_v50  ;;  %v11016_v60 = vpop.f32.mrb[101].mxu1  ;;  %v10977_v19 = vpop.f32.mrb[102].mxu0  ;;  %13171 = vrot.lane.b32.xlu0 %v13156_v61, %s14526_s26  ;;  %v13163_v17 = vrot.slane %v19789_v32, %v19767_v48  ;;  %v10786_v4 = vld [vmem:[#allocation4 + $0x40] sm:$0xff] }
 0x7dc   : > { %v11107_v45 = vadd.f32 %v11016_v60, %v10765_v35  ;;  %v11018_v38 = vpop.f32.mrb[102].mxu1  ;;  %v10978_v14 = vpop.f32.mrb[103].mxu0 }
 0x7dd   : > { %v11019_v20 = vpop.f32.mrb[103].mxu1  ;;  %v13170_v6 = vrot.slane %v13163_v17, %v19767_v48 }
 0x7df   : > { %13173 = vrot.lane.b32.xlu1 %v13170_v6, %s14526_s26 }
 0x7e1   : > { %v11055_v34 = vpop.f32.mrb[104].mxu0 }
 0x7e2   : > { %v11108_v50 = vadd.f32 %v11055_v34, %v19722_v16  ;;  %v11096_v3 = vpop.f32.mrb[104].mxu1  ;;  %v11057_v35 = vpop.f32.mrb[105].mxu0 }
 0x7e3   : > { %v11110_v8 = vadd.f32 %v11096_v3, %v10786_v4  ;;  %v11109_v5 = vadd.f32 %v11057_v35, %v19724_v2  ;;  %v14361_v44 = vpop.f32.mrb[105].mxu1  ;;  %v11059_v47 = vpop.f32.mrb[106].mxu0 }
 0x7e4   : > { %v11099_v12 = vpop.f32.mrb[106].mxu1  ;;  %v11060_v36 = vpop.f32.mrb[107].mxu0 }
 0x7e5   : > { %11119 = vst.msk [vmem:[#allocation4 + $0x40] sm:$0xff] %vm20471_vm2, %v11110_v8  ;;  %v14362_v52 = vpop.f32.mrb[107].mxu1  ;;  %vm20477_vm2 = vmmov %vm20476_vm4 }
 0x7e6   : > { %vm20478_vm6 = vmmov %vm20477_vm2 }
 0x7e9   : > { %v11274_v55 = vpop.f32.mrb[108].mxu0 }
 0x7ea   : > { %v11444_v33 = vadd.f32 %v11274_v55, %v11102_v23  ;;  %v11315_v16 = vpop.f32.mrb[108].mxu1  ;;  %v11276_v18 = vpop.f32.mrb[109].mxu0 }
 0x7eb   : > { %v11446_v43 = vadd.f32 %v11315_v16, %v11104_v56  ;;  %v11445_v53 = vadd.f32 %v11276_v18, %v11103_v0  ;;  %v11317_v42 = vpop.f32.mrb[109].mxu1  ;;  %v11278_v41 = vpop.f32.mrb[110].mxu0 }
 0x7ec   : > { %v11447_v2 = vadd.f32 %v11317_v42, %v11105_v25  ;;  %v11319_v13 = vpop.f32.mrb[110].mxu1  ;;  %v11279_v21 = vpop.f32.mrb[111].mxu0  ;;  %v11128_v25 = vld [vmem:[#allocation4 + $0x40] sm:$0xff] }
 0x7ed   : > { %v11320_v51 = vpop.f32.mrb[111].mxu1 }
 0x7f1   : > { %v11356_v58 = vpop.f32.mrb[112].mxu0 }
 0x7f2   : > { %v11448_v9 = vadd.f32 %v11356_v58, %v11106_v37  ;;  %v11397_v22 = vpop.f32.mrb[112].mxu1  ;;  %v11358_v29 = vpop.f32.mrb[113].mxu0 }
 0x7f3   : > { %v11450_v60 = vadd.f32 %v11397_v22, %v11108_v50  ;;  %v11449_v23 = vadd.f32 %v11358_v29, %v11107_v45  ;;  %v11399_v19 = vpop.f32.mrb[113].mxu1  ;;  %v11360_v62 = vpop.f32.mrb[114].mxu0 }
 0x7f4   : > { %v11451_v56 = vadd.f32 %v11399_v19, %v11109_v5  ;;  %v11401_v0 = vpop.f32.mrb[114].mxu1  ;;  %v11361_v38 = vpop.f32.mrb[115].mxu0 }
 0x7f5   : > { %v11402_v14 = vpop.f32.mrb[115].mxu1 }
 0x7f9   : > { %v11438_v61 = vpop.f32.mrb[116].mxu0 }
 0x7fa   : > { %v11452_v20 = vadd.f32 %v11438_v61, %v11128_v25  ;;  %v11616_v34 = vpop.f32.mrb[116].mxu1  ;;  %v14369_v17 = vpop.f32.mrb[117].mxu0 }
 0x7fb   : > { %v11786_v4 = vadd.f32 %v11616_v34, %v11444_v33  ;;  %v11618_v3 = vpop.f32.mrb[117].mxu1  ;;  %v11441_v35 = vpop.f32.mrb[118].mxu0 }
 0x7fc   : > { %11461 = vst.msk [vmem:[#allocation4 + $0x40] sm:$0xff] %vm20472_vm0, %v11452_v20  ;;  %v11787_v30 = vadd.f32 %v11618_v3, %v11445_v53  ;;  %v11620_v37 = vpop.f32.mrb[118].mxu1  ;;  %v14370_v50 = vpop.f32.mrb[119].mxu0  ;;  %vm20479_vm0 = vmmov %vm20477_vm2 }
 0x7fd   : > { %v11621_v45 = vpop.f32.mrb[119].mxu1 }
 0x801   : > { %v11657_v8 = vpop.f32.mrb[120].mxu0 }
 0x802   : > { %v11788_v44 = vadd.f32 %v11657_v8, %v11446_v43  ;;  %v11698_v5 = vpop.f32.mrb[120].mxu1  ;;  %v11659_v47 = vpop.f32.mrb[121].mxu0 }
 0x803   : > { %v11790_v6 = vadd.f32 %v11698_v5, %v11448_v9  ;;  %v11789_v12 = vadd.f32 %v11659_v47, %v11447_v2  ;;  %v11700_v36 = vpop.f32.mrb[121].mxu1  ;;  %v11661_v52 = vpop.f32.mrb[122].mxu0  ;;  %v11470_v13 = vld [vmem:[#allocation4 + $0x40] sm:$0xff] }
 0x804   : > { %v11791_v55 = vadd.f32 %v11700_v36, %v11449_v23  ;;  %v11702_v16 = vpop.f32.mrb[122].mxu1  ;;  %v11662_v18 = vpop.f32.mrb[123].mxu0 }
 0x805   : > { %v11703_v33 = vpop.f32.mrb[123].mxu1 }
 0x809   : > { %v11739_v42 = vpop.f32.mrb[124].mxu0 }
 0x80a   : > { %v11792_v41 = vadd.f32 %v11739_v42, %v11450_v60  ;;  %v11780_v21 = vpop.f32.mrb[124].mxu1  ;;  %v11741_v53 = vpop.f32.mrb[125].mxu0 }
 0x80b   : > { %v11794_v51 = vadd.f32 %v11780_v21, %v11470_v13  ;;  %v11793_v58 = vadd.f32 %v11741_v53, %v11451_v56  ;;  %v14377_v22 = vpop.f32.mrb[125].mxu1  ;;  %v11743_v29 = vpop.f32.mrb[126].mxu0 }
 0x80c   : > { %v11783_v43 = vpop.f32.mrb[126].mxu1  ;;  %v11744_v19 = vpop.f32.mrb[127].mxu0 }
 0x80d   : > { %11803 = vst.msk [vmem:[#allocation4 + $0x40] sm:$0xff] %vm20473_vm14, %v11794_v51  ;;  %v14378_v2 = vpop.f32.mrb[127].mxu1  ;;  %v12928_v51 = vpop.permute.xlu1 %12927  ;;  %vm20480_vm14 = vmmov %vm20479_vm0 }
 0x811   : > { %v11968_v9 = vpop.f32.mrb[128].mxu0 }
 0x812   : > { %v12138_v62 = vadd.f32 %v11968_v9, %v11786_v4  ;;  %v12009_v23 = vpop.f32.mrb[128].mxu1  ;;  %v11970_v0 = vpop.f32.mrb[129].mxu0 }
 0x813   : > { %v12140_v38 = vadd.f32 %v12009_v23, %v11788_v44  ;;  %v12139_v14 = vadd.f32 %v11970_v0, %v11787_v30  ;;  %v12011_v25 = vpop.f32.mrb[129].mxu1  ;;  %v11972_v60 = vpop.f32.mrb[130].mxu0 }
 0x814   : > { %v12141_v61 = vadd.f32 %v12011_v25, %v11789_v12  ;;  %v12013_v20 = vpop.f32.mrb[130].mxu1  ;;  %v11973_v34 = vpop.f32.mrb[131].mxu0  ;;  %v11812_v44 = vld [vmem:[#allocation4 + $0x40] sm:$0xff] }
 0x815   : > { %v12014_v17 = vpop.f32.mrb[131].mxu1  ;;  %v12932_v20 = vpop.permute.xlu1 %12931 }
 0x819   : > { %v12050_v56 = vpop.f32.mrb[132].mxu0 }
 0x81a   : > { %v12142_v3 = vadd.f32 %v12050_v56, %v11790_v6  ;;  %v12091_v35 = vpop.f32.mrb[132].mxu1  ;;  %v12052_v37 = vpop.f32.mrb[133].mxu0 }
 0x81b   : > { %v12144_v50 = vadd.f32 %v12091_v35, %v11792_v41  ;;  %v12143_v45 = vadd.f32 %v12052_v37, %v11791_v55  ;;  %v12093_v8 = vpop.f32.mrb[133].mxu1  ;;  %v12054_v5 = vpop.f32.mrb[134].mxu0 }
 0x81c   : > { %v12145_v47 = vadd.f32 %v12093_v8, %v11793_v58  ;;  %v12095_v4 = vpop.f32.mrb[134].mxu1  ;;  %v12055_v36 = vpop.f32.mrb[135].mxu0 }
 0x81d   : > { %v12096_v52 = vpop.f32.mrb[135].mxu1  ;;  %v19804_v55 = vpop.permute.xlu0 %12872 }
 0x81e   : > { %v12936_v52 = vpop.permute.xlu1 %12935 }
 0x821   : > { %v12132_v30 = vpop.f32.mrb[136].mxu0  ;;  %v12930_v22 = vpop.permute.xlu0 %12929 }
 0x822   : > { %v12146_v16 = vadd.f32 %v12132_v30, %v11812_v44  ;;  %v12320_v18 = vpop.f32.mrb[136].mxu1  ;;  %v14385_v12 = vpop.f32.mrb[137].mxu0 }
 0x823   : > { %v12490_v33 = vadd.f32 %v12320_v18, %v12138_v62  ;;  %v12322_v42 = vpop.f32.mrb[137].mxu1  ;;  %v12135_v13 = vpop.f32.mrb[138].mxu0 }
 0x824   : > { %12155 = vst.msk [vmem:[#allocation4 + $0x40] sm:$0xff] %vm20474_vm3, %v12146_v16  ;;  %v12491_v6 = vadd.f32 %v12322_v42, %v12139_v14  ;;  %v12324_v21 = vpop.f32.mrb[138].mxu1  ;;  %v14386_v41 = vpop.f32.mrb[139].mxu0  ;;  %vm20481_vm3 = vmmov %vm20479_vm0 }
 0x825   : > { %v12325_v53 = vpop.f32.mrb[139].mxu1  ;;  %v12934_v17 = vpop.permute.xlu0 %12933 }
 0x826   : > { %v12940_v16 = vpop.permute.xlu1 %12939 }
 0x829   : > { %v12361_v58 = vpop.f32.mrb[140].mxu0  ;;  %v12938_v44 = vpop.permute.xlu0 %12937 }
 0x82a   : > { %v12492_v29 = vadd.f32 %v12361_v58, %v12140_v38  ;;  %v12402_v43 = vpop.f32.mrb[140].mxu1  ;;  %v12363_v19 = vpop.f32.mrb[141].mxu0 }
 0x82b   : > { %v12494_v2 = vadd.f32 %v12402_v43, %v12142_v3  ;;  %v12493_v9 = vadd.f32 %v12363_v19, %v12141_v61  ;;  %v12404_v23 = vpop.f32.mrb[141].mxu1  ;;  %v12365_v62 = vpop.f32.mrb[142].mxu0  ;;  %v12164_v35 = vld [vmem:[#allocation4 + $0x40] sm:$0xff] }
 0x82c   : > { %v19806_v0 = vadd.f32 %v12404_v23, %v12143_v45  ;;  %v12406_v25 = vpop.f32.mrb[142].mxu1  ;;  %v12366_v60 = vpop.f32.mrb[143].mxu0  ;;  %v12947_v23 = vsel %vm20477_vm2, %v12930_v22, %v12932_v20  ;;  %v12948_v62 = vsel %vm20478_vm6, %v12932_v20, %v12934_v17 }
 0x82d   : > { %v12407_v14 = vpop.f32.mrb[143].mxu1 }
 0x831   : > { %v12443_v34 = vpop.f32.mrb[144].mxu0 }
 0x832   : > { %v12496_v56 = vadd.f32 %v12443_v34, %v12144_v50  ;;  %v12484_v37 = vpop.f32.mrb[144].mxu1  ;;  %v12445_v8 = vpop.f32.mrb[145].mxu0 }
 0x833   : > { %v12498_v5 = vadd.f32 %v12484_v37, %v12164_v35  ;;  %v12497_v38 = vadd.f32 %v12445_v8, %v12145_v47  ;;  %v14393_v4 = vpop.f32.mrb[145].mxu1  ;;  %v12447_v36 = vpop.f32.mrb[146].mxu0  ;;  %v12946_v47 = vsel %vm20476_vm4, %v12928_v51, %v12930_v22  ;;  %v12950_v22 = vsel %vm20480_vm14, %v12936_v52, %v12938_v44  ;;  %vm20483_vm4 = vmmov %vm20479_vm0 }
 0x834   : > { %v12487_v3 = vpop.f32.mrb[146].mxu1  ;;  %v12448_v61 = vpop.f32.mrb[147].mxu0  ;;  %v12951_v36 = vsel %vm20481_vm3, %v12938_v44, %v12940_v16  ;;  %vm20493_vm14 = vcmask 1039360  }
 0x835   : > { %12507 = vst.msk [vmem:[#allocation4 + $0x40] sm:$0xff] %vm20475_vm11, %v12498_v5  ;;  %v14394_v45 = vpop.f32.mrb[147].mxu1  ;;  %v12942_v51 = vpop.permute.xlu0 %12941  ;;  %vm20482_vm11 = vmmov %vm20479_vm0 }
 0x836   : > { %v19817_v35 = vpop.permute.xlu1 %12943  ;;  %v12952_v3 = vsel %vm20482_vm11, %v12940_v16, %v12942_v51  ;;  %vm13625_vm11 = vcmask 1040384  }
 0x839   : > { %v12672_v30 = vpop.f32.mrb[148].mxu0 }
 0x83a   : > { %v12842_v18 = vadd.f32 %v12672_v30, %v12490_v33  ;;  %v12713_v12 = vpop.f32.mrb[148].mxu1  ;;  %v12674_v42 = vpop.f32.mrb[149].mxu0 }
 0x83b   : > { %v12844_v50 = vadd.f32 %v12713_v12, %v12492_v29  ;;  %v12843_v13 = vadd.f32 %v12674_v42, %v12491_v6  ;;  %v12715_v21 = vpop.f32.mrb[149].mxu1  ;;  %v12676_v41 = vpop.f32.mrb[150].mxu0  ;;  %v12949_v6 = vsel %vm20479_vm0, %v12934_v17, %v12936_v52  ;;  %v19824_v12 = vsel %vm20483_vm4, %v12942_v51, %v19817_v35 }
 0x83c   : > { %v12845_v53 = vadd.f32 %v12715_v21, %v12493_v9  ;;  %v12717_v58 = vpop.f32.mrb[150].mxu1  ;;  %v12875_v43 = vadd.f32 %v19804_v55, %v12842_v18  ;;  %v12677_v19 = vpop.f32.mrb[151].mxu0  ;;  %vm13541_vm0 = vcmask 1046528   ;;  %vm13623_vm4 = vcmask 556032  }
 0x83d   : > { %v12718_v25 = vpop.f32.mrb[151].mxu1  ;;  %v12876_v33 = vadd.f32 %v19804_v55, %v12843_v13  ;;  %v12877_v60 = vadd.f32 %v19804_v55, %v12844_v50 }
 0x83e   : > { %v12963_v29 = vadd.f32 %v12946_v47, %v12875_v43  ;;  %v12878_v14 = vadd.f32 %v19804_v55, %v12845_v53 }
 0x83f   : > { %v12964_v9 = vadd.f32 %v12947_v23, %v12876_v33  ;;  %v12965_v34 = vadd.f32 %v12948_v62, %v12877_v60 }
 0x840   : > { %v12972_v37 = vmax.f32 %v12963_v29, 0.0  ;;  %v12966_v8 = vadd.f32 %v12949_v6, %v12878_v14 }
 0x841   : > { %v12754_v20 = vpop.f32.mrb[152].mxu0  ;;  %v12973_v5 = vmax.f32 %v12964_v9, 0.0  ;;  %v12974_v4 = vmax.f32 %v12965_v34, 0.0 }
 0x842   : > { %v12981_v17 = vmin.f32 %v12972_v37, 1.0  ;;  %v12846_v61 = vadd.f32 %v12754_v20, %v12494_v2  ;;  %v12795_v45 = vpop.f32.mrb[152].mxu1  ;;  %v12756_v30 = vpop.f32.mrb[153].mxu0  ;;  %v12975_v18 = vmax.f32 %v12966_v8, 0.0 }
 0x843   : > { %v12848_v42 = vadd.f32 %v12795_v45, %v12496_v56  ;;  %v12982_v50 = vmin.f32 %v12973_v5, 1.0  ;;  %v12847_v52 = vadd.f32 %v12756_v30, %v19806_v0  ;;  %v12797_v13 = vpop.f32.mrb[153].mxu1  ;;  %v12983_v21 = vmin.f32 %v12974_v4, 1.0  ;;  %v12758_v41 = vpop.f32.mrb[154].mxu0 }
 0x844   : > { %v12990_v44 = vsel %vm16145_vm15, %v12981_v17, 0.0  ;;  %v12849_v16 = vadd.f32 %v12797_v13, %v12497_v38  ;;  %v12984_v47 = vmin.f32 %v12975_v18, 1.0  ;;  %v12879_v2 = vadd.f32 %v19804_v55, %v12846_v61  ;;  %v12759_v53 = vpop.f32.mrb[155].mxu0  ;;  %v12799_v58 = vpop.f32.mrb[154].mxu1  ;;  %v12516_v17 = vld [vmem:[#allocation4 + $0x40] sm:$0xff] }
 0x845   : > { %v13072_v43 = vrot.slane %v12990_v44, 4  ;;  %v12991_v19 = vsel %vm16154_vm10, %v12982_v50, 0.0  ;;  %v12992_v56 = vsel %vm16209_vm5, %v12983_v21, 0.0  ;;  %v12880_v0 = vadd.f32 %v19804_v55, %v12847_v52  ;;  %v12800_v23 = vpop.f32.mrb[155].mxu1 }
 0x846   : > { %v13073_v62 = vrot.slane %v12991_v19, 4  ;;  %v13074_v25 = vrot.slane %v12992_v56, 4  ;;  %v12993_v27 = vsel %vm16233_vm1, %v12984_v47, 0.0  ;;  %v12967_v38 = vadd.f32 %v12950_v22, %v12879_v2 }
 0x847   : > { %v13090_v33 = vmul.f32 %v13072_v43, %v12990_v44  ;;  %v13075_v60 = vrot.slane %v12993_v27, 4  ;;  %v12968_v6 = vadd.f32 %v12951_v36, %v12880_v0  ;;  %v12881_v29 = vadd.f32 %v19804_v55, %v12848_v42 }
 0x848   : > { %v13091_v14 = vmul.f32 %v13073_v62, %v12991_v19  ;;  %v13092_v26 = vmul.f32 %v13074_v25, %v12992_v56  ;;  %v12976_v51 = vmax.f32 %v12967_v38, 0.0  ;;  %v12882_v63 = vadd.f32 %v19804_v55, %v12849_v16 }
 0x849   : > { %v13274_v9 = vsub.f32 1.0, %v13090_v33  ;;  %v13093_v34 = vmul.f32 %v13075_v60, %v12993_v27  ;;  %v12836_v37 = vpop.f32.mrb[156].mxu0  ;;  %v12977_v8 = vmax.f32 %v12968_v6, 0.0  ;;  %v12969_v20 = vadd.f32 %v12952_v3, %v12881_v29 }
 0x84a   : > { %vm13176_vm5 = vcmask 277504   ;;  %v13199_v5 = vcombine.low %v13090_v33, %v13091_v14  ;;  %v13275_v10 = vsub.f32 1.0, %v13091_v14  ;;  %v13276_v4 = vsub.f32 1.0, %v13092_v26  ;;  %v14401_v61 = vpop.f32.mrb[157].mxu0 }
 0x84b   : > { %v12985_v22 = vmin.f32 %v12976_v51, 1.0  ;;  %v13283_v36 = vmul.f32 %v13274_v9, %v19734_v31  ;;  %v13200_v45 = vcombine.low %v13092_v26, %v13093_v34  ;;  %v13277_v30 = vsub.f32 1.0, %v13093_v34  ;;  %v12839_v42 = vpop.f32.mrb[158].mxu0 }
 0x84c   : > { %v12850_v18 = vadd.f32 %v12836_v37, %v12516_v17  ;;  %v19841_v50 = vrot.slane %v13199_v5, %v19767_v48  ;;  %v13284_v52 = vmul.f32 %v13275_v10, %v19738_v11  ;;  %v13437_v13 = vcombine.low %v13274_v9, %v13275_v10  ;;  %v14402_v21 = vpop.f32.mrb[159].mxu0 }
 0x84d   : > { %v13285_v3 = vmul.f32 %v13276_v4, %v19742_v40  ;;  %v19846_v41 = vrot.slane %v13200_v45, %v19767_v48  ;;  %v13286_v44 = vmul.f32 %v13277_v30, %v19746_v46  ;;  %v13438_v16 = vcombine.low %v13276_v4, %v13277_v30  ;;  %v13172_v23 = vpop.permute.xlu0 %13171 }
 0x84e   : > { %v12994_v31 = vsel %vm16290_vm7, %v12985_v22, 0.0  ;;  %vm20484_vm15 = vcmask 523264   ;;  %v13301_v47 = vcombine.low %v13283_v36, %v13284_v52  ;;  %v19853_v2 = vrot.slane %v13437_v13, %v19767_v48 }
 0x84f   : > { %12859 = vst.msk [vmem:[#allocation4 + $0x40] sm:$0xff] %vm20484_vm15, %v12850_v18  ;;  %v13076_v11 = vrot.slane %v12994_v31, 4  ;;  %v12986_v53 = vmin.f32 %v12977_v8, 1.0  ;;  %v13302_v58 = vcombine.low %v13285_v3, %v13286_v44  ;;  %v19856_v40 = vrot.slane %v13438_v16, %v19767_v48 }
 0x850   : > { %v12978_v43 = vmax.f32 %v12969_v20, 0.0  ;;  %v12970_v19 = vadd.f32 %v19824_v12, %v12882_v63  ;;  %v13231_v56 = vcombine.low %v19841_v50, %v19846_v41  ;;  %v19864_v0 = vrot.slane %v13301_v47, %v19767_v48 }
 0x851   : > { %v13094_v46 = vmul.f32 %v13076_v11, %v12994_v31  ;;  %v12995_v59 = vsel %vm16328_vm8, %v12986_v53, 0.0  ;;  %v19867_v38 = vrot.slane %v13302_v58, %v19767_v48  ;;  %v13469_v12 = vcombine.high %v19853_v2, %v19856_v40  ;;  %v13174_v7 = vpop.permute.xlu1 %13173 }
 0x852   : > { %v13077_v62 = vrot.slane %v12995_v59, 4  ;;  %v12987_v25 = vmin.f32 %v12978_v43, 1.0  ;;  %v12979_v27 = vmax.f32 %v12970_v19, 0.0  ;;  %vm19872_vm10 = vcmp.ge.s32.totalorder %v20429_v1, 34 }
 0x853   : > { %v13278_v33 = vsub.f32 1.0, %v13094_v46  ;;  %v13175_v60 = vrot.slane %v13172_v23, 7  ;;  %v13333_v26 = vcombine.low %v19864_v0, %v19867_v38  ;;  %vm19888_vm1 = vcmp.lt.s32.totalorder %v20429_v1, 98 }
 0x854   : > { %v13095_v6 = vmul.f32 %v13077_v62, %v12995_v59  ;;  %v12996_v29 = vsel %vm16352_vm9, %v12987_v25, 0.0  ;;  %v12988_v14 = vmin.f32 %v12979_v27, 1.0  ;;  %v13557_v42 = vcombine.low %v19853_v2, %v19856_v40 }
 0x855   : > { %v13287_v51 = vmul.f32 %v13278_v33, %v19752_v49  ;;  %v13078_v63 = vrot.slane %v12996_v29, 4  ;;  %v13177_v34 = vsel %vm13176_vm5, %v13175_v60, %v13172_v23  ;;  %v13391_v49 = vcombine.high %v19841_v50, %v19846_v41 }
 0x856   : > { %v12868_v9 = vld [vmem:[#allocation4 + $0x40] sm:$0xff]  ;;  %v13201_v37 = vcombine.low %v13094_v46, %v13095_v6  ;;  %v13279_v8 = vsub.f32 1.0, %v13095_v6  ;;  %v12997_v5 = vsel %vm16375_vm13, %v12988_v14, 0.0  ;;  %13184 = vst.msk [vmem:[#allocation5] sm:$0xff] %vm19872_vm10, %v13177_v34  ;;  %v13178_v45 = vsel %vm13176_vm5, %v13175_v60, %v13174_v7 }
 0x857   : > { %v12883_v20 = vadd.f32 %v19804_v55, %v12868_v9  ;;  %v13096_v54 = vmul.f32 %v13078_v63, %v12996_v29  ;;  %v13079_v10 = vrot.slane %v12997_v5, 4  ;;  %13187 = vst.msk [vmem:[#allocation5 + $0x8] sm:$0x1] %vm19888_vm1, %v13178_v45  ;;  %v19910_v11 = vrot.slane %v13231_v56, %v19767_v48 }
 0x858   : > { %v13288_v22 = vmul.f32 %v13279_v8, %v19760_v57  ;;  %v13439_v17 = vcombine.low %v13278_v33, %v13279_v8  ;;  %v19914_v58 = vrot.slane %v13469_v12, %v19767_v48  ;;  %v19921_v46 = vrot.slane %v13391_v49, %v19767_v48 }
 0x859   : > { %v12971_v55 = vadd.f32 %v19817_v35, %v12883_v20  ;;  %v13280_v61 = vsub.f32 1.0, %v13096_v54  ;;  %v13097_v36 = vmul.f32 %v13079_v10, %v12997_v5  ;;  %v13223_v35 = vrot.slane %v13201_v37, %v19767_v48 }
 0x85a   : > { %v13303_v30 = vcombine.low %v13287_v51, %v13288_v22  ;;  %v13461_v44 = vrot.slane %v13439_v17, %v19767_v48  ;;  %v19927_v0 = vrot.slane %v13557_v42, %v19767_v48  ;;  %v13341_v29 = vrot.slane %v13333_v26, %v19767_v48 }
 0x85b   : > { %v12980_v18 = vmax.f32 %v12971_v55, 0.0  ;;  %v13289_v50 = vmul.f32 %v13280_v61, %v19764_v24  ;;  %v13202_v52 = vcombine.low %v13096_v54, %v13097_v36  ;;  %v13281_v57 = vsub.f32 1.0, %v13097_v36 }
 0x85c   : > { %v13325_v53 = vrot.slane %v13303_v30, %v19767_v48  ;;  %vm13267_vm7 = vcmask 269312   ;;  %vm13382_vm8 = vcmask 7168   ;;  %vm13526_vm9 = vcmask 15360  }
 0x85d   : > { %v12989_v13 = vmin.f32 %v12980_v18, 1.0  ;;  %v13230_v3 = vrot.slane %v13202_v52, %v19767_v48  ;;  %v13290_v21 = vmul.f32 %v13281_v57, %v19773_v39  ;;  %v13440_v41 = vcombine.low %v13280_v61, %v13281_v57  ;;  %v13188_v22 = vld [vmem:[#allocation5] sm:$0xff] }
 0x85e   : > { %v13189_v61 = vld [vmem:[#allocation5 + $0x8] sm:$0x1]  ;;  %vm20489_vm13 = vcmask 285696   ;;  %vm20494_vm15 = vcmask 490496  }
 0x85f   : > { %v12998_v16 = vsel %vm16464_vm12, %v12989_v13, 0.0  ;;  %v13304_v47 = vcombine.low %v13289_v50, %v13290_v21  ;;  %v13468_v2 = vrot.slane %v13440_v41, %v19767_v48  ;;  %v13232_v24 = vcombine.low %v13223_v35, %v13230_v3  ;;  %vm20490_vm12 = vmmov %vm20489_vm13 }
 0x860   : > { %v13080_v31 = vrot.slane %v12998_v16, 4  ;;  %v13392_v39 = vcombine.high %v13223_v35, %v13230_v3  ;;  %vm20491_vm2 = vmmov %vm20490_vm12 }
 0x861   : > { %v19917_v43 = vrot.slane %v13232_v24, %v19767_v48  ;;  %v13332_v15 = vrot.slane %v13304_v47, %v19767_v48  ;;  %v13470_v19 = vcombine.high %v13461_v44, %v13468_v2  ;;  %v13558_v56 = vcombine.low %v13461_v44, %v13468_v2  ;;  %vm20492_vm6 = vmmov %vm20491_vm2 }
 0x862   : > { %v13098_v40 = vmul.f32 %v13080_v31, %v12998_v16  ;;  %v19924_v59 = vrot.slane %v13392_v39, %v19767_v48 }
 0x863   : > { %v13247_v25 = vcombine.low %v19910_v11, %v19917_v43  ;;  %v13334_v27 = vcombine.low %v13325_v53, %v13332_v15  ;;  %v19933_v38 = vrot.slane %v13470_v19, %v19767_v48  ;;  %v13572_v12 = vrot.slane %v13558_v56, %v19767_v48 }
 0x864   : > { %v13254_v23 = vrot.slane %v13098_v40, %v19767_v48  ;;  %v13282_v62 = vsub.f32 1.0, %v13098_v40  ;;  %v13407_v33 = vcombine.low %v19921_v46, %v19924_v59  ;;  %v13551_v60 = vcombine.high %v19910_v11, %v19917_v43 }
 0x865   : > { %13262 = vrot.lane.b32.xlu0 %v13247_v25, %s14527_s30  ;;  %v13348_v14 = vrot.slane %v13334_v27, %v19767_v48  ;;  %v13485_v63 = vcombine.low %v19914_v58, %v19933_v38  ;;  %v13573_v9 = vcombine.high %v19927_v0, %v13572_v12  ;;  %v13615_v34 = vcombine.high %v19921_v46, %v19924_v59 }
 0x866   : > { %v13291_v6 = vmul.f32 %v13282_v62, %v19789_v32  ;;  %v19944_v51 = vrot.slane %v13254_v23, %v19767_v48  ;;  %v13492_v37 = vrot.slane %v13282_v62, %v19767_v48  ;;  %v13632_v26 = vcombine.high %v19914_v58, %v19933_v38 }
 0x867   : > { %v13349_v32 = vcombine.low %v13341_v29, %v13348_v14  ;;  %v13408_v21 = vcombine.high %v13254_v23, %v13254_v23 }
 0x868   : > { %v13356_v8 = vrot.slane %v13291_v6, %v19767_v48  ;;  %v13493_v5 = vcombine.high %v13492_v37, %v13492_v37  ;;  %v13500_v24 = vrot.slane %v13492_v37, %v19767_v48 }
 0x869   : > { %13364 = vrot.lane.b32.xlu1 %v13349_v32, %s14527_s30  ;;  %13264 = vrot.lane.b32.xlu0 %v19944_v51, %s14527_s30  ;;  %v19968_v31 = vrot.slane %v13408_v21, %v19767_v48 }
 0x86a   : > { %v13363_v20 = vrot.slane %v13356_v8, %v19767_v48  ;;  %v19958_v54 = vrot.slane %v13493_v5, %v19767_v48  ;;  %v13574_v53 = vcombine.high %v13500_v24, %v13500_v24 }
 0x86b   : > { %v13616_v24 = vcombine.high %v19968_v31, %v19968_v31 }
 0x86c   : > { %v13633_v21 = vcombine.high %v19958_v54, %v19958_v54 }
 0x86d   : > { %13366 = vrot.lane.b32.xlu1 %v13363_v20, %s14527_s30  ;;  %13508 = vrot.lane.b32.xlu0 %v13485_v63, %s14527_s30 }
 0x871   : > { %13510 = vrot.lane.b32.xlu1 %v19958_v54, %s14527_s30 }
 0x8d7   : > { %v13263_v10 = vpop.permute.xlu0 %13262 }
 0x8d8   : > { %v13266_v49 = vrot.slane %v13263_v10, 7 }
 0x8da   : > { %v13268_v17 = vsel %vm13267_vm7, %v13266_v49, %v13263_v10 }
 0x8db   : > { %v13265_v55 = vpop.permute.xlu0 %13264  ;;  %v13365_v7 = vpop.permute.xlu1 %13364  ;;  %v13272_v30 = vmul.f32 %v13268_v17, %v13188_v22 }
 0x8dc   : > { %v13269_v36 = vsel %vm13267_vm7, %v13266_v49, %v13265_v55  ;;  %v13368_v45 = vrot.slane %v13365_v7, 7 }
 0x8dd   : > { %v13273_v42 = vmul.f32 %v13269_v36, %v13189_v61 }
 0x8de   : > { %v13369_v18 = vsel %vm13267_vm7, %v13368_v45, %v13365_v7 }
 0x8df   : > { %v13373_v50 = vadd.f32 %v13369_v18, %v13272_v30  ;;  %v13509_v52 = vpop.permute.xlu0 %13508  ;;  %v13367_v57 = vpop.permute.xlu1 %13366 }
 0x8e0   : > { %v13512_v13 = vrot.slane %v13509_v52, 7  ;;  %v13370_v35 = vsel %vm13267_vm7, %v13368_v45, %v13367_v57 }
 0x8e1   : > { %v13374_v3 = vadd.f32 %v13370_v35, %v13273_v42  ;;  %13377 = vrot.lane.b32.xlu0 %v13373_v50, %s14528_s9 }
 0x8e2   : > { %v13513_v41 = vsel %vm13267_vm7, %v13512_v13, %v13509_v52  ;;  %v13552_v52 = vcombine.high %v19944_v51, %v19944_v51 }
 0x8e3   : > { %13379 = vrot.lane.b32.xlu1 %v13374_v3, %s14528_s9  ;;  %v13511_v44 = vpop.permute.xlu1 %13510  ;;  %v13517_v16 = vmul.f32 %v13513_v41, %v13373_v50 }
 0x8e4   : > { %v13514_v47 = vsel %vm13267_vm7, %v13512_v13, %v13511_v44 }
 0x8e5   : > { %13416 = vrot.lane.b32.xlu0 %v13407_v33, %s14523_s12  ;;  %v13518_v2 = vmul.f32 %v13514_v47, %v13374_v3 }
 0x8e7   : > { %13418 = vrot.lane.b32.xlu1 %v19968_v31, %s14523_s12 }
 0x8e9   : > { %13521 = vrot.lane.b32.xlu0 %v13517_v16, %s14529_s13 }
 0x8eb   : > { %13523 = vrot.lane.b32.xlu1 %v13518_v2, %s14529_s13 }
 0x8ed   : > { %13575 = vrot.lane.b32.xlu0 %v13573_v9, %s14523_s12 }
 0x8ef   : > { %13577 = vrot.lane.b32.xlu1 %v13574_v53, %s14523_s12 }
 0x953   : > { %v13378_v39 = vpop.permute.xlu0 %13377 }
 0x954   : > { %v13381_v40 = vrot.slane %v13378_v39, 7 }
 0x955   : > { %v13380_v15 = vpop.permute.xlu1 %13379 }
 0x956   : > { %v13383_v19 = vsel %vm13382_vm8, %v13381_v40, %v13378_v39  ;;  %v13384_v56 = vsel %vm13382_vm8, %v13381_v40, %v13380_v15 }
 0x957   : > { %13387 = vst.msk [vmem:[#allocation5] sm:$0xff] %vm19872_vm10, %v13383_v19  ;;  %v13417_v0 = vpop.permute.xlu0 %13416 }
 0x958   : > { %13388 = vst.msk [vmem:[#allocation5 + $0x8] sm:$0x1] %vm19888_vm1, %v13384_v56  ;;  %v13420_v23 = vrot.slane %v13417_v0, 7 }
 0x959   : > { %v13419_v48 = vpop.permute.xlu1 %13418 }
 0x95a   : > { %v13422_v12 = vsel %vm20489_vm13, %v13420_v23, %v13417_v0  ;;  %v13423_v29 = vsel %vm20490_vm12, %v13420_v23, %v13419_v48 }
 0x95b   : > { %v13522_v62 = vpop.permute.xlu0 %13521 }
 0x95c   : > { %v13525_v25 = vrot.slane %v13522_v62, 7 }
 0x95d   : > { %v13524_v27 = vpop.permute.xlu1 %13523 }
 0x95e   : > { %v13389_v33 = vld [vmem:[#allocation5] sm:$0xff]  ;;  %v13527_v37 = vsel %vm13526_vm9, %v13525_v25, %v13522_v62  ;;  %v13528_v32 = vsel %vm13526_vm9, %v13525_v25, %v13524_v27 }
 0x95f   : > { %v13390_v6 = vld [vmem:[#allocation5 + $0x8] sm:$0x1]  ;;  %v13426_v14 = vmul.f32 %v13422_v12, %v13389_v33  ;;  %v13576_v9 = vpop.permute.xlu0 %13575 }
 0x960   : > { %v13427_v63 = vmul.f32 %v13423_v29, %v13390_v6  ;;  %v13579_v8 = vrot.slane %v13576_v9, 7 }
 0x961   : > { %v13531_v20 = vadd.f32 %v13527_v37, %v13426_v14  ;;  %v13578_v10 = vpop.permute.xlu1 %13577 }
 0x962   : > { %v13532_v5 = vadd.f32 %v13528_v32, %v13427_v63  ;;  %v13580_v49 = vsel %vm20491_vm2, %v13579_v8, %v13576_v9  ;;  %v13581_v22 = vsel %vm20492_vm6, %v13579_v8, %v13578_v10 }
 0x963   : > { %13535 = vrot.lane.b32.xlu0 %v13531_v20, %s14514_s11  ;;  %v13584_v17 = vmul.f32 %v13580_v49, %v13531_v20 }
 0x964   : > { %13537 = vrot.lane.b32.xlu1 %v13532_v5, %s14514_s11  ;;  %v13585_v55 = vmul.f32 %v13581_v22, %v13532_v5  ;;  %s14530_s11 = smov 68  }
 0x967   : > { %13588 = vrot.lane.b32.xlu0 %v13584_v17, %s14517_s18 }
 0x968   : > { %13590 = vrot.lane.b32.xlu1 %v13585_v55, %s14517_s18 }
 0x9d5   : > { %v13536_v7 = vpop.permute.xlu0 %13535 }
 0x9d6   : > { %v13538_v61 = vpop.permute.xlu1 %13537  ;;  %v13539_v36 = vrot.slane %v13536_v7, 1 }
 0x9d7   : > { %v13540_v45 = vrot.slane %v13538_v61, 1  ;;  %13548 = vst.msk [vmem:[#allocation5 + $0x8] sm:$0x1] %vm19888_vm1, %v13538_v61 }
 0x9d9   : > { %v13542_v30 = vsel %vm13541_vm0, %v13539_v36, %v13540_v45  ;;  %v13589_v50 = vpop.permute.xlu0 %13588 }
 0x9da   : > { %v13544_v18 = vsel %vm20493_vm14, %v13536_v7, %v13542_v30  ;;  %v13591_v42 = vpop.permute.xlu1 %13590  ;;  %v13592_v35 = vrot.slane %v13589_v50, 1 }
 0x9db   : > { %13547 = vst.msk [vmem:[#allocation5] sm:$0xff] %vm19872_vm10, %v13544_v18  ;;  %v13593_v57 = vrot.slane %v13591_v42, 1 }
 0x9dd   : > { %v13594_v41 = vsel %vm13541_vm0, %v13592_v35, %v13593_v57 }
 0x9de   : > { %v13550_v13 = vld [vmem:[#allocation5 + $0x8] sm:$0x1]  ;;  %v13595_v51 = vsel %vm20481_vm3, %v13589_v50, %v13594_v41 }
 0x9df   : > { %v13556_v3 = vmul.f32 %v13552_v52, %v13550_v13 }
 0x9e1   : > { %v13599_v44 = vadd.f32 %v13591_v42, %v13556_v3 }
 0x9e2   : > { %v13549_v16 = vld [vmem:[#allocation5] sm:$0xff] }
 0x9e3   : > { %v13637_v47 = vmul.f32 %v13633_v21, %v13599_v44  ;;  %13604 = vrot.lane.b32.xlu1 %v13599_v44, %s14526_s26  ;;  %v13555_v2 = vmul.f32 %v13551_v60, %v13549_v16 }
 0x9e5   : > { %v13598_v53 = vadd.f32 %v13595_v51, %v13555_v2 }
 0x9e7   : > { %13619 = vrot.lane.b32.xlu1 %v13616_v24, %s14530_s11  ;;  %13602 = vrot.lane.b32.xlu0 %v13598_v53, %s14526_s26  ;;  %v13636_v54 = vmul.f32 %v13632_v26, %v13598_v53 }
 0x9eb   : > { %13642 = vrot.lane.b32.xlu1 %v13637_v47, %s14530_s11  ;;  %13617 = vrot.lane.b32.xlu0 %v13615_v34, %s14530_s11 }
 0x9ef   : > { %13640 = vrot.lane.b32.xlu0 %v13636_v54, %s14530_s11 }
 0xa55   : > { %v13605_v11 = vpop.permute.xlu1 %13604 }
 0xa59   : > { %v13620_v43 = vpop.permute.xlu1 %13619  ;;  %v13603_v60 = vpop.permute.xlu0 %13602 }
 0xa5a   : > { %v13606_v39 = vrot.slane %v13603_v60, 7  ;;  %v13622_v46 = vrot.slane %v13620_v43, 7 }
 0xa5c   : > { %v13607_v31 = vsel %vm13176_vm5, %v13606_v39, %v13603_v60  ;;  %v13608_v40 = vsel %vm13176_vm5, %v13606_v39, %v13605_v11  ;;  %vm13668_vm5 = vcmp.lt.s32.totalorder %v20429_v1, 64 }
 0xa5d   : > { %13611 = vst.msk [vmem:[#allocation5] sm:$0xff] %vm19872_vm10, %v13607_v31  ;;  %v13618_v58 = vpop.permute.xlu0 %13617  ;;  %v13643_v59 = vpop.permute.xlu1 %13642  ;;  %vm20495_vm10 = vmmov %vm20494_vm15 }
 0xa5e   : > { %13612 = vst.msk [vmem:[#allocation5 + $0x8] sm:$0x1] %vm19888_vm1, %v13608_v40  ;;  %v13621_v38 = vrot.slane %v13618_v58, 7  ;;  %v13645_v15 = vrot.slane %v13643_v59, 7 }
 0xa60   : > { %v13626_v34 = vsel %vm13625_vm11, %v13621_v38, %v13622_v46  ;;  %v13624_v0 = vsel %vm13623_vm4, %v13621_v38, %v13618_v58 }
 0xa61   : > { %v13641_v26 = vpop.permute.xlu0 %13640  ;;  %v13627_v48 = vsel %vm13623_vm4, %v13626_v34, %v13620_v43 }
 0xa62   : > { %v13644_v19 = vrot.slane %v13641_v26, 7 }
 0xa64   : > { %v13613_v56 = vld [vmem:[#allocation5] sm:$0xff]  ;;  %v13647_v23 = vsel %vm13625_vm11, %v13644_v19, %v13645_v15  ;;  %v13646_v27 = vsel %vm13623_vm4, %v13644_v19, %v13641_v26 }
 0xa65   : > { %v13614_v28 = vld [vmem:[#allocation5 + $0x8] sm:$0x3]  ;;  %v13630_v62 = vmul.f32 %v13624_v0, %v13613_v56  ;;  %v13648_v4 = vsel %vm13623_vm4, %v13647_v23, %v13643_v59 }
 0xa66   : > { %v13631_v25 = vmul.f32 %v13627_v48, %v13614_v28 }
 0xa67   : > { %v13651_v33 = vadd.f32 %v13646_v27, %v13630_v62 }
 0xa68   : > { %v13652_v12 = vadd.f32 %v13648_v4, %v13631_v25 }
 0xa69   : > { %13655 = vrot.lane.b32.xlu0 %v13651_v33, %s14519_s20 }
 0xa6a   : > { %13657 = vrot.lane.b32.xlu1 %v13652_v12, %s14519_s20 }
 0xadb   : > { %v13656_v29 = vpop.permute.xlu0 %13655 }
 0xadc   : > { %v13658_v6 = vpop.permute.xlu1 %13657  ;;  %v13659_v63 = vrot.slane %v13656_v29, 1 }
 0xadd   : > { %v13660_v14 = vrot.slane %v13658_v6, 1 }
 0xadf   : > { %v13664_v9 = vsel %vm20494_vm15, %v13658_v6, %v13660_v14  ;;  %v13661_v37 = vsel %vm13541_vm0, %v13659_v63, %v13660_v14 }
 0xae0   : > { %13670 = vst.msk [vmem:[%s320_s14 + $0x8] sm:$0x1] %vm13668_vm5, %v13664_v9  ;;  %v13663_v32 = vsel %vm20495_vm10, %v13656_v29, %v13661_v37 }
 0xae1   : > { %13667 = vst [vmem:[%s320_s14] sm:$0xff] %v13663_v32 }
 0xae2 PF: > { %s18_s27 = sadd.s32 1, %s14511_s27  }
 0xae3   : > { %p15_p4 = scmp.ge.s32.totalorder %s18_s27, 4  }
 0xae5   :  { %17 = sbr.rel (!%p15_p4) target bundleno = 1 (0x1), region = 110 }

</bundles_post_ra>
